<compile_context>
chip_gen: v6e
topology: v6e:2x2x1
jax: 0.10.0
libtpu: 0.0.40
codegen_flags: <defaults>
</compile_context>

<pallas_src>
import math

import jax
import jax.numpy as jnp
from jax.experimental import pallas as pl
from jax.experimental.pallas import tpu as pltpu

# Conv geometry for the Atari head: 84x84 --conv1(8,s4)--> 20x20 --conv2(3,s2)--> 9x9.
OH1 = 20            # conv1 output spatial size
OH2 = 9             # conv2 output spatial size
FATROWS = 358       # fat conv2 accumulator rows: r = oh2*20 + ow2 (stride-1 layout)


# ---------------------------------------------------------------------------
# Fused Pallas kernel (one grid step = one example)
# ---------------------------------------------------------------------------
def _fused_kernel(p1_ref, w1_ref, b1_ref, w2_ref, b2_ref, wl_ref, bl_ref,
                  wpv_ref, bpv_ref, probs_ref, logp_ref, value_ref,
                  c1_s, c2_s):
    A = probs_ref.shape[-1]

    # ---- conv1: (400, C*64) @ (C*64, 16) + b, ReLU  (row = h*20 + w) ----------
    c1 = jnp.dot(p1_ref[0], w1_ref[...], preferred_element_type=jnp.float32)
    c1_s[...] = jnp.maximum(c1 + b1_ref[...], 0.0)                  # VMEM-resident

    # ---- conv2 (3x3, stride 2) as 9 shifted-slab matmuls ----------------------
    # c2_s[r] accumulates the stride-1 conv at fat position r = oh2*20 + ow2;
    # the true stride-2 outputs sit at r = 40*oh + 2*ow and are the only rows
    # ever read below (junk rows are computed but never used).
    c2_s[...] = jnp.zeros_like(c2_s)
    for kh in range(3):
        for kw in range(3):
            lhs = c1_s[pl.ds(kh * OH1 + kw, FATROWS), :].astype(jnp.bfloat16)
            c2_s[...] += jnp.dot(lhs, w2_ref[kh * 3 + kw],
                                 preferred_element_type=jnp.float32)
    c2_s[...] = jnp.maximum(c2_s[...] + b2_ref[...], 0.0)

    # ---- linear1 over the true (decimated) conv2 outputs ----------------------
    # PyTorch's (C, H, W) flatten order is pre-folded into wl_ref's layout:
    # wl_ref[oh*9 + ow] is the (32, 256) column block for spatial tap (oh, ow).
    h = bl_ref[...]                                                  # (1, 256) f32
    for oh in range(OH2):
        for ow in range(OH2):
            r = 2 * oh * OH1 + 2 * ow
            lhs = c2_s[pl.ds(r, 1), :].astype(jnp.bfloat16)          # (1, 32)
            h = h + jnp.dot(lhs, wl_ref[oh * OH2 + ow],
                            preferred_element_type=jnp.float32)

    # ---- noisy policy + value heads (concatenated) and softmax/log_softmax ----
    lv = jnp.dot(h.astype(jnp.bfloat16), wpv_ref[...],
                 preferred_element_type=jnp.float32) + bpv_ref[...]  # (1, A+1)
    logits = lv[:, :A]
    value = lv[:, A:A + 1]

    m = jnp.max(logits, axis=1, keepdims=True)
    shifted = logits - m
    e = jnp.exp(shifted)
    s = jnp.sum(e, axis=1, keepdims=True)
    probs = e * pl.reciprocal(s, approx=True)
    logp = shifted - jnp.log(s)

    probs_ref[...] = probs.reshape(probs_ref.shape)
    logp_ref[...] = logp.reshape(logp_ref.shape)
    value_ref[...] = value.reshape(value_ref.shape)


# ---------------------------------------------------------------------------
# Wrapper glue: conv1 im2col (XLA side) + one-time weight layout folding
# ---------------------------------------------------------------------------
def _im2col_conv1(x):
    """x: (B, C, 84, 84) -> (B, 400, C*64); feature order (c, kh, kw) matches OIHW."""
    B, C, H, W = x.shape
    k, stride = 8, 4
    OH = (H - k) // stride + 1
    OW = (W - k) // stride + 1
    cols = []
    for kh in range(k):
        for kw in range(k):
            cols.append(x[:, :, kh:kh + stride * OH:stride,
                               kw:kw + stride * OW:stride])
    p = jnp.stack(cols, axis=2)                  # (B, C, 64, OH, OW)
    p = p.reshape(B, C * k * k, OH, OW)          # feature = c*64 + kh*8 + kw
    p = p.transpose(0, 2, 3, 1).reshape(B, OH * OW, C * k * k)
    return p


def actor_critic_noise_forward(params, x):
    B, C, H, W = x.shape
    assert H == 84 and W == 84, "ActorCriticNoise requires 84x84 inputs (Linear(32*9*9))"
    A = params["w_pol"].shape[0]
    ckk = C * 64

    # conv1 patches (only XLA-side layout op; everything downstream is fused).
    p1 = _im2col_conv1(x.astype(jnp.bfloat16))                        # (B, 400, ckk)

    # --- weight prep: fold all layout (channels-last, CHW flatten, stride-2
    #     decimation, head concat) into the weights, once ---
    w1 = params["w_conv1"].reshape(16, ckk).T.astype(jnp.bfloat16)    # (ckk, 16)
    b1 = params["b_conv1"].reshape(1, 16).astype(jnp.float32)

    w2 = jnp.transpose(params["w_conv2"], (2, 3, 1, 0))               # (3,3,16,32)
    w2 = w2.reshape(9, 16, 32).astype(jnp.bfloat16)
    b2 = params["b_conv2"].reshape(1, 32).astype(jnp.float32)

    wl = params["w_lin1"].reshape(256, 32, OH2, OH2)                  # (out, c, oh, ow)
    wl = jnp.transpose(wl, (2, 3, 1, 0)).reshape(OH2 * OH2, 32, 256)  # (81, 32, 256)
    wl = wl.astype(jnp.bfloat16)
    bl = params["b_lin1"].reshape(1, 256).astype(jnp.float32)

    # NoisyLinear effective weights (weight + sigma * epsilon); policy & value concat.
    wp = params["w_pol"] + params["sw_pol"] * params["ew_pol"]
    bp = params["b_pol"] + params["sb_pol"] * params["eb_pol"]
    wv = params["w_val"] + params["sw_val"] * params["ew_val"]
    bv = params["b_val"] + params["sb_val"] * params["eb_val"]
    wpv = jnp.concatenate([wp, wv], axis=0).T.astype(jnp.bfloat16)    # (256, A+1)
    bpv = jnp.concatenate([bp, bv], axis=0).reshape(1, A + 1).astype(jnp.float32)

    probs, logp, value = pl.pallas_call(
        _fused_kernel,
        grid=(B,),
        in_specs=[
            pl.BlockSpec((1, OH1 * OH1, ckk), lambda b: (b, 0, 0)),   # patches
            pl.BlockSpec((ckk, 16), lambda b: (0, 0)),                # w1
            pl.BlockSpec((1, 16), lambda b: (0, 0)),                  # b1
            pl.BlockSpec((9, 16, 32), lambda b: (0, 0, 0)),           # w2
            pl.BlockSpec((1, 32), lambda b: (0, 0)),                  # b2
            pl.BlockSpec((OH2 * OH2, 32, 256), lambda b: (0, 0, 0)),  # w_lin1 (regrouped)
            pl.BlockSpec((1, 256), lambda b: (0, 0)),                 # b_lin1
            pl.BlockSpec((256, A + 1), lambda b: (0, 0)),             # policy|value weights
            pl.BlockSpec((1, A + 1), lambda b: (0, 0)),               # policy|value biases
        ],
        out_specs=[
            pl.BlockSpec((1, 1, A), lambda b: (b, 0, 0)),
            pl.BlockSpec((1, 1, A), lambda b: (b, 0, 0)),
            pl.BlockSpec((1, 1, 1), lambda b: (b, 0, 0)),
        ],
        out_shape=[
            jax.ShapeDtypeStruct((B, 1, A), jnp.float32),
            jax.ShapeDtypeStruct((B, 1, A), jnp.float32),
            jax.ShapeDtypeStruct((B, 1, 1), jnp.float32),
        ],
        scratch_shapes=[
            pltpu.VMEM((OH1 * OH1, 16), jnp.float32),   # conv1 output, VMEM-resident
            pltpu.VMEM((FATROWS, 32), jnp.float32),     # conv2 "fat" accumulator
        ],
        compiler_params=pltpu.CompilerParams(
            dimension_semantics=("parallel",),
            vmem_limit_bytes=32 * 1024 * 1024,
        ),
    )(p1, w1, b1, w2, b2, wl, bl, wpv, bpv)

    return probs[:, 0, :], logp[:, 0, :], value[:, 0, :]


# ---------------------------------------------------------------------------
# Parameters (deterministic, PyTorch-style shapes)
# ---------------------------------------------------------------------------
def init_params(key, stack_size, num_actions, sigma_init=0.017):
    ks = jax.random.split(key, 14)

    def unif(k, shape, bound):
        return jax.random.uniform(k, shape, jnp.float32, -bound, bound)

    f1 = stack_size * 8 * 8
    f2 = 16 * 3 * 3
    f3 = 32 * 9 * 9
    noisy_b = math.sqrt(3.0 / 256)
    return {
        "w_conv1": unif(ks[0], (16, stack_size, 8, 8), 1.0 / math.sqrt(f1)),
        "b_conv1": unif(ks[1], (16,), 1.0 / math.sqrt(f1)),
        "w_conv2": unif(ks[2], (32, 16, 3, 3), 1.0 / math.sqrt(f2)),
        "b_conv2": unif(ks[3], (32,), 1.0 / math.sqrt(f2)),
        "w_lin1": unif(ks[4], (256, f3), 1.0 / math.sqrt(f3)),
        "b_lin1": unif(ks[5], (256,), 1.0 / math.sqrt(f3)),
        # NoisyLinear policy
        "w_pol": unif(ks[6], (num_actions, 256), noisy_b),
        "b_pol": unif(ks[7], (num_actions,), noisy_b),
        "sw_pol": jnp.full((num_actions, 256), sigma_init, jnp.float32),
        "sb_pol": jnp.full((num_actions,), sigma_init, jnp.float32),
        "ew_pol": jax.random.normal(ks[8], (num_actions, 256), jnp.float32),
        "eb_pol": jax.random.normal(ks[9], (num_actions,), jnp.float32),
        # NoisyLinear value
        "w_val": unif(ks[10], (1, 256), noisy_b),
        "b_val": unif(ks[11], (1,), noisy_b),
        "sw_val": jnp.full((1, 256), sigma_init, jnp.float32),
        "sb_val": jnp.full((1,), sigma_init, jnp.float32),
        "ew_val": jax.random.normal(ks[12], (1, 256), jnp.float32),
        "eb_val": jax.random.normal(ks[13], (1,), jnp.float32),
    }


# ---------------------------------------------------------------------------
# Pure-JAX reference (for correctness check)
# ---------------------------------------------------------------------------
def reference_forward(params, x):
    dn = ("NCHW", "OIHW", "NCHW")
    c1 = jax.lax.conv_general_dilated(x, params["w_conv1"], (4, 4), "VALID",
                                      dimension_numbers=dn)
    c1 = jax.nn.relu(c1 + params["b_conv1"][None, :, None, None])
    c2 = jax.lax.conv_general_dilated(c1, params["w_conv2"], (2, 2), "VALID",
                                      dimension_numbers=dn)
    c2 = jax.nn.relu(c2 + params["b_conv2"][None, :, None, None])
    flat = c2.reshape(x.shape[0], -1)
    h = jnp.dot(flat, params["w_lin1"].T) + params["b_lin1"]
    wp = params["w_pol"] + params["sw_pol"] * params["ew_pol"]
    bp = params["b_pol"] + params["sb_pol"] * params["eb_pol"]
    wv = params["w_val"] + params["sw_val"] * params["ew_val"]
    bv = params["b_val"] + params["sb_val"] * params["eb_val"]
    logits = jnp.dot(h, wp.T) + bp
    v = jnp.dot(h, wv.T) + bv
    return (jax.nn.softmax(logits, axis=1),
            jax.nn.log_softmax(logits, axis=1),
            v)


if __name__ == "__main__":
    # config: stack_size=4, sigma_init=0.017; num_of_actions=6
    # input spatial must be 84x84 so the conv stack yields 9x9 (Linear(32*9*9, 256)).
    B, STACK, HW, ACTIONS = 2, 4, 84, 6

    key = jax.random.PRNGKey(0)
    k_param, k_x = jax.random.split(key)
    params = init_params(k_param, STACK, ACTIONS)
    x = jax.random.uniform(k_x, (B, STACK, HW, HW), jnp.float32)

    fwd = jax.jit(actor_critic_noise_forward)
    probs, log_probs, value = jax.block_until_ready(fwd(params, x))

    # sanity + reference check (kernel runs bf16 on the MXU -> loose tolerances)
    r_probs, r_logp, r_value = jax.block_until_ready(reference_forward(params, x))
    assert probs.shape == (B, ACTIONS) and log_probs.shape == (B, ACTIONS)
    assert value.shape == (B, 1)
    assert bool(jnp.all(jnp.abs(jnp.sum(probs, axis=1) - 1.0) < 2e-2))
    assert bool(jnp.allclose(probs, r_probs, rtol=5e-2, atol=2e-2))
    assert bool(jnp.allclose(log_probs, r_logp, rtol=5e-2, atol=2e-2))
    assert bool(jnp.allclose(value, r_value, rtol=5e-2, atol=2e-2))

    print("KERNEL_OK")
</pallas_src>

<mosaic_0001>
module attributes {stable_mosaic.version = 11 : i64} {
  func.func @_fused_kernel(%arg0: i32, %arg1: memref<1x400x256xbf16, #tpu.memory_space<vmem>>, %arg2: memref<256x16xbf16, #tpu.memory_space<vmem>>, %arg3: memref<1x16xf32, #tpu.memory_space<vmem>>, %arg4: memref<9x16x32xbf16, #tpu.memory_space<vmem>>, %arg5: memref<1x32xf32, #tpu.memory_space<vmem>>, %arg6: memref<81x32x256xbf16, #tpu.memory_space<vmem>>, %arg7: memref<1x256xf32, #tpu.memory_space<vmem>>, %arg8: memref<256x7xbf16, #tpu.memory_space<vmem>>, %arg9: memref<1x7xf32, #tpu.memory_space<vmem>>, %arg10: memref<1x1x6xf32, #tpu.memory_space<vmem>>, %arg11: memref<1x1x6xf32, #tpu.memory_space<vmem>>, %arg12: memref<1x1x1xf32, #tpu.memory_space<vmem>>, %arg13: memref<400x16xf32, #tpu.memory_space<vmem>>, %arg14: memref<358x32xf32, #tpu.memory_space<vmem>>) attributes {dimension_semantics = [#tpu.dimension_semantics<parallel>], iteration_bounds = array<i64: 2>, scalar_prefetch = 0 : i64, scratch_operands = 2 : i64, tpu.core_type = #tpu.core_type<tc>, window_params = [{transform_indices = @transform_0, window_bounds = array<i64: 1, 400, 256>}, {pipeline_mode = #tpu.pipeline_mode<synchronous>, transform_indices = @transform_1, window_bounds = array<i64: 256, 16>}, {pipeline_mode = #tpu.pipeline_mode<synchronous>, transform_indices = @transform_2, window_bounds = array<i64: 1, 16>}, {pipeline_mode = #tpu.pipeline_mode<synchronous>, transform_indices = @transform_3, window_bounds = array<i64: 9, 16, 32>}, {pipeline_mode = #tpu.pipeline_mode<synchronous>, transform_indices = @transform_4, window_bounds = array<i64: 1, 32>}, {pipeline_mode = #tpu.pipeline_mode<synchronous>, transform_indices = @transform_5, window_bounds = array<i64: 81, 32, 256>}, {pipeline_mode = #tpu.pipeline_mode<synchronous>, transform_indices = @transform_6, window_bounds = array<i64: 1, 256>}, {pipeline_mode = #tpu.pipeline_mode<synchronous>, transform_indices = @transform_7, window_bounds = array<i64: 256, 7>}, {pipeline_mode = #tpu.pipeline_mode<synchronous>, transform_indices = @transform_8, window_bounds = array<i64: 1, 7>}, {transform_indices = @transform_9, window_bounds = array<i64: 1, 1, 6>}, {transform_indices = @transform_10, window_bounds = array<i64: 1, 1, 6>}, {transform_indices = @transform_11, window_bounds = array<i64: 1, 1, 1>}]} {
    %c0 = arith.constant 0 : index
    %c0_0 = arith.constant 0 : index
    %c0_1 = arith.constant 0 : index
    %0 = vector.load %arg1[%c0, %c0_0, %c0_1] : memref<1x400x256xbf16, #tpu.memory_space<vmem>>, vector<1x400x256xbf16>
    %1 = vector.shape_cast %0 : vector<1x400x256xbf16> to vector<400x256xbf16>
    %c0_2 = arith.constant 0 : index
    %c0_3 = arith.constant 0 : index
    %2 = vector.load %arg2[%c0_2, %c0_3] : memref<256x16xbf16, #tpu.memory_space<vmem>>, vector<256x16xbf16>
    %cst = arith.constant dense<0.000000e+00> : vector<400x16xf32>
    %3 = tpu.matmul %1, %2, %cst {dimension_numbers = #tpu.dot_dimension_numbers<[1], [0], [0], [1], [0, 0, 1, 1], [], []>} : vector<400x256xbf16>, vector<256x16xbf16>, vector<400x16xf32> -> vector<400x16xf32>
    %c0_4 = arith.constant 0 : index
    %c0_5 = arith.constant 0 : index
    %4 = vector.load %arg3[%c0_4, %c0_5] : memref<1x16xf32, #tpu.memory_space<vmem>>, vector<1x16xf32>
    %5 = vector.broadcast %4 : vector<1x16xf32> to vector<400x16xf32>
    %6 = arith.addf %3, %5 : vector<400x16xf32>
    %cst_6 = arith.constant 0.000000e+00 : f32
    %7 = vector.broadcast %cst_6 : f32 to vector<400x16xf32>
    %8 = arith.maximumf %6, %7 : vector<400x16xf32>
    %c0_7 = arith.constant 0 : index
    %c0_8 = arith.constant 0 : index
    %9 = vector.load %arg13[%c0_7, %c0_8] : memref<400x16xf32, #tpu.memory_space<vmem>>, vector<400x16xf32>
    tpu.vector_store %arg13[%c0_7, %c0_8], %8 {strides = array<i32>} : memref<400x16xf32, #tpu.memory_space<vmem>>, vector<400x16xf32>,
    %cst_9 = arith.constant 0.000000e+00 : f32
    %10 = vector.broadcast %cst_9 : f32 to vector<358x32xf32>
    %c0_10 = arith.constant 0 : index
    %c0_11 = arith.constant 0 : index
    %11 = vector.load %arg14[%c0_10, %c0_11] : memref<358x32xf32, #tpu.memory_space<vmem>>, vector<358x32xf32>
    tpu.vector_store %arg14[%c0_10, %c0_11], %10 {strides = array<i32>} : memref<358x32xf32, #tpu.memory_space<vmem>>, vector<358x32xf32>,
    %c0_12 = arith.constant 0 : index
    %c0_13 = arith.constant 0 : index
    %12 = vector.load %arg13[%c0_12, %c0_13] : memref<400x16xf32, #tpu.memory_space<vmem>>, vector<358x16xf32>
    %13 = arith.truncf %12 : vector<358x16xf32> to vector<358x16xbf16>
    %c0_14 = arith.constant 0 : index
    %c0_15 = arith.constant 0 : index
    %14 = vector.load %arg14[%c0_14, %c0_15] : memref<358x32xf32, #tpu.memory_space<vmem>>, vector<358x32xf32>
    %c0_16 = arith.constant 0 : index
    %c0_17 = arith.constant 0 : index
    %c0_18 = arith.constant 0 : index
    %15 = vector.load %arg4[%c0_16, %c0_17, %c0_18] : memref<9x16x32xbf16, #tpu.memory_space<vmem>>, vector<1x16x32xbf16>
    %16 = vector.shape_cast %15 : vector<1x16x32xbf16> to vector<16x32xbf16>
    %cst_19 = arith.constant dense<0.000000e+00> : vector<358x32xf32>
    %17 = tpu.matmul %13, %16, %cst_19 {dimension_numbers = #tpu.dot_dimension_numbers<[1], [0], [0], [1], [0, 0, 1, 1], [], []>} : vector<358x16xbf16>, vector<16x32xbf16>, vector<358x32xf32> -> vector<358x32xf32>
    %18 = arith.addf %14, %17 : vector<358x32xf32>
    %c0_20 = arith.constant 0 : index
    %c0_21 = arith.constant 0 : index
    %19 = vector.load %arg14[%c0_20, %c0_21] : memref<358x32xf32, #tpu.memory_space<vmem>>, vector<358x32xf32>
    tpu.vector_store %arg14[%c0_20, %c0_21], %18 {strides = array<i32>} : memref<358x32xf32, #tpu.memory_space<vmem>>, vector<358x32xf32>,
    %c1 = arith.constant 1 : index
    %c0_22 = arith.constant 0 : index
    %20 = vector.load %arg13[%c1, %c0_22] : memref<400x16xf32, #tpu.memory_space<vmem>>, vector<358x16xf32>
    %21 = arith.truncf %20 : vector<358x16xf32> to vector<358x16xbf16>
    %c0_23 = arith.constant 0 : index
    %c0_24 = arith.constant 0 : index
    %22 = vector.load %arg14[%c0_23, %c0_24] : memref<358x32xf32, #tpu.memory_space<vmem>>, vector<358x32xf32>
    %c1_25 = arith.constant 1 : index
    %c0_26 = arith.constant 0 : index
    %c0_27 = arith.constant 0 : index
    %23 = vector.load %arg4[%c1_25, %c0_26, %c0_27] : memref<9x16x32xbf16, #tpu.memory_space<vmem>>, vector<1x16x32xbf16>
    %24 = vector.shape_cast %23 : vector<1x16x32xbf16> to vector<16x32xbf16>
    %cst_28 = arith.constant dense<0.000000e+00> : vector<358x32xf32>
    %25 = tpu.matmul %21, %24, %cst_28 {dimension_numbers = #tpu.dot_dimension_numbers<[1], [0], [0], [1], [0, 0, 1, 1], [], []>} : vector<358x16xbf16>, vector<16x32xbf16>, vector<358x32xf32> -> vector<358x32xf32>
    %26 = arith.addf %22, %25 : vector<358x32xf32>
    %c0_29 = arith.constant 0 : index
    %c0_30 = arith.constant 0 : index
    %27 = vector.load %arg14[%c0_29, %c0_30] : memref<358x32xf32, #tpu.memory_space<vmem>>, vector<358x32xf32>
    tpu.vector_store %arg14[%c0_29, %c0_30], %26 {strides = array<i32>} : memref<358x32xf32, #tpu.memory_space<vmem>>, vector<358x32xf32>,
    %c2 = arith.constant 2 : index
    %c0_31 = arith.constant 0 : index
    %28 = vector.load %arg13[%c2, %c0_31] : memref<400x16xf32, #tpu.memory_space<vmem>>, vector<358x16xf32>
    %29 = arith.truncf %28 : vector<358x16xf32> to vector<358x16xbf16>
    %c0_32 = arith.constant 0 : index
    %c0_33 = arith.constant 0 : index
    %30 = vector.load %arg14[%c0_32, %c0_33] : memref<358x32xf32, #tpu.memory_space<vmem>>, vector<358x32xf32>
    %c2_34 = arith.constant 2 : index
    %c0_35 = arith.constant 0 : index
    %c0_36 = arith.constant 0 : index
    %31 = vector.load %arg4[%c2_34, %c0_35, %c0_36] : memref<9x16x32xbf16, #tpu.memory_space<vmem>>, vector<1x16x32xbf16>
    %32 = vector.shape_cast %31 : vector<1x16x32xbf16> to vector<16x32xbf16>
    %cst_37 = arith.constant dense<0.000000e+00> : vector<358x32xf32>
    %33 = tpu.matmul %29, %32, %cst_37 {dimension_numbers = #tpu.dot_dimension_numbers<[1], [0], [0], [1], [0, 0, 1, 1], [], []>} : vector<358x16xbf16>, vector<16x32xbf16>, vector<358x32xf32> -> vector<358x32xf32>
    %34 = arith.addf %30, %33 : vector<358x32xf32>
    %c0_38 = arith.constant 0 : index
    %c0_39 = arith.constant 0 : index
    %35 = vector.load %arg14[%c0_38, %c0_39] : memref<358x32xf32, #tpu.memory_space<vmem>>, vector<358x32xf32>
    tpu.vector_store %arg14[%c0_38, %c0_39], %34 {strides = array<i32>} : memref<358x32xf32, #tpu.memory_space<vmem>>, vector<358x32xf32>,
    %c20 = arith.constant 20 : index
    %c0_40 = arith.constant 0 : index
    %36 = vector.load %arg13[%c20, %c0_40] : memref<400x16xf32, #tpu.memory_space<vmem>>, vector<358x16xf32>
    %37 = arith.truncf %36 : vector<358x16xf32> to vector<358x16xbf16>
    %c0_41 = arith.constant 0 : index
    %c0_42 = arith.constant 0 : index
    %38 = vector.load %arg14[%c0_41, %c0_42] : memref<358x32xf32, #tpu.memory_space<vmem>>, vector<358x32xf32>
    %c3 = arith.constant 3 : index
    %c0_43 = arith.constant 0 : index
    %c0_44 = arith.constant 0 : index
    %39 = vector.load %arg4[%c3, %c0_43, %c0_44] : memref<9x16x32xbf16, #tpu.memory_space<vmem>>, vector<1x16x32xbf16>
    %40 = vector.shape_cast %39 : vector<1x16x32xbf16> to vector<16x32xbf16>
    %cst_45 = arith.constant dense<0.000000e+00> : vector<358x32xf32>
    %41 = tpu.matmul %37, %40, %cst_45 {dimension_numbers = #tpu.dot_dimension_numbers<[1], [0], [0], [1], [0, 0, 1, 1], [], []>} : vector<358x16xbf16>, vector<16x32xbf16>, vector<358x32xf32> -> vector<358x32xf32>
    %42 = arith.addf %38, %41 : vector<358x32xf32>
    %c0_46 = arith.constant 0 : index
    %c0_47 = arith.constant 0 : index
    %43 = vector.load %arg14[%c0_46, %c0_47] : memref<358x32xf32, #tpu.memory_space<vmem>>, vector<358x32xf32>
    tpu.vector_store %arg14[%c0_46, %c0_47], %42 {strides = array<i32>} : memref<358x32xf32, #tpu.memory_space<vmem>>, vector<358x32xf32>,
    %c21 = arith.constant 21 : index
    %c0_48 = arith.constant 0 : index
    %44 = vector.load %arg13[%c21, %c0_48] : memref<400x16xf32, #tpu.memory_space<vmem>>, vector<358x16xf32>
    %45 = arith.truncf %44 : vector<358x16xf32> to vector<358x16xbf16>
    %c0_49 = arith.constant 0 : index
    %c0_50 = arith.constant 0 : index
    %46 = vector.load %arg14[%c0_49, %c0_50] : memref<358x32xf32, #tpu.memory_space<vmem>>, vector<358x32xf32>
    %c4 = arith.constant 4 : index
    %c0_51 = arith.constant 0 : index
    %c0_52 = arith.constant 0 : index
    %47 = vector.load %arg4[%c4, %c0_51, %c0_52] : memref<9x16x32xbf16, #tpu.memory_space<vmem>>, vector<1x16x32xbf16>
    %48 = vector.shape_cast %47 : vector<1x16x32xbf16> to vector<16x32xbf16>
    %cst_53 = arith.constant dense<0.000000e+00> : vector<358x32xf32>
    %49 = tpu.matmul %45, %48, %cst_53 {dimension_numbers = #tpu.dot_dimension_numbers<[1], [0], [0], [1], [0, 0, 1, 1], [], []>} : vector<358x16xbf16>, vector<16x32xbf16>, vector<358x32xf32> -> vector<358x32xf32>
    %50 = arith.addf %46, %49 : vector<358x32xf32>
    %c0_54 = arith.constant 0 : index
    %c0_55 = arith.constant 0 : index
    %51 = vector.load %arg14[%c0_54, %c0_55] : memref<358x32xf32, #tpu.memory_space<vmem>>, vector<358x32xf32>
    tpu.vector_store %arg14[%c0_54, %c0_55], %50 {strides = array<i32>} : memref<358x32xf32, #tpu.memory_space<vmem>>, vector<358x32xf32>,
    %c22 = arith.constant 22 : index
    %c0_56 = arith.constant 0 : index
    %52 = vector.load %arg13[%c22, %c0_56] : memref<400x16xf32, #tpu.memory_space<vmem>>, vector<358x16xf32>
    %53 = arith.truncf %52 : vector<358x16xf32> to vector<358x16xbf16>
    %c0_57 = arith.constant 0 : index
    %c0_58 = arith.constant 0 : index
    %54 = vector.load %arg14[%c0_57, %c0_58] : memref<358x32xf32, #tpu.memory_space<vmem>>, vector<358x32xf32>
    %c5 = arith.constant 5 : index
    %c0_59 = arith.constant 0 : index
    %c0_60 = arith.constant 0 : index
    %55 = vector.load %arg4[%c5, %c0_59, %c0_60] : memref<9x16x32xbf16, #tpu.memory_space<vmem>>, vector<1x16x32xbf16>
    %56 = vector.shape_cast %55 : vector<1x16x32xbf16> to vector<16x32xbf16>
    %cst_61 = arith.constant dense<0.000000e+00> : vector<358x32xf32>
    %57 = tpu.matmul %53, %56, %cst_61 {dimension_numbers = #tpu.dot_dimension_numbers<[1], [0], [0], [1], [0, 0, 1, 1], [], []>} : vector<358x16xbf16>, vector<16x32xbf16>, vector<358x32xf32> -> vector<358x32xf32>
    %58 = arith.addf %54, %57 : vector<358x32xf32>
    %c0_62 = arith.constant 0 : index
    %c0_63 = arith.constant 0 : index
    %59 = vector.load %arg14[%c0_62, %c0_63] : memref<358x32xf32, #tpu.memory_space<vmem>>, vector<358x32xf32>
    tpu.vector_store %arg14[%c0_62, %c0_63], %58 {strides = array<i32>} : memref<358x32xf32, #tpu.memory_space<vmem>>, vector<358x32xf32>,
    %c40 = arith.constant 40 : index
    %c0_64 = arith.constant 0 : index
    %60 = vector.load %arg13[%c40, %c0_64] : memref<400x16xf32, #tpu.memory_space<vmem>>, vector<358x16xf32>
    %61 = arith.truncf %60 : vector<358x16xf32> to vector<358x16xbf16>
    %c0_65 = arith.constant 0 : index
    %c0_66 = arith.constant 0 : index
    %62 = vector.load %arg14[%c0_65, %c0_66] : memref<358x32xf32, #tpu.memory_space<vmem>>, vector<358x32xf32>
    %c6 = arith.constant 6 : index
    %c0_67 = arith.constant 0 : index
    %c0_68 = arith.constant 0 : index
    %63 = vector.load %arg4[%c6, %c0_67, %c0_68] : memref<9x16x32xbf16, #tpu.memory_space<vmem>>, vector<1x16x32xbf16>
    %64 = vector.shape_cast %63 : vector<1x16x32xbf16> to vector<16x32xbf16>
    %cst_69 = arith.constant dense<0.000000e+00> : vector<358x32xf32>
    %65 = tpu.matmul %61, %64, %cst_69 {dimension_numbers = #tpu.dot_dimension_numbers<[1], [0], [0], [1], [0, 0, 1, 1], [], []>} : vector<358x16xbf16>, vector<16x32xbf16>, vector<358x32xf32> -> vector<358x32xf32>
    %66 = arith.addf %62, %65 : vector<358x32xf32>
    %c0_70 = arith.constant 0 : index
    %c0_71 = arith.constant 0 : index
    %67 = vector.load %arg14[%c0_70, %c0_71] : memref<358x32xf32, #tpu.memory_space<vmem>>, vector<358x32xf32>
    tpu.vector_store %arg14[%c0_70, %c0_71], %66 {strides = array<i32>} : memref<358x32xf32, #tpu.memory_space<vmem>>, vector<358x32xf32>,
    %c41 = arith.constant 41 : index
    %c0_72 = arith.constant 0 : index
    %68 = vector.load %arg13[%c41, %c0_72] : memref<400x16xf32, #tpu.memory_space<vmem>>, vector<358x16xf32>
    %69 = arith.truncf %68 : vector<358x16xf32> to vector<358x16xbf16>
    %c0_73 = arith.constant 0 : index
    %c0_74 = arith.constant 0 : index
    %70 = vector.load %arg14[%c0_73, %c0_74] : memref<358x32xf32, #tpu.memory_space<vmem>>, vector<358x32xf32>
    %c7 = arith.constant 7 : index
    %c0_75 = arith.constant 0 : index
    %c0_76 = arith.constant 0 : index
    %71 = vector.load %arg4[%c7, %c0_75, %c0_76] : memref<9x16x32xbf16, #tpu.memory_space<vmem>>, vector<1x16x32xbf16>
    %72 = vector.shape_cast %71 : vector<1x16x32xbf16> to vector<16x32xbf16>
    %cst_77 = arith.constant dense<0.000000e+00> : vector<358x32xf32>
    %73 = tpu.matmul %69, %72, %cst_77 {dimension_numbers = #tpu.dot_dimension_numbers<[1], [0], [0], [1], [0, 0, 1, 1], [], []>} : vector<358x16xbf16>, vector<16x32xbf16>, vector<358x32xf32> -> vector<358x32xf32>
    %74 = arith.addf %70, %73 : vector<358x32xf32>
    %c0_78 = arith.constant 0 : index
    %c0_79 = arith.constant 0 : index
    %75 = vector.load %arg14[%c0_78, %c0_79] : memref<358x32xf32, #tpu.memory_space<vmem>>, vector<358x32xf32>
    tpu.vector_store %arg14[%c0_78, %c0_79], %74 {strides = array<i32>} : memref<358x32xf32, #tpu.memory_space<vmem>>, vector<358x32xf32>,
    %c42 = arith.constant 42 : index
    %c0_80 = arith.constant 0 : index
    %76 = vector.load %arg13[%c42, %c0_80] : memref<400x16xf32, #tpu.memory_space<vmem>>, vector<358x16xf32>
    %77 = arith.truncf %76 : vector<358x16xf32> to vector<358x16xbf16>
    %c0_81 = arith.constant 0 : index
    %c0_82 = arith.constant 0 : index
    %78 = vector.load %arg14[%c0_81, %c0_82] : memref<358x32xf32, #tpu.memory_space<vmem>>, vector<358x32xf32>
    %c8 = arith.constant 8 : index
    %c0_83 = arith.constant 0 : index
    %c0_84 = arith.constant 0 : index
    %79 = vector.load %arg4[%c8, %c0_83, %c0_84] : memref<9x16x32xbf16, #tpu.memory_space<vmem>>, vector<1x16x32xbf16>
    %80 = vector.shape_cast %79 : vector<1x16x32xbf16> to vector<16x32xbf16>
    %cst_85 = arith.constant dense<0.000000e+00> : vector<358x32xf32>
    %81 = tpu.matmul %77, %80, %cst_85 {dimension_numbers = #tpu.dot_dimension_numbers<[1], [0], [0], [1], [0, 0, 1, 1], [], []>} : vector<358x16xbf16>, vector<16x32xbf16>, vector<358x32xf32> -> vector<358x32xf32>
    %82 = arith.addf %78, %81 : vector<358x32xf32>
    %c0_86 = arith.constant 0 : index
    %c0_87 = arith.constant 0 : index
    %83 = vector.load %arg14[%c0_86, %c0_87] : memref<358x32xf32, #tpu.memory_space<vmem>>, vector<358x32xf32>
    tpu.vector_store %arg14[%c0_86, %c0_87], %82 {strides = array<i32>} : memref<358x32xf32, #tpu.memory_space<vmem>>, vector<358x32xf32>,
    %c0_88 = arith.constant 0 : index
    %c0_89 = arith.constant 0 : index
    %84 = vector.load %arg14[%c0_88, %c0_89] : memref<358x32xf32, #tpu.memory_space<vmem>>, vector<358x32xf32>
    %c0_90 = arith.constant 0 : index
    %c0_91 = arith.constant 0 : index
    %85 = vector.load %arg5[%c0_90, %c0_91] : memref<1x32xf32, #tpu.memory_space<vmem>>, vector<1x32xf32>
    %86 = vector.broadcast %85 : vector<1x32xf32> to vector<358x32xf32>
    %87 = arith.addf %84, %86 : vector<358x32xf32>
    %cst_92 = arith.constant 0.000000e+00 : f32
    %88 = vector.broadcast %cst_92 : f32 to vector<358x32xf32>
    %89 = arith.maximumf %87, %88 : vector<358x32xf32>
    %c0_93 = arith.constant 0 : index
    %c0_94 = arith.constant 0 : index
    %90 = vector.load %arg14[%c0_93, %c0_94] : memref<358x32xf32, #tpu.memory_space<vmem>>, vector<358x32xf32>
    tpu.vector_store %arg14[%c0_93, %c0_94], %89 {strides = array<i32>} : memref<358x32xf32, #tpu.memory_space<vmem>>, vector<358x32xf32>,
    %c0_95 = arith.constant 0 : index
    %c0_96 = arith.constant 0 : index
    %91 = vector.load %arg7[%c0_95, %c0_96] : memref<1x256xf32, #tpu.memory_space<vmem>>, vector<1x256xf32>
    %c0_97 = arith.constant 0 : index
    %c0_98 = arith.constant 0 : index
    %92 = vector.load %arg14[%c0_97, %c0_98] : memref<358x32xf32, #tpu.memory_space<vmem>>, vector<1x32xf32>
    %93 = arith.truncf %92 : vector<1x32xf32> to vector<1x32xbf16>
    %c0_99 = arith.constant 0 : index
    %c0_100 = arith.constant 0 : index
    %c0_101 = arith.constant 0 : index
    %94 = vector.load %arg6[%c0_99, %c0_100, %c0_101] : memref<81x32x256xbf16, #tpu.memory_space<vmem>>, vector<1x32x256xbf16>
    %95 = vector.shape_cast %94 : vector<1x32x256xbf16> to vector<32x256xbf16>
    %cst_102 = arith.constant dense<0.000000e+00> : vector<1x256xf32>
    %96 = tpu.matmul %93, %95, %cst_102 {dimension_numbers = #tpu.dot_dimension_numbers<[1], [0], [0], [1], [0, 0, 1, 1], [], []>} : vector<1x32xbf16>, vector<32x256xbf16>, vector<1x256xf32> -> vector<1x256xf32>
    %97 = arith.addf %91, %96 : vector<1x256xf32>
    %c2_103 = arith.constant 2 : index
    %c0_104 = arith.constant 0 : index
    %98 = vector.load %arg14[%c2_103, %c0_104] : memref<358x32xf32, #tpu.memory_space<vmem>>, vector<1x32xf32>
    %99 = arith.truncf %98 : vector<1x32xf32> to vector<1x32xbf16>
    %c1_105 = arith.constant 1 : index
    %c0_106 = arith.constant 0 : index
    %c0_107 = arith.constant 0 : index
    %100 = vector.load %arg6[%c1_105, %c0_106, %c0_107] : memref<81x32x256xbf16, #tpu.memory_space<vmem>>, vector<1x32x256xbf16>
    %101 = vector.shape_cast %100 : vector<1x32x256xbf16> to vector<32x256xbf16>
    %cst_108 = arith.constant dense<0.000000e+00> : vector<1x256xf32>
    %102 = tpu.matmul %99, %101, %cst_108 {dimension_numbers = #tpu.dot_dimension_numbers<[1], [0], [0], [1], [0, 0, 1, 1], [], []>} : vector<1x32xbf16>, vector<32x256xbf16>, vector<1x256xf32> -> vector<1x256xf32>
    %103 = arith.addf %97, %102 : vector<1x256xf32>
    %c4_109 = arith.constant 4 : index
    %c0_110 = arith.constant 0 : index
    %104 = vector.load %arg14[%c4_109, %c0_110] : memref<358x32xf32, #tpu.memory_space<vmem>>, vector<1x32xf32>
    %105 = arith.truncf %104 : vector<1x32xf32> to vector<1x32xbf16>
    %c2_111 = arith.constant 2 : index
    %c0_112 = arith.constant 0 : index
    %c0_113 = arith.constant 0 : index
    %106 = vector.load %arg6[%c2_111, %c0_112, %c0_113] : memref<81x32x256xbf16, #tpu.memory_space<vmem>>, vector<1x32x256xbf16>
    %107 = vector.shape_cast %106 : vector<1x32x256xbf16> to vector<32x256xbf16>
    %cst_114 = arith.constant dense<0.000000e+00> : vector<1x256xf32>
    %108 = tpu.matmul %105, %107, %cst_114 {dimension_numbers = #tpu.dot_dimension_numbers<[1], [0], [0], [1], [0, 0, 1, 1], [], []>} : vector<1x32xbf16>, vector<32x256xbf16>, vector<1x256xf32> -> vector<1x256xf32>
    %109 = arith.addf %103, %108 : vector<1x256xf32>
    %c6_115 = arith.constant 6 : index
    %c0_116 = arith.constant 0 : index
    %110 = vector.load %arg14[%c6_115, %c0_116] : memref<358x32xf32, #tpu.memory_space<vmem>>, vector<1x32xf32>
    %111 = arith.truncf %110 : vector<1x32xf32> to vector<1x32xbf16>
    %c3_117 = arith.constant 3 : index
    %c0_118 = arith.constant 0 : index
    %c0_119 = arith.constant 0 : index
    %112 = vector.load %arg6[%c3_117, %c0_118, %c0_119] : memref<81x32x256xbf16, #tpu.memory_space<vmem>>, vector<1x32x256xbf16>
    %113 = vector.shape_cast %112 : vector<1x32x256xbf16> to vector<32x256xbf16>
    %cst_120 = arith.constant dense<0.000000e+00> : vector<1x256xf32>
    %114 = tpu.matmul %111, %113, %cst_120 {dimension_numbers = #tpu.dot_dimension_numbers<[1], [0], [0], [1], [0, 0, 1, 1], [], []>} : vector<1x32xbf16>, vector<32x256xbf16>, vector<1x256xf32> -> vector<1x256xf32>
    %115 = arith.addf %109, %114 : vector<1x256xf32>
    %c8_121 = arith.constant 8 : index
    %c0_122 = arith.constant 0 : index
    %116 = vector.load %arg14[%c8_121, %c0_122] : memref<358x32xf32, #tpu.memory_space<vmem>>, vector<1x32xf32>
    %117 = arith.truncf %116 : vector<1x32xf32> to vector<1x32xbf16>
    %c4_123 = arith.constant 4 : index
    %c0_124 = arith.constant 0 : index
    %c0_125 = arith.constant 0 : index
    %118 = vector.load %arg6[%c4_123, %c0_124, %c0_125] : memref<81x32x256xbf16, #tpu.memory_space<vmem>>, vector<1x32x256xbf16>
    %119 = vector.shape_cast %118 : vector<1x32x256xbf16> to vector<32x256xbf16>
    %cst_126 = arith.constant dense<0.000000e+00> : vector<1x256xf32>
    %120 = tpu.matmul %117, %119, %cst_126 {dimension_numbers = #tpu.dot_dimension_numbers<[1], [0], [0], [1], [0, 0, 1, 1], [], []>} : vector<1x32xbf16>, vector<32x256xbf16>, vector<1x256xf32> -> vector<1x256xf32>
    %121 = arith.addf %115, %120 : vector<1x256xf32>
    %c10 = arith.constant 10 : index
    %c0_127 = arith.constant 0 : index
    %122 = vector.load %arg14[%c10, %c0_127] : memref<358x32xf32, #tpu.memory_space<vmem>>, vector<1x32xf32>
    %123 = arith.truncf %122 : vector<1x32xf32> to vector<1x32xbf16>
    %c5_128 = arith.constant 5 : index
    %c0_129 = arith.constant 0 : index
    %c0_130 = arith.constant 0 : index
    %124 = vector.load %arg6[%c5_128, %c0_129, %c0_130] : memref<81x32x256xbf16, #tpu.memory_space<vmem>>, vector<1x32x256xbf16>
    %125 = vector.shape_cast %124 : vector<1x32x256xbf16> to vector<32x256xbf16>
    %cst_131 = arith.constant dense<0.000000e+00> : vector<1x256xf32>
    %126 = tpu.matmul %123, %125, %cst_131 {dimension_numbers = #tpu.dot_dimension_numbers<[1], [0], [0], [1], [0, 0, 1, 1], [], []>} : vector<1x32xbf16>, vector<32x256xbf16>, vector<1x256xf32> -> vector<1x256xf32>
    %127 = arith.addf %121, %126 : vector<1x256xf32>
    %c12 = arith.constant 12 : index
    %c0_132 = arith.constant 0 : index
    %128 = vector.load %arg14[%c12, %c0_132] : memref<358x32xf32, #tpu.memory_space<vmem>>, vector<1x32xf32>
    %129 = arith.truncf %128 : vector<1x32xf32> to vector<1x32xbf16>
    %c6_133 = arith.constant 6 : index
    %c0_134 = arith.constant 0 : index
    %c0_135 = arith.constant 0 : index
    %130 = vector.load %arg6[%c6_133, %c0_134, %c0_135] : memref<81x32x256xbf16, #tpu.memory_space<vmem>>, vector<1x32x256xbf16>
    %131 = vector.shape_cast %130 : vector<1x32x256xbf16> to vector<32x256xbf16>
    %cst_136 = arith.constant dense<0.000000e+00> : vector<1x256xf32>
    %132 = tpu.matmul %129, %131, %cst_136 {dimension_numbers = #tpu.dot_dimension_numbers<[1], [0], [0], [1], [0, 0, 1, 1], [], []>} : vector<1x32xbf16>, vector<32x256xbf16>, vector<1x256xf32> -> vector<1x256xf32>
    %133 = arith.addf %127, %132 : vector<1x256xf32>
    %c14 = arith.constant 14 : index
    %c0_137 = arith.constant 0 : index
    %134 = vector.load %arg14[%c14, %c0_137] : memref<358x32xf32, #tpu.memory_space<vmem>>, vector<1x32xf32>
    %135 = arith.truncf %134 : vector<1x32xf32> to vector<1x32xbf16>
    %c7_138 = arith.constant 7 : index
    %c0_139 = arith.constant 0 : index
    %c0_140 = arith.constant 0 : index
    %136 = vector.load %arg6[%c7_138, %c0_139, %c0_140] : memref<81x32x256xbf16, #tpu.memory_space<vmem>>, vector<1x32x256xbf16>
    %137 = vector.shape_cast %136 : vector<1x32x256xbf16> to vector<32x256xbf16>
    %cst_141 = arith.constant dense<0.000000e+00> : vector<1x256xf32>
    %138 = tpu.matmul %135, %137, %cst_141 {dimension_numbers = #tpu.dot_dimension_numbers<[1], [0], [0], [1], [0, 0, 1, 1], [], []>} : vector<1x32xbf16>, vector<32x256xbf16>, vector<1x256xf32> -> vector<1x256xf32>
    %139 = arith.addf %133, %138 : vector<1x256xf32>
    %c16 = arith.constant 16 : index
    %c0_142 = arith.constant 0 : index
    %140 = vector.load %arg14[%c16, %c0_142] : memref<358x32xf32, #tpu.memory_space<vmem>>, vector<1x32xf32>
    %141 = arith.truncf %140 : vector<1x32xf32> to vector<1x32xbf16>
    %c8_143 = arith.constant 8 : index
    %c0_144 = arith.constant 0 : index
    %c0_145 = arith.constant 0 : index
    %142 = vector.load %arg6[%c8_143, %c0_144, %c0_145] : memref<81x32x256xbf16, #tpu.memory_space<vmem>>, vector<1x32x256xbf16>
    %143 = vector.shape_cast %142 : vector<1x32x256xbf16> to vector<32x256xbf16>
    %cst_146 = arith.constant dense<0.000000e+00> : vector<1x256xf32>
    %144 = tpu.matmul %141, %143, %cst_146 {dimension_numbers = #tpu.dot_dimension_numbers<[1], [0], [0], [1], [0, 0, 1, 1], [], []>} : vector<1x32xbf16>, vector<32x256xbf16>, vector<1x256xf32> -> vector<1x256xf32>
    %145 = arith.addf %139, %144 : vector<1x256xf32>
    %c40_147 = arith.constant 40 : index
    %c0_148 = arith.constant 0 : index
    %146 = vector.load %arg14[%c40_147, %c0_148] : memref<358x32xf32, #tpu.memory_space<vmem>>, vector<1x32xf32>
    %147 = arith.truncf %146 : vector<1x32xf32> to vector<1x32xbf16>
    %c9 = arith.constant 9 : index
    %c0_149 = arith.constant 0 : index
    %c0_150 = arith.constant 0 : index
    %148 = vector.load %arg6[%c9, %c0_149, %c0_150] : memref<81x32x256xbf16, #tpu.memory_space<vmem>>, vector<1x32x256xbf16>
    %149 = vector.shape_cast %148 : vector<1x32x256xbf16> to vector<32x256xbf16>
    %cst_151 = arith.constant dense<0.000000e+00> : vector<1x256xf32>
    %150 = tpu.matmul %147, %149, %cst_151 {dimension_numbers = #tpu.dot_dimension_numbers<[1], [0], [0], [1], [0, 0, 1, 1], [], []>} : vector<1x32xbf16>, vector<32x256xbf16>, vector<1x256xf32> -> vector<1x256xf32>
    %151 = arith.addf %145, %150 : vector<1x256xf32>
    %c42_152 = arith.constant 42 : index
    %c0_153 = arith.constant 0 : index
    %152 = vector.load %arg14[%c42_152, %c0_153] : memref<358x32xf32, #tpu.memory_space<vmem>>, vector<1x32xf32>
    %153 = arith.truncf %152 : vector<1x32xf32> to vector<1x32xbf16>
    %c10_154 = arith.constant 10 : index
    %c0_155 = arith.constant 0 : index
    %c0_156 = arith.constant 0 : index
    %154 = vector.load %arg6[%c10_154, %c0_155, %c0_156] : memref<81x32x256xbf16, #tpu.memory_space<vmem>>, vector<1x32x256xbf16>
    %155 = vector.shape_cast %154 : vector<1x32x256xbf16> to vector<32x256xbf16>
    %cst_157 = arith.constant dense<0.000000e+00> : vector<1x256xf32>
    %156 = tpu.matmul %153, %155, %cst_157 {dimension_numbers = #tpu.dot_dimension_numbers<[1], [0], [0], [1], [0, 0, 1, 1], [], []>} : vector<1x32xbf16>, vector<32x256xbf16>, vector<1x256xf32> -> vector<1x256xf32>
    %157 = arith.addf %151, %156 : vector<1x256xf32>
    %c44 = arith.constant 44 : index
    %c0_158 = arith.constant 0 : index
    %158 = vector.load %arg14[%c44, %c0_158] : memref<358x32xf32, #tpu.memory_space<vmem>>, vector<1x32xf32>
    %159 = arith.truncf %158 : vector<1x32xf32> to vector<1x32xbf16>
    %c11 = arith.constant 11 : index
    %c0_159 = arith.constant 0 : index
    %c0_160 = arith.constant 0 : index
    %160 = vector.load %arg6[%c11, %c0_159, %c0_160] : memref<81x32x256xbf16, #tpu.memory_space<vmem>>, vector<1x32x256xbf16>
    %161 = vector.shape_cast %160 : vector<1x32x256xbf16> to vector<32x256xbf16>
    %cst_161 = arith.constant dense<0.000000e+00> : vector<1x256xf32>
    %162 = tpu.matmul %159, %161, %cst_161 {dimension_numbers = #tpu.dot_dimension_numbers<[1], [0], [0], [1], [0, 0, 1, 1], [], []>} : vector<1x32xbf16>, vector<32x256xbf16>, vector<1x256xf32> -> vector<1x256xf32>
    %163 = arith.addf %157, %162 : vector<1x256xf32>
    %c46 = arith.constant 46 : index
    %c0_162 = arith.constant 0 : index
    %164 = vector.load %arg14[%c46, %c0_162] : memref<358x32xf32, #tpu.memory_space<vmem>>, vector<1x32xf32>
    %165 = arith.truncf %164 : vector<1x32xf32> to vector<1x32xbf16>
    %c12_163 = arith.constant 12 : index
    %c0_164 = arith.constant 0 : index
    %c0_165 = arith.constant 0 : index
    %166 = vector.load %arg6[%c12_163, %c0_164, %c0_165] : memref<81x32x256xbf16, #tpu.memory_space<vmem>>, vector<1x32x256xbf16>
    %167 = vector.shape_cast %166 : vector<1x32x256xbf16> to vector<32x256xbf16>
    %cst_166 = arith.constant dense<0.000000e+00> : vector<1x256xf32>
    %168 = tpu.matmul %165, %167, %cst_166 {dimension_numbers = #tpu.dot_dimension_numbers<[1], [0], [0], [1], [0, 0, 1, 1], [], []>} : vector<1x32xbf16>, vector<32x256xbf16>, vector<1x256xf32> -> vector<1x256xf32>
    %169 = arith.addf %163, %168 : vector<1x256xf32>
    %c48 = arith.constant 48 : index
    %c0_167 = arith.constant 0 : index
    %170 = vector.load %arg14[%c48, %c0_167] : memref<358x32xf32, #tpu.memory_space<vmem>>, vector<1x32xf32>
    %171 = arith.truncf %170 : vector<1x32xf32> to vector<1x32xbf16>
    %c13 = arith.constant 13 : index
    %c0_168 = arith.constant 0 : index
    %c0_169 = arith.constant 0 : index
    %172 = vector.load %arg6[%c13, %c0_168, %c0_169] : memref<81x32x256xbf16, #tpu.memory_space<vmem>>, vector<1x32x256xbf16>
    %173 = vector.shape_cast %172 : vector<1x32x256xbf16> to vector<32x256xbf16>
    %cst_170 = arith.constant dense<0.000000e+00> : vector<1x256xf32>
    %174 = tpu.matmul %171, %173, %cst_170 {dimension_numbers = #tpu.dot_dimension_numbers<[1], [0], [0], [1], [0, 0, 1, 1], [], []>} : vector<1x32xbf16>, vector<32x256xbf16>, vector<1x256xf32> -> vector<1x256xf32>
    %175 = arith.addf %169, %174 : vector<1x256xf32>
    %c50 = arith.constant 50 : index
    %c0_171 = arith.constant 0 : index
    %176 = vector.load %arg14[%c50, %c0_171] : memref<358x32xf32, #tpu.memory_space<vmem>>, vector<1x32xf32>
    %177 = arith.truncf %176 : vector<1x32xf32> to vector<1x32xbf16>
    %c14_172 = arith.constant 14 : index
    %c0_173 = arith.constant 0 : index
    %c0_174 = arith.constant 0 : index
    %178 = vector.load %arg6[%c14_172, %c0_173, %c0_174] : memref<81x32x256xbf16, #tpu.memory_space<vmem>>, vector<1x32x256xbf16>
    %179 = vector.shape_cast %178 : vector<1x32x256xbf16> to vector<32x256xbf16>
    %cst_175 = arith.constant dense<0.000000e+00> : vector<1x256xf32>
    %180 = tpu.matmul %177, %179, %cst_175 {dimension_numbers = #tpu.dot_dimension_numbers<[1], [0], [0], [1], [0, 0, 1, 1], [], []>} : vector<1x32xbf16>, vector<32x256xbf16>, vector<1x256xf32> -> vector<1x256xf32>
    %181 = arith.addf %175, %180 : vector<1x256xf32>
    %c52 = arith.constant 52 : index
    %c0_176 = arith.constant 0 : index
    %182 = vector.load %arg14[%c52, %c0_176] : memref<358x32xf32, #tpu.memory_space<vmem>>, vector<1x32xf32>
    %183 = arith.truncf %182 : vector<1x32xf32> to vector<1x32xbf16>
    %c15 = arith.constant 15 : index
    %c0_177 = arith.constant 0 : index
    %c0_178 = arith.constant 0 : index
    %184 = vector.load %arg6[%c15, %c0_177, %c0_178] : memref<81x32x256xbf16, #tpu.memory_space<vmem>>, vector<1x32x256xbf16>
    %185 = vector.shape_cast %184 : vector<1x32x256xbf16> to vector<32x256xbf16>
    %cst_179 = arith.constant dense<0.000000e+00> : vector<1x256xf32>
    %186 = tpu.matmul %183, %185, %cst_179 {dimension_numbers = #tpu.dot_dimension_numbers<[1], [0], [0], [1], [0, 0, 1, 1], [], []>} : vector<1x32xbf16>, vector<32x256xbf16>, vector<1x256xf32> -> vector<1x256xf32>
    %187 = arith.addf %181, %186 : vector<1x256xf32>
    %c54 = arith.constant 54 : index
    %c0_180 = arith.constant 0 : index
    %188 = vector.load %arg14[%c54, %c0_180] : memref<358x32xf32, #tpu.memory_space<vmem>>, vector<1x32xf32>
    %189 = arith.truncf %188 : vector<1x32xf32> to vector<1x32xbf16>
    %c16_181 = arith.constant 16 : index
    %c0_182 = arith.constant 0 : index
    %c0_183 = arith.constant 0 : index
    %190 = vector.load %arg6[%c16_181, %c0_182, %c0_183] : memref<81x32x256xbf16, #tpu.memory_space<vmem>>, vector<1x32x256xbf16>
    %191 = vector.shape_cast %190 : vector<1x32x256xbf16> to vector<32x256xbf16>
    %cst_184 = arith.constant dense<0.000000e+00> : vector<1x256xf32>
    %192 = tpu.matmul %189, %191, %cst_184 {dimension_numbers = #tpu.dot_dimension_numbers<[1], [0], [0], [1], [0, 0, 1, 1], [], []>} : vector<1x32xbf16>, vector<32x256xbf16>, vector<1x256xf32> -> vector<1x256xf32>
    %193 = arith.addf %187, %192 : vector<1x256xf32>
    %c56 = arith.constant 56 : index
    %c0_185 = arith.constant 0 : index
    %194 = vector.load %arg14[%c56, %c0_185] : memref<358x32xf32, #tpu.memory_space<vmem>>, vector<1x32xf32>
    %195 = arith.truncf %194 : vector<1x32xf32> to vector<1x32xbf16>
    %c17 = arith.constant 17 : index
    %c0_186 = arith.constant 0 : index
    %c0_187 = arith.constant 0 : index
    %196 = vector.load %arg6[%c17, %c0_186, %c0_187] : memref<81x32x256xbf16, #tpu.memory_space<vmem>>, vector<1x32x256xbf16>
    %197 = vector.shape_cast %196 : vector<1x32x256xbf16> to vector<32x256xbf16>
    %cst_188 = arith.constant dense<0.000000e+00> : vector<1x256xf32>
    %198 = tpu.matmul %195, %197, %cst_188 {dimension_numbers = #tpu.dot_dimension_numbers<[1], [0], [0], [1], [0, 0, 1, 1], [], []>} : vector<1x32xbf16>, vector<32x256xbf16>, vector<1x256xf32> -> vector<1x256xf32>
    %199 = arith.addf %193, %198 : vector<1x256xf32>
    %c80 = arith.constant 80 : index
    %c0_189 = arith.constant 0 : index
    %200 = vector.load %arg14[%c80, %c0_189] : memref<358x32xf32, #tpu.memory_space<vmem>>, vector<1x32xf32>
    %201 = arith.truncf %200 : vector<1x32xf32> to vector<1x32xbf16>
    %c18 = arith.constant 18 : index
    %c0_190 = arith.constant 0 : index
    %c0_191 = arith.constant 0 : index
    %202 = vector.load %arg6[%c18, %c0_190, %c0_191] : memref<81x32x256xbf16, #tpu.memory_space<vmem>>, vector<1x32x256xbf16>
    %203 = vector.shape_cast %202 : vector<1x32x256xbf16> to vector<32x256xbf16>
    %cst_192 = arith.constant dense<0.000000e+00> : vector<1x256xf32>
    %204 = tpu.matmul %201, %203, %cst_192 {dimension_numbers = #tpu.dot_dimension_numbers<[1], [0], [0], [1], [0, 0, 1, 1], [], []>} : vector<1x32xbf16>, vector<32x256xbf16>, vector<1x256xf32> -> vector<1x256xf32>
    %205 = arith.addf %199, %204 : vector<1x256xf32>
    %c82 = arith.constant 82 : index
    %c0_193 = arith.constant 0 : index
    %206 = vector.load %arg14[%c82, %c0_193] : memref<358x32xf32, #tpu.memory_space<vmem>>, vector<1x32xf32>
    %207 = arith.truncf %206 : vector<1x32xf32> to vector<1x32xbf16>
    %c19 = arith.constant 19 : index
    %c0_194 = arith.constant 0 : index
    %c0_195 = arith.constant 0 : index
    %208 = vector.load %arg6[%c19, %c0_194, %c0_195] : memref<81x32x256xbf16, #tpu.memory_space<vmem>>, vector<1x32x256xbf16>
    %209 = vector.shape_cast %208 : vector<1x32x256xbf16> to vector<32x256xbf16>
    %cst_196 = arith.constant dense<0.000000e+00> : vector<1x256xf32>
    %210 = tpu.matmul %207, %209, %cst_196 {dimension_numbers = #tpu.dot_dimension_numbers<[1], [0], [0], [1], [0, 0, 1, 1], [], []>} : vector<1x32xbf16>, vector<32x256xbf16>, vector<1x256xf32> -> vector<1x256xf32>
    %211 = arith.addf %205, %210 : vector<1x256xf32>
    %c84 = arith.constant 84 : index
    %c0_197 = arith.constant 0 : index
    %212 = vector.load %arg14[%c84, %c0_197] : memref<358x32xf32, #tpu.memory_space<vmem>>, vector<1x32xf32>
    %213 = arith.truncf %212 : vector<1x32xf32> to vector<1x32xbf16>
    %c20_198 = arith.constant 20 : index
    %c0_199 = arith.constant 0 : index
    %c0_200 = arith.constant 0 : index
    %214 = vector.load %arg6[%c20_198, %c0_199, %c0_200] : memref<81x32x256xbf16, #tpu.memory_space<vmem>>, vector<1x32x256xbf16>
    %215 = vector.shape_cast %214 : vector<1x32x256xbf16> to vector<32x256xbf16>
    %cst_201 = arith.constant dense<0.000000e+00> : vector<1x256xf32>
    %216 = tpu.matmul %213, %215, %cst_201 {dimension_numbers = #tpu.dot_dimension_numbers<[1], [0], [0], [1], [0, 0, 1, 1], [], []>} : vector<1x32xbf16>, vector<32x256xbf16>, vector<1x256xf32> -> vector<1x256xf32>
    %217 = arith.addf %211, %216 : vector<1x256xf32>
    %c86 = arith.constant 86 : index
    %c0_202 = arith.constant 0 : index
    %218 = vector.load %arg14[%c86, %c0_202] : memref<358x32xf32, #tpu.memory_space<vmem>>, vector<1x32xf32>
    %219 = arith.truncf %218 : vector<1x32xf32> to vector<1x32xbf16>
    %c21_203 = arith.constant 21 : index
    %c0_204 = arith.constant 0 : index
    %c0_205 = arith.constant 0 : index
    %220 = vector.load %arg6[%c21_203, %c0_204, %c0_205] : memref<81x32x256xbf16, #tpu.memory_space<vmem>>, vector<1x32x256xbf16>
    %221 = vector.shape_cast %220 : vector<1x32x256xbf16> to vector<32x256xbf16>
    %cst_206 = arith.constant dense<0.000000e+00> : vector<1x256xf32>
    %222 = tpu.matmul %219, %221, %cst_206 {dimension_numbers = #tpu.dot_dimension_numbers<[1], [0], [0], [1], [0, 0, 1, 1], [], []>} : vector<1x32xbf16>, vector<32x256xbf16>, vector<1x256xf32> -> vector<1x256xf32>
    %223 = arith.addf %217, %222 : vector<1x256xf32>
    %c88 = arith.constant 88 : index
    %c0_207 = arith.constant 0 : index
    %224 = vector.load %arg14[%c88, %c0_207] : memref<358x32xf32, #tpu.memory_space<vmem>>, vector<1x32xf32>
    %225 = arith.truncf %224 : vector<1x32xf32> to vector<1x32xbf16>
    %c22_208 = arith.constant 22 : index
    %c0_209 = arith.constant 0 : index
    %c0_210 = arith.constant 0 : index
    %226 = vector.load %arg6[%c22_208, %c0_209, %c0_210] : memref<81x32x256xbf16, #tpu.memory_space<vmem>>, vector<1x32x256xbf16>
    %227 = vector.shape_cast %226 : vector<1x32x256xbf16> to vector<32x256xbf16>
    %cst_211 = arith.constant dense<0.000000e+00> : vector<1x256xf32>
    %228 = tpu.matmul %225, %227, %cst_211 {dimension_numbers = #tpu.dot_dimension_numbers<[1], [0], [0], [1], [0, 0, 1, 1], [], []>} : vector<1x32xbf16>, vector<32x256xbf16>, vector<1x256xf32> -> vector<1x256xf32>
    %229 = arith.addf %223, %228 : vector<1x256xf32>
    %c90 = arith.constant 90 : index
    %c0_212 = arith.constant 0 : index
    %230 = vector.load %arg14[%c90, %c0_212] : memref<358x32xf32, #tpu.memory_space<vmem>>, vector<1x32xf32>
    %231 = arith.truncf %230 : vector<1x32xf32> to vector<1x32xbf16>
    %c23 = arith.constant 23 : index
    %c0_213 = arith.constant 0 : index
    %c0_214 = arith.constant 0 : index
    %232 = vector.load %arg6[%c23, %c0_213, %c0_214] : memref<81x32x256xbf16, #tpu.memory_space<vmem>>, vector<1x32x256xbf16>
    %233 = vector.shape_cast %232 : vector<1x32x256xbf16> to vector<32x256xbf16>
    %cst_215 = arith.constant dense<0.000000e+00> : vector<1x256xf32>
    %234 = tpu.matmul %231, %233, %cst_215 {dimension_numbers = #tpu.dot_dimension_numbers<[1], [0], [0], [1], [0, 0, 1, 1], [], []>} : vector<1x32xbf16>, vector<32x256xbf16>, vector<1x256xf32> -> vector<1x256xf32>
    %235 = arith.addf %229, %234 : vector<1x256xf32>
    %c92 = arith.constant 92 : index
    %c0_216 = arith.constant 0 : index
    %236 = vector.load %arg14[%c92, %c0_216] : memref<358x32xf32, #tpu.memory_space<vmem>>, vector<1x32xf32>
    %237 = arith.truncf %236 : vector<1x32xf32> to vector<1x32xbf16>
    %c24 = arith.constant 24 : index
    %c0_217 = arith.constant 0 : index
    %c0_218 = arith.constant 0 : index
    %238 = vector.load %arg6[%c24, %c0_217, %c0_218] : memref<81x32x256xbf16, #tpu.memory_space<vmem>>, vector<1x32x256xbf16>
    %239 = vector.shape_cast %238 : vector<1x32x256xbf16> to vector<32x256xbf16>
    %cst_219 = arith.constant dense<0.000000e+00> : vector<1x256xf32>
    %240 = tpu.matmul %237, %239, %cst_219 {dimension_numbers = #tpu.dot_dimension_numbers<[1], [0], [0], [1], [0, 0, 1, 1], [], []>} : vector<1x32xbf16>, vector<32x256xbf16>, vector<1x256xf32> -> vector<1x256xf32>
    %241 = arith.addf %235, %240 : vector<1x256xf32>
    %c94 = arith.constant 94 : index
    %c0_220 = arith.constant 0 : index
    %242 = vector.load %arg14[%c94, %c0_220] : memref<358x32xf32, #tpu.memory_space<vmem>>, vector<1x32xf32>
    %243 = arith.truncf %242 : vector<1x32xf32> to vector<1x32xbf16>
    %c25 = arith.constant 25 : index
    %c0_221 = arith.constant 0 : index
    %c0_222 = arith.constant 0 : index
    %244 = vector.load %arg6[%c25, %c0_221, %c0_222] : memref<81x32x256xbf16, #tpu.memory_space<vmem>>, vector<1x32x256xbf16>
    %245 = vector.shape_cast %244 : vector<1x32x256xbf16> to vector<32x256xbf16>
    %cst_223 = arith.constant dense<0.000000e+00> : vector<1x256xf32>
    %246 = tpu.matmul %243, %245, %cst_223 {dimension_numbers = #tpu.dot_dimension_numbers<[1], [0], [0], [1], [0, 0, 1, 1], [], []>} : vector<1x32xbf16>, vector<32x256xbf16>, vector<1x256xf32> -> vector<1x256xf32>
    %247 = arith.addf %241, %246 : vector<1x256xf32>
    %c96 = arith.constant 96 : index
    %c0_224 = arith.constant 0 : index
    %248 = vector.load %arg14[%c96, %c0_224] : memref<358x32xf32, #tpu.memory_space<vmem>>, vector<1x32xf32>
    %249 = arith.truncf %248 : vector<1x32xf32> to vector<1x32xbf16>
    %c26 = arith.constant 26 : index
    %c0_225 = arith.constant 0 : index
    %c0_226 = arith.constant 0 : index
    %250 = vector.load %arg6[%c26, %c0_225, %c0_226] : memref<81x32x256xbf16, #tpu.memory_space<vmem>>, vector<1x32x256xbf16>
    %251 = vector.shape_cast %250 : vector<1x32x256xbf16> to vector<32x256xbf16>
    %cst_227 = arith.constant dense<0.000000e+00> : vector<1x256xf32>
    %252 = tpu.matmul %249, %251, %cst_227 {dimension_numbers = #tpu.dot_dimension_numbers<[1], [0], [0], [1], [0, 0, 1, 1], [], []>} : vector<1x32xbf16>, vector<32x256xbf16>, vector<1x256xf32> -> vector<1x256xf32>
    %253 = arith.addf %247, %252 : vector<1x256xf32>
    %c120 = arith.constant 120 : index
    %c0_228 = arith.constant 0 : index
    %254 = vector.load %arg14[%c120, %c0_228] : memref<358x32xf32, #tpu.memory_space<vmem>>, vector<1x32xf32>
    %255 = arith.truncf %254 : vector<1x32xf32> to vector<1x32xbf16>
    %c27 = arith.constant 27 : index
    %c0_229 = arith.constant 0 : index
    %c0_230 = arith.constant 0 : index
    %256 = vector.load %arg6[%c27, %c0_229, %c0_230] : memref<81x32x256xbf16, #tpu.memory_space<vmem>>, vector<1x32x256xbf16>
    %257 = vector.shape_cast %256 : vector<1x32x256xbf16> to vector<32x256xbf16>
    %cst_231 = arith.constant dense<0.000000e+00> : vector<1x256xf32>
    %258 = tpu.matmul %255, %257, %cst_231 {dimension_numbers = #tpu.dot_dimension_numbers<[1], [0], [0], [1], [0, 0, 1, 1], [], []>} : vector<1x32xbf16>, vector<32x256xbf16>, vector<1x256xf32> -> vector<1x256xf32>
    %259 = arith.addf %253, %258 : vector<1x256xf32>
    %c122 = arith.constant 122 : index
    %c0_232 = arith.constant 0 : index
    %260 = vector.load %arg14[%c122, %c0_232] : memref<358x32xf32, #tpu.memory_space<vmem>>, vector<1x32xf32>
    %261 = arith.truncf %260 : vector<1x32xf32> to vector<1x32xbf16>
    %c28 = arith.constant 28 : index
    %c0_233 = arith.constant 0 : index
    %c0_234 = arith.constant 0 : index
    %262 = vector.load %arg6[%c28, %c0_233, %c0_234] : memref<81x32x256xbf16, #tpu.memory_space<vmem>>, vector<1x32x256xbf16>
    %263 = vector.shape_cast %262 : vector<1x32x256xbf16> to vector<32x256xbf16>
    %cst_235 = arith.constant dense<0.000000e+00> : vector<1x256xf32>
    %264 = tpu.matmul %261, %263, %cst_235 {dimension_numbers = #tpu.dot_dimension_numbers<[1], [0], [0], [1], [0, 0, 1, 1], [], []>} : vector<1x32xbf16>, vector<32x256xbf16>, vector<1x256xf32> -> vector<1x256xf32>
    %265 = arith.addf %259, %264 : vector<1x256xf32>
    %c124 = arith.constant 124 : index
    %c0_236 = arith.constant 0 : index
    %266 = vector.load %arg14[%c124, %c0_236] : memref<358x32xf32, #tpu.memory_space<vmem>>, vector<1x32xf32>
    %267 = arith.truncf %266 : vector<1x32xf32> to vector<1x32xbf16>
    %c29 = arith.constant 29 : index
    %c0_237 = arith.constant 0 : index
    %c0_238 = arith.constant 0 : index
    %268 = vector.load %arg6[%c29, %c0_237, %c0_238] : memref<81x32x256xbf16, #tpu.memory_space<vmem>>, vector<1x32x256xbf16>
    %269 = vector.shape_cast %268 : vector<1x32x256xbf16> to vector<32x256xbf16>
    %cst_239 = arith.constant dense<0.000000e+00> : vector<1x256xf32>
    %270 = tpu.matmul %267, %269, %cst_239 {dimension_numbers = #tpu.dot_dimension_numbers<[1], [0], [0], [1], [0, 0, 1, 1], [], []>} : vector<1x32xbf16>, vector<32x256xbf16>, vector<1x256xf32> -> vector<1x256xf32>
    %271 = arith.addf %265, %270 : vector<1x256xf32>
    %c126 = arith.constant 126 : index
    %c0_240 = arith.constant 0 : index
    %272 = vector.load %arg14[%c126, %c0_240] : memref<358x32xf32, #tpu.memory_space<vmem>>, vector<1x32xf32>
    %273 = arith.truncf %272 : vector<1x32xf32> to vector<1x32xbf16>
    %c30 = arith.constant 30 : index
    %c0_241 = arith.constant 0 : index
    %c0_242 = arith.constant 0 : index
    %274 = vector.load %arg6[%c30, %c0_241, %c0_242] : memref<81x32x256xbf16, #tpu.memory_space<vmem>>, vector<1x32x256xbf16>
    %275 = vector.shape_cast %274 : vector<1x32x256xbf16> to vector<32x256xbf16>
    %cst_243 = arith.constant dense<0.000000e+00> : vector<1x256xf32>
    %276 = tpu.matmul %273, %275, %cst_243 {dimension_numbers = #tpu.dot_dimension_numbers<[1], [0], [0], [1], [0, 0, 1, 1], [], []>} : vector<1x32xbf16>, vector<32x256xbf16>, vector<1x256xf32> -> vector<1x256xf32>
    %277 = arith.addf %271, %276 : vector<1x256xf32>
    %c128 = arith.constant 128 : index
    %c0_244 = arith.constant 0 : index
    %278 = vector.load %arg14[%c128, %c0_244] : memref<358x32xf32, #tpu.memory_space<vmem>>, vector<1x32xf32>
    %279 = arith.truncf %278 : vector<1x32xf32> to vector<1x32xbf16>
    %c31 = arith.constant 31 : index
    %c0_245 = arith.constant 0 : index
    %c0_246 = arith.constant 0 : index
    %280 = vector.load %arg6[%c31, %c0_245, %c0_246] : memref<81x32x256xbf16, #tpu.memory_space<vmem>>, vector<1x32x256xbf16>
    %281 = vector.shape_cast %280 : vector<1x32x256xbf16> to vector<32x256xbf16>
    %cst_247 = arith.constant dense<0.000000e+00> : vector<1x256xf32>
    %282 = tpu.matmul %279, %281, %cst_247 {dimension_numbers = #tpu.dot_dimension_numbers<[1], [0], [0], [1], [0, 0, 1, 1], [], []>} : vector<1x32xbf16>, vector<32x256xbf16>, vector<1x256xf32> -> vector<1x256xf32>
    %283 = arith.addf %277, %282 : vector<1x256xf32>
    %c130 = arith.constant 130 : index
    %c0_248 = arith.constant 0 : index
    %284 = vector.load %arg14[%c130, %c0_248] : memref<358x32xf32, #tpu.memory_space<vmem>>, vector<1x32xf32>
    %285 = arith.truncf %284 : vector<1x32xf32> to vector<1x32xbf16>
    %c32 = arith.constant 32 : index
    %c0_249 = arith.constant 0 : index
    %c0_250 = arith.constant 0 : index
    %286 = vector.load %arg6[%c32, %c0_249, %c0_250] : memref<81x32x256xbf16, #tpu.memory_space<vmem>>, vector<1x32x256xbf16>
    %287 = vector.shape_cast %286 : vector<1x32x256xbf16> to vector<32x256xbf16>
    %cst_251 = arith.constant dense<0.000000e+00> : vector<1x256xf32>
    %288 = tpu.matmul %285, %287, %cst_251 {dimension_numbers = #tpu.dot_dimension_numbers<[1], [0], [0], [1], [0, 0, 1, 1], [], []>} : vector<1x32xbf16>, vector<32x256xbf16>, vector<1x256xf32> -> vector<1x256xf32>
    %289 = arith.addf %283, %288 : vector<1x256xf32>
    %c132 = arith.constant 132 : index
    %c0_252 = arith.constant 0 : index
    %290 = vector.load %arg14[%c132, %c0_252] : memref<358x32xf32, #tpu.memory_space<vmem>>, vector<1x32xf32>
    %291 = arith.truncf %290 : vector<1x32xf32> to vector<1x32xbf16>
    %c33 = arith.constant 33 : index
    %c0_253 = arith.constant 0 : index
    %c0_254 = arith.constant 0 : index
    %292 = vector.load %arg6[%c33, %c0_253, %c0_254] : memref<81x32x256xbf16, #tpu.memory_space<vmem>>, vector<1x32x256xbf16>
    %293 = vector.shape_cast %292 : vector<1x32x256xbf16> to vector<32x256xbf16>
    %cst_255 = arith.constant dense<0.000000e+00> : vector<1x256xf32>
    %294 = tpu.matmul %291, %293, %cst_255 {dimension_numbers = #tpu.dot_dimension_numbers<[1], [0], [0], [1], [0, 0, 1, 1], [], []>} : vector<1x32xbf16>, vector<32x256xbf16>, vector<1x256xf32> -> vector<1x256xf32>
    %295 = arith.addf %289, %294 : vector<1x256xf32>
    %c134 = arith.constant 134 : index
    %c0_256 = arith.constant 0 : index
    %296 = vector.load %arg14[%c134, %c0_256] : memref<358x32xf32, #tpu.memory_space<vmem>>, vector<1x32xf32>
    %297 = arith.truncf %296 : vector<1x32xf32> to vector<1x32xbf16>
    %c34 = arith.constant 34 : index
    %c0_257 = arith.constant 0 : index
    %c0_258 = arith.constant 0 : index
    %298 = vector.load %arg6[%c34, %c0_257, %c0_258] : memref<81x32x256xbf16, #tpu.memory_space<vmem>>, vector<1x32x256xbf16>
    %299 = vector.shape_cast %298 : vector<1x32x256xbf16> to vector<32x256xbf16>
    %cst_259 = arith.constant dense<0.000000e+00> : vector<1x256xf32>
    %300 = tpu.matmul %297, %299, %cst_259 {dimension_numbers = #tpu.dot_dimension_numbers<[1], [0], [0], [1], [0, 0, 1, 1], [], []>} : vector<1x32xbf16>, vector<32x256xbf16>, vector<1x256xf32> -> vector<1x256xf32>
    %301 = arith.addf %295, %300 : vector<1x256xf32>
    %c136 = arith.constant 136 : index
    %c0_260 = arith.constant 0 : index
    %302 = vector.load %arg14[%c136, %c0_260] : memref<358x32xf32, #tpu.memory_space<vmem>>, vector<1x32xf32>
    %303 = arith.truncf %302 : vector<1x32xf32> to vector<1x32xbf16>
    %c35 = arith.constant 35 : index
    %c0_261 = arith.constant 0 : index
    %c0_262 = arith.constant 0 : index
    %304 = vector.load %arg6[%c35, %c0_261, %c0_262] : memref<81x32x256xbf16, #tpu.memory_space<vmem>>, vector<1x32x256xbf16>
    %305 = vector.shape_cast %304 : vector<1x32x256xbf16> to vector<32x256xbf16>
    %cst_263 = arith.constant dense<0.000000e+00> : vector<1x256xf32>
    %306 = tpu.matmul %303, %305, %cst_263 {dimension_numbers = #tpu.dot_dimension_numbers<[1], [0], [0], [1], [0, 0, 1, 1], [], []>} : vector<1x32xbf16>, vector<32x256xbf16>, vector<1x256xf32> -> vector<1x256xf32>
    %307 = arith.addf %301, %306 : vector<1x256xf32>
    %c160 = arith.constant 160 : index
    %c0_264 = arith.constant 0 : index
    %308 = vector.load %arg14[%c160, %c0_264] : memref<358x32xf32, #tpu.memory_space<vmem>>, vector<1x32xf32>
    %309 = arith.truncf %308 : vector<1x32xf32> to vector<1x32xbf16>
    %c36 = arith.constant 36 : index
    %c0_265 = arith.constant 0 : index
    %c0_266 = arith.constant 0 : index
    %310 = vector.load %arg6[%c36, %c0_265, %c0_266] : memref<81x32x256xbf16, #tpu.memory_space<vmem>>, vector<1x32x256xbf16>
    %311 = vector.shape_cast %310 : vector<1x32x256xbf16> to vector<32x256xbf16>
    %cst_267 = arith.constant dense<0.000000e+00> : vector<1x256xf32>
    %312 = tpu.matmul %309, %311, %cst_267 {dimension_numbers = #tpu.dot_dimension_numbers<[1], [0], [0], [1], [0, 0, 1, 1], [], []>} : vector<1x32xbf16>, vector<32x256xbf16>, vector<1x256xf32> -> vector<1x256xf32>
    %313 = arith.addf %307, %312 : vector<1x256xf32>
    %c162 = arith.constant 162 : index
    %c0_268 = arith.constant 0 : index
    %314 = vector.load %arg14[%c162, %c0_268] : memref<358x32xf32, #tpu.memory_space<vmem>>, vector<1x32xf32>
    %315 = arith.truncf %314 : vector<1x32xf32> to vector<1x32xbf16>
    %c37 = arith.constant 37 : index
    %c0_269 = arith.constant 0 : index
    %c0_270 = arith.constant 0 : index
    %316 = vector.load %arg6[%c37, %c0_269, %c0_270] : memref<81x32x256xbf16, #tpu.memory_space<vmem>>, vector<1x32x256xbf16>
    %317 = vector.shape_cast %316 : vector<1x32x256xbf16> to vector<32x256xbf16>
    %cst_271 = arith.constant dense<0.000000e+00> : vector<1x256xf32>
    %318 = tpu.matmul %315, %317, %cst_271 {dimension_numbers = #tpu.dot_dimension_numbers<[1], [0], [0], [1], [0, 0, 1, 1], [], []>} : vector<1x32xbf16>, vector<32x256xbf16>, vector<1x256xf32> -> vector<1x256xf32>
    %319 = arith.addf %313, %318 : vector<1x256xf32>
    %c164 = arith.constant 164 : index
    %c0_272 = arith.constant 0 : index
    %320 = vector.load %arg14[%c164, %c0_272] : memref<358x32xf32, #tpu.memory_space<vmem>>, vector<1x32xf32>
    %321 = arith.truncf %320 : vector<1x32xf32> to vector<1x32xbf16>
    %c38 = arith.constant 38 : index
    %c0_273 = arith.constant 0 : index
    %c0_274 = arith.constant 0 : index
    %322 = vector.load %arg6[%c38, %c0_273, %c0_274] : memref<81x32x256xbf16, #tpu.memory_space<vmem>>, vector<1x32x256xbf16>
    %323 = vector.shape_cast %322 : vector<1x32x256xbf16> to vector<32x256xbf16>
    %cst_275 = arith.constant dense<0.000000e+00> : vector<1x256xf32>
    %324 = tpu.matmul %321, %323, %cst_275 {dimension_numbers = #tpu.dot_dimension_numbers<[1], [0], [0], [1], [0, 0, 1, 1], [], []>} : vector<1x32xbf16>, vector<32x256xbf16>, vector<1x256xf32> -> vector<1x256xf32>
    %325 = arith.addf %319, %324 : vector<1x256xf32>
    %c166 = arith.constant 166 : index
    %c0_276 = arith.constant 0 : index
    %326 = vector.load %arg14[%c166, %c0_276] : memref<358x32xf32, #tpu.memory_space<vmem>>, vector<1x32xf32>
    %327 = arith.truncf %326 : vector<1x32xf32> to vector<1x32xbf16>
    %c39 = arith.constant 39 : index
    %c0_277 = arith.constant 0 : index
    %c0_278 = arith.constant 0 : index
    %328 = vector.load %arg6[%c39, %c0_277, %c0_278] : memref<81x32x256xbf16, #tpu.memory_space<vmem>>, vector<1x32x256xbf16>
    %329 = vector.shape_cast %328 : vector<1x32x256xbf16> to vector<32x256xbf16>
    %cst_279 = arith.constant dense<0.000000e+00> : vector<1x256xf32>
    %330 = tpu.matmul %327, %329, %cst_279 {dimension_numbers = #tpu.dot_dimension_numbers<[1], [0], [0], [1], [0, 0, 1, 1], [], []>} : vector<1x32xbf16>, vector<32x256xbf16>, vector<1x256xf32> -> vector<1x256xf32>
    %331 = arith.addf %325, %330 : vector<1x256xf32>
    %c168 = arith.constant 168 : index
    %c0_280 = arith.constant 0 : index
    %332 = vector.load %arg14[%c168, %c0_280] : memref<358x32xf32, #tpu.memory_space<vmem>>, vector<1x32xf32>
    %333 = arith.truncf %332 : vector<1x32xf32> to vector<1x32xbf16>
    %c40_281 = arith.constant 40 : index
    %c0_282 = arith.constant 0 : index
    %c0_283 = arith.constant 0 : index
    %334 = vector.load %arg6[%c40_281, %c0_282, %c0_283] : memref<81x32x256xbf16, #tpu.memory_space<vmem>>, vector<1x32x256xbf16>
    %335 = vector.shape_cast %334 : vector<1x32x256xbf16> to vector<32x256xbf16>
    %cst_284 = arith.constant dense<0.000000e+00> : vector<1x256xf32>
    %336 = tpu.matmul %333, %335, %cst_284 {dimension_numbers = #tpu.dot_dimension_numbers<[1], [0], [0], [1], [0, 0, 1, 1], [], []>} : vector<1x32xbf16>, vector<32x256xbf16>, vector<1x256xf32> -> vector<1x256xf32>
    %337 = arith.addf %331, %336 : vector<1x256xf32>
    %c170 = arith.constant 170 : index
    %c0_285 = arith.constant 0 : index
    %338 = vector.load %arg14[%c170, %c0_285] : memref<358x32xf32, #tpu.memory_space<vmem>>, vector<1x32xf32>
    %339 = arith.truncf %338 : vector<1x32xf32> to vector<1x32xbf16>
    %c41_286 = arith.constant 41 : index
    %c0_287 = arith.constant 0 : index
    %c0_288 = arith.constant 0 : index
    %340 = vector.load %arg6[%c41_286, %c0_287, %c0_288] : memref<81x32x256xbf16, #tpu.memory_space<vmem>>, vector<1x32x256xbf16>
    %341 = vector.shape_cast %340 : vector<1x32x256xbf16> to vector<32x256xbf16>
    %cst_289 = arith.constant dense<0.000000e+00> : vector<1x256xf32>
    %342 = tpu.matmul %339, %341, %cst_289 {dimension_numbers = #tpu.dot_dimension_numbers<[1], [0], [0], [1], [0, 0, 1, 1], [], []>} : vector<1x32xbf16>, vector<32x256xbf16>, vector<1x256xf32> -> vector<1x256xf32>
    %343 = arith.addf %337, %342 : vector<1x256xf32>
    %c172 = arith.constant 172 : index
    %c0_290 = arith.constant 0 : index
    %344 = vector.load %arg14[%c172, %c0_290] : memref<358x32xf32, #tpu.memory_space<vmem>>, vector<1x32xf32>
    %345 = arith.truncf %344 : vector<1x32xf32> to vector<1x32xbf16>
    %c42_291 = arith.constant 42 : index
    %c0_292 = arith.constant 0 : index
    %c0_293 = arith.constant 0 : index
    %346 = vector.load %arg6[%c42_291, %c0_292, %c0_293] : memref<81x32x256xbf16, #tpu.memory_space<vmem>>, vector<1x32x256xbf16>
    %347 = vector.shape_cast %346 : vector<1x32x256xbf16> to vector<32x256xbf16>
    %cst_294 = arith.constant dense<0.000000e+00> : vector<1x256xf32>
    %348 = tpu.matmul %345, %347, %cst_294 {dimension_numbers = #tpu.dot_dimension_numbers<[1], [0], [0], [1], [0, 0, 1, 1], [], []>} : vector<1x32xbf16>, vector<32x256xbf16>, vector<1x256xf32> -> vector<1x256xf32>
    %349 = arith.addf %343, %348 : vector<1x256xf32>
    %c174 = arith.constant 174 : index
    %c0_295 = arith.constant 0 : index
    %350 = vector.load %arg14[%c174, %c0_295] : memref<358x32xf32, #tpu.memory_space<vmem>>, vector<1x32xf32>
    %351 = arith.truncf %350 : vector<1x32xf32> to vector<1x32xbf16>
    %c43 = arith.constant 43 : index
    %c0_296 = arith.constant 0 : index
    %c0_297 = arith.constant 0 : index
    %352 = vector.load %arg6[%c43, %c0_296, %c0_297] : memref<81x32x256xbf16, #tpu.memory_space<vmem>>, vector<1x32x256xbf16>
    %353 = vector.shape_cast %352 : vector<1x32x256xbf16> to vector<32x256xbf16>
    %cst_298 = arith.constant dense<0.000000e+00> : vector<1x256xf32>
    %354 = tpu.matmul %351, %353, %cst_298 {dimension_numbers = #tpu.dot_dimension_numbers<[1], [0], [0], [1], [0, 0, 1, 1], [], []>} : vector<1x32xbf16>, vector<32x256xbf16>, vector<1x256xf32> -> vector<1x256xf32>
    %355 = arith.addf %349, %354 : vector<1x256xf32>
    %c176 = arith.constant 176 : index
    %c0_299 = arith.constant 0 : index
    %356 = vector.load %arg14[%c176, %c0_299] : memref<358x32xf32, #tpu.memory_space<vmem>>, vector<1x32xf32>
    %357 = arith.truncf %356 : vector<1x32xf32> to vector<1x32xbf16>
    %c44_300 = arith.constant 44 : index
    %c0_301 = arith.constant 0 : index
    %c0_302 = arith.constant 0 : index
    %358 = vector.load %arg6[%c44_300, %c0_301, %c0_302] : memref<81x32x256xbf16, #tpu.memory_space<vmem>>, vector<1x32x256xbf16>
    %359 = vector.shape_cast %358 : vector<1x32x256xbf16> to vector<32x256xbf16>
    %cst_303 = arith.constant dense<0.000000e+00> : vector<1x256xf32>
    %360 = tpu.matmul %357, %359, %cst_303 {dimension_numbers = #tpu.dot_dimension_numbers<[1], [0], [0], [1], [0, 0, 1, 1], [], []>} : vector<1x32xbf16>, vector<32x256xbf16>, vector<1x256xf32> -> vector<1x256xf32>
    %361 = arith.addf %355, %360 : vector<1x256xf32>
    %c200 = arith.constant 200 : index
    %c0_304 = arith.constant 0 : index
    %362 = vector.load %arg14[%c200, %c0_304] : memref<358x32xf32, #tpu.memory_space<vmem>>, vector<1x32xf32>
    %363 = arith.truncf %362 : vector<1x32xf32> to vector<1x32xbf16>
    %c45 = arith.constant 45 : index
    %c0_305 = arith.constant 0 : index
    %c0_306 = arith.constant 0 : index
    %364 = vector.load %arg6[%c45, %c0_305, %c0_306] : memref<81x32x256xbf16, #tpu.memory_space<vmem>>, vector<1x32x256xbf16>
    %365 = vector.shape_cast %364 : vector<1x32x256xbf16> to vector<32x256xbf16>
    %cst_307 = arith.constant dense<0.000000e+00> : vector<1x256xf32>
    %366 = tpu.matmul %363, %365, %cst_307 {dimension_numbers = #tpu.dot_dimension_numbers<[1], [0], [0], [1], [0, 0, 1, 1], [], []>} : vector<1x32xbf16>, vector<32x256xbf16>, vector<1x256xf32> -> vector<1x256xf32>
    %367 = arith.addf %361, %366 : vector<1x256xf32>
    %c202 = arith.constant 202 : index
    %c0_308 = arith.constant 0 : index
    %368 = vector.load %arg14[%c202, %c0_308] : memref<358x32xf32, #tpu.memory_space<vmem>>, vector<1x32xf32>
    %369 = arith.truncf %368 : vector<1x32xf32> to vector<1x32xbf16>
    %c46_309 = arith.constant 46 : index
    %c0_310 = arith.constant 0 : index
    %c0_311 = arith.constant 0 : index
    %370 = vector.load %arg6[%c46_309, %c0_310, %c0_311] : memref<81x32x256xbf16, #tpu.memory_space<vmem>>, vector<1x32x256xbf16>
    %371 = vector.shape_cast %370 : vector<1x32x256xbf16> to vector<32x256xbf16>
    %cst_312 = arith.constant dense<0.000000e+00> : vector<1x256xf32>
    %372 = tpu.matmul %369, %371, %cst_312 {dimension_numbers = #tpu.dot_dimension_numbers<[1], [0], [0], [1], [0, 0, 1, 1], [], []>} : vector<1x32xbf16>, vector<32x256xbf16>, vector<1x256xf32> -> vector<1x256xf32>
    %373 = arith.addf %367, %372 : vector<1x256xf32>
    %c204 = arith.constant 204 : index
    %c0_313 = arith.constant 0 : index
    %374 = vector.load %arg14[%c204, %c0_313] : memref<358x32xf32, #tpu.memory_space<vmem>>, vector<1x32xf32>
    %375 = arith.truncf %374 : vector<1x32xf32> to vector<1x32xbf16>
    %c47 = arith.constant 47 : index
    %c0_314 = arith.constant 0 : index
    %c0_315 = arith.constant 0 : index
    %376 = vector.load %arg6[%c47, %c0_314, %c0_315] : memref<81x32x256xbf16, #tpu.memory_space<vmem>>, vector<1x32x256xbf16>
    %377 = vector.shape_cast %376 : vector<1x32x256xbf16> to vector<32x256xbf16>
    %cst_316 = arith.constant dense<0.000000e+00> : vector<1x256xf32>
    %378 = tpu.matmul %375, %377, %cst_316 {dimension_numbers = #tpu.dot_dimension_numbers<[1], [0], [0], [1], [0, 0, 1, 1], [], []>} : vector<1x32xbf16>, vector<32x256xbf16>, vector<1x256xf32> -> vector<1x256xf32>
    %379 = arith.addf %373, %378 : vector<1x256xf32>
    %c206 = arith.constant 206 : index
    %c0_317 = arith.constant 0 : index
    %380 = vector.load %arg14[%c206, %c0_317] : memref<358x32xf32, #tpu.memory_space<vmem>>, vector<1x32xf32>
    %381 = arith.truncf %380 : vector<1x32xf32> to vector<1x32xbf16>
    %c48_318 = arith.constant 48 : index
    %c0_319 = arith.constant 0 : index
    %c0_320 = arith.constant 0 : index
    %382 = vector.load %arg6[%c48_318, %c0_319, %c0_320] : memref<81x32x256xbf16, #tpu.memory_space<vmem>>, vector<1x32x256xbf16>
    %383 = vector.shape_cast %382 : vector<1x32x256xbf16> to vector<32x256xbf16>
    %cst_321 = arith.constant dense<0.000000e+00> : vector<1x256xf32>
    %384 = tpu.matmul %381, %383, %cst_321 {dimension_numbers = #tpu.dot_dimension_numbers<[1], [0], [0], [1], [0, 0, 1, 1], [], []>} : vector<1x32xbf16>, vector<32x256xbf16>, vector<1x256xf32> -> vector<1x256xf32>
    %385 = arith.addf %379, %384 : vector<1x256xf32>
    %c208 = arith.constant 208 : index
    %c0_322 = arith.constant 0 : index
    %386 = vector.load %arg14[%c208, %c0_322] : memref<358x32xf32, #tpu.memory_space<vmem>>, vector<1x32xf32>
    %387 = arith.truncf %386 : vector<1x32xf32> to vector<1x32xbf16>
    %c49 = arith.constant 49 : index
    %c0_323 = arith.constant 0 : index
    %c0_324 = arith.constant 0 : index
    %388 = vector.load %arg6[%c49, %c0_323, %c0_324] : memref<81x32x256xbf16, #tpu.memory_space<vmem>>, vector<1x32x256xbf16>
    %389 = vector.shape_cast %388 : vector<1x32x256xbf16> to vector<32x256xbf16>
    %cst_325 = arith.constant dense<0.000000e+00> : vector<1x256xf32>
    %390 = tpu.matmul %387, %389, %cst_325 {dimension_numbers = #tpu.dot_dimension_numbers<[1], [0], [0], [1], [0, 0, 1, 1], [], []>} : vector<1x32xbf16>, vector<32x256xbf16>, vector<1x256xf32> -> vector<1x256xf32>
    %391 = arith.addf %385, %390 : vector<1x256xf32>
    %c210 = arith.constant 210 : index
    %c0_326 = arith.constant 0 : index
    %392 = vector.load %arg14[%c210, %c0_326] : memref<358x32xf32, #tpu.memory_space<vmem>>, vector<1x32xf32>
    %393 = arith.truncf %392 : vector<1x32xf32> to vector<1x32xbf16>
    %c50_327 = arith.constant 50 : index
    %c0_328 = arith.constant 0 : index
    %c0_329 = arith.constant 0 : index
    %394 = vector.load %arg6[%c50_327, %c0_328, %c0_329] : memref<81x32x256xbf16, #tpu.memory_space<vmem>>, vector<1x32x256xbf16>
    %395 = vector.shape_cast %394 : vector<1x32x256xbf16> to vector<32x256xbf16>
    %cst_330 = arith.constant dense<0.000000e+00> : vector<1x256xf32>
    %396 = tpu.matmul %393, %395, %cst_330 {dimension_numbers = #tpu.dot_dimension_numbers<[1], [0], [0], [1], [0, 0, 1, 1], [], []>} : vector<1x32xbf16>, vector<32x256xbf16>, vector<1x256xf32> -> vector<1x256xf32>
    %397 = arith.addf %391, %396 : vector<1x256xf32>
    %c212 = arith.constant 212 : index
    %c0_331 = arith.constant 0 : index
    %398 = vector.load %arg14[%c212, %c0_331] : memref<358x32xf32, #tpu.memory_space<vmem>>, vector<1x32xf32>
    %399 = arith.truncf %398 : vector<1x32xf32> to vector<1x32xbf16>
    %c51 = arith.constant 51 : index
    %c0_332 = arith.constant 0 : index
    %c0_333 = arith.constant 0 : index
    %400 = vector.load %arg6[%c51, %c0_332, %c0_333] : memref<81x32x256xbf16, #tpu.memory_space<vmem>>, vector<1x32x256xbf16>
    %401 = vector.shape_cast %400 : vector<1x32x256xbf16> to vector<32x256xbf16>
    %cst_334 = arith.constant dense<0.000000e+00> : vector<1x256xf32>
    %402 = tpu.matmul %399, %401, %cst_334 {dimension_numbers = #tpu.dot_dimension_numbers<[1], [0], [0], [1], [0, 0, 1, 1], [], []>} : vector<1x32xbf16>, vector<32x256xbf16>, vector<1x256xf32> -> vector<1x256xf32>
    %403 = arith.addf %397, %402 : vector<1x256xf32>
    %c214 = arith.constant 214 : index
    %c0_335 = arith.constant 0 : index
    %404 = vector.load %arg14[%c214, %c0_335] : memref<358x32xf32, #tpu.memory_space<vmem>>, vector<1x32xf32>
    %405 = arith.truncf %404 : vector<1x32xf32> to vector<1x32xbf16>
    %c52_336 = arith.constant 52 : index
    %c0_337 = arith.constant 0 : index
    %c0_338 = arith.constant 0 : index
    %406 = vector.load %arg6[%c52_336, %c0_337, %c0_338] : memref<81x32x256xbf16, #tpu.memory_space<vmem>>, vector<1x32x256xbf16>
    %407 = vector.shape_cast %406 : vector<1x32x256xbf16> to vector<32x256xbf16>
    %cst_339 = arith.constant dense<0.000000e+00> : vector<1x256xf32>
    %408 = tpu.matmul %405, %407, %cst_339 {dimension_numbers = #tpu.dot_dimension_numbers<[1], [0], [0], [1], [0, 0, 1, 1], [], []>} : vector<1x32xbf16>, vector<32x256xbf16>, vector<1x256xf32> -> vector<1x256xf32>
    %409 = arith.addf %403, %408 : vector<1x256xf32>
    %c216 = arith.constant 216 : index
    %c0_340 = arith.constant 0 : index
    %410 = vector.load %arg14[%c216, %c0_340] : memref<358x32xf32, #tpu.memory_space<vmem>>, vector<1x32xf32>
    %411 = arith.truncf %410 : vector<1x32xf32> to vector<1x32xbf16>
    %c53 = arith.constant 53 : index
    %c0_341 = arith.constant 0 : index
    %c0_342 = arith.constant 0 : index
    %412 = vector.load %arg6[%c53, %c0_341, %c0_342] : memref<81x32x256xbf16, #tpu.memory_space<vmem>>, vector<1x32x256xbf16>
    %413 = vector.shape_cast %412 : vector<1x32x256xbf16> to vector<32x256xbf16>
    %cst_343 = arith.constant dense<0.000000e+00> : vector<1x256xf32>
    %414 = tpu.matmul %411, %413, %cst_343 {dimension_numbers = #tpu.dot_dimension_numbers<[1], [0], [0], [1], [0, 0, 1, 1], [], []>} : vector<1x32xbf16>, vector<32x256xbf16>, vector<1x256xf32> -> vector<1x256xf32>
    %415 = arith.addf %409, %414 : vector<1x256xf32>
    %c240 = arith.constant 240 : index
    %c0_344 = arith.constant 0 : index
    %416 = vector.load %arg14[%c240, %c0_344] : memref<358x32xf32, #tpu.memory_space<vmem>>, vector<1x32xf32>
    %417 = arith.truncf %416 : vector<1x32xf32> to vector<1x32xbf16>
    %c54_345 = arith.constant 54 : index
    %c0_346 = arith.constant 0 : index
    %c0_347 = arith.constant 0 : index
    %418 = vector.load %arg6[%c54_345, %c0_346, %c0_347] : memref<81x32x256xbf16, #tpu.memory_space<vmem>>, vector<1x32x256xbf16>
    %419 = vector.shape_cast %418 : vector<1x32x256xbf16> to vector<32x256xbf16>
    %cst_348 = arith.constant dense<0.000000e+00> : vector<1x256xf32>
    %420 = tpu.matmul %417, %419, %cst_348 {dimension_numbers = #tpu.dot_dimension_numbers<[1], [0], [0], [1], [0, 0, 1, 1], [], []>} : vector<1x32xbf16>, vector<32x256xbf16>, vector<1x256xf32> -> vector<1x256xf32>
    %421 = arith.addf %415, %420 : vector<1x256xf32>
    %c242 = arith.constant 242 : index
    %c0_349 = arith.constant 0 : index
    %422 = vector.load %arg14[%c242, %c0_349] : memref<358x32xf32, #tpu.memory_space<vmem>>, vector<1x32xf32>
    %423 = arith.truncf %422 : vector<1x32xf32> to vector<1x32xbf16>
    %c55 = arith.constant 55 : index
    %c0_350 = arith.constant 0 : index
    %c0_351 = arith.constant 0 : index
    %424 = vector.load %arg6[%c55, %c0_350, %c0_351] : memref<81x32x256xbf16, #tpu.memory_space<vmem>>, vector<1x32x256xbf16>
    %425 = vector.shape_cast %424 : vector<1x32x256xbf16> to vector<32x256xbf16>
    %cst_352 = arith.constant dense<0.000000e+00> : vector<1x256xf32>
    %426 = tpu.matmul %423, %425, %cst_352 {dimension_numbers = #tpu.dot_dimension_numbers<[1], [0], [0], [1], [0, 0, 1, 1], [], []>} : vector<1x32xbf16>, vector<32x256xbf16>, vector<1x256xf32> -> vector<1x256xf32>
    %427 = arith.addf %421, %426 : vector<1x256xf32>
    %c244 = arith.constant 244 : index
    %c0_353 = arith.constant 0 : index
    %428 = vector.load %arg14[%c244, %c0_353] : memref<358x32xf32, #tpu.memory_space<vmem>>, vector<1x32xf32>
    %429 = arith.truncf %428 : vector<1x32xf32> to vector<1x32xbf16>
    %c56_354 = arith.constant 56 : index
    %c0_355 = arith.constant 0 : index
    %c0_356 = arith.constant 0 : index
    %430 = vector.load %arg6[%c56_354, %c0_355, %c0_356] : memref<81x32x256xbf16, #tpu.memory_space<vmem>>, vector<1x32x256xbf16>
    %431 = vector.shape_cast %430 : vector<1x32x256xbf16> to vector<32x256xbf16>
    %cst_357 = arith.constant dense<0.000000e+00> : vector<1x256xf32>
    %432 = tpu.matmul %429, %431, %cst_357 {dimension_numbers = #tpu.dot_dimension_numbers<[1], [0], [0], [1], [0, 0, 1, 1], [], []>} : vector<1x32xbf16>, vector<32x256xbf16>, vector<1x256xf32> -> vector<1x256xf32>
    %433 = arith.addf %427, %432 : vector<1x256xf32>
    %c246 = arith.constant 246 : index
    %c0_358 = arith.constant 0 : index
    %434 = vector.load %arg14[%c246, %c0_358] : memref<358x32xf32, #tpu.memory_space<vmem>>, vector<1x32xf32>
    %435 = arith.truncf %434 : vector<1x32xf32> to vector<1x32xbf16>
    %c57 = arith.constant 57 : index
    %c0_359 = arith.constant 0 : index
    %c0_360 = arith.constant 0 : index
    %436 = vector.load %arg6[%c57, %c0_359, %c0_360] : memref<81x32x256xbf16, #tpu.memory_space<vmem>>, vector<1x32x256xbf16>
    %437 = vector.shape_cast %436 : vector<1x32x256xbf16> to vector<32x256xbf16>
    %cst_361 = arith.constant dense<0.000000e+00> : vector<1x256xf32>
    %438 = tpu.matmul %435, %437, %cst_361 {dimension_numbers = #tpu.dot_dimension_numbers<[1], [0], [0], [1], [0, 0, 1, 1], [], []>} : vector<1x32xbf16>, vector<32x256xbf16>, vector<1x256xf32> -> vector<1x256xf32>
    %439 = arith.addf %433, %438 : vector<1x256xf32>
    %c248 = arith.constant 248 : index
    %c0_362 = arith.constant 0 : index
    %440 = vector.load %arg14[%c248, %c0_362] : memref<358x32xf32, #tpu.memory_space<vmem>>, vector<1x32xf32>
    %441 = arith.truncf %440 : vector<1x32xf32> to vector<1x32xbf16>
    %c58 = arith.constant 58 : index
    %c0_363 = arith.constant 0 : index
    %c0_364 = arith.constant 0 : index
    %442 = vector.load %arg6[%c58, %c0_363, %c0_364] : memref<81x32x256xbf16, #tpu.memory_space<vmem>>, vector<1x32x256xbf16>
    %443 = vector.shape_cast %442 : vector<1x32x256xbf16> to vector<32x256xbf16>
    %cst_365 = arith.constant dense<0.000000e+00> : vector<1x256xf32>
    %444 = tpu.matmul %441, %443, %cst_365 {dimension_numbers = #tpu.dot_dimension_numbers<[1], [0], [0], [1], [0, 0, 1, 1], [], []>} : vector<1x32xbf16>, vector<32x256xbf16>, vector<1x256xf32> -> vector<1x256xf32>
    %445 = arith.addf %439, %444 : vector<1x256xf32>
    %c250 = arith.constant 250 : index
    %c0_366 = arith.constant 0 : index
    %446 = vector.load %arg14[%c250, %c0_366] : memref<358x32xf32, #tpu.memory_space<vmem>>, vector<1x32xf32>
    %447 = arith.truncf %446 : vector<1x32xf32> to vector<1x32xbf16>
    %c59 = arith.constant 59 : index
    %c0_367 = arith.constant 0 : index
    %c0_368 = arith.constant 0 : index
    %448 = vector.load %arg6[%c59, %c0_367, %c0_368] : memref<81x32x256xbf16, #tpu.memory_space<vmem>>, vector<1x32x256xbf16>
    %449 = vector.shape_cast %448 : vector<1x32x256xbf16> to vector<32x256xbf16>
    %cst_369 = arith.constant dense<0.000000e+00> : vector<1x256xf32>
    %450 = tpu.matmul %447, %449, %cst_369 {dimension_numbers = #tpu.dot_dimension_numbers<[1], [0], [0], [1], [0, 0, 1, 1], [], []>} : vector<1x32xbf16>, vector<32x256xbf16>, vector<1x256xf32> -> vector<1x256xf32>
    %451 = arith.addf %445, %450 : vector<1x256xf32>
    %c252 = arith.constant 252 : index
    %c0_370 = arith.constant 0 : index
    %452 = vector.load %arg14[%c252, %c0_370] : memref<358x32xf32, #tpu.memory_space<vmem>>, vector<1x32xf32>
    %453 = arith.truncf %452 : vector<1x32xf32> to vector<1x32xbf16>
    %c60 = arith.constant 60 : index
    %c0_371 = arith.constant 0 : index
    %c0_372 = arith.constant 0 : index
    %454 = vector.load %arg6[%c60, %c0_371, %c0_372] : memref<81x32x256xbf16, #tpu.memory_space<vmem>>, vector<1x32x256xbf16>
    %455 = vector.shape_cast %454 : vector<1x32x256xbf16> to vector<32x256xbf16>
    %cst_373 = arith.constant dense<0.000000e+00> : vector<1x256xf32>
    %456 = tpu.matmul %453, %455, %cst_373 {dimension_numbers = #tpu.dot_dimension_numbers<[1], [0], [0], [1], [0, 0, 1, 1], [], []>} : vector<1x32xbf16>, vector<32x256xbf16>, vector<1x256xf32> -> vector<1x256xf32>
    %457 = arith.addf %451, %456 : vector<1x256xf32>
    %c254 = arith.constant 254 : index
    %c0_374 = arith.constant 0 : index
    %458 = vector.load %arg14[%c254, %c0_374] : memref<358x32xf32, #tpu.memory_space<vmem>>, vector<1x32xf32>
    %459 = arith.truncf %458 : vector<1x32xf32> to vector<1x32xbf16>
    %c61 = arith.constant 61 : index
    %c0_375 = arith.constant 0 : index
    %c0_376 = arith.constant 0 : index
    %460 = vector.load %arg6[%c61, %c0_375, %c0_376] : memref<81x32x256xbf16, #tpu.memory_space<vmem>>, vector<1x32x256xbf16>
    %461 = vector.shape_cast %460 : vector<1x32x256xbf16> to vector<32x256xbf16>
    %cst_377 = arith.constant dense<0.000000e+00> : vector<1x256xf32>
    %462 = tpu.matmul %459, %461, %cst_377 {dimension_numbers = #tpu.dot_dimension_numbers<[1], [0], [0], [1], [0, 0, 1, 1], [], []>} : vector<1x32xbf16>, vector<32x256xbf16>, vector<1x256xf32> -> vector<1x256xf32>
    %463 = arith.addf %457, %462 : vector<1x256xf32>
    %c256 = arith.constant 256 : index
    %c0_378 = arith.constant 0 : index
    %464 = vector.load %arg14[%c256, %c0_378] : memref<358x32xf32, #tpu.memory_space<vmem>>, vector<1x32xf32>
    %465 = arith.truncf %464 : vector<1x32xf32> to vector<1x32xbf16>
    %c62 = arith.constant 62 : index
    %c0_379 = arith.constant 0 : index
    %c0_380 = arith.constant 0 : index
    %466 = vector.load %arg6[%c62, %c0_379, %c0_380] : memref<81x32x256xbf16, #tpu.memory_space<vmem>>, vector<1x32x256xbf16>
    %467 = vector.shape_cast %466 : vector<1x32x256xbf16> to vector<32x256xbf16>
    %cst_381 = arith.constant dense<0.000000e+00> : vector<1x256xf32>
    %468 = tpu.matmul %465, %467, %cst_381 {dimension_numbers = #tpu.dot_dimension_numbers<[1], [0], [0], [1], [0, 0, 1, 1], [], []>} : vector<1x32xbf16>, vector<32x256xbf16>, vector<1x256xf32> -> vector<1x256xf32>
    %469 = arith.addf %463, %468 : vector<1x256xf32>
    %c280 = arith.constant 280 : index
    %c0_382 = arith.constant 0 : index
    %470 = vector.load %arg14[%c280, %c0_382] : memref<358x32xf32, #tpu.memory_space<vmem>>, vector<1x32xf32>
    %471 = arith.truncf %470 : vector<1x32xf32> to vector<1x32xbf16>
    %c63 = arith.constant 63 : index
    %c0_383 = arith.constant 0 : index
    %c0_384 = arith.constant 0 : index
    %472 = vector.load %arg6[%c63, %c0_383, %c0_384] : memref<81x32x256xbf16, #tpu.memory_space<vmem>>, vector<1x32x256xbf16>
    %473 = vector.shape_cast %472 : vector<1x32x256xbf16> to vector<32x256xbf16>
    %cst_385 = arith.constant dense<0.000000e+00> : vector<1x256xf32>
    %474 = tpu.matmul %471, %473, %cst_385 {dimension_numbers = #tpu.dot_dimension_numbers<[1], [0], [0], [1], [0, 0, 1, 1], [], []>} : vector<1x32xbf16>, vector<32x256xbf16>, vector<1x256xf32> -> vector<1x256xf32>
    %475 = arith.addf %469, %474 : vector<1x256xf32>
    %c282 = arith.constant 282 : index
    %c0_386 = arith.constant 0 : index
    %476 = vector.load %arg14[%c282, %c0_386] : memref<358x32xf32, #tpu.memory_space<vmem>>, vector<1x32xf32>
    %477 = arith.truncf %476 : vector<1x32xf32> to vector<1x32xbf16>
    %c64 = arith.constant 64 : index
    %c0_387 = arith.constant 0 : index
    %c0_388 = arith.constant 0 : index
    %478 = vector.load %arg6[%c64, %c0_387, %c0_388] : memref<81x32x256xbf16, #tpu.memory_space<vmem>>, vector<1x32x256xbf16>
    %479 = vector.shape_cast %478 : vector<1x32x256xbf16> to vector<32x256xbf16>
    %cst_389 = arith.constant dense<0.000000e+00> : vector<1x256xf32>
    %480 = tpu.matmul %477, %479, %cst_389 {dimension_numbers = #tpu.dot_dimension_numbers<[1], [0], [0], [1], [0, 0, 1, 1], [], []>} : vector<1x32xbf16>, vector<32x256xbf16>, vector<1x256xf32> -> vector<1x256xf32>
    %481 = arith.addf %475, %480 : vector<1x256xf32>
    %c284 = arith.constant 284 : index
    %c0_390 = arith.constant 0 : index
    %482 = vector.load %arg14[%c284, %c0_390] : memref<358x32xf32, #tpu.memory_space<vmem>>, vector<1x32xf32>
    %483 = arith.truncf %482 : vector<1x32xf32> to vector<1x32xbf16>
    %c65 = arith.constant 65 : index
    %c0_391 = arith.constant 0 : index
    %c0_392 = arith.constant 0 : index
    %484 = vector.load %arg6[%c65, %c0_391, %c0_392] : memref<81x32x256xbf16, #tpu.memory_space<vmem>>, vector<1x32x256xbf16>
    %485 = vector.shape_cast %484 : vector<1x32x256xbf16> to vector<32x256xbf16>
    %cst_393 = arith.constant dense<0.000000e+00> : vector<1x256xf32>
    %486 = tpu.matmul %483, %485, %cst_393 {dimension_numbers = #tpu.dot_dimension_numbers<[1], [0], [0], [1], [0, 0, 1, 1], [], []>} : vector<1x32xbf16>, vector<32x256xbf16>, vector<1x256xf32> -> vector<1x256xf32>
    %487 = arith.addf %481, %486 : vector<1x256xf32>
    %c286 = arith.constant 286 : index
    %c0_394 = arith.constant 0 : index
    %488 = vector.load %arg14[%c286, %c0_394] : memref<358x32xf32, #tpu.memory_space<vmem>>, vector<1x32xf32>
    %489 = arith.truncf %488 : vector<1x32xf32> to vector<1x32xbf16>
    %c66 = arith.constant 66 : index
    %c0_395 = arith.constant 0 : index
    %c0_396 = arith.constant 0 : index
    %490 = vector.load %arg6[%c66, %c0_395, %c0_396] : memref<81x32x256xbf16, #tpu.memory_space<vmem>>, vector<1x32x256xbf16>
    %491 = vector.shape_cast %490 : vector<1x32x256xbf16> to vector<32x256xbf16>
    %cst_397 = arith.constant dense<0.000000e+00> : vector<1x256xf32>
    %492 = tpu.matmul %489, %491, %cst_397 {dimension_numbers = #tpu.dot_dimension_numbers<[1], [0], [0], [1], [0, 0, 1, 1], [], []>} : vector<1x32xbf16>, vector<32x256xbf16>, vector<1x256xf32> -> vector<1x256xf32>
    %493 = arith.addf %487, %492 : vector<1x256xf32>
    %c288 = arith.constant 288 : index
    %c0_398 = arith.constant 0 : index
    %494 = vector.load %arg14[%c288, %c0_398] : memref<358x32xf32, #tpu.memory_space<vmem>>, vector<1x32xf32>
    %495 = arith.truncf %494 : vector<1x32xf32> to vector<1x32xbf16>
    %c67 = arith.constant 67 : index
    %c0_399 = arith.constant 0 : index
    %c0_400 = arith.constant 0 : index
    %496 = vector.load %arg6[%c67, %c0_399, %c0_400] : memref<81x32x256xbf16, #tpu.memory_space<vmem>>, vector<1x32x256xbf16>
    %497 = vector.shape_cast %496 : vector<1x32x256xbf16> to vector<32x256xbf16>
    %cst_401 = arith.constant dense<0.000000e+00> : vector<1x256xf32>
    %498 = tpu.matmul %495, %497, %cst_401 {dimension_numbers = #tpu.dot_dimension_numbers<[1], [0], [0], [1], [0, 0, 1, 1], [], []>} : vector<1x32xbf16>, vector<32x256xbf16>, vector<1x256xf32> -> vector<1x256xf32>
    %499 = arith.addf %493, %498 : vector<1x256xf32>
    %c290 = arith.constant 290 : index
    %c0_402 = arith.constant 0 : index
    %500 = vector.load %arg14[%c290, %c0_402] : memref<358x32xf32, #tpu.memory_space<vmem>>, vector<1x32xf32>
    %501 = arith.truncf %500 : vector<1x32xf32> to vector<1x32xbf16>
    %c68 = arith.constant 68 : index
    %c0_403 = arith.constant 0 : index
    %c0_404 = arith.constant 0 : index
    %502 = vector.load %arg6[%c68, %c0_403, %c0_404] : memref<81x32x256xbf16, #tpu.memory_space<vmem>>, vector<1x32x256xbf16>
    %503 = vector.shape_cast %502 : vector<1x32x256xbf16> to vector<32x256xbf16>
    %cst_405 = arith.constant dense<0.000000e+00> : vector<1x256xf32>
    %504 = tpu.matmul %501, %503, %cst_405 {dimension_numbers = #tpu.dot_dimension_numbers<[1], [0], [0], [1], [0, 0, 1, 1], [], []>} : vector<1x32xbf16>, vector<32x256xbf16>, vector<1x256xf32> -> vector<1x256xf32>
    %505 = arith.addf %499, %504 : vector<1x256xf32>
    %c292 = arith.constant 292 : index
    %c0_406 = arith.constant 0 : index
    %506 = vector.load %arg14[%c292, %c0_406] : memref<358x32xf32, #tpu.memory_space<vmem>>, vector<1x32xf32>
    %507 = arith.truncf %506 : vector<1x32xf32> to vector<1x32xbf16>
    %c69 = arith.constant 69 : index
    %c0_407 = arith.constant 0 : index
    %c0_408 = arith.constant 0 : index
    %508 = vector.load %arg6[%c69, %c0_407, %c0_408] : memref<81x32x256xbf16, #tpu.memory_space<vmem>>, vector<1x32x256xbf16>
    %509 = vector.shape_cast %508 : vector<1x32x256xbf16> to vector<32x256xbf16>
    %cst_409 = arith.constant dense<0.000000e+00> : vector<1x256xf32>
    %510 = tpu.matmul %507, %509, %cst_409 {dimension_numbers = #tpu.dot_dimension_numbers<[1], [0], [0], [1], [0, 0, 1, 1], [], []>} : vector<1x32xbf16>, vector<32x256xbf16>, vector<1x256xf32> -> vector<1x256xf32>
    %511 = arith.addf %505, %510 : vector<1x256xf32>
    %c294 = arith.constant 294 : index
    %c0_410 = arith.constant 0 : index
    %512 = vector.load %arg14[%c294, %c0_410] : memref<358x32xf32, #tpu.memory_space<vmem>>, vector<1x32xf32>
    %513 = arith.truncf %512 : vector<1x32xf32> to vector<1x32xbf16>
    %c70 = arith.constant 70 : index
    %c0_411 = arith.constant 0 : index
    %c0_412 = arith.constant 0 : index
    %514 = vector.load %arg6[%c70, %c0_411, %c0_412] : memref<81x32x256xbf16, #tpu.memory_space<vmem>>, vector<1x32x256xbf16>
    %515 = vector.shape_cast %514 : vector<1x32x256xbf16> to vector<32x256xbf16>
    %cst_413 = arith.constant dense<0.000000e+00> : vector<1x256xf32>
    %516 = tpu.matmul %513, %515, %cst_413 {dimension_numbers = #tpu.dot_dimension_numbers<[1], [0], [0], [1], [0, 0, 1, 1], [], []>} : vector<1x32xbf16>, vector<32x256xbf16>, vector<1x256xf32> -> vector<1x256xf32>
    %517 = arith.addf %511, %516 : vector<1x256xf32>
    %c296 = arith.constant 296 : index
    %c0_414 = arith.constant 0 : index
    %518 = vector.load %arg14[%c296, %c0_414] : memref<358x32xf32, #tpu.memory_space<vmem>>, vector<1x32xf32>
    %519 = arith.truncf %518 : vector<1x32xf32> to vector<1x32xbf16>
    %c71 = arith.constant 71 : index
    %c0_415 = arith.constant 0 : index
    %c0_416 = arith.constant 0 : index
    %520 = vector.load %arg6[%c71, %c0_415, %c0_416] : memref<81x32x256xbf16, #tpu.memory_space<vmem>>, vector<1x32x256xbf16>
    %521 = vector.shape_cast %520 : vector<1x32x256xbf16> to vector<32x256xbf16>
    %cst_417 = arith.constant dense<0.000000e+00> : vector<1x256xf32>
    %522 = tpu.matmul %519, %521, %cst_417 {dimension_numbers = #tpu.dot_dimension_numbers<[1], [0], [0], [1], [0, 0, 1, 1], [], []>} : vector<1x32xbf16>, vector<32x256xbf16>, vector<1x256xf32> -> vector<1x256xf32>
    %523 = arith.addf %517, %522 : vector<1x256xf32>
    %c320 = arith.constant 320 : index
    %c0_418 = arith.constant 0 : index
    %524 = vector.load %arg14[%c320, %c0_418] : memref<358x32xf32, #tpu.memory_space<vmem>>, vector<1x32xf32>
    %525 = arith.truncf %524 : vector<1x32xf32> to vector<1x32xbf16>
    %c72 = arith.constant 72 : index
    %c0_419 = arith.constant 0 : index
    %c0_420 = arith.constant 0 : index
    %526 = vector.load %arg6[%c72, %c0_419, %c0_420] : memref<81x32x256xbf16, #tpu.memory_space<vmem>>, vector<1x32x256xbf16>
    %527 = vector.shape_cast %526 : vector<1x32x256xbf16> to vector<32x256xbf16>
    %cst_421 = arith.constant dense<0.000000e+00> : vector<1x256xf32>
    %528 = tpu.matmul %525, %527, %cst_421 {dimension_numbers = #tpu.dot_dimension_numbers<[1], [0], [0], [1], [0, 0, 1, 1], [], []>} : vector<1x32xbf16>, vector<32x256xbf16>, vector<1x256xf32> -> vector<1x256xf32>
    %529 = arith.addf %523, %528 : vector<1x256xf32>
    %c322 = arith.constant 322 : index
    %c0_422 = arith.constant 0 : index
    %530 = vector.load %arg14[%c322, %c0_422] : memref<358x32xf32, #tpu.memory_space<vmem>>, vector<1x32xf32>
    %531 = arith.truncf %530 : vector<1x32xf32> to vector<1x32xbf16>
    %c73 = arith.constant 73 : index
    %c0_423 = arith.constant 0 : index
    %c0_424 = arith.constant 0 : index
    %532 = vector.load %arg6[%c73, %c0_423, %c0_424] : memref<81x32x256xbf16, #tpu.memory_space<vmem>>, vector<1x32x256xbf16>
    %533 = vector.shape_cast %532 : vector<1x32x256xbf16> to vector<32x256xbf16>
    %cst_425 = arith.constant dense<0.000000e+00> : vector<1x256xf32>
    %534 = tpu.matmul %531, %533, %cst_425 {dimension_numbers = #tpu.dot_dimension_numbers<[1], [0], [0], [1], [0, 0, 1, 1], [], []>} : vector<1x32xbf16>, vector<32x256xbf16>, vector<1x256xf32> -> vector<1x256xf32>
    %535 = arith.addf %529, %534 : vector<1x256xf32>
    %c324 = arith.constant 324 : index
    %c0_426 = arith.constant 0 : index
    %536 = vector.load %arg14[%c324, %c0_426] : memref<358x32xf32, #tpu.memory_space<vmem>>, vector<1x32xf32>
    %537 = arith.truncf %536 : vector<1x32xf32> to vector<1x32xbf16>
    %c74 = arith.constant 74 : index
    %c0_427 = arith.constant 0 : index
    %c0_428 = arith.constant 0 : index
    %538 = vector.load %arg6[%c74, %c0_427, %c0_428] : memref<81x32x256xbf16, #tpu.memory_space<vmem>>, vector<1x32x256xbf16>
    %539 = vector.shape_cast %538 : vector<1x32x256xbf16> to vector<32x256xbf16>
    %cst_429 = arith.constant dense<0.000000e+00> : vector<1x256xf32>
    %540 = tpu.matmul %537, %539, %cst_429 {dimension_numbers = #tpu.dot_dimension_numbers<[1], [0], [0], [1], [0, 0, 1, 1], [], []>} : vector<1x32xbf16>, vector<32x256xbf16>, vector<1x256xf32> -> vector<1x256xf32>
    %541 = arith.addf %535, %540 : vector<1x256xf32>
    %c326 = arith.constant 326 : index
    %c0_430 = arith.constant 0 : index
    %542 = vector.load %arg14[%c326, %c0_430] : memref<358x32xf32, #tpu.memory_space<vmem>>, vector<1x32xf32>
    %543 = arith.truncf %542 : vector<1x32xf32> to vector<1x32xbf16>
    %c75 = arith.constant 75 : index
    %c0_431 = arith.constant 0 : index
    %c0_432 = arith.constant 0 : index
    %544 = vector.load %arg6[%c75, %c0_431, %c0_432] : memref<81x32x256xbf16, #tpu.memory_space<vmem>>, vector<1x32x256xbf16>
    %545 = vector.shape_cast %544 : vector<1x32x256xbf16> to vector<32x256xbf16>
    %cst_433 = arith.constant dense<0.000000e+00> : vector<1x256xf32>
    %546 = tpu.matmul %543, %545, %cst_433 {dimension_numbers = #tpu.dot_dimension_numbers<[1], [0], [0], [1], [0, 0, 1, 1], [], []>} : vector<1x32xbf16>, vector<32x256xbf16>, vector<1x256xf32> -> vector<1x256xf32>
    %547 = arith.addf %541, %546 : vector<1x256xf32>
    %c328 = arith.constant 328 : index
    %c0_434 = arith.constant 0 : index
    %548 = vector.load %arg14[%c328, %c0_434] : memref<358x32xf32, #tpu.memory_space<vmem>>, vector<1x32xf32>
    %549 = arith.truncf %548 : vector<1x32xf32> to vector<1x32xbf16>
    %c76 = arith.constant 76 : index
    %c0_435 = arith.constant 0 : index
    %c0_436 = arith.constant 0 : index
    %550 = vector.load %arg6[%c76, %c0_435, %c0_436] : memref<81x32x256xbf16, #tpu.memory_space<vmem>>, vector<1x32x256xbf16>
    %551 = vector.shape_cast %550 : vector<1x32x256xbf16> to vector<32x256xbf16>
    %cst_437 = arith.constant dense<0.000000e+00> : vector<1x256xf32>
    %552 = tpu.matmul %549, %551, %cst_437 {dimension_numbers = #tpu.dot_dimension_numbers<[1], [0], [0], [1], [0, 0, 1, 1], [], []>} : vector<1x32xbf16>, vector<32x256xbf16>, vector<1x256xf32> -> vector<1x256xf32>
    %553 = arith.addf %547, %552 : vector<1x256xf32>
    %c330 = arith.constant 330 : index
    %c0_438 = arith.constant 0 : index
    %554 = vector.load %arg14[%c330, %c0_438] : memref<358x32xf32, #tpu.memory_space<vmem>>, vector<1x32xf32>
    %555 = arith.truncf %554 : vector<1x32xf32> to vector<1x32xbf16>
    %c77 = arith.constant 77 : index
    %c0_439 = arith.constant 0 : index
    %c0_440 = arith.constant 0 : index
    %556 = vector.load %arg6[%c77, %c0_439, %c0_440] : memref<81x32x256xbf16, #tpu.memory_space<vmem>>, vector<1x32x256xbf16>
    %557 = vector.shape_cast %556 : vector<1x32x256xbf16> to vector<32x256xbf16>
    %cst_441 = arith.constant dense<0.000000e+00> : vector<1x256xf32>
    %558 = tpu.matmul %555, %557, %cst_441 {dimension_numbers = #tpu.dot_dimension_numbers<[1], [0], [0], [1], [0, 0, 1, 1], [], []>} : vector<1x32xbf16>, vector<32x256xbf16>, vector<1x256xf32> -> vector<1x256xf32>
    %559 = arith.addf %553, %558 : vector<1x256xf32>
    %c332 = arith.constant 332 : index
    %c0_442 = arith.constant 0 : index
    %560 = vector.load %arg14[%c332, %c0_442] : memref<358x32xf32, #tpu.memory_space<vmem>>, vector<1x32xf32>
    %561 = arith.truncf %560 : vector<1x32xf32> to vector<1x32xbf16>
    %c78 = arith.constant 78 : index
    %c0_443 = arith.constant 0 : index
    %c0_444 = arith.constant 0 : index
    %562 = vector.load %arg6[%c78, %c0_443, %c0_444] : memref<81x32x256xbf16, #tpu.memory_space<vmem>>, vector<1x32x256xbf16>
    %563 = vector.shape_cast %562 : vector<1x32x256xbf16> to vector<32x256xbf16>
    %cst_445 = arith.constant dense<0.000000e+00> : vector<1x256xf32>
    %564 = tpu.matmul %561, %563, %cst_445 {dimension_numbers = #tpu.dot_dimension_numbers<[1], [0], [0], [1], [0, 0, 1, 1], [], []>} : vector<1x32xbf16>, vector<32x256xbf16>, vector<1x256xf32> -> vector<1x256xf32>
    %565 = arith.addf %559, %564 : vector<1x256xf32>
    %c334 = arith.constant 334 : index
    %c0_446 = arith.constant 0 : index
    %566 = vector.load %arg14[%c334, %c0_446] : memref<358x32xf32, #tpu.memory_space<vmem>>, vector<1x32xf32>
    %567 = arith.truncf %566 : vector<1x32xf32> to vector<1x32xbf16>
    %c79 = arith.constant 79 : index
    %c0_447 = arith.constant 0 : index
    %c0_448 = arith.constant 0 : index
    %568 = vector.load %arg6[%c79, %c0_447, %c0_448] : memref<81x32x256xbf16, #tpu.memory_space<vmem>>, vector<1x32x256xbf16>
    %569 = vector.shape_cast %568 : vector<1x32x256xbf16> to vector<32x256xbf16>
    %cst_449 = arith.constant dense<0.000000e+00> : vector<1x256xf32>
    %570 = tpu.matmul %567, %569, %cst_449 {dimension_numbers = #tpu.dot_dimension_numbers<[1], [0], [0], [1], [0, 0, 1, 1], [], []>} : vector<1x32xbf16>, vector<32x256xbf16>, vector<1x256xf32> -> vector<1x256xf32>
    %571 = arith.addf %565, %570 : vector<1x256xf32>
    %c336 = arith.constant 336 : index
    %c0_450 = arith.constant 0 : index
    %572 = vector.load %arg14[%c336, %c0_450] : memref<358x32xf32, #tpu.memory_space<vmem>>, vector<1x32xf32>
    %573 = arith.truncf %572 : vector<1x32xf32> to vector<1x32xbf16>
    %c80_451 = arith.constant 80 : index
    %c0_452 = arith.constant 0 : index
    %c0_453 = arith.constant 0 : index
    %574 = vector.load %arg6[%c80_451, %c0_452, %c0_453] : memref<81x32x256xbf16, #tpu.memory_space<vmem>>, vector<1x32x256xbf16>
    %575 = vector.shape_cast %574 : vector<1x32x256xbf16> to vector<32x256xbf16>
    %cst_454 = arith.constant dense<0.000000e+00> : vector<1x256xf32>
    %576 = tpu.matmul %573, %575, %cst_454 {dimension_numbers = #tpu.dot_dimension_numbers<[1], [0], [0], [1], [0, 0, 1, 1], [], []>} : vector<1x32xbf16>, vector<32x256xbf16>, vector<1x256xf32> -> vector<1x256xf32>
    %577 = arith.addf %571, %576 : vector<1x256xf32>
    %578 = arith.truncf %577 : vector<1x256xf32> to vector<1x256xbf16>
    %c0_455 = arith.constant 0 : index
    %c0_456 = arith.constant 0 : index
    %579 = vector.load %arg8[%c0_455, %c0_456] : memref<256x7xbf16, #tpu.memory_space<vmem>>, vector<256x7xbf16>
    %cst_457 = arith.constant dense<0.000000e+00> : vector<1x7xf32>
    %580 = tpu.matmul %578, %579, %cst_457 {dimension_numbers = #tpu.dot_dimension_numbers<[1], [0], [0], [1], [0, 0, 1, 1], [], []>} : vector<1x256xbf16>, vector<256x7xbf16>, vector<1x7xf32> -> vector<1x7xf32>
    %c0_458 = arith.constant 0 : index
    %c0_459 = arith.constant 0 : index
    %581 = vector.load %arg9[%c0_458, %c0_459] : memref<1x7xf32, #tpu.memory_space<vmem>>, vector<1x7xf32>
    %582 = arith.addf %580, %581 : vector<1x7xf32>
    %583 = vector.extract_strided_slice %582 {offsets = [0, 0], sizes = [1, 6], strides = [1, 1]} : vector<1x7xf32> to vector<1x6xf32>
    %584 = vector.extract_strided_slice %582 {offsets = [0, 6], sizes = [1, 1], strides = [1, 1]} : vector<1x7xf32> to vector<1x1xf32>
    %cst_460 = arith.constant dense<0xFF800000> : vector<1xf32>
    %585 = vector.multi_reduction <maximumf>, %583, %cst_460 [1] : vector<1x6xf32> to vector<1xf32>
    %586 = vector.shape_cast %585 : vector<1xf32> to vector<1x1xf32>
    %587 = vector.broadcast %586 : vector<1x1xf32> to vector<1x6xf32>
    %588 = arith.subf %583, %587 : vector<1x6xf32>
    %589 = math.exp %588 : vector<1x6xf32>
    %cst_461 = arith.constant dense<0.000000e+00> : vector<1xf32>
    %590 = vector.multi_reduction <add>, %589, %cst_461 [1] : vector<1x6xf32> to vector<1xf32>
    %591 = vector.shape_cast %590 : vector<1xf32> to vector<1x1xf32>
    %592 = tpu.reciprocal %591 {approx = true} : vector<1x1xf32> -> vector<1x1xf32>
    %593 = vector.broadcast %592 : vector<1x1xf32> to vector<1x6xf32>
    %594 = arith.mulf %589, %593 : vector<1x6xf32>
    %595 = math.log %591 : vector<1x1xf32>
    %596 = vector.broadcast %595 : vector<1x1xf32> to vector<1x6xf32>
    %597 = arith.subf %588, %596 : vector<1x6xf32>
    %598 = vector.shape_cast %594 : vector<1x6xf32> to vector<1x1x6xf32>
    %c0_462 = arith.constant 0 : index
    %c0_463 = arith.constant 0 : index
    %c0_464 = arith.constant 0 : index
    %599 = vector.load %arg10[%c0_462, %c0_463, %c0_464] : memref<1x1x6xf32, #tpu.memory_space<vmem>>, vector<1x1x6xf32>
    tpu.vector_store %arg10[%c0_462, %c0_463, %c0_464], %598 {strides = array<i32>} : memref<1x1x6xf32, #tpu.memory_space<vmem>>, vector<1x1x6xf32>,
    %600 = vector.shape_cast %597 : vector<1x6xf32> to vector<1x1x6xf32>
    %c0_465 = arith.constant 0 : index
    %c0_466 = arith.constant 0 : index
    %c0_467 = arith.constant 0 : index
    %601 = vector.load %arg11[%c0_465, %c0_466, %c0_467] : memref<1x1x6xf32, #tpu.memory_space<vmem>>, vector<1x1x6xf32>
    tpu.vector_store %arg11[%c0_465, %c0_466, %c0_467], %600 {strides = array<i32>} : memref<1x1x6xf32, #tpu.memory_space<vmem>>, vector<1x1x6xf32>,
    %602 = vector.shape_cast %584 : vector<1x1xf32> to vector<1x1x1xf32>
    %c0_468 = arith.constant 0 : index
    %c0_469 = arith.constant 0 : index
    %c0_470 = arith.constant 0 : index
    %603 = vector.load %arg12[%c0_468, %c0_469, %c0_470] : memref<1x1x1xf32, #tpu.memory_space<vmem>>, vector<1x1x1xf32>
    tpu.vector_store %arg12[%c0_468, %c0_469, %c0_470], %602 {strides = array<i32>} : memref<1x1x1xf32, #tpu.memory_space<vmem>>, vector<1x1x1xf32>,
    return
  }
  func.func @transform_0(%arg0: i32) -> (i32, i32, i32) {
    %c0_i32 = arith.constant 0 : i32
    %c0_i32_0 = arith.constant 0 : i32
    %c0_i32_1 = arith.constant 0 : i32
    return %arg0, %c0_i32, %c0_i32_0 : i32, i32, i32
  }
  func.func @transform_1(%arg0: i32) -> (i32, i32) {
    %c0_i32 = arith.constant 0 : i32
    %c0_i32_0 = arith.constant 0 : i32
    %c0_i32_1 = arith.constant 0 : i32
    return %c0_i32, %c0_i32_0 : i32, i32
  }
  func.func @transform_2(%arg0: i32) -> (i32, i32) {
    %c0_i32 = arith.constant 0 : i32
    %c0_i32_0 = arith.constant 0 : i32
    %c0_i32_1 = arith.constant 0 : i32
    return %c0_i32, %c0_i32_0 : i32, i32
  }
  func.func @transform_3(%arg0: i32) -> (i32, i32, i32) {
    %c0_i32 = arith.constant 0 : i32
    %c0_i32_0 = arith.constant 0 : i32
    %c0_i32_1 = arith.constant 0 : i32
    %c0_i32_2 = arith.constant 0 : i32
    return %c0_i32, %c0_i32_0, %c0_i32_1 : i32, i32, i32
  }
  func.func @transform_4(%arg0: i32) -> (i32, i32) {
    %c0_i32 = arith.constant 0 : i32
    %c0_i32_0 = arith.constant 0 : i32
    %c0_i32_1 = arith.constant 0 : i32
    return %c0_i32, %c0_i32_0 : i32, i32
  }
  func.func @transform_5(%arg0: i32) -> (i32, i32, i32) {
    %c0_i32 = arith.constant 0 : i32
    %c0_i32_0 = arith.constant 0 : i32
    %c0_i32_1 = arith.constant 0 : i32
    %c0_i32_2 = arith.constant 0 : i32
    return %c0_i32, %c0_i32_0, %c0_i32_1 : i32, i32, i32
  }
  func.func @transform_6(%arg0: i32) -> (i32, i32) {
    %c0_i32 = arith.constant 0 : i32
    %c0_i32_0 = arith.constant 0 : i32
    %c0_i32_1 = arith.constant 0 : i32
    return %c0_i32, %c0_i32_0 : i32, i32
  }
  func.func @transform_7(%arg0: i32) -> (i32, i32) {
    %c0_i32 = arith.constant 0 : i32
    %c0_i32_0 = arith.constant 0 : i32
    %c0_i32_1 = arith.constant 0 : i32
    return %c0_i32, %c0_i32_0 : i32, i32
  }
  func.func @transform_8(%arg0: i32) -> (i32, i32) {
    %c0_i32 = arith.constant 0 : i32
    %c0_i32_0 = arith.constant 0 : i32
    %c0_i32_1 = arith.constant 0 : i32
    return %c0_i32, %c0_i32_0 : i32, i32
  }
  func.func @transform_9(%arg0: i32) -> (i32, i32, i32) {
    %c0_i32 = arith.constant 0 : i32
    %c0_i32_0 = arith.constant 0 : i32
    %c0_i32_1 = arith.constant 0 : i32
    return %arg0, %c0_i32, %c0_i32_0 : i32, i32, i32
  }
  func.func @transform_10(%arg0: i32) -> (i32, i32, i32) {
    %c0_i32 = arith.constant 0 : i32
    %c0_i32_0 = arith.constant 0 : i32
    %c0_i32_1 = arith.constant 0 : i32
    return %arg0, %c0_i32, %c0_i32_0 : i32, i32, i32
  }
  func.func @transform_11(%arg0: i32) -> (i32, i32, i32) {
    %c0_i32 = arith.constant 0 : i32
    %c0_i32_0 = arith.constant 0 : i32
    %c0_i32_1 = arith.constant 0 : i32
    return %arg0, %c0_i32, %c0_i32_0 : i32, i32, i32
  }
}

</mosaic_0001>

<bundles_post_ra>
// kernel: actor_critic_noise_forward.1
= control target key start
LH: loop header
LB: loop body
LE: loop exit
PB: predicated region body
PF: predicated region fallthrough
CT: control target
= control target key end

     0   :  { %s20294_s0 = inlined_call_operand.vmem [shape: bf16[2,400,256], index: 0, kind: input, shape index: {}]   ;;  %s20295_s1 = inlined_call_operand.vmem [shape: bf16[256,16], index: 1, kind: input, shape index: {}]   ;;  %s20296_s2 = inlined_call_operand.vmem [shape: f32[1,16], index: 2, kind: input, shape index: {}]   ;;  %s20297_s3 = inlined_call_operand.vmem [shape: bf16[9,16,32], index: 3, kind: input, shape index: {}]   ;;  %s20298_s4 = inlined_call_operand.vmem [shape: f32[1,32], index: 4, kind: input, shape index: {}]   ;;  %s20299_s5 = inlined_call_operand.vmem [shape: bf16[81,32,256], index: 5, kind: input, shape index: {}]   ;;  %s20300_s6 = inlined_call_operand.vmem [shape: f32[1,256], index: 6, kind: input, shape index: {}]   ;;  %s20301_s7 = inlined_call_operand.vmem [shape: bf16[256,7], index: 7, kind: input, shape index: {}]   ;;  %s20302_s8 = inlined_call_operand.vmem [shape: f32[1,7], index: 8, kind: input, shape index: {}]   ;;  %s20303_s9 = inlined_call_operand.hbm [shape: f32[2,1,6], index: 9, kind: output, shape index: {0}]   ;;  %s20304_s10 = inlined_call_operand.hbm [shape: f32[2,1,6], index: 10, kind: output, shape index: {1}]   ;;  %s20305_s11 = inlined_call_operand.vmem [shape: f32[2,1,1], index: 11, kind: output, shape index: {2}]  }
   0x1   :  { %20311 = sst [smem:[#allocation10_spill]] %s20294_s0 }
   0x2   :  { %20312 = sst [smem:[#allocation11_spill]] %s20295_s1 }
   0x3   :  { %20313 = sst [smem:[#allocation12_spill]] %s20296_s2 }
   0x4   :  { %20314 = sst [smem:[#allocation13_spill]] %s20297_s3 }
   0x5   :  { %17 = vsyncpa [#allocation5], 0 }
   0x6   :  { %19 = vsyncpa [#allocation5 + $0x1], 0 }
   0x7   :  { %20 = vsyncpa [#allocation7], 0 }
   0x8   :  { %22 = vsyncpa [#allocation7 + $0x1], 0  ;;  %s16466_s17 = smov 0   ;;  %s16468_s18 = smov 0  }
   0x9   :  { %s16470_s19 = smov 0   ;;  %s16472_s20 = smov 0  }
   0xa LB: > { %s16487_s21 = sadd.s32 4294967295, %s16397_s20   ;;  %s13511_s22 = sadd.s32 4294967294, %s16397_s20   ;;  %s16397_s20 = sphi %s16472_s20, %s20327_s20   ;;  %s16393_s19 = sphi %s16470_s19, %s20326_s19   ;;  %s16389_s18 = sphi %s16468_s18, %s20325_s18   ;;  %s16385_s17 = sphi %s16466_s17, %s20324_s17  }
   0xb   : > { %s16491_s23 = sadd.s32 1, %s16397_s20   ;;  %s229_s24 = sadd.s32 1, %s16393_s19 }
   0xc   : > { %s226_s25 = ssub.s32 %s16397_s20, %s16491_s23  ;;  %p239_p0 = scmp.ne.s32.totalorder %s16393_s19, %s16389_s18 }
   0xd   : > { %p227_p1 = scmp.eq.s32.totalorder %s226_s25, 0  ;;  %p240_p2 = scmp.eq.s32.totalorder %s16487_s21, 1 }
   0xe   : > { %p245_p3 = scmp.ne.s32.totalorder %s16389_s18, %s16385_s17  ;;  %p246_p4 = scmp.eq.s32.totalorder %s13511_s22, 1 }
   0xf   : > { %s16502_s26 = scalar_select %p227_p1, %s16393_s19, %s229_s24  }
  0x10   : > { %p16504_p5 = por %p240_p2, %p239_p0  ;;  %p16508_p6 = por %p246_p4, %p245_p3 }
  0x11   : > { %p13514_p7 = scmp.ge.s32.totalorder %s16397_s20, 1  ;;  %p348_p8 = scmp.lt.s32.totalorder %s16397_s20, 3 }
  0x13   : > { %p349_p9 = pnand %p13514_p7, %p348_p8 }
  0x14   : > { %s20317_s1 = sld [smem:[#allocation11_spill]] (!%p349_p9)  ;;  %p394_p10 = scmp.lt.s32.totalorder (!%p349_p9), %s16487_s21, 1 }
  0x15   : > { %352 = sbr.rel (%p349_p9) target bundleno = 2367 (0x93f), region = 56  ;;  %s20318_s0 = sld [smem:[#allocation10_spill]] (!%p349_p9) }
  0x16   : > { %s20319_s3 = sld [smem:[#allocation13_spill]] (!%p349_p9)  ;;  %s16403_s30 = smov (!%p349_p9), 122  }
  0x17   : > { %s20320_s2 = sld [smem:[#allocation12_spill]] (!%p349_p9)  ;;  %s20210_s22 = sand.u32 (!%p349_p9), 1, %s16389_s18  }
  0x18   : > { %s20310_s29 = scalar_lea.vmem (!%p349_p9), [#allocation6], %s20210_s22  ;;  %s16404_s12 = smov (!%p349_p9), [#allocation4]  }
  0x1a   : > { %v15697_v0 = vld [vmem:[%s20317_s1 + $0x38] sm:$0xff]   ;;  %v20306_v1 = vmov 0   ;;  %v15698_v2 = vld [vmem:[%s20317_s1 + $0x30] sm:$0xff]   ;;  %v15699_v3 = vld [vmem:[%s20317_s1 + $0x28] sm:$0xff]   ;;  %s16527_s16 = scalar_select %p394_p10, %s16487_s21, 1  ;;  %v20308_v40 = vmov 0.0  }
  0x1b   : > { %838 = vmatprep.subr.bf16.mxu0 %v20306_v1  ;;  %v15700_v4 = vld [vmem:[%s20317_s1 + $0x20] sm:$0xff]   ;;  %v15701_v5 = vld [vmem:[%s20317_s1 + $0x18] sm:$0xff]   ;;  %v15702_v7 = vld [vmem:[%s20317_s1 + $0x10] sm:$0xff]   ;;  %15645 = vmatprep.subr.bf16.mxu1 %v20308_v40  ;;  %vm16401_vm0 = vmmov 0   ;;  %vm1121_vm1 = vcmask 130048   ;;  %vm1172_vm2 = vcmask 261120  }
  0x1c   : > { %839 = vmatpush1.bf16.msra.mxu0 %v15697_v0  ;;  %s15647_s25 = smul.u32 400, %s16527_s16  ;;  %v15703_v8 = vld [vmem:[%s20317_s1 + $0x8] sm:$0xff]   ;;  %v15704_v9 = vld [vmem:[%s20317_s1] sm:$0xff]   ;;  %v15705_v10 = vld [vmem:[%s20317_s1 + $0x78] sm:$0xff]   ;;  %14805 = vmatprep.mubr.msk.bf16.mxu1 %vm16401_vm0, %v20308_v40  ;;  %1173 = vst.msk [vmem:[#allocation3] sm:$0xff] %vm1172_vm2, %v20308_v40  ;;  %vm1217_vm3 = vcmask 259072   ;;  %s401_s15 = scalar_lea.vmem %s20305_s11, %s16527_s16 }
  0x1d   : > { %840 = vmatprep.subr.bf16.mxu0 %v20306_v1  ;;  %v15706_v11 = vld [vmem:[%s20317_s1 + $0x70] sm:$0xff]   ;;  %v15707_v12 = vld [vmem:[%s20317_s1 + $0x68] sm:$0xff]   ;;  %v15708_v13 = vld [vmem:[%s20317_s1 + $0x60] sm:$0xff]   ;;  %1174 = vst.msk [vmem:[#allocation3 + $0x8] sm:$0xff] %vm1172_vm2, %v20308_v40  ;;  %vm13350_vm4 = vcmask 40960   ;;  %vm13371_vm5 = vcmask 0  }
  0x1e   : > { %s16541_s14 = scalar_lea.vmem %s20318_s0, %s15647_s25  ;;  %v15709_v14 = vld [vmem:[%s20317_s1 + $0x58] sm:$0xff]   ;;  %v15710_v15 = vld [vmem:[%s20317_s1 + $0x50] sm:$0xff]   ;;  %v15711_v16 = vld [vmem:[%s20317_s1 + $0x48] sm:$0xff]   ;;  %1175 = vst.msk [vmem:[#allocation3 + $0x10] sm:$0xff] %vm1172_vm2, %v20308_v40  ;;  %s14557_s16 = sshll.u32 %s16487_s21, 4 }
  0x1f   : > { %v15715_v6 = vld [vmem:[%s16541_s14 + $0x4] ss:$8 sps:$4 sm:$0xff]   ;;  %v15713_v18 = vld [vmem:[%s16541_s14] ss:$8 sps:$4 sm:$0xff]   ;;  %v15716_v19 = vld [vmem:[%s16541_s14 + $0x14] ss:$8 sps:$4 sm:$0xff]   ;;  %s20220_s13 = scalar_lea.hbm %s20303_s9, %s14557_s16  ;;  %s20228_s0 = scalar_lea.hbm %s20304_s10, %s14557_s16 }
  0x20   : > { %841 = vmatpush1.bf16.msra.mxu0 %v15698_v2  ;;  %870 = vmatprep.mubr.bf16.mxu0 %v15715_v6  ;;  %v15712_v17 = vld [vmem:[%s20317_s1 + $0x40] sm:$0xff]   ;;  %v15718_v20 = vld [vmem:[%s16541_s14 + $0x10] ss:$8 sps:$4 sm:$0xff]   ;;  %v15722_v23 = vld [vmem:[%s16541_s14 + $0x34] ss:$8 sps:$4 sm:$0xff]   ;;  %1176 = vst.msk [vmem:[#allocation3 + $0x18] sm:$0xff] %vm1172_vm2, %v20308_v40 }
  0x21   : > { %842 = vmatprep.subr.bf16.mxu0 %v20306_v1  ;;  %v15719_v21 = vld [vmem:[%s16541_s14 + $0x24] ss:$8 sps:$4 sm:$0xff]   ;;  %v15721_v22 = vld [vmem:[%s16541_s14 + $0x20] ss:$8 sps:$4 sm:$0xff]   ;;  %v15724_v24 = vld [vmem:[%s16541_s14 + $0x30] ss:$8 sps:$4 sm:$0xff]  }
  0x22   : > { %v15725_v25 = vld [vmem:[%s16541_s14 + $0x44] ss:$8 sps:$4 sm:$0xff]   ;;  %v15727_v26 = vld [vmem:[%s16541_s14 + $0x40] ss:$8 sps:$4 sm:$0xff]   ;;  %v15728_v27 = vld [vmem:[%s16541_s14 + $0x54] ss:$8 sps:$4 sm:$0xff]  }
  0x23   : > { %v15730_v28 = vld [vmem:[%s16541_s14 + $0x50] ss:$8 sps:$4 sm:$0xff]   ;;  %v15731_v29 = vld [vmem:[%s16541_s14 + $0x64] ss:$8 sps:$4 sm:$0xff]   ;;  %v15733_v30 = vld [vmem:[%s16541_s14 + $0x60] ss:$8 sps:$4 sm:$0xff]  }
  0x24   : > { %843 = vmatpush1.bf16.msra.mxu0 %v15699_v3  ;;  %v15734_v31 = vld [vmem:[%s16541_s14 + $0x74] ss:$8 sps:$4 sm:$0xff]   ;;  %v15736_v32 = vld [vmem:[%s16541_s14 + $0x70] ss:$8 sps:$4 sm:$0xff]   ;;  %v15737_v33 = vld [vmem:[%s16541_s14 + $0x84] ss:$8 sps:$4 sm:$0xff]  }
  0x25   : > { %844 = vmatprep.subr.bf16.mxu0 %v20306_v1  ;;  %v15739_v34 = vld [vmem:[%s16541_s14 + $0x80] ss:$8 sps:$4 sm:$0xff]   ;;  %v15740_v35 = vld [vmem:[%s16541_s14 + $0x94] ss:$8 sps:$4 sm:$0xff]   ;;  %v15742_v36 = vld [vmem:[%s16541_s14 + $0x90] ss:$8 sps:$4 sm:$0xff]  }
  0x26   : > { %v15743_v37 = vld [vmem:[%s16541_s14 + $0xa4] ss:$8 sps:$4 sm:$0xff]   ;;  %v15745_v39 = vld [vmem:[%s16541_s14 + $0xa0] ss:$8 sps:$4 sm:$0xff]   ;;  %v15746_v41 = vld [vmem:[%s16541_s14 + $0xb4] ss:$8 sps:$4 sm:$0xff]  }
  0x27   : > { %v15785_v38 = vld [vmem:[%s20319_s3] sm:$0xff]   ;;  %v15748_v42 = vld [vmem:[%s16541_s14 + $0xb0] ss:$8 sps:$4 sm:$0xff]   ;;  %v15752_v45 = vld [vmem:[%s16541_s14 + $0xd4] ss:$8 sps:$4 sm:$0xff]   ;;  %1177 = vst.msk [vmem:[#allocation3 + $0x20] sm:$0xff] %vm1172_vm2, %v20308_v40 }
  0x28   : > { %845 = vmatpush1.bf16.msra.mxu0 %v15700_v4  ;;  %15646 = vmatpush3.bf16.msra.mxu1 %v15785_v38  ;;  %v15749_v43 = vld [vmem:[%s16541_s14 + $0xc4] ss:$8 sps:$4 sm:$0xff]   ;;  %v15751_v44 = vld [vmem:[%s16541_s14 + $0xc0] ss:$8 sps:$4 sm:$0xff]   ;;  %v15754_v46 = vld [vmem:[%s16541_s14 + $0xd0] ss:$8 sps:$4 sm:$0xff]  }
  0x29   : > { %846 = vmatprep.subr.bf16.mxu0 %v20306_v1  ;;  %14893 = vmatprep.subr.bf16.mxu1 %v20308_v40  ;;  %v15755_v47 = vld [vmem:[%s16541_s14 + $0xe4] ss:$8 sps:$4 sm:$0xff]   ;;  %v15757_v48 = vld [vmem:[%s16541_s14 + $0xe0] ss:$8 sps:$4 sm:$0xff]   ;;  %v15758_v49 = vld [vmem:[%s16541_s14 + $0xf4] ss:$8 sps:$4 sm:$0xff]  }
  0x2a   : > { %v15760_v50 = vld [vmem:[%s16541_s14 + $0xf0] ss:$8 sps:$4 sm:$0xff]   ;;  %v15761_v51 = vld [vmem:[%s16541_s14 + $0x104] ss:$8 sps:$4 sm:$0xff]   ;;  %v15763_v52 = vld [vmem:[%s16541_s14 + $0x100] ss:$8 sps:$4 sm:$0xff]  }
  0x2b   : > { %v15764_v53 = vld [vmem:[%s16541_s14 + $0x114] ss:$8 sps:$4 sm:$0xff]   ;;  %v15766_v54 = vld [vmem:[%s16541_s14 + $0x110] ss:$8 sps:$4 sm:$0xff]   ;;  %v15767_v55 = vld [vmem:[%s16541_s14 + $0x124] ss:$8 sps:$4 sm:$0xff]  }
  0x2c   : > { %847 = vmatpush1.bf16.msra.mxu0 %v15701_v5  ;;  %v15769_v56 = vld [vmem:[%s16541_s14 + $0x120] ss:$8 sps:$4 sm:$0xff]   ;;  %v15770_v57 = vld [vmem:[%s16541_s14 + $0x134] ss:$8 sps:$4 sm:$0xff]   ;;  %v15772_v58 = vld [vmem:[%s16541_s14 + $0x130] ss:$8 sps:$4 sm:$0xff]  }
  0x2d   : > { %848 = vmatprep.subr.bf16.mxu0 %v20306_v1  ;;  %v15773_v59 = vld [vmem:[%s16541_s14 + $0x144] ss:$8 sps:$4 sm:$0xff]   ;;  %v15775_v60 = vld [vmem:[%s16541_s14 + $0x140] ss:$8 sps:$4 sm:$0xff]   ;;  %v15776_v61 = vld [vmem:[%s16541_s14 + $0x154] ss:$8 sps:$4 sm:$0xff]  }
  0x2e   : > { %v15778_v62 = vld [vmem:[%s16541_s14 + $0x150] ss:$8 sps:$4 sm:$0xff]   ;;  %v15779_v63 = vld [vmem:[%s16541_s14 + $0x164] ss:$8 sps:$4 sm:$0xff]   ;;  %v15781_v0 = vld [vmem:[%s16541_s14 + $0x160] ss:$8 sps:$4 sm:$0xff]  }
  0x2f   : > { %v15782_v2 = vld [vmem:[%s16541_s14 + $0x174] ss:$8 sps:$4 sm:$0xff]   ;;  %v15784_v3 = vld [vmem:[%s16541_s14 + $0x170] ss:$8 sps:$4 sm:$0xff]   ;;  %v15786_v4 = vld [vmem:[%s16541_s14 + $0x184] ss:$8 sps:$4 sm:$0xff]  }
  0x30   : > { %849 = vmatpush1.bf16.msra.mxu0 %v15702_v7  ;;  %v15788_v5 = vld [vmem:[%s16541_s14 + $0x180] ss:$8 sps:$4 sm:$0xff]   ;;  %1178 = vst.msk [vmem:[#allocation3 + $0x28] sm:$0xff] %vm1172_vm2, %v20308_v40  ;;  %1179 = vst.msk [vmem:[#allocation3 + $0x30] sm:$0xff] %vm1172_vm2, %v20308_v40  ;;  %s382_s14 = scalar_lea.vmem [#allocation4], %s20210_s22  ;;  %s13406_s25 = sshll.u32 %s20310_s29, 4  ;;  %s20230_s25 = int_to_ptr.vmem [resolvable:$true] %s13406_s25 }
  0x31   : > { %850 = vmatprep.subr.bf16.mxu0 %v20306_v1  ;;  %v16650_v6 = vld [vmem:[%s20320_s2] ss:$0 sm:$0xff]  ;;  %1180 = vst.msk [vmem:[#allocation3 + $0x38] sm:$0xff] %vm1172_vm2, %v20308_v40  ;;  %1181 = vst.msk [vmem:[#allocation3 + $0x40] sm:$0xff] %vm1172_vm2, %v20308_v40  ;;  %s13393_s24 = sshll.u32 %s382_s14, 4  ;;  %s13374_s29 = scalar_lea.sflag [#allocation5], %s20210_s22  ;;  %s20222_s24 = int_to_ptr.vmem [resolvable:$true] %s13393_s24 }
  0x32   : > { %1182 = vst.msk [vmem:[#allocation3 + $0x48] sm:$0xff] %vm1172_vm2, %v20308_v40  ;;  %1183 = vst.msk [vmem:[#allocation3 + $0x50] sm:$0xff] %vm1172_vm2, %v20308_v40  ;;  %s16311_s1 = sshll.u32 %s16404_s12, 4  ;;  %s16312_s1 = int_to_ptr.vmem [resolvable:$false] %s16311_s1 }
  0x33   : > { %1184 = vst.msk [vmem:[#allocation3 + $0x58] sm:$0xff] %vm1172_vm2, %v20308_v40  ;;  %1185 = vst.msk [vmem:[#allocation3 + $0x60] sm:$0xff] %vm1172_vm2, %v20308_v40  ;;  %p16314_p0 = scmp.lt.s32.totalorder %s20222_s24, %s16312_s1 }
  0x34   : > { %851 = vmatpush1.bf16.msra.mxu0 %v15703_v8  ;;  %1186 = vst.msk [vmem:[#allocation3 + $0x68] sm:$0xff] %vm1172_vm2, %v20308_v40  ;;  %1187 = vst.msk [vmem:[#allocation3 + $0x70] sm:$0xff] %vm1172_vm2, %v20308_v40 }
  0x35   : > { %852 = vmatprep.subr.bf16.mxu0 %v20306_v1  ;;  %1188 = vst.msk [vmem:[#allocation3 + $0x78] sm:$0xff] %vm1172_vm2, %v20308_v40  ;;  %1189 = vst.msk [vmem:[#allocation3 + $0x80] sm:$0xff] %vm1172_vm2, %v20308_v40 }
  0x36   : > { %1190 = vst.msk [vmem:[#allocation3 + $0x88] sm:$0xff] %vm1172_vm2, %v20308_v40  ;;  %1191 = vst.msk [vmem:[#allocation3 + $0x90] sm:$0xff] %vm1172_vm2, %v20308_v40 }
  0x37   : > { %1192 = vst.msk [vmem:[#allocation3 + $0x98] sm:$0xff] %vm1172_vm2, %v20308_v40  ;;  %1193 = vst.msk [vmem:[#allocation3 + $0xa0] sm:$0xff] %vm1172_vm2, %v20308_v40 }
  0x38   : > { %853 = vmatpush1.bf16.msra.mxu0 %v15704_v9  ;;  %1194 = vst.msk [vmem:[#allocation3 + $0xa8] sm:$0xff] %vm1172_vm2, %v20308_v40  ;;  %1195 = vst.msk [vmem:[#allocation3 + $0xb0] sm:$0xff] %vm1172_vm2, %v20308_v40 }
  0x39   : > { %854 = vmatprep.subr.bf16.mxu0 %v20306_v1  ;;  %1196 = vst.msk [vmem:[#allocation3 + $0xb8] sm:$0xff] %vm1172_vm2, %v20308_v40  ;;  %1197 = vst.msk [vmem:[#allocation3 + $0xc0] sm:$0xff] %vm1172_vm2, %v20308_v40 }
  0x3a   : > { %1198 = vst.msk [vmem:[#allocation3 + $0xc8] sm:$0xff] %vm1172_vm2, %v20308_v40  ;;  %1199 = vst.msk [vmem:[#allocation3 + $0xd0] sm:$0xff] %vm1172_vm2, %v20308_v40 }
  0x3b   : > { %1200 = vst.msk [vmem:[#allocation3 + $0xd8] sm:$0xff] %vm1172_vm2, %v20308_v40  ;;  %1201 = vst.msk [vmem:[#allocation3 + $0xe0] sm:$0xff] %vm1172_vm2, %v20308_v40 }
  0x3c   : > { %855 = vmatpush2.bf16.msra.mxu0 %v15705_v10  ;;  %1202 = vst.msk [vmem:[#allocation3 + $0xe8] sm:$0xff] %vm1172_vm2, %v20308_v40  ;;  %1203 = vst.msk [vmem:[#allocation3 + $0xf0] sm:$0xff] %vm1172_vm2, %v20308_v40 }
  0x3d   : > { %856 = vmatprep.subr.bf16.mxu0 %v20306_v1  ;;  %1204 = vst.msk [vmem:[#allocation3 + $0xf8] sm:$0xff] %vm1172_vm2, %v20308_v40  ;;  %1205 = vst.msk [vmem:[#allocation3 + $0x100] sm:$0xff] %vm1172_vm2, %v20308_v40 }
  0x3e   : > { %1206 = vst.msk [vmem:[#allocation3 + $0x108] sm:$0xff] %vm1172_vm2, %v20308_v40  ;;  %1207 = vst.msk [vmem:[#allocation3 + $0x110] sm:$0xff] %vm1172_vm2, %v20308_v40 }
  0x3f   : > { %1208 = vst.msk [vmem:[#allocation3 + $0x118] sm:$0xff] %vm1172_vm2, %v20308_v40  ;;  %1209 = vst.msk [vmem:[#allocation3 + $0x120] sm:$0xff] %vm1172_vm2, %v20308_v40 }
  0x40   : > { %857 = vmatpush2.bf16.msra.mxu0 %v15706_v11  ;;  %1210 = vst.msk [vmem:[#allocation3 + $0x128] sm:$0xff] %vm1172_vm2, %v20308_v40  ;;  %1211 = vst.msk [vmem:[#allocation3 + $0x130] sm:$0xff] %vm1172_vm2, %v20308_v40 }
  0x41   : > { %858 = vmatprep.subr.bf16.mxu0 %v20306_v1  ;;  %1212 = vst.msk [vmem:[#allocation3 + $0x138] sm:$0xff] %vm1172_vm2, %v20308_v40  ;;  %1213 = vst.msk [vmem:[#allocation3 + $0x140] sm:$0xff] %vm1172_vm2, %v20308_v40 }
  0x42   : > { %1214 = vst.msk [vmem:[#allocation3 + $0x148] sm:$0xff] %vm1172_vm2, %v20308_v40  ;;  %1215 = vst.msk [vmem:[#allocation3 + $0x150] sm:$0xff] %vm1172_vm2, %v20308_v40 }
  0x43   : > { %1216 = vst.msk [vmem:[#allocation3 + $0x158] sm:$0xff] %vm1172_vm2, %v20308_v40 }
  0x44   : > { %859 = vmatpush2.bf16.msra.mxu0 %v15707_v12  ;;  %1218 = vst.msk [vmem:[#allocation3 + $0x160] sm:$0x3f] %vm1217_vm3, %v20308_v40 }
  0x45   : > { %860 = vmatprep.subr.bf16.mxu0 %v20306_v1 }
  0x48   : > { %861 = vmatpush2.bf16.msra.mxu0 %v15708_v13 }
  0x49   : > { %862 = vmatprep.subr.bf16.mxu0 %v20306_v1 }
  0x4c   : > { %863 = vmatpush2.bf16.msra.mxu0 %v15709_v14 }
  0x4d   : > { %864 = vmatprep.subr.bf16.mxu0 %v20306_v1 }
  0x50   : > { %865 = vmatpush2.bf16.msra.mxu0 %v15710_v15 }
  0x51   : > { %866 = vmatprep.subr.bf16.mxu0 %v20306_v1 }
  0x54   : > { %867 = vmatpush2.bf16.msra.mxu0 %v15711_v16 }
  0x55   : > { %868 = vmatprep.subr.bf16.mxu0 %v20306_v1 }
  0x58   : > { %869 = vmatpush2.bf16.msra.mxu0 %v15712_v17 }
  0x59   : > { %14799 = vmatprep.subr.bf16.mxu0 %v20308_v40 }
  0x5b   : > { %871 = vmatmul.mubr.bf16.vlgmr.msra.gmra.mxu0 %v15713_v18 }
  0x5c   : > { %878 = vmatprep.mubr.bf16.mxu0 %v15716_v19  ;;  %14800 = vmatpush3.bf16.msra.mxu0 %v15785_v38 }
  0x5d   : > { %14987 = vmatprep.subr.bf16.mxu0 %v20308_v40 }
  0x63   : > { %879 = vmatmul.mubr.bf16.gmra.mxu0 %v15718_v20 }
  0x64   : > { %886 = vmatprep.mubr.bf16.mxu0 %v15719_v21 }
  0x6b   : > { %887 = vmatmul.mubr.bf16.gmra.mxu0 %v15721_v22 }
  0x6c   : > { %894 = vmatprep.mubr.bf16.mxu0 %v15722_v23 }
  0x73   : > { %895 = vmatmul.mubr.bf16.gmra.mxu0 %v15724_v24 }
  0x74   : > { %902 = vmatprep.mubr.bf16.mxu0 %v15725_v25 }
  0x7b   : > { %903 = vmatmul.mubr.bf16.gmra.mxu0 %v15727_v26  ;;  %v15789_v26 = vld [vmem:[%s20319_s3 + $0x10] sm:$0xff]  }
  0x7c   : > { %910 = vmatprep.mubr.bf16.mxu0 %v15728_v27 }
  0x83   : > { %911 = vmatmul.mubr.bf16.gmra.mxu0 %v15730_v28 }
  0x84   : > { %918 = vmatprep.mubr.bf16.mxu0 %v15731_v29 }
  0x8b   : > { %919 = vmatmul.mubr.bf16.gmra.mxu0 %v15733_v30 }
  0x8c   : > { %926 = vmatprep.mubr.bf16.mxu0 %v15734_v31 }
  0x93   : > { %927 = vmatmul.mubr.bf16.gmra.mxu0 %v15736_v32 }
  0x94   : > { %934 = vmatprep.mubr.bf16.mxu0 %v15737_v33 }
  0x9b   : > { %935 = vmatmul.mubr.bf16.gmra.mxu0 %v15739_v34 }
  0x9c   : > { %942 = vmatprep.mubr.bf16.mxu0 %v15740_v35 }
  0xa3   : > { %943 = vmatmul.mubr.bf16.gmra.mxu0 %v15742_v36  ;;  %v15790_v36 = vld [vmem:[%s20319_s3 + $0x8] sm:$0xff]  }
  0xa4   : > { %950 = vmatprep.mubr.bf16.mxu0 %v15743_v37 }
  0xab   : > { %951 = vmatmul.mubr.bf16.gmra.mxu0 %v15745_v39 }
  0xac   : > { %958 = vmatprep.mubr.bf16.mxu0 %v15746_v41 }
  0xb3   : > { %959 = vmatmul.mubr.bf16.gmra.mxu0 %v15748_v42 }
  0xb4   : > { %966 = vmatprep.mubr.bf16.mxu0 %v15749_v43 }
  0xbb   : > { %967 = vmatmul.mubr.bf16.gmra.mxu0 %v15751_v44 }
  0xbc   : > { %974 = vmatprep.mubr.bf16.mxu0 %v15752_v45 }
  0xc3   : > { %975 = vmatmul.mubr.bf16.gmra.mxu0 %v15754_v46 }
  0xc4   : > { %982 = vmatprep.mubr.bf16.mxu0 %v15755_v47 }
  0xcb   : > { %983 = vmatmul.mubr.bf16.gmra.mxu0 %v15757_v48 }
  0xcc   : > { %990 = vmatprep.mubr.bf16.mxu0 %v15758_v49 }
  0xd3   : > { %991 = vmatmul.mubr.bf16.gmra.mxu0 %v15760_v50 }
  0xd4   : > { %998 = vmatprep.mubr.bf16.mxu0 %v15761_v51 }
  0xdb   : > { %999 = vmatmul.mubr.bf16.gmra.mxu0 %v15763_v52 }
  0xdc   : > { %1006 = vmatprep.mubr.bf16.mxu0 %v15764_v53 }
  0xe3   : > { %1007 = vmatmul.mubr.bf16.gmra.mxu0 %v15766_v54 }
  0xe4   : > { %1014 = vmatprep.mubr.bf16.mxu0 %v15767_v55 }
  0xeb   : > { %1015 = vmatmul.mubr.bf16.gmra.mxu0 %v15769_v56 }
  0xec   : > { %1022 = vmatprep.mubr.bf16.mxu0 %v15770_v57 }
  0xf3   : > { %1023 = vmatmul.mubr.bf16.gmra.mxu0 %v15772_v58 }
  0xf4   : > { %1030 = vmatprep.mubr.bf16.mxu0 %v15773_v59 }
  0xfb   : > { %1031 = vmatmul.mubr.bf16.gmra.mxu0 %v15775_v60 }
  0xfc   : > { %1038 = vmatprep.mubr.bf16.mxu0 %v15776_v61 }
 0x103   : > { %1039 = vmatmul.mubr.bf16.gmra.mxu0 %v15778_v62 }
 0x104   : > { %1046 = vmatprep.mubr.bf16.mxu0 %v15779_v63 }
 0x10b   : > { %1047 = vmatmul.mubr.bf16.gmra.mxu0 %v15781_v0 }
 0x10c   : > { %1054 = vmatprep.mubr.bf16.mxu0 %v15782_v2 }
 0x113   : > { %1055 = vmatmul.mubr.bf16.gmra.mxu0 %v15784_v3 }
 0x114   : > { %1062 = vmatprep.mubr.bf16.mxu0 %v15786_v4 }
 0x11b   : > { %v872_v7 = vpop.f32.mrf.mxu0  ;;  %1063 = vmatmul.mubr.bf16.gmra.mxu0 %v15788_v5 }
 0x11c   : > { %v873_v8 = vadd.f32 %v16650_v6, %v872_v7  ;;  %14801 = vmatprep.mubr.msk.bf16.mxu0 %vm16401_vm0, %v20308_v40 }
 0x11d   : > { %v874_v9 = vpop.f32.mrf.mxu0 }
 0x11e   : > { %v1071_v10 = vmax.f32 %v873_v8, 0.0 }
 0x11f   : > { %v875_v11 = vpop.f32.mrf.mxu0 }
 0x120   : > { %1122 = vst.msk [vmem:[#allocation2] sm:$0xff] %vm1121_vm1, %v1071_v10  ;;  %v876_v12 = vadd.f32 %v16650_v6, %v875_v11 }
 0x121   : > { %v877_v13 = vpop.f32.mrf.mxu0 }
 0x122   : > { %v1072_v14 = vmax.f32 %v876_v12, 0.0 }
 0x123   : > { %v880_v15 = vpop.f32.mrf.mxu0 }
 0x124   : > { %1123 = vst.msk [vmem:[#allocation2 + $0x8] sm:$0xff] %vm1121_vm1, %v1072_v14  ;;  %v881_v16 = vadd.f32 %v16650_v6, %v880_v15 }
 0x125   : > { %v882_v17 = vpop.f32.mrf.mxu0 }
 0x126   : > { %v1073_v18 = vmax.f32 %v881_v16, 0.0 }
 0x127   : > { %v883_v19 = vpop.f32.mrf.mxu0  ;;  %v1219_v24 = vld [vmem:[#allocation2] sm:$0xff] }
 0x128   : > { %1124 = vst.msk [vmem:[#allocation2 + $0x10] sm:$0xff] %vm1121_vm1, %v1073_v18  ;;  %v884_v20 = vadd.f32 %v16650_v6, %v883_v19 }
 0x129   : > { %v885_v21 = vpop.f32.mrf.mxu0 }
 0x12a   : > { %v1074_v22 = vmax.f32 %v884_v20, 0.0 }
 0x12b   : > { %v888_v23 = vpop.f32.mrf.mxu0  ;;  %v1220_v25 = vld [vmem:[#allocation2 + $0x8] sm:$0xff] }
 0x12c   : > { %1125 = vst.msk [vmem:[#allocation2 + $0x18] sm:$0xff] %vm1121_vm1, %v1074_v22  ;;  %v889_v27 = vadd.f32 %v16650_v6, %v888_v23  ;;  %v1264_v28 = vpack.c.bf16 %v1220_v25, %v1219_v24  ;;  %v2212_v41 = vld [vmem:[#allocation2 + $0x2] sm:$0xff] }
 0x12d   : > { %v890_v29 = vpop.f32.mrf.mxu0 }
 0x12e   : > { %v1075_v30 = vmax.f32 %v889_v27, 0.0  ;;  %14802 = vmatmul.mubr.msk.bf16.vlgmr.msra.gmra.mxu0 %vm1121_vm1, %v1264_v28 }
 0x12f   : > { %v891_v31 = vpop.f32.mrf.mxu0  ;;  %14988 = vmatpush3.bf16.msra.mxu0 %v15789_v26  ;;  %14989 = vmatprep.mubr.msk.bf16.mxu0 %vm16401_vm0, %v20308_v40  ;;  %v2213_v34 = vld [vmem:[#allocation2 + $0xa] sm:$0xff] }
 0x130   : > { %1126 = vst.msk [vmem:[#allocation2 + $0x20] sm:$0xff] %vm1121_vm1, %v1075_v30  ;;  %v892_v32 = vadd.f32 %v16650_v6, %v891_v31  ;;  %15175 = vmatprep.subr.bf16.mxu0 %v20308_v40  ;;  %v1221_v38 = vld [vmem:[#allocation2 + $0x10] sm:$0xff]  ;;  %v2257_v44 = vpack.c.bf16 %v2213_v34, %v2212_v41 }
 0x131   : > { %v893_v33 = vpop.f32.mrf.mxu0 }
 0x132   : > { %v1076_v35 = vmax.f32 %v892_v32, 0.0 }
 0x133   : > { %v896_v37 = vpop.f32.mrf.mxu0  ;;  %v1222_v39 = vld [vmem:[#allocation2 + $0x18] sm:$0xff] }
 0x134   : > { %1127 = vst.msk [vmem:[#allocation2 + $0x28] sm:$0xff] %vm1121_vm1, %v1076_v35  ;;  %v897_v42 = vadd.f32 %v16650_v6, %v896_v37  ;;  %v1265_v43 = vpack.c.bf16 %v1222_v39, %v1221_v38  ;;  %v2214_v55 = vld [vmem:[#allocation2 + $0x12] sm:$0xff] }
 0x135   : > { %v898_v45 = vpop.f32.mrf.mxu0 }
 0x136   : > { %v1077_v46 = vmax.f32 %v897_v42, 0.0  ;;  %14806 = vmatmul.mubr.msk.bf16.vlgmr.msra.gmra.mxu1 %vm1121_vm1, %v1265_v43  ;;  %14990 = vmatmul.mubr.msk.bf16.vlgmr.msra.gmra.mxu0 %vm1121_vm1, %v2257_v44 }
 0x137   : > { %14894 = vmatpush3.bf16.msra.mxu1 %v15790_v36  ;;  %v899_v47 = vpop.f32.mrf.mxu0  ;;  %14809 = vmatprep.mubr.msk.bf16.mxu1 %vm16401_vm0, %v20308_v40  ;;  %v2215_v50 = vld [vmem:[#allocation2 + $0x1a] sm:$0xff] }
 0x138   : > { %1128 = vst.msk [vmem:[#allocation2 + $0x30] sm:$0xff] %vm1121_vm1, %v1077_v46  ;;  %v900_v48 = vadd.f32 %v16650_v6, %v899_v47  ;;  %14993 = vmatprep.mubr.msk.bf16.mxu0 %vm16401_vm0, %v20308_v40  ;;  %15081 = vmatprep.subr.bf16.mxu1 %v20308_v40  ;;  %v1223_v53 = vld [vmem:[#allocation2 + $0x20] sm:$0xff]  ;;  %v2258_v58 = vpack.c.bf16 %v2215_v50, %v2214_v55 }
 0x139   : > { %v901_v49 = vpop.f32.mrf.mxu0 }
 0x13a   : > { %v1078_v51 = vmax.f32 %v900_v48, 0.0 }
 0x13b   : > { %v904_v52 = vpop.f32.mrf.mxu0  ;;  %v1224_v54 = vld [vmem:[#allocation2 + $0x28] sm:$0xff] }
 0x13c   : > { %1129 = vst.msk [vmem:[#allocation2 + $0x38] sm:$0xff] %vm1121_vm1, %v1078_v51  ;;  %v905_v56 = vadd.f32 %v16650_v6, %v904_v52  ;;  %v1266_v57 = vpack.c.bf16 %v1224_v54, %v1223_v53  ;;  %v2216_v7 = vld [vmem:[#allocation2 + $0x22] sm:$0xff] }
 0x13d   : > { %v906_v59 = vpop.f32.mrf.mxu0 }
 0x13e   : > { %v1079_v60 = vmax.f32 %v905_v56, 0.0  ;;  %14810 = vmatmul.mubr.msk.bf16.gmra.mxu1 %vm1121_vm1, %v1266_v57  ;;  %14994 = vmatmul.mubr.msk.bf16.gmra.mxu0 %vm1121_vm1, %v2258_v58 }
 0x13f   : > { %v907_v61 = vpop.f32.mrf.mxu0  ;;  %14813 = vmatprep.mubr.msk.bf16.mxu1 %vm16401_vm0, %v20308_v40  ;;  %14997 = vmatprep.mubr.msk.bf16.mxu0 %vm16401_vm0, %v20308_v40  ;;  %v2217_v0 = vld [vmem:[#allocation2 + $0x2a] sm:$0xff] }
 0x140   : > { %1130 = vst.msk [vmem:[#allocation2 + $0x40] sm:$0xff] %vm1121_vm1, %v1079_v60  ;;  %v908_v62 = vadd.f32 %v16650_v6, %v907_v61  ;;  %v1225_v4 = vld [vmem:[#allocation2 + $0x30] sm:$0xff]  ;;  %v2259_v10 = vpack.c.bf16 %v2217_v0, %v2216_v7 }
 0x141   : > { %v909_v63 = vpop.f32.mrf.mxu0 }
 0x142   : > { %v1080_v2 = vmax.f32 %v908_v62, 0.0 }
 0x143   : > { %v912_v3 = vpop.f32.mrf.mxu0  ;;  %v1226_v5 = vld [vmem:[#allocation2 + $0x38] sm:$0xff] }
 0x144   : > { %1131 = vst.msk [vmem:[#allocation2 + $0x48] sm:$0xff] %vm1121_vm1, %v1080_v2  ;;  %v913_v8 = vadd.f32 %v16650_v6, %v912_v3  ;;  %v1267_v9 = vpack.c.bf16 %v1226_v5, %v1225_v4  ;;  %v2218_v21 = vld [vmem:[#allocation2 + $0x32] sm:$0xff] }
 0x145   : > { %v914_v11 = vpop.f32.mrf.mxu0 }
 0x146   : > { %v1081_v12 = vmax.f32 %v913_v8, 0.0  ;;  %14814 = vmatmul.mubr.msk.bf16.gmra.mxu1 %vm1121_vm1, %v1267_v9  ;;  %14998 = vmatmul.mubr.msk.bf16.gmra.mxu0 %vm1121_vm1, %v2259_v10  ;;  %v15792_v9 = vld [vmem:[%s20319_s3 + $0x20] sm:$0xff]  }
 0x147   : > { %v915_v13 = vpop.f32.mrf.mxu0  ;;  %14817 = vmatprep.mubr.msk.bf16.mxu1 %vm16401_vm0, %v20308_v40  ;;  %15001 = vmatprep.mubr.msk.bf16.mxu0 %vm16401_vm0, %v20308_v40  ;;  %v2219_v16 = vld [vmem:[#allocation2 + $0x3a] sm:$0xff] }
 0x148   : > { %1132 = vst.msk [vmem:[#allocation2 + $0x50] sm:$0xff] %vm1121_vm1, %v1081_v12  ;;  %v916_v14 = vadd.f32 %v16650_v6, %v915_v13  ;;  %v1227_v19 = vld [vmem:[#allocation2 + $0x40] sm:$0xff]  ;;  %v2260_v24 = vpack.c.bf16 %v2219_v16, %v2218_v21  ;;  %15176 = vmatpush3.bf16.msra.mxu0 %v15792_v9 }
 0x149   : > { %v917_v15 = vpop.f32.mrf.mxu0  ;;  %15363 = vmatprep.subr.bf16.mxu0 %v20308_v40 }
 0x14a   : > { %v1082_v17 = vmax.f32 %v916_v14, 0.0 }
 0x14b   : > { %v920_v18 = vpop.f32.mrf.mxu0  ;;  %v1228_v20 = vld [vmem:[#allocation2 + $0x48] sm:$0xff] }
 0x14c   : > { %1133 = vst.msk [vmem:[#allocation2 + $0x58] sm:$0xff] %vm1121_vm1, %v1082_v17  ;;  %v921_v22 = vadd.f32 %v16650_v6, %v920_v18  ;;  %v1268_v23 = vpack.c.bf16 %v1228_v20, %v1227_v19  ;;  %v2220_v35 = vld [vmem:[#allocation2 + $0x42] sm:$0xff] }
 0x14d   : > { %v922_v25 = vpop.f32.mrf.mxu0 }
 0x14e   : > { %v1083_v26 = vmax.f32 %v921_v22, 0.0  ;;  %14818 = vmatmul.mubr.msk.bf16.gmra.mxu1 %vm1121_vm1, %v1268_v23  ;;  %15002 = vmatmul.mubr.msk.bf16.gmra.mxu0 %vm1121_vm1, %v2260_v24 }
 0x14f   : > { %v923_v27 = vpop.f32.mrf.mxu0  ;;  %14821 = vmatprep.mubr.msk.bf16.mxu1 %vm16401_vm0, %v20308_v40  ;;  %15005 = vmatprep.mubr.msk.bf16.mxu0 %vm16401_vm0, %v20308_v40  ;;  %v2221_v30 = vld [vmem:[#allocation2 + $0x4a] sm:$0xff] }
 0x150   : > { %1134 = vst.msk [vmem:[#allocation2 + $0x60] sm:$0xff] %vm1121_vm1, %v1083_v26  ;;  %v924_v28 = vadd.f32 %v16650_v6, %v923_v27  ;;  %v1229_v33 = vld [vmem:[#allocation2 + $0x50] sm:$0xff]  ;;  %v2261_v38 = vpack.c.bf16 %v2221_v30, %v2220_v35 }
 0x151   : > { %v925_v29 = vpop.f32.mrf.mxu0 }
 0x152   : > { %v1084_v31 = vmax.f32 %v924_v28, 0.0 }
 0x153   : > { %v928_v32 = vpop.f32.mrf.mxu0  ;;  %v1230_v34 = vld [vmem:[#allocation2 + $0x58] sm:$0xff] }
 0x154   : > { %1135 = vst.msk [vmem:[#allocation2 + $0x68] sm:$0xff] %vm1121_vm1, %v1084_v31  ;;  %v929_v36 = vadd.f32 %v16650_v6, %v928_v32  ;;  %v1269_v37 = vpack.c.bf16 %v1230_v34, %v1229_v33  ;;  %v2222_v50 = vld [vmem:[#allocation2 + $0x52] sm:$0xff] }
 0x155   : > { %v930_v39 = vpop.f32.mrf.mxu0 }
 0x156   : > { %v1085_v41 = vmax.f32 %v929_v36, 0.0  ;;  %14822 = vmatmul.mubr.msk.bf16.gmra.mxu1 %vm1121_vm1, %v1269_v37  ;;  %15006 = vmatmul.mubr.msk.bf16.gmra.mxu0 %vm1121_vm1, %v2261_v38 }
 0x157   : > { %v931_v42 = vpop.f32.mrf.mxu0  ;;  %14825 = vmatprep.mubr.msk.bf16.mxu1 %vm16401_vm0, %v20308_v40  ;;  %15009 = vmatprep.mubr.msk.bf16.mxu0 %vm16401_vm0, %v20308_v40  ;;  %v2223_v45 = vld [vmem:[#allocation2 + $0x5a] sm:$0xff] }
 0x158   : > { %1136 = vst.msk [vmem:[#allocation2 + $0x70] sm:$0xff] %vm1121_vm1, %v1085_v41  ;;  %v932_v43 = vadd.f32 %v16650_v6, %v931_v42  ;;  %v1231_v48 = vld [vmem:[#allocation2 + $0x60] sm:$0xff]  ;;  %v2262_v53 = vpack.c.bf16 %v2223_v45, %v2222_v50 }
 0x159   : > { %v933_v44 = vpop.f32.mrf.mxu0 }
 0x15a   : > { %v1086_v46 = vmax.f32 %v932_v43, 0.0 }
 0x15b   : > { %v936_v47 = vpop.f32.mrf.mxu0  ;;  %v1232_v49 = vld [vmem:[#allocation2 + $0x68] sm:$0xff] }
 0x15c   : > { %1137 = vst.msk [vmem:[#allocation2 + $0x78] sm:$0xff] %vm1121_vm1, %v1086_v46  ;;  %v937_v51 = vadd.f32 %v16650_v6, %v936_v47  ;;  %v1270_v52 = vpack.c.bf16 %v1232_v49, %v1231_v48  ;;  %v2224_v0 = vld [vmem:[#allocation2 + $0x62] sm:$0xff] }
 0x15d   : > { %v938_v54 = vpop.f32.mrf.mxu0 }
 0x15e   : > { %v1087_v55 = vmax.f32 %v937_v51, 0.0  ;;  %14826 = vmatmul.mubr.msk.bf16.gmra.mxu1 %vm1121_vm1, %v1270_v52  ;;  %15010 = vmatmul.mubr.msk.bf16.gmra.mxu0 %vm1121_vm1, %v2262_v53 }
 0x15f   : > { %v939_v56 = vpop.f32.mrf.mxu0  ;;  %14829 = vmatprep.mubr.msk.bf16.mxu1 %vm16401_vm0, %v20308_v40  ;;  %15013 = vmatprep.mubr.msk.bf16.mxu0 %vm16401_vm0, %v20308_v40  ;;  %v2225_v59 = vld [vmem:[#allocation2 + $0x6a] sm:$0xff] }
 0x160   : > { %1138 = vst.msk [vmem:[#allocation2 + $0x80] sm:$0xff] %vm1121_vm1, %v1087_v55  ;;  %v940_v57 = vadd.f32 %v16650_v6, %v939_v56  ;;  %v1233_v62 = vld [vmem:[#allocation2 + $0x70] sm:$0xff]  ;;  %v2263_v4 = vpack.c.bf16 %v2225_v59, %v2224_v0 }
 0x161   : > { %v941_v58 = vpop.f32.mrf.mxu0 }
 0x162   : > { %v1088_v60 = vmax.f32 %v940_v57, 0.0 }
 0x163   : > { %v944_v61 = vpop.f32.mrf.mxu0  ;;  %v1234_v63 = vld [vmem:[#allocation2 + $0x78] sm:$0xff] }
 0x164   : > { %1139 = vst.msk [vmem:[#allocation2 + $0x88] sm:$0xff] %vm1121_vm1, %v1088_v60  ;;  %v945_v2 = vadd.f32 %v16650_v6, %v944_v61  ;;  %v1271_v3 = vpack.c.bf16 %v1234_v63, %v1233_v62  ;;  %v2226_v17 = vld [vmem:[#allocation2 + $0x72] sm:$0xff] }
 0x165   : > { %v946_v5 = vpop.f32.mrf.mxu0 }
 0x166   : > { %v1089_v7 = vmax.f32 %v945_v2, 0.0  ;;  %14830 = vmatmul.mubr.msk.bf16.gmra.mxu1 %vm1121_vm1, %v1271_v3  ;;  %15014 = vmatmul.mubr.msk.bf16.gmra.mxu0 %vm1121_vm1, %v2263_v4 }
 0x167   : > { %v947_v8 = vpop.f32.mrf.mxu0  ;;  %14833 = vmatprep.mubr.msk.bf16.mxu1 %vm16401_vm0, %v20308_v40  ;;  %15017 = vmatprep.mubr.msk.bf16.mxu0 %vm16401_vm0, %v20308_v40  ;;  %v2227_v12 = vld [vmem:[#allocation2 + $0x7a] sm:$0xff] }
 0x168   : > { %1140 = vst.msk [vmem:[#allocation2 + $0x90] sm:$0xff] %vm1121_vm1, %v1089_v7  ;;  %v948_v10 = vadd.f32 %v16650_v6, %v947_v8  ;;  %v1235_v15 = vld [vmem:[#allocation2 + $0x80] sm:$0xff]  ;;  %v2264_v20 = vpack.c.bf16 %v2227_v12, %v2226_v17 }
 0x169   : > { %v949_v11 = vpop.f32.mrf.mxu0 }
 0x16a   : > { %v1090_v13 = vmax.f32 %v948_v10, 0.0 }
 0x16b   : > { %v952_v14 = vpop.f32.mrf.mxu0  ;;  %v1236_v16 = vld [vmem:[#allocation2 + $0x88] sm:$0xff] }
 0x16c   : > { %1141 = vst.msk [vmem:[#allocation2 + $0x98] sm:$0xff] %vm1121_vm1, %v1090_v13  ;;  %v953_v18 = vadd.f32 %v16650_v6, %v952_v14  ;;  %v1272_v19 = vpack.c.bf16 %v1236_v16, %v1235_v15  ;;  %v2228_v31 = vld [vmem:[#allocation2 + $0x82] sm:$0xff] }
 0x16d   : > { %v954_v21 = vpop.f32.mrf.mxu0 }
 0x16e   : > { %v1091_v22 = vmax.f32 %v953_v18, 0.0  ;;  %14834 = vmatmul.mubr.msk.bf16.gmra.mxu1 %vm1121_vm1, %v1272_v19  ;;  %15018 = vmatmul.mubr.msk.bf16.gmra.mxu0 %vm1121_vm1, %v2264_v20 }
 0x16f   : > { %v955_v23 = vpop.f32.mrf.mxu0  ;;  %14837 = vmatprep.mubr.msk.bf16.mxu1 %vm16401_vm0, %v20308_v40  ;;  %15021 = vmatprep.mubr.msk.bf16.mxu0 %vm16401_vm0, %v20308_v40  ;;  %v2229_v26 = vld [vmem:[#allocation2 + $0x8a] sm:$0xff] }
 0x170   : > { %1142 = vst.msk [vmem:[#allocation2 + $0xa0] sm:$0xff] %vm1121_vm1, %v1091_v22  ;;  %v956_v24 = vadd.f32 %v16650_v6, %v955_v23  ;;  %v1237_v29 = vld [vmem:[#allocation2 + $0x90] sm:$0xff]  ;;  %v2265_v34 = vpack.c.bf16 %v2229_v26, %v2228_v31 }
 0x171   : > { %v957_v25 = vpop.f32.mrf.mxu0 }
 0x172   : > { %v1092_v27 = vmax.f32 %v956_v24, 0.0 }
 0x173   : > { %v960_v28 = vpop.f32.mrf.mxu0  ;;  %v1238_v30 = vld [vmem:[#allocation2 + $0x98] sm:$0xff] }
 0x174   : > { %1143 = vst.msk [vmem:[#allocation2 + $0xa8] sm:$0xff] %vm1121_vm1, %v1092_v27  ;;  %v961_v32 = vadd.f32 %v16650_v6, %v960_v28  ;;  %v1273_v33 = vpack.c.bf16 %v1238_v30, %v1237_v29  ;;  %v2230_v46 = vld [vmem:[#allocation2 + $0x92] sm:$0xff] }
 0x175   : > { %v962_v35 = vpop.f32.mrf.mxu0 }
 0x176   : > { %v1093_v36 = vmax.f32 %v961_v32, 0.0  ;;  %14838 = vmatmul.mubr.msk.bf16.gmra.mxu1 %vm1121_vm1, %v1273_v33  ;;  %15022 = vmatmul.mubr.msk.bf16.gmra.mxu0 %vm1121_vm1, %v2265_v34 }
 0x177   : > { %v963_v37 = vpop.f32.mrf.mxu0  ;;  %14841 = vmatprep.mubr.msk.bf16.mxu1 %vm16401_vm0, %v20308_v40  ;;  %15025 = vmatprep.mubr.msk.bf16.mxu0 %vm16401_vm0, %v20308_v40  ;;  %v2231_v41 = vld [vmem:[#allocation2 + $0x9a] sm:$0xff] }
 0x178   : > { %1144 = vst.msk [vmem:[#allocation2 + $0xb0] sm:$0xff] %vm1121_vm1, %v1093_v36  ;;  %v964_v38 = vadd.f32 %v16650_v6, %v963_v37  ;;  %v1239_v44 = vld [vmem:[#allocation2 + $0xa0] sm:$0xff]  ;;  %v2266_v49 = vpack.c.bf16 %v2231_v41, %v2230_v46 }
 0x179   : > { %v965_v39 = vpop.f32.mrf.mxu0 }
 0x17a   : > { %v1094_v42 = vmax.f32 %v964_v38, 0.0 }
 0x17b   : > { %v968_v43 = vpop.f32.mrf.mxu0  ;;  %v1240_v45 = vld [vmem:[#allocation2 + $0xa8] sm:$0xff] }
 0x17c   : > { %1145 = vst.msk [vmem:[#allocation2 + $0xb8] sm:$0xff] %vm1121_vm1, %v1094_v42  ;;  %v969_v47 = vadd.f32 %v16650_v6, %v968_v43  ;;  %v1274_v48 = vpack.c.bf16 %v1240_v45, %v1239_v44  ;;  %v2232_v60 = vld [vmem:[#allocation2 + $0xa2] sm:$0xff] }
 0x17d   : > { %v970_v50 = vpop.f32.mrf.mxu0 }
 0x17e   : > { %v1095_v51 = vmax.f32 %v969_v47, 0.0  ;;  %14842 = vmatmul.mubr.msk.bf16.gmra.mxu1 %vm1121_vm1, %v1274_v48  ;;  %15026 = vmatmul.mubr.msk.bf16.gmra.mxu0 %vm1121_vm1, %v2266_v49 }
 0x17f   : > { %v971_v52 = vpop.f32.mrf.mxu0  ;;  %14845 = vmatprep.mubr.msk.bf16.mxu1 %vm16401_vm0, %v20308_v40  ;;  %15029 = vmatprep.mubr.msk.bf16.mxu0 %vm16401_vm0, %v20308_v40  ;;  %v2233_v55 = vld [vmem:[#allocation2 + $0xaa] sm:$0xff] }
 0x180   : > { %1146 = vst.msk [vmem:[#allocation2 + $0xc0] sm:$0xff] %vm1121_vm1, %v1095_v51  ;;  %v972_v53 = vadd.f32 %v16650_v6, %v971_v52  ;;  %v1241_v58 = vld [vmem:[#allocation2 + $0xb0] sm:$0xff]  ;;  %v2267_v63 = vpack.c.bf16 %v2233_v55, %v2232_v60 }
 0x181   : > { %v973_v54 = vpop.f32.mrf.mxu0 }
 0x182   : > { %v1096_v56 = vmax.f32 %v972_v53, 0.0 }
 0x183   : > { %v976_v57 = vpop.f32.mrf.mxu0  ;;  %v1242_v59 = vld [vmem:[#allocation2 + $0xb8] sm:$0xff] }
 0x184   : > { %1147 = vst.msk [vmem:[#allocation2 + $0xc8] sm:$0xff] %vm1121_vm1, %v1096_v56  ;;  %v977_v61 = vadd.f32 %v16650_v6, %v976_v57  ;;  %v1275_v62 = vpack.c.bf16 %v1242_v59, %v1241_v58  ;;  %v2234_v12 = vld [vmem:[#allocation2 + $0xb2] sm:$0xff] }
 0x185   : > { %v978_v0 = vpop.f32.mrf.mxu0 }
 0x186   : > { %v1097_v2 = vmax.f32 %v977_v61, 0.0  ;;  %14846 = vmatmul.mubr.msk.bf16.gmra.mxu1 %vm1121_vm1, %v1275_v62  ;;  %15030 = vmatmul.mubr.msk.bf16.gmra.mxu0 %vm1121_vm1, %v2267_v63 }
 0x187   : > { %v979_v3 = vpop.f32.mrf.mxu0  ;;  %14849 = vmatprep.mubr.msk.bf16.mxu1 %vm16401_vm0, %v20308_v40  ;;  %15033 = vmatprep.mubr.msk.bf16.mxu0 %vm16401_vm0, %v20308_v40  ;;  %v2235_v7 = vld [vmem:[#allocation2 + $0xba] sm:$0xff] }
 0x188   : > { %1148 = vst.msk [vmem:[#allocation2 + $0xd0] sm:$0xff] %vm1121_vm1, %v1097_v2  ;;  %v980_v4 = vadd.f32 %v16650_v6, %v979_v3  ;;  %v1243_v10 = vld [vmem:[#allocation2 + $0xc0] sm:$0xff]  ;;  %v2268_v15 = vpack.c.bf16 %v2235_v7, %v2234_v12 }
 0x189   : > { %v981_v5 = vpop.f32.mrf.mxu0 }
 0x18a   : > { %v1098_v8 = vmax.f32 %v980_v4, 0.0 }
 0x18b   : > { %v984_v9 = vpop.f32.mrf.mxu0  ;;  %v1244_v11 = vld [vmem:[#allocation2 + $0xc8] sm:$0xff] }
 0x18c   : > { %1149 = vst.msk [vmem:[#allocation2 + $0xd8] sm:$0xff] %vm1121_vm1, %v1098_v8  ;;  %v985_v13 = vadd.f32 %v16650_v6, %v984_v9  ;;  %v1276_v14 = vpack.c.bf16 %v1244_v11, %v1243_v10  ;;  %v2236_v26 = vld [vmem:[#allocation2 + $0xc2] sm:$0xff] }
 0x18d   : > { %v986_v16 = vpop.f32.mrf.mxu0 }
 0x18e   : > { %v1099_v17 = vmax.f32 %v985_v13, 0.0  ;;  %14850 = vmatmul.mubr.msk.bf16.gmra.mxu1 %vm1121_vm1, %v1276_v14  ;;  %15034 = vmatmul.mubr.msk.bf16.gmra.mxu0 %vm1121_vm1, %v2268_v15 }
 0x18f   : > { %v987_v18 = vpop.f32.mrf.mxu0  ;;  %14853 = vmatprep.mubr.msk.bf16.mxu1 %vm16401_vm0, %v20308_v40  ;;  %15037 = vmatprep.mubr.msk.bf16.mxu0 %vm16401_vm0, %v20308_v40  ;;  %v2237_v21 = vld [vmem:[#allocation2 + $0xca] sm:$0xff] }
 0x190   : > { %1150 = vst.msk [vmem:[#allocation2 + $0xe0] sm:$0xff] %vm1121_vm1, %v1099_v17  ;;  %v988_v19 = vadd.f32 %v16650_v6, %v987_v18  ;;  %v1245_v24 = vld [vmem:[#allocation2 + $0xd0] sm:$0xff]  ;;  %v2269_v29 = vpack.c.bf16 %v2237_v21, %v2236_v26 }
 0x191   : > { %v989_v20 = vpop.f32.mrf.mxu0 }
 0x192   : > { %v1100_v22 = vmax.f32 %v988_v19, 0.0 }
 0x193   : > { %v992_v23 = vpop.f32.mrf.mxu0  ;;  %v1246_v25 = vld [vmem:[#allocation2 + $0xd8] sm:$0xff] }
 0x194   : > { %1151 = vst.msk [vmem:[#allocation2 + $0xe8] sm:$0xff] %vm1121_vm1, %v1100_v22  ;;  %v993_v27 = vadd.f32 %v16650_v6, %v992_v23  ;;  %v1277_v28 = vpack.c.bf16 %v1246_v25, %v1245_v24  ;;  %v2238_v41 = vld [vmem:[#allocation2 + $0xd2] sm:$0xff] }
 0x195   : > { %v994_v30 = vpop.f32.mrf.mxu0 }
 0x196   : > { %v1101_v31 = vmax.f32 %v993_v27, 0.0  ;;  %14854 = vmatmul.mubr.msk.bf16.gmra.mxu1 %vm1121_vm1, %v1277_v28  ;;  %15038 = vmatmul.mubr.msk.bf16.gmra.mxu0 %vm1121_vm1, %v2269_v29 }
 0x197   : > { %v995_v32 = vpop.f32.mrf.mxu0  ;;  %14857 = vmatprep.mubr.msk.bf16.mxu1 %vm16401_vm0, %v20308_v40  ;;  %15041 = vmatprep.mubr.msk.bf16.mxu0 %vm16401_vm0, %v20308_v40  ;;  %v2239_v35 = vld [vmem:[#allocation2 + $0xda] sm:$0xff] }
 0x198   : > { %1152 = vst.msk [vmem:[#allocation2 + $0xf0] sm:$0xff] %vm1121_vm1, %v1101_v31  ;;  %v996_v33 = vadd.f32 %v16650_v6, %v995_v32  ;;  %v1247_v38 = vld [vmem:[#allocation2 + $0xe0] sm:$0xff]  ;;  %v2270_v44 = vpack.c.bf16 %v2239_v35, %v2238_v41 }
 0x199   : > { %v997_v34 = vpop.f32.mrf.mxu0 }
 0x19a   : > { %v1102_v36 = vmax.f32 %v996_v33, 0.0 }
 0x19b   : > { %v1000_v37 = vpop.f32.mrf.mxu0  ;;  %v1248_v39 = vld [vmem:[#allocation2 + $0xe8] sm:$0xff] }
 0x19c   : > { %1153 = vst.msk [vmem:[#allocation2 + $0xf8] sm:$0xff] %vm1121_vm1, %v1102_v36  ;;  %v1001_v42 = vadd.f32 %v16650_v6, %v1000_v37  ;;  %v1278_v43 = vpack.c.bf16 %v1248_v39, %v1247_v38  ;;  %v2240_v55 = vld [vmem:[#allocation2 + $0xe2] sm:$0xff] }
 0x19d   : > { %v1002_v45 = vpop.f32.mrf.mxu0 }
 0x19e   : > { %v1103_v46 = vmax.f32 %v1001_v42, 0.0  ;;  %14858 = vmatmul.mubr.msk.bf16.gmra.mxu1 %vm1121_vm1, %v1278_v43  ;;  %15042 = vmatmul.mubr.msk.bf16.gmra.mxu0 %vm1121_vm1, %v2270_v44 }
 0x19f   : > { %v1003_v47 = vpop.f32.mrf.mxu0  ;;  %14861 = vmatprep.mubr.msk.bf16.mxu1 %vm16401_vm0, %v20308_v40  ;;  %15045 = vmatprep.mubr.msk.bf16.mxu0 %vm16401_vm0, %v20308_v40  ;;  %v2241_v50 = vld [vmem:[#allocation2 + $0xea] sm:$0xff] }
 0x1a0   : > { %1154 = vst.msk [vmem:[#allocation2 + $0x100] sm:$0xff] %vm1121_vm1, %v1103_v46  ;;  %v1004_v48 = vadd.f32 %v16650_v6, %v1003_v47  ;;  %v1249_v53 = vld [vmem:[#allocation2 + $0xf0] sm:$0xff]  ;;  %v2271_v58 = vpack.c.bf16 %v2241_v50, %v2240_v55 }
 0x1a1   : > { %v1005_v49 = vpop.f32.mrf.mxu0 }
 0x1a2   : > { %v1104_v51 = vmax.f32 %v1004_v48, 0.0 }
 0x1a3   : > { %v1008_v52 = vpop.f32.mrf.mxu0  ;;  %v1250_v54 = vld [vmem:[#allocation2 + $0xf8] sm:$0xff] }
 0x1a4   : > { %1155 = vst.msk [vmem:[#allocation2 + $0x108] sm:$0xff] %vm1121_vm1, %v1104_v51  ;;  %v1009_v56 = vadd.f32 %v16650_v6, %v1008_v52  ;;  %v1279_v57 = vpack.c.bf16 %v1250_v54, %v1249_v53  ;;  %v2242_v7 = vld [vmem:[#allocation2 + $0xf2] sm:$0xff] }
 0x1a5   : > { %v1010_v59 = vpop.f32.mrf.mxu0 }
 0x1a6   : > { %v1105_v60 = vmax.f32 %v1009_v56, 0.0  ;;  %14862 = vmatmul.mubr.msk.bf16.gmra.mxu1 %vm1121_vm1, %v1279_v57  ;;  %15046 = vmatmul.mubr.msk.bf16.gmra.mxu0 %vm1121_vm1, %v2271_v58 }
 0x1a7   : > { %v1011_v61 = vpop.f32.mrf.mxu0  ;;  %14865 = vmatprep.mubr.msk.bf16.mxu1 %vm16401_vm0, %v20308_v40  ;;  %15049 = vmatprep.mubr.msk.bf16.mxu0 %vm16401_vm0, %v20308_v40  ;;  %v2243_v0 = vld [vmem:[#allocation2 + $0xfa] sm:$0xff] }
 0x1a8   : > { %1156 = vst.msk [vmem:[#allocation2 + $0x110] sm:$0xff] %vm1121_vm1, %v1105_v60  ;;  %v1012_v62 = vadd.f32 %v16650_v6, %v1011_v61  ;;  %v1251_v4 = vld [vmem:[#allocation2 + $0x100] sm:$0xff]  ;;  %v2272_v10 = vpack.c.bf16 %v2243_v0, %v2242_v7 }
 0x1a9   : > { %v1013_v63 = vpop.f32.mrf.mxu0 }
 0x1aa   : > { %v1106_v2 = vmax.f32 %v1012_v62, 0.0 }
 0x1ab   : > { %v1016_v3 = vpop.f32.mrf.mxu0  ;;  %v1252_v5 = vld [vmem:[#allocation2 + $0x108] sm:$0xff] }
 0x1ac   : > { %1157 = vst.msk [vmem:[#allocation2 + $0x118] sm:$0xff] %vm1121_vm1, %v1106_v2  ;;  %v1017_v8 = vadd.f32 %v16650_v6, %v1016_v3  ;;  %v1280_v9 = vpack.c.bf16 %v1252_v5, %v1251_v4  ;;  %v2244_v21 = vld [vmem:[#allocation2 + $0x102] sm:$0xff] }
 0x1ad   : > { %v1018_v11 = vpop.f32.mrf.mxu0 }
 0x1ae   : > { %v1107_v12 = vmax.f32 %v1017_v8, 0.0  ;;  %14866 = vmatmul.mubr.msk.bf16.gmra.mxu1 %vm1121_vm1, %v1280_v9  ;;  %15050 = vmatmul.mubr.msk.bf16.gmra.mxu0 %vm1121_vm1, %v2272_v10 }
 0x1af   : > { %v1019_v13 = vpop.f32.mrf.mxu0  ;;  %14869 = vmatprep.mubr.msk.bf16.mxu1 %vm16401_vm0, %v20308_v40  ;;  %15053 = vmatprep.mubr.msk.bf16.mxu0 %vm16401_vm0, %v20308_v40  ;;  %v2245_v16 = vld [vmem:[#allocation2 + $0x10a] sm:$0xff] }
 0x1b0   : > { %1158 = vst.msk [vmem:[#allocation2 + $0x120] sm:$0xff] %vm1121_vm1, %v1107_v12  ;;  %v1020_v14 = vadd.f32 %v16650_v6, %v1019_v13  ;;  %v1253_v19 = vld [vmem:[#allocation2 + $0x110] sm:$0xff]  ;;  %v2273_v24 = vpack.c.bf16 %v2245_v16, %v2244_v21 }
 0x1b1   : > { %v1021_v15 = vpop.f32.mrf.mxu0 }
 0x1b2   : > { %v1108_v17 = vmax.f32 %v1020_v14, 0.0 }
 0x1b3   : > { %v1024_v18 = vpop.f32.mrf.mxu0  ;;  %v1254_v20 = vld [vmem:[#allocation2 + $0x118] sm:$0xff] }
 0x1b4   : > { %1159 = vst.msk [vmem:[#allocation2 + $0x128] sm:$0xff] %vm1121_vm1, %v1108_v17  ;;  %v1025_v22 = vadd.f32 %v16650_v6, %v1024_v18  ;;  %v1281_v23 = vpack.c.bf16 %v1254_v20, %v1253_v19  ;;  %v2246_v35 = vld [vmem:[#allocation2 + $0x112] sm:$0xff] }
 0x1b5   : > { %v1026_v25 = vpop.f32.mrf.mxu0 }
 0x1b6   : > { %v1109_v26 = vmax.f32 %v1025_v22, 0.0  ;;  %14870 = vmatmul.mubr.msk.bf16.gmra.mxu1 %vm1121_vm1, %v1281_v23  ;;  %15054 = vmatmul.mubr.msk.bf16.gmra.mxu0 %vm1121_vm1, %v2273_v24 }
 0x1b7   : > { %v1027_v27 = vpop.f32.mrf.mxu0  ;;  %14873 = vmatprep.mubr.msk.bf16.mxu1 %vm16401_vm0, %v20308_v40  ;;  %15057 = vmatprep.mubr.msk.bf16.mxu0 %vm16401_vm0, %v20308_v40  ;;  %v2247_v30 = vld [vmem:[#allocation2 + $0x11a] sm:$0xff] }
 0x1b8   : > { %1160 = vst.msk [vmem:[#allocation2 + $0x130] sm:$0xff] %vm1121_vm1, %v1109_v26  ;;  %v1028_v28 = vadd.f32 %v16650_v6, %v1027_v27  ;;  %v1255_v33 = vld [vmem:[#allocation2 + $0x120] sm:$0xff]  ;;  %v2274_v38 = vpack.c.bf16 %v2247_v30, %v2246_v35 }
 0x1b9   : > { %v1029_v29 = vpop.f32.mrf.mxu0 }
 0x1ba   : > { %v1110_v31 = vmax.f32 %v1028_v28, 0.0 }
 0x1bb   : > { %v1032_v32 = vpop.f32.mrf.mxu0  ;;  %v1256_v34 = vld [vmem:[#allocation2 + $0x128] sm:$0xff] }
 0x1bc   : > { %1161 = vst.msk [vmem:[#allocation2 + $0x138] sm:$0xff] %vm1121_vm1, %v1110_v31  ;;  %v1033_v36 = vadd.f32 %v16650_v6, %v1032_v32  ;;  %v1282_v37 = vpack.c.bf16 %v1256_v34, %v1255_v33  ;;  %v2248_v50 = vld [vmem:[#allocation2 + $0x122] sm:$0xff]  ;;  %v16305_v32 = vld [vmem:[%s20320_s2] ss:$0 sm:$0xff]  ;;  %s16313_s2 = scalar_lea.vmem %s16312_s1, 32 }
 0x1bd   : > { %v1034_v39 = vpop.f32.mrf.mxu0 }
 0x1be   : > { %v1111_v41 = vmax.f32 %v1033_v36, 0.0  ;;  %14874 = vmatmul.mubr.msk.bf16.gmra.mxu1 %vm1121_vm1, %v1282_v37  ;;  %15058 = vmatmul.mubr.msk.bf16.gmra.mxu0 %vm1121_vm1, %v2274_v38  ;;  %v1716_v37 = vld [vmem:[#allocation2 + $0x9] sm:$0xff] }
 0x1bf   : > { %v1035_v42 = vpop.f32.mrf.mxu0  ;;  %14877 = vmatprep.mubr.msk.bf16.mxu1 %vm16401_vm0, %v20308_v40  ;;  %15061 = vmatprep.mubr.msk.bf16.mxu0 %vm16401_vm0, %v20308_v40  ;;  %v2249_v45 = vld [vmem:[#allocation2 + $0x12a] sm:$0xff] }
 0x1c0   : > { %1162 = vst.msk [vmem:[#allocation2 + $0x140] sm:$0xff] %vm1121_vm1, %v1111_v41  ;;  %v1036_v43 = vadd.f32 %v16650_v6, %v1035_v42  ;;  %v1257_v48 = vld [vmem:[#allocation2 + $0x130] sm:$0xff]  ;;  %v2275_v53 = vpack.c.bf16 %v2249_v45, %v2248_v50  ;;  %v1715_v42 = vld [vmem:[#allocation2 + $0x1] sm:$0xff] }
 0x1c1   : > { %v1037_v44 = vpop.f32.mrf.mxu0  ;;  %v1287_v50 = vld [vmem:[#allocation3] sm:$0xff] }
 0x1c2   : > { %v1112_v46 = vmax.f32 %v1036_v43, 0.0  ;;  %v15791_v43 = vld [vmem:[%s20319_s3 + $0x18] sm:$0xff]   ;;  %v1760_v44 = vpack.c.bf16 %v1716_v37, %v1715_v42  ;;  %v1293_v37 = vld [vmem:[#allocation3 + $0x30] sm:$0xff] }
 0x1c3   : > { %v1040_v47 = vpop.f32.mrf.mxu0  ;;  %v1258_v49 = vld [vmem:[#allocation2 + $0x138] sm:$0xff] }
 0x1c4   : > { %1163 = vst.msk [vmem:[#allocation2 + $0x148] sm:$0xff] %vm1121_vm1, %v1112_v46  ;;  %v1041_v51 = vadd.f32 %v16650_v6, %v1040_v47  ;;  %v1283_v52 = vpack.c.bf16 %v1258_v49, %v1257_v48  ;;  %v2250_v0 = vld [vmem:[#allocation2 + $0x132] sm:$0xff]  ;;  %v3207_v47 = vld [vmem:[#allocation2 + $0x1d] sm:$0xff] }
 0x1c5   : > { %v1042_v54 = vpop.f32.mrf.mxu0  ;;  %v1718_v46 = vld [vmem:[#allocation2 + $0x19] sm:$0xff]  ;;  %v1717_v48 = vld [vmem:[#allocation2 + $0x11] sm:$0xff] }
 0x1c6   : > { %v1113_v55 = vmax.f32 %v1041_v51, 0.0  ;;  %14878 = vmatmul.mubr.msk.bf16.gmra.mxu1 %vm1121_vm1, %v1283_v52  ;;  %15062 = vmatmul.mubr.msk.bf16.gmra.mxu0 %vm1121_vm1, %v2275_v53  ;;  %v3206_v49 = vld [vmem:[#allocation2 + $0x15] sm:$0xff]  ;;  %v1761_v51 = vpack.c.bf16 %v1718_v46, %v1717_v48  ;;  %v1294_v46 = vld [vmem:[#allocation3 + $0x38] sm:$0xff]  ;;  %v3215_v48 = vld [vmem:[#allocation2 + $0x5d] sm:$0xff] }
 0x1c7   : > { %v1043_v56 = vpop.f32.mrf.mxu0  ;;  %14881 = vmatprep.mubr.msk.bf16.mxu1 %vm16401_vm0, %v20308_v40  ;;  %15065 = vmatprep.mubr.msk.bf16.mxu0 %vm16401_vm0, %v20308_v40  ;;  %v2251_v59 = vld [vmem:[#allocation2 + $0x13a] sm:$0xff]  ;;  %v3251_v52 = vpack.c.bf16 %v3207_v47, %v3206_v49 }
 0x1c8   : > { %1164 = vst.msk [vmem:[#allocation2 + $0x150] sm:$0xff] %vm1121_vm1, %v1113_v55  ;;  %v1044_v57 = vadd.f32 %v16650_v6, %v1043_v56  ;;  %v1259_v62 = vld [vmem:[#allocation2 + $0x140] sm:$0xff]  ;;  %v2276_v4 = vpack.c.bf16 %v2251_v59, %v2250_v0  ;;  %v1288_v56 = vld [vmem:[#allocation3 + $0x8] sm:$0xff] }
 0x1c9   : > { %v1045_v58 = vpop.f32.mrf.mxu0  ;;  %v1289_v0 = vld [vmem:[#allocation3 + $0x10] sm:$0xff] }
 0x1ca   : > { %v1114_v60 = vmax.f32 %v1044_v57, 0.0  ;;  %v1720_v57 = vld [vmem:[#allocation2 + $0x29] sm:$0xff]  ;;  %v1726_v47 = vld [vmem:[#allocation2 + $0x59] sm:$0xff] }
 0x1cb   : > { %v1048_v61 = vpop.f32.mrf.mxu0  ;;  %v1260_v63 = vld [vmem:[#allocation2 + $0x148] sm:$0xff] }
 0x1cc   : > { %1165 = vst.msk [vmem:[#allocation2 + $0x158] sm:$0xff] %vm1121_vm1, %v1114_v60  ;;  %v1049_v2 = vadd.f32 %v16650_v6, %v1048_v61  ;;  %v1284_v3 = vpack.c.bf16 %v1260_v63, %v1259_v62  ;;  %v2252_v16 = vld [vmem:[#allocation2 + $0x142] sm:$0xff]  ;;  %v3209_v58 = vld [vmem:[#allocation2 + $0x2d] sm:$0xff] }
 0x1cd   : > { %v1050_v5 = vpop.f32.mrf.mxu0  ;;  %v1719_v61 = vld [vmem:[#allocation2 + $0x21] sm:$0xff] }
 0x1ce   : > { %v1115_v7 = vmax.f32 %v1049_v2, 0.0  ;;  %14882 = vmatmul.mubr.msk.bf16.gmra.mxu1 %vm1121_vm1, %v1284_v3  ;;  %15066 = vmatmul.mubr.msk.bf16.gmra.mxu0 %vm1121_vm1, %v2276_v4  ;;  %v3208_v62 = vld [vmem:[#allocation2 + $0x25] sm:$0xff]  ;;  %v1762_v2 = vpack.c.bf16 %v1720_v57, %v1719_v61 }
 0x1cf   : > { %v1051_v8 = vpop.f32.mrf.mxu0  ;;  %14885 = vmatprep.mubr.msk.bf16.mxu1 %vm16401_vm0, %v20308_v40  ;;  %15069 = vmatprep.mubr.msk.bf16.mxu0 %vm16401_vm0, %v20308_v40  ;;  %v2253_v11 = vld [vmem:[#allocation2 + $0x14a] sm:$0xff]  ;;  %v3252_v3 = vpack.c.bf16 %v3209_v58, %v3208_v62 }
 0x1d0   : > { %1166 = vst.msk [vmem:[#allocation2 + $0x160] sm:$0xff] %vm1121_vm1, %v1115_v7  ;;  %v1052_v9 = vadd.f32 %v16650_v6, %v1051_v8  ;;  %v1261_v14 = vld [vmem:[#allocation2 + $0x150] sm:$0xff]  ;;  %v2277_v19 = vpack.c.bf16 %v2253_v11, %v2252_v16  ;;  %v1722_v11 = vld [vmem:[#allocation2 + $0x39] sm:$0xff] }
 0x1d1   : > { %v1053_v10 = vpop.f32.mrf.mxu0  ;;  %v1721_v16 = vld [vmem:[#allocation2 + $0x31] sm:$0xff] }
 0x1d2   : > { %v1116_v12 = vmax.f32 %v1052_v9, 0.0  ;;  %v1290_v10 = vld [vmem:[#allocation3 + $0x18] sm:$0xff] }
 0x1d3   : > { %v1056_v13 = vpop.f32.mrf.mxu0  ;;  %v1262_v15 = vld [vmem:[#allocation2 + $0x158] sm:$0xff] }
 0x1d4   : > { %1167 = vst.msk [vmem:[#allocation2 + $0x168] sm:$0xff] %vm1121_vm1, %v1116_v12  ;;  %v1057_v17 = vadd.f32 %v16650_v6, %v1056_v13  ;;  %v1285_v18 = vpack.c.bf16 %v1262_v15, %v1261_v14  ;;  %v2254_v29 = vld [vmem:[#allocation2 + $0x152] sm:$0xff]  ;;  %v3211_v12 = vld [vmem:[#allocation2 + $0x3d] sm:$0xff] }
 0x1d5   : > { %v1058_v20 = vpop.f32.mrf.mxu0 }
 0x1d6   : > { %v1117_v21 = vmax.f32 %v1057_v17, 0.0  ;;  %14886 = vmatmul.mubr.msk.bf16.gmra.mxu1 %vm1121_vm1, %v1285_v18  ;;  %15070 = vmatmul.mubr.msk.bf16.gmra.mxu0 %vm1121_vm1, %v2277_v19  ;;  %v3210_v17 = vld [vmem:[#allocation2 + $0x35] sm:$0xff] }
 0x1d7   : > { %v1059_v22 = vpop.f32.mrf.mxu0  ;;  %14889 = vmatprep.mubr.msk.bf16.mxu1 %vm16401_vm0, %v20308_v40  ;;  %15073 = vmatprep.mubr.msk.bf16.mxu0 %vm16401_vm0, %v20308_v40  ;;  %v1263_v23 = vld [vmem:[#allocation2 + $0x160] sm:$0x3f]  ;;  %v1291_v20 = vld [vmem:[#allocation3 + $0x20] sm:$0xff] }
 0x1d8   : > { %1168 = vst.msk [vmem:[#allocation2 + $0x170] sm:$0xff] %vm1121_vm1, %v1117_v21  ;;  %v1060_v24 = vadd.f32 %v16650_v6, %v1059_v22  ;;  %v2255_v25 = vld [vmem:[#allocation2 + $0x15a] sm:$0xff]  ;;  %v1286_v28 = vpack.c.bf16 %v1263_v23, %v1263_v23  ;;  %v2256_v38 = vld [vmem:[#allocation2 + $0x162] sm:$0x3f]  ;;  %v1763_v21 = vpack.c.bf16 %v1722_v11, %v1721_v16  ;;  %v3253_v22 = vpack.c.bf16 %v3211_v12, %v3210_v17 }
 0x1d9   : > { %v1061_v26 = vpop.f32.mrf.mxu0  ;;  %v2278_v31 = vpack.c.bf16 %v2255_v25, %v2254_v29  ;;  %v2279_v45 = vpack.c.bf16 %v2256_v38, %v2256_v38  ;;  %v1724_v29 = vld [vmem:[#allocation2 + $0x49] sm:$0xff] }
 0x1da   : > { %v1118_v27 = vmax.f32 %v1060_v24, 0.0 }
 0x1db   : > { %v1064_v30 = vpop.f32.mrf.mxu0 }
 0x1dc   : > { %1169 = vst.msk [vmem:[#allocation2 + $0x178] sm:$0xff] %vm1121_vm1, %v1118_v27  ;;  %v1065_v33 = vadd.f32 %v16305_v32, %v1064_v30  ;;  %v3213_v30 = vld [vmem:[#allocation2 + $0x4d] sm:$0xff] }
 0x1dd   : > { %v1066_v34 = vpop.f32.mrf.mxu0 }
 0x1de   : > { %14890 = vmatmul.mubr.msk.bf16.gmra.mxu1 %vm1121_vm1, %v1286_v28  ;;  %15074 = vmatmul.mubr.msk.bf16.gmra.mxu0 %vm1121_vm1, %v2278_v31  ;;  %v1119_v6 = vmax.f32 %v1065_v33, 0.0  ;;  %v1292_v28 = vld [vmem:[#allocation3 + $0x28] sm:$0xff]  ;;  %v1723_v34 = vld [vmem:[#allocation2 + $0x41] sm:$0xff] }
 0x1df   : > { %14895 = vmatprep.mubr.msk.bf16.mxu1 %vm16401_vm0, %v20308_v40  ;;  %15077 = vmatprep.mubr.msk.bf16.mxu0 %vm16401_vm0, %v20308_v40  ;;  %v1067_v35 = vpop.f32.mrf.mxu0  ;;  %v1764_v38 = vpack.c.bf16 %v1724_v29, %v1723_v34  ;;  %v1729_v29 = vld [vmem:[#allocation2 + $0x71] sm:$0xff] }
 0x1e0   : > { %1170 = vst.msk [vmem:[#allocation2 + $0x180] sm:$0xff] %vm1121_vm1, %v1119_v6  ;;  %v1068_v36 = vadd.f32 %v16305_v32, %v1067_v35  ;;  %v3212_v6 = vld [vmem:[#allocation2 + $0x45] sm:$0xff]  ;;  %v1299_v34 = vld [vmem:[#allocation3 + $0x60] sm:$0xff] }
 0x1e1   : > { %v1069_v39 = vpop.f32.mrf.mxu0 }
 0x1e2   : > { %v1120_v41 = vmax.f32 %v1068_v36, 0.0  ;;  %v3254_v39 = vpack.c.bf16 %v3213_v30, %v3212_v6  ;;  %v3218_v30 = vld [vmem:[#allocation2 + $0x75] sm:$0xff] }
 0x1e4   : > { %1171 = vst.msk [vmem:[#allocation2 + $0x188] sm:$0xff] %vm1121_vm1, %v1120_v41 }
 0x1e6   : > { %14896 = vmatmul.mubr.msk.bf16.vlgmr.msra.gmra.mxu1 %vm1121_vm1, %v1760_v44  ;;  %15078 = vmatmul.mubr.msk.bf16.gmra.mxu0 %vm1121_vm1, %v2279_v45 }
 0x1e7   : > { %15082 = vmatpush3.bf16.msra.mxu1 %v15791_v43  ;;  %14899 = vmatprep.mubr.msk.bf16.mxu1 %vm16401_vm0, %v20308_v40 }
 0x1e8   : > { %15177 = vmatprep.mubr.msk.bf16.mxu0 %vm16401_vm0, %v20308_v40  ;;  %15269 = vmatprep.subr.bf16.mxu1 %v20308_v40 }
 0x1ee   : > { %v1443_v53 = vpop.f32.mrf.mxu0  ;;  %14900 = vmatmul.mubr.msk.bf16.gmra.mxu1 %vm1121_vm1, %v1761_v51  ;;  %15178 = vmatmul.mubr.msk.bf16.vlgmr.msra.gmra.mxu0 %vm1121_vm1, %v3251_v52  ;;  %v1725_v52 = vld [vmem:[#allocation2 + $0x51] sm:$0xff] }
 0x1ef   : > { %v1625_v54 = vadd.f32 %v1443_v53, %v1287_v50  ;;  %14903 = vmatprep.mubr.msk.bf16.mxu1 %vm16401_vm0, %v20308_v40  ;;  %15181 = vmatprep.mubr.msk.bf16.mxu0 %vm16401_vm0, %v20308_v40  ;;  %v3214_v53 = vld [vmem:[#allocation2 + $0x55] sm:$0xff]  ;;  %v1765_v57 = vpack.c.bf16 %v1726_v47, %v1725_v52  ;;  %v3220_v52 = vld [vmem:[#allocation2 + $0x85] sm:$0xff] }
 0x1f0   : > { %v14803_v55 = vpop.f32.mrf.mxu0  ;;  %v3255_v58 = vpack.c.bf16 %v3215_v48, %v3214_v53  ;;  %v15794_v48 = vld [vmem:[%s20319_s3 + $0x30] sm:$0xff]  }
 0x1f1   : > { %1670 = vst.msk [vmem:[#allocation3] sm:$0xff] %vm1172_vm2, %v1625_v54  ;;  %15364 = vmatpush3.bf16.msra.mxu0 %v15794_v48  ;;  %v1306_v48 = vld [vmem:[#allocation3 + $0x98] sm:$0xff] }
 0x1f2   : > { %v1446_v59 = vpop.f32.mrf.mxu0  ;;  %15551 = vmatprep.subr.bf16.mxu0 %v20308_v40 }
 0x1f3   : > { %v1626_v60 = vadd.f32 %v1446_v59, %v1288_v56  ;;  %v1295_v56 = vld [vmem:[#allocation3 + $0x40] sm:$0xff] }
 0x1f4   : > { %v14804_v63 = vpop.f32.mrf.mxu0 }
 0x1f5   : > { %1671 = vst.msk [vmem:[#allocation3 + $0x8] sm:$0xff] %vm1172_vm2, %v1626_v60 }
 0x1f6   : > { %v1451_v4 = vpop.f32.mrf.mxu1  ;;  %14904 = vmatmul.mubr.msk.bf16.gmra.mxu1 %vm1121_vm1, %v1762_v2  ;;  %v17009_v5 = vpop.f32.mrf.mxu0  ;;  %15182 = vmatmul.mubr.msk.bf16.gmra.mxu0 %vm1121_vm1, %v3252_v3  ;;  %v1728_v2 = vld [vmem:[#allocation2 + $0x69] sm:$0xff] }
 0x1f7   : > { %v1627_v7 = vadd.f32 %v1451_v4, %v1289_v0  ;;  %14907 = vmatprep.mubr.msk.bf16.mxu1 %vm16401_vm0, %v20308_v40  ;;  %15185 = vmatprep.mubr.msk.bf16.mxu0 %vm16401_vm0, %v20308_v40  ;;  %v1296_v0 = vld [vmem:[#allocation3 + $0x48] sm:$0xff]  ;;  %v3217_v3 = vld [vmem:[#allocation2 + $0x6d] sm:$0xff] }
 0x1f8   : > { %v14807_v8 = vpop.f32.mrf.mxu1  ;;  %v14991_v9 = vpop.f32.mrf.mxu0 }
 0x1f9   : > { %1672 = vst.msk [vmem:[#allocation3 + $0x10] sm:$0xff] %vm1172_vm2, %v1627_v7  ;;  %v1727_v9 = vld [vmem:[#allocation2 + $0x61] sm:$0xff] }
 0x1fa   : > { %v1454_v13 = vpop.f32.mrf.mxu1  ;;  %v17017_v14 = vpop.f32.mrf.mxu0 }
 0x1fb   : > { %v1628_v15 = vadd.f32 %v1454_v13, %v1290_v10  ;;  %v3216_v10 = vld [vmem:[#allocation2 + $0x65] sm:$0xff] }
 0x1fc   : > { %v14808_v18 = vpop.f32.mrf.mxu1  ;;  %v14992_v19 = vpop.f32.mrf.mxu0  ;;  %v1297_v13 = vld [vmem:[#allocation3 + $0x50] sm:$0xff]  ;;  %v3256_v16 = vpack.c.bf16 %v3217_v3, %v3216_v10  ;;  %v1733_v10 = vld [vmem:[#allocation2 + $0x91] sm:$0xff] }
 0x1fd   : > { %1673 = vst.msk [vmem:[#allocation3 + $0x18] sm:$0xff] %vm1172_vm2, %v1628_v15  ;;  %v1766_v15 = vpack.c.bf16 %v1728_v2, %v1727_v9  ;;  %v1734_v2 = vld [vmem:[#allocation2 + $0x99] sm:$0xff] }
 0x1fe   : > { %v1459_v23 = vpop.f32.mrf.mxu1  ;;  %14908 = vmatmul.mubr.msk.bf16.gmra.mxu1 %vm1121_vm1, %v1763_v21  ;;  %v17021_v24 = vpop.f32.mrf.mxu0  ;;  %15186 = vmatmul.mubr.msk.bf16.gmra.mxu0 %vm1121_vm1, %v3253_v22  ;;  %v1298_v22 = vld [vmem:[#allocation3 + $0x58] sm:$0xff]  ;;  %v3223_v3 = vld [vmem:[#allocation2 + $0x9d] sm:$0xff] }
 0x1ff   : > { %v1629_v25 = vadd.f32 %v1459_v23, %v1291_v20  ;;  %14911 = vmatprep.mubr.msk.bf16.mxu1 %vm16401_vm0, %v20308_v40  ;;  %15189 = vmatprep.mubr.msk.bf16.mxu0 %vm16401_vm0, %v20308_v40  ;;  %v1730_v23 = vld [vmem:[#allocation2 + $0x79] sm:$0xff] }
 0x200   : > { %v14811_v26 = vpop.f32.mrf.mxu1  ;;  %v14995_v27 = vpop.f32.mrf.mxu0  ;;  %v1767_v6 = vpack.c.bf16 %v1730_v23, %v1729_v29 }
 0x201   : > { %1674 = vst.msk [vmem:[#allocation3 + $0x20] sm:$0xff] %vm1172_vm2, %v1629_v25  ;;  %v3219_v25 = vld [vmem:[#allocation2 + $0x7d] sm:$0xff] }
 0x202   : > { %v1462_v31 = vpop.f32.mrf.mxu1  ;;  %v17029_v32 = vpop.f32.mrf.mxu0 }
 0x203   : > { %v1630_v33 = vadd.f32 %v1462_v31, %v1292_v28 }
 0x204   : > { %v14812_v35 = vpop.f32.mrf.mxu1  ;;  %v14996_v36 = vpop.f32.mrf.mxu0 }
 0x205   : > { %1675 = vst.msk [vmem:[#allocation3 + $0x28] sm:$0xff] %vm1172_vm2, %v1630_v33  ;;  %v3257_v35 = vpack.c.bf16 %v3219_v25, %v3218_v30  ;;  %v1304_v25 = vld [vmem:[#allocation3 + $0x88] sm:$0xff] }
 0x206   : > { %v1467_v41 = vpop.f32.mrf.mxu1  ;;  %14912 = vmatmul.mubr.msk.bf16.gmra.mxu1 %vm1121_vm1, %v1764_v38  ;;  %v17033_v42 = vpop.f32.mrf.mxu0  ;;  %15190 = vmatmul.mubr.msk.bf16.gmra.mxu0 %vm1121_vm1, %v3254_v39 }
 0x207   : > { %v1631_v43 = vadd.f32 %v1467_v41, %v1293_v37  ;;  %14915 = vmatprep.mubr.msk.bf16.mxu1 %vm16401_vm0, %v20308_v40  ;;  %15193 = vmatprep.mubr.msk.bf16.mxu0 %vm16401_vm0, %v20308_v40 }
 0x208   : > { %v14815_v44 = vpop.f32.mrf.mxu1  ;;  %v14999_v45 = vpop.f32.mrf.mxu0  ;;  %v1787_v1 = vld [vmem:[#allocation3 + $0x20] sm:$0xff] }
 0x209   : > { %1676 = vst.msk [vmem:[#allocation3 + $0x30] sm:$0xff] %vm1172_vm2, %v1631_v43  ;;  %v1300_v43 = vld [vmem:[#allocation3 + $0x68] sm:$0xff]  ;;  %v1732_v44 = vld [vmem:[#allocation2 + $0x89] sm:$0xff] }
 0x20a   : > { %v1470_v49 = vpop.f32.mrf.mxu1  ;;  %v17041_v50 = vpop.f32.mrf.mxu0  ;;  %v3221_v45 = vld [vmem:[#allocation2 + $0x8d] sm:$0xff] }
 0x20b   : > { %v1632_v51 = vadd.f32 %v1470_v49, %v1294_v46 }
 0x20c   : > { %v14816_v54 = vpop.f32.mrf.mxu1  ;;  %v15000_v55 = vpop.f32.mrf.mxu0 }
 0x20d   : > { %1677 = vst.msk [vmem:[#allocation3 + $0x38] sm:$0xff] %vm1172_vm2, %v1632_v51  ;;  %v1731_v51 = vld [vmem:[#allocation2 + $0x81] sm:$0xff] }
 0x20e   : > { %v1475_v59 = vpop.f32.mrf.mxu1  ;;  %14916 = vmatmul.mubr.msk.bf16.gmra.mxu1 %vm1121_vm1, %v1765_v57  ;;  %v17045_v60 = vpop.f32.mrf.mxu0  ;;  %15194 = vmatmul.mubr.msk.bf16.gmra.mxu0 %vm1121_vm1, %v3255_v58  ;;  %v1301_v55 = vld [vmem:[#allocation3 + $0x70] sm:$0xff]  ;;  %v3258_v57 = vpack.c.bf16 %v3221_v45, %v3220_v52 }
 0x20f   : > { %v1633_v61 = vadd.f32 %v1475_v59, %v1295_v56  ;;  %14919 = vmatprep.mubr.msk.bf16.mxu1 %vm16401_vm0, %v20308_v40  ;;  %15197 = vmatprep.mubr.msk.bf16.mxu0 %vm16401_vm0, %v20308_v40  ;;  %v1768_v56 = vpack.c.bf16 %v1732_v44, %v1731_v51  ;;  %v3227_v51 = vld [vmem:[#allocation2 + $0xbd] sm:$0xff] }
 0x210   : > { %v14819_v62 = vpop.f32.mrf.mxu1  ;;  %v15003_v63 = vpop.f32.mrf.mxu0 }
 0x211   : > { %1678 = vst.msk [vmem:[#allocation3 + $0x40] sm:$0xff] %vm1172_vm2, %v1633_v61 }
 0x212   : > { %v1478_v4 = vpop.f32.mrf.mxu1  ;;  %v17053_v7 = vpop.f32.mrf.mxu0 }
 0x213   : > { %v1634_v8 = vadd.f32 %v1478_v4, %v1296_v0  ;;  %v1302_v0 = vld [vmem:[#allocation3 + $0x78] sm:$0xff] }
 0x214   : > { %v14820_v11 = vpop.f32.mrf.mxu1  ;;  %v15004_v12 = vpop.f32.mrf.mxu0 }
 0x215   : > { %1679 = vst.msk [vmem:[#allocation3 + $0x48] sm:$0xff] %vm1172_vm2, %v1634_v8  ;;  %v3222_v11 = vld [vmem:[#allocation2 + $0x95] sm:$0xff] }
 0x216   : > { %v1483_v17 = vpop.f32.mrf.mxu1  ;;  %14920 = vmatmul.mubr.msk.bf16.gmra.mxu1 %vm1121_vm1, %v1766_v15  ;;  %v17057_v18 = vpop.f32.mrf.mxu0  ;;  %15198 = vmatmul.mubr.msk.bf16.gmra.mxu0 %vm1121_vm1, %v3256_v16  ;;  %v1303_v15 = vld [vmem:[#allocation3 + $0x80] sm:$0xff]  ;;  %v1769_v16 = vpack.c.bf16 %v1734_v2, %v1733_v10  ;;  %v1308_v10 = vld [vmem:[#allocation3 + $0xa8] sm:$0xff] }
 0x217   : > { %v1635_v19 = vadd.f32 %v1483_v17, %v1297_v13  ;;  %14923 = vmatprep.mubr.msk.bf16.mxu1 %vm16401_vm0, %v20308_v40  ;;  %15201 = vmatprep.mubr.msk.bf16.mxu0 %vm16401_vm0, %v20308_v40  ;;  %v3259_v17 = vpack.c.bf16 %v3223_v3, %v3222_v11  ;;  %v1740_v11 = vld [vmem:[#allocation2 + $0xc9] sm:$0xff] }
 0x218   : > { %v14823_v20 = vpop.f32.mrf.mxu1  ;;  %v15007_v21 = vpop.f32.mrf.mxu0 }
 0x219   : > { %1680 = vst.msk [vmem:[#allocation3 + $0x50] sm:$0xff] %vm1172_vm2, %v1635_v19 }
 0x21a   : > { %v1486_v26 = vpop.f32.mrf.mxu1  ;;  %v17067_v27 = vpop.f32.mrf.mxu0 }
 0x21b   : > { %v1636_v28 = vadd.f32 %v1486_v26, %v1298_v22  ;;  %v1736_v26 = vld [vmem:[#allocation2 + $0xa9] sm:$0xff] }
 0x21c   : > { %v14824_v31 = vpop.f32.mrf.mxu1  ;;  %v15008_v33 = vpop.f32.mrf.mxu0 }
 0x21d   : > { %1681 = vst.msk [vmem:[#allocation3 + $0x58] sm:$0xff] %vm1172_vm2, %v1636_v28  ;;  %v3225_v28 = vld [vmem:[#allocation2 + $0xad] sm:$0xff]  ;;  %v1735_v33 = vld [vmem:[#allocation2 + $0xa1] sm:$0xff] }
 0x21e   : > { %v1491_v36 = vpop.f32.mrf.mxu1  ;;  %14924 = vmatmul.mubr.msk.bf16.gmra.mxu1 %vm1121_vm1, %v1767_v6  ;;  %v17071_v37 = vpop.f32.mrf.mxu0  ;;  %15202 = vmatmul.mubr.msk.bf16.gmra.mxu0 %vm1121_vm1, %v3257_v35 }
 0x21f   : > { %v1637_v38 = vadd.f32 %v1491_v36, %v1299_v34  ;;  %14927 = vmatprep.mubr.msk.bf16.mxu1 %vm16401_vm0, %v20308_v40  ;;  %15205 = vmatprep.mubr.msk.bf16.mxu0 %vm16401_vm0, %v20308_v40  ;;  %v3224_v34 = vld [vmem:[#allocation2 + $0xa5] sm:$0xff] }
 0x220   : > { %v14827_v39 = vpop.f32.mrf.mxu1  ;;  %v15011_v41 = vpop.f32.mrf.mxu0  ;;  %v1305_v36 = vld [vmem:[#allocation3 + $0x90] sm:$0xff] }
 0x221   : > { %1682 = vst.msk [vmem:[#allocation3 + $0x60] sm:$0xff] %vm1172_vm2, %v1637_v38  ;;  %v1770_v38 = vpack.c.bf16 %v1736_v26, %v1735_v33  ;;  %v3260_v39 = vpack.c.bf16 %v3225_v28, %v3224_v34 }
 0x222   : > { %v1494_v46 = vpop.f32.mrf.mxu1  ;;  %v17079_v47 = vpop.f32.mrf.mxu0 }
 0x223   : > { %v1638_v49 = vadd.f32 %v1494_v46, %v1300_v43 }
 0x224   : > { %v14828_v53 = vpop.f32.mrf.mxu1  ;;  %v15012_v54 = vpop.f32.mrf.mxu0 }
 0x225   : > { %1683 = vst.msk [vmem:[#allocation3 + $0x68] sm:$0xff] %vm1172_vm2, %v1638_v49  ;;  %v1738_v49 = vld [vmem:[#allocation2 + $0xb9] sm:$0xff] }
 0x226   : > { %v1499_v58 = vpop.f32.mrf.mxu1  ;;  %14928 = vmatmul.mubr.msk.bf16.gmra.mxu1 %vm1121_vm1, %v1768_v56  ;;  %v17087_v59 = vpop.f32.mrf.mxu0  ;;  %15206 = vmatmul.mubr.msk.bf16.gmra.mxu0 %vm1121_vm1, %v3258_v57  ;;  %v3226_v56 = vld [vmem:[#allocation2 + $0xb5] sm:$0xff] }
 0x227   : > { %v1639_v61 = vadd.f32 %v1499_v58, %v1301_v55  ;;  %14931 = vmatprep.mubr.msk.bf16.mxu1 %vm16401_vm0, %v20308_v40  ;;  %15209 = vmatprep.mubr.msk.bf16.mxu0 %vm16401_vm0, %v20308_v40  ;;  %v1737_v55 = vld [vmem:[#allocation2 + $0xb1] sm:$0xff] }
 0x228   : > { %v14831_v62 = vpop.f32.mrf.mxu1  ;;  %v15015_v63 = vpop.f32.mrf.mxu0 }
 0x229   : > { %1684 = vst.msk [vmem:[#allocation3 + $0x70] sm:$0xff] %vm1172_vm2, %v1639_v61  ;;  %v1307_v61 = vld [vmem:[#allocation3 + $0xa0] sm:$0xff]  ;;  %v1771_v62 = vpack.c.bf16 %v1738_v49, %v1737_v55  ;;  %v3261_v63 = vpack.c.bf16 %v3227_v51, %v3226_v56 }
 0x22a   : > { %v1502_v4 = vpop.f32.mrf.mxu1  ;;  %v17095_v8 = vpop.f32.mrf.mxu0  ;;  %v1311_v49 = vld [vmem:[#allocation3 + $0xc0] sm:$0xff] }
 0x22b   : > { %v1640_v9 = vadd.f32 %v1502_v4, %v1302_v0 }
 0x22c   : > { %v14832_v12 = vpop.f32.mrf.mxu1  ;;  %v15016_v13 = vpop.f32.mrf.mxu0 }
 0x22d   : > { %1685 = vst.msk [vmem:[#allocation3 + $0x78] sm:$0xff] %vm1172_vm2, %v1640_v9  ;;  %v3229_v12 = vld [vmem:[#allocation2 + $0xcd] sm:$0xff] }
 0x22e   : > { %v1507_v19 = vpop.f32.mrf.mxu1  ;;  %14932 = vmatmul.mubr.msk.bf16.gmra.mxu1 %vm1121_vm1, %v1769_v16  ;;  %v17099_v20 = vpop.f32.mrf.mxu0  ;;  %15210 = vmatmul.mubr.msk.bf16.gmra.mxu0 %vm1121_vm1, %v3259_v17  ;;  %v1739_v17 = vld [vmem:[#allocation2 + $0xc1] sm:$0xff] }
 0x22f   : > { %v1641_v21 = vadd.f32 %v1507_v19, %v1303_v15  ;;  %14935 = vmatprep.mubr.msk.bf16.mxu1 %vm16401_vm0, %v20308_v40  ;;  %15213 = vmatprep.mubr.msk.bf16.mxu0 %vm16401_vm0, %v20308_v40  ;;  %v3228_v19 = vld [vmem:[#allocation2 + $0xc5] sm:$0xff] }
 0x230   : > { %v14835_v22 = vpop.f32.mrf.mxu1  ;;  %v15019_v23 = vpop.f32.mrf.mxu0  ;;  %v3262_v26 = vpack.c.bf16 %v3229_v12, %v3228_v19 }
 0x231   : > { %1686 = vst.msk [vmem:[#allocation3 + $0x80] sm:$0xff] %vm1172_vm2, %v1641_v21  ;;  %v1309_v23 = vld [vmem:[#allocation3 + $0xb0] sm:$0xff] }
 0x232   : > { %v1510_v29 = vpop.f32.mrf.mxu1  ;;  %v17107_v30 = vpop.f32.mrf.mxu0 }
 0x233   : > { %v1642_v31 = vadd.f32 %v1510_v29, %v1304_v25  ;;  %v1772_v25 = vpack.c.bf16 %v1740_v11, %v1739_v17 }
 0x234   : > { %v14836_v6 = vpop.f32.mrf.mxu1  ;;  %v15020_v35 = vpop.f32.mrf.mxu0 }
 0x235   : > { %1687 = vst.msk [vmem:[#allocation3 + $0x88] sm:$0xff] %vm1172_vm2, %v1642_v31  ;;  %v1310_v6 = vld [vmem:[#allocation3 + $0xb8] sm:$0xff]  ;;  %v1742_v35 = vld [vmem:[#allocation2 + $0xd9] sm:$0xff] }
 0x236   : > { %v1515_v41 = vpop.f32.mrf.mxu1  ;;  %14936 = vmatmul.mubr.msk.bf16.gmra.mxu1 %vm1121_vm1, %v1770_v38  ;;  %v17111_v43 = vpop.f32.mrf.mxu0  ;;  %15214 = vmatmul.mubr.msk.bf16.gmra.mxu0 %vm1121_vm1, %v3260_v39 }
 0x237   : > { %v1643_v44 = vadd.f32 %v1515_v41, %v1305_v36  ;;  %14939 = vmatprep.mubr.msk.bf16.mxu1 %vm16401_vm0, %v20308_v40  ;;  %15217 = vmatprep.mubr.msk.bf16.mxu0 %vm16401_vm0, %v20308_v40  ;;  %v3231_v36 = vld [vmem:[#allocation2 + $0xdd] sm:$0xff] }
 0x238   : > { %v14839_v45 = vpop.f32.mrf.mxu1  ;;  %v15023_v46 = vpop.f32.mrf.mxu0 }
 0x239   : > { %1688 = vst.msk [vmem:[#allocation3 + $0x90] sm:$0xff] %vm1172_vm2, %v1643_v44  ;;  %v1741_v44 = vld [vmem:[#allocation2 + $0xd1] sm:$0xff] }
 0x23a   : > { %v1518_v52 = vpop.f32.mrf.mxu1  ;;  %v17119_v53 = vpop.f32.mrf.mxu0  ;;  %v3230_v45 = vld [vmem:[#allocation2 + $0xd5] sm:$0xff]  ;;  %v1773_v51 = vpack.c.bf16 %v1742_v35, %v1741_v44 }
 0x23b   : > { %v1644_v54 = vadd.f32 %v1518_v52, %v1306_v48  ;;  %v3263_v52 = vpack.c.bf16 %v3231_v36, %v3230_v45  ;;  %v1745_v35 = vld [vmem:[#allocation2 + $0xf1] sm:$0xff] }
 0x23c   : > { %v14840_v57 = vpop.f32.mrf.mxu1  ;;  %v15024_v58 = vpop.f32.mrf.mxu0  ;;  %v3234_v36 = vld [vmem:[#allocation2 + $0xf5] sm:$0xff] }
 0x23d   : > { %1689 = vst.msk [vmem:[#allocation3 + $0x98] sm:$0xff] %vm1172_vm2, %v1644_v54  ;;  %v1315_v44 = vld [vmem:[#allocation3 + $0xe0] sm:$0xff] }
 0x23e   : > { %v1523_v0 = vpop.f32.mrf.mxu1  ;;  %14940 = vmatmul.mubr.msk.bf16.gmra.mxu1 %vm1121_vm1, %v1771_v62  ;;  %v17123_v2 = vpop.f32.mrf.mxu0  ;;  %15218 = vmatmul.mubr.msk.bf16.gmra.mxu0 %vm1121_vm1, %v3261_v63  ;;  %v1744_v62 = vld [vmem:[#allocation2 + $0xe9] sm:$0xff] }
 0x23f   : > { %v1645_v3 = vadd.f32 %v1523_v0, %v1307_v61  ;;  %14943 = vmatprep.mubr.msk.bf16.mxu1 %vm16401_vm0, %v20308_v40  ;;  %15221 = vmatprep.mubr.msk.bf16.mxu0 %vm16401_vm0, %v20308_v40  ;;  %v1312_v61 = vld [vmem:[#allocation3 + $0xc8] sm:$0xff]  ;;  %v3233_v63 = vld [vmem:[#allocation2 + $0xed] sm:$0xff] }
 0x240   : > { %v14843_v4 = vpop.f32.mrf.mxu1  ;;  %v15027_v9 = vpop.f32.mrf.mxu0 }
 0x241   : > { %1690 = vst.msk [vmem:[#allocation3 + $0xa0] sm:$0xff] %vm1172_vm2, %v1645_v3  ;;  %v1743_v9 = vld [vmem:[#allocation2 + $0xe1] sm:$0xff] }
 0x242   : > { %v1526_v13 = vpop.f32.mrf.mxu1  ;;  %v17131_v15 = vpop.f32.mrf.mxu0 }
 0x243   : > { %v1646_v16 = vadd.f32 %v1526_v13, %v1308_v10  ;;  %v3232_v10 = vld [vmem:[#allocation2 + $0xe5] sm:$0xff] }
 0x244   : > { %v14844_v21 = vpop.f32.mrf.mxu1  ;;  %v15028_v22 = vpop.f32.mrf.mxu0  ;;  %v1313_v13 = vld [vmem:[#allocation3 + $0xd0] sm:$0xff]  ;;  %v3264_v17 = vpack.c.bf16 %v3233_v63, %v3232_v10 }
 0x245   : > { %1691 = vst.msk [vmem:[#allocation3 + $0xa8] sm:$0xff] %vm1172_vm2, %v1646_v16  ;;  %v1774_v16 = vpack.c.bf16 %v1744_v62, %v1743_v9 }
 0x246   : > { %v1531_v28 = vpop.f32.mrf.mxu1  ;;  %14944 = vmatmul.mubr.msk.bf16.gmra.mxu1 %vm1121_vm1, %v1772_v25  ;;  %v17135_v29 = vpop.f32.mrf.mxu0  ;;  %15222 = vmatmul.mubr.msk.bf16.gmra.mxu0 %vm1121_vm1, %v3262_v26  ;;  %v1314_v26 = vld [vmem:[#allocation3 + $0xd8] sm:$0xff] }
 0x247   : > { %v1647_v31 = vadd.f32 %v1531_v28, %v1309_v23  ;;  %14947 = vmatprep.mubr.msk.bf16.mxu1 %vm16401_vm0, %v20308_v40  ;;  %15225 = vmatprep.mubr.msk.bf16.mxu0 %vm16401_vm0, %v20308_v40  ;;  %v1746_v28 = vld [vmem:[#allocation2 + $0xf9] sm:$0xff] }
 0x248   : > { %v14847_v33 = vpop.f32.mrf.mxu1  ;;  %v15031_v34 = vpop.f32.mrf.mxu0  ;;  %v1775_v45 = vpack.c.bf16 %v1746_v28, %v1745_v35  ;;  %v3239_v28 = vld [vmem:[#allocation2 + $0x11d] sm:$0xff]  ;;  %v1749_v35 = vld [vmem:[#allocation2 + $0x111] sm:$0xff] }
 0x249   : > { %1692 = vst.msk [vmem:[#allocation3 + $0xb0] sm:$0xff] %vm1172_vm2, %v1647_v31  ;;  %v3235_v31 = vld [vmem:[#allocation2 + $0xfd] sm:$0xff] }
 0x24a   : > { %v1534_v38 = vpop.f32.mrf.mxu1  ;;  %v17143_v39 = vpop.f32.mrf.mxu0 }
 0x24b   : > { %v1648_v41 = vadd.f32 %v1534_v38, %v1310_v6 }
 0x24c   : > { %v14848_v46 = vpop.f32.mrf.mxu1  ;;  %v15032_v48 = vpop.f32.mrf.mxu0 }
 0x24d   : > { %1693 = vst.msk [vmem:[#allocation3 + $0xb8] sm:$0xff] %vm1172_vm2, %v1648_v41  ;;  %v3265_v46 = vpack.c.bf16 %v3235_v31, %v3234_v36  ;;  %v3238_v36 = vld [vmem:[#allocation2 + $0x115] sm:$0xff] }
 0x24e   : > { %v1539_v54 = vpop.f32.mrf.mxu1  ;;  %14948 = vmatmul.mubr.msk.bf16.gmra.mxu1 %vm1121_vm1, %v1773_v51  ;;  %v17147_v55 = vpop.f32.mrf.mxu0  ;;  %15226 = vmatmul.mubr.msk.bf16.gmra.mxu0 %vm1121_vm1, %v3263_v52 }
 0x24f   : > { %v1649_v56 = vadd.f32 %v1539_v54, %v1311_v49  ;;  %14951 = vmatprep.mubr.msk.bf16.mxu1 %vm16401_vm0, %v20308_v40  ;;  %15229 = vmatprep.mubr.msk.bf16.mxu0 %vm16401_vm0, %v20308_v40 }
 0x250   : > { %v14851_v57 = vpop.f32.mrf.mxu1  ;;  %v15035_v58 = vpop.f32.mrf.mxu0 }
 0x251   : > { %1694 = vst.msk [vmem:[#allocation3 + $0xc0] sm:$0xff] %vm1172_vm2, %v1649_v56  ;;  %v1316_v56 = vld [vmem:[#allocation3 + $0xe8] sm:$0xff]  ;;  %v1748_v57 = vld [vmem:[#allocation2 + $0x109] sm:$0xff] }
 0x252   : > { %v1542_v0 = vpop.f32.mrf.mxu1  ;;  %v17155_v3 = vpop.f32.mrf.mxu0  ;;  %v3237_v58 = vld [vmem:[#allocation2 + $0x10d] sm:$0xff] }
 0x253   : > { %v1650_v4 = vadd.f32 %v1542_v0, %v1312_v61  ;;  %v1747_v0 = vld [vmem:[#allocation2 + $0x101] sm:$0xff] }
 0x254   : > { %v14852_v11 = vpop.f32.mrf.mxu1  ;;  %v15036_v12 = vpop.f32.mrf.mxu0 }
 0x255   : > { %1695 = vst.msk [vmem:[#allocation3 + $0xc8] sm:$0xff] %vm1172_vm2, %v1650_v4  ;;  %v3236_v4 = vld [vmem:[#allocation2 + $0x105] sm:$0xff]  ;;  %v1776_v12 = vpack.c.bf16 %v1748_v57, %v1747_v0  ;;  %v1320_v57 = vld [vmem:[#allocation3 + $0x108] sm:$0xff] }
 0x256   : > { %v1547_v19 = vpop.f32.mrf.mxu1  ;;  %14952 = vmatmul.mubr.msk.bf16.gmra.mxu1 %vm1121_vm1, %v1774_v16  ;;  %v17159_v21 = vpop.f32.mrf.mxu0  ;;  %15230 = vmatmul.mubr.msk.bf16.gmra.mxu0 %vm1121_vm1, %v3264_v17  ;;  %v1317_v11 = vld [vmem:[#allocation3 + $0xf0] sm:$0xff] }
 0x257   : > { %v1651_v22 = vadd.f32 %v1547_v19, %v1313_v13  ;;  %14955 = vmatprep.mubr.msk.bf16.mxu1 %vm16401_vm0, %v20308_v40  ;;  %15233 = vmatprep.mubr.msk.bf16.mxu0 %vm16401_vm0, %v20308_v40  ;;  %v3266_v13 = vpack.c.bf16 %v3237_v58, %v3236_v4  ;;  %v1752_v58 = vld [vmem:[#allocation2 + $0x129] sm:$0xff] }
 0x258   : > { %v14855_v23 = vpop.f32.mrf.mxu1  ;;  %v15039_v25 = vpop.f32.mrf.mxu0 }
 0x259   : > { %1696 = vst.msk [vmem:[#allocation3 + $0xd0] sm:$0xff] %vm1172_vm2, %v1651_v22  ;;  %v1318_v25 = vld [vmem:[#allocation3 + $0xf8] sm:$0xff] }
 0x25a   : > { %v1550_v33 = vpop.f32.mrf.mxu1  ;;  %v17167_v34 = vpop.f32.mrf.mxu0 }
 0x25b   : > { %v1652_v6 = vadd.f32 %v1550_v33, %v1314_v26  ;;  %v1750_v26 = vld [vmem:[#allocation2 + $0x119] sm:$0xff] }
 0x25c   : > { %v14856_v38 = vpop.f32.mrf.mxu1  ;;  %v15040_v41 = vpop.f32.mrf.mxu0 }
 0x25d   : > { %1697 = vst.msk [vmem:[#allocation3 + $0xd8] sm:$0xff] %vm1172_vm2, %v1652_v6 }
 0x25e   : > { %v1555_v48 = vpop.f32.mrf.mxu1  ;;  %14956 = vmatmul.mubr.msk.bf16.gmra.mxu1 %vm1121_vm1, %v1775_v45  ;;  %v17171_v49 = vpop.f32.mrf.mxu0  ;;  %15234 = vmatmul.mubr.msk.bf16.gmra.mxu0 %vm1121_vm1, %v3265_v46  ;;  %v1777_v45 = vpack.c.bf16 %v1750_v26, %v1749_v35  ;;  %v3267_v46 = vpack.c.bf16 %v3239_v28, %v3238_v36  ;;  %v3243_v35 = vld [vmem:[#allocation2 + $0x13d] sm:$0xff] }
 0x25f   : > { %v1653_v51 = vadd.f32 %v1555_v48, %v1315_v44  ;;  %14959 = vmatprep.mubr.msk.bf16.mxu1 %vm16401_vm0, %v20308_v40  ;;  %15237 = vmatprep.mubr.msk.bf16.mxu0 %vm16401_vm0, %v20308_v40  ;;  %v1319_v44 = vld [vmem:[#allocation3 + $0x100] sm:$0xff] }
 0x260   : > { %v14859_v52 = vpop.f32.mrf.mxu1  ;;  %v15043_v54 = vpop.f32.mrf.mxu0 }
 0x261   : > { %1698 = vst.msk [vmem:[#allocation3 + $0xe0] sm:$0xff] %vm1172_vm2, %v1653_v51 }
 0x262   : > { %v1558_v61 = vpop.f32.mrf.mxu1  ;;  %v17179_v62 = vpop.f32.mrf.mxu0 }
 0x263   : > { %v1654_v63 = vadd.f32 %v1558_v61, %v1316_v56  ;;  %v3241_v61 = vld [vmem:[#allocation2 + $0x12d] sm:$0xff] }
 0x264   : > { %v14860_v9 = vpop.f32.mrf.mxu1  ;;  %v15044_v10 = vpop.f32.mrf.mxu0 }
 0x265   : > { %1699 = vst.msk [vmem:[#allocation3 + $0xe8] sm:$0xff] %vm1172_vm2, %v1654_v63  ;;  %v1751_v9 = vld [vmem:[#allocation2 + $0x121] sm:$0xff] }
 0x266   : > { %v1563_v16 = vpop.f32.mrf.mxu1  ;;  %14960 = vmatmul.mubr.msk.bf16.gmra.mxu1 %vm1121_vm1, %v1776_v12  ;;  %v17183_v17 = vpop.f32.mrf.mxu0  ;;  %15238 = vmatmul.mubr.msk.bf16.gmra.mxu0 %vm1121_vm1, %v3266_v13  ;;  %v3240_v10 = vld [vmem:[#allocation2 + $0x125] sm:$0xff] }
 0x267   : > { %v1655_v19 = vadd.f32 %v1563_v16, %v1317_v11  ;;  %14963 = vmatprep.mubr.msk.bf16.mxu1 %vm16401_vm0, %v20308_v40  ;;  %15241 = vmatprep.mubr.msk.bf16.mxu0 %vm16401_vm0, %v20308_v40  ;;  %v1321_v13 = vld [vmem:[#allocation3 + $0x110] sm:$0xff]  ;;  %v1778_v16 = vpack.c.bf16 %v1752_v58, %v1751_v9  ;;  %v1324_v9 = vld [vmem:[#allocation3 + $0x128] sm:$0xff] }
 0x268   : > { %v14863_v22 = vpop.f32.mrf.mxu1  ;;  %v15047_v23 = vpop.f32.mrf.mxu0 }
 0x269   : > { %1700 = vst.msk [vmem:[#allocation3 + $0xf0] sm:$0xff] %vm1172_vm2, %v1655_v19  ;;  %v3268_v19 = vpack.c.bf16 %v3241_v61, %v3240_v10  ;;  %v1756_v10 = vld [vmem:[#allocation2 + $0x149] sm:$0xff] }
 0x26a   : > { %v1566_v31 = vpop.f32.mrf.mxu1  ;;  %v17191_v33 = vpop.f32.mrf.mxu0 }
 0x26b   : > { %v1656_v6 = vadd.f32 %v1566_v31, %v1318_v25  ;;  %v1322_v31 = vld [vmem:[#allocation3 + $0x118] sm:$0xff] }
 0x26c   : > { %v14864_v38 = vpop.f32.mrf.mxu1  ;;  %v15048_v41 = vpop.f32.mrf.mxu0 }
 0x26d   : > { %1701 = vst.msk [vmem:[#allocation3 + $0xf8] sm:$0xff] %vm1172_vm2, %v1656_v6  ;;  %v1754_v6 = vld [vmem:[#allocation2 + $0x139] sm:$0xff] }
 0x26e   : > { %v1571_v48 = vpop.f32.mrf.mxu1  ;;  %14964 = vmatmul.mubr.msk.bf16.gmra.mxu1 %vm1121_vm1, %v1777_v45  ;;  %v17195_v51 = vpop.f32.mrf.mxu0  ;;  %15242 = vmatmul.mubr.msk.bf16.gmra.mxu0 %vm1121_vm1, %v3267_v46  ;;  %v3242_v45 = vld [vmem:[#allocation2 + $0x135] sm:$0xff] }
 0x26f   : > { %v1657_v52 = vadd.f32 %v1571_v48, %v1319_v44  ;;  %14967 = vmatprep.mubr.msk.bf16.mxu1 %vm16401_vm0, %v20308_v40  ;;  %15245 = vmatprep.mubr.msk.bf16.mxu0 %vm16401_vm0, %v20308_v40  ;;  %v1753_v44 = vld [vmem:[#allocation2 + $0x131] sm:$0xff] }
 0x270   : > { %v14867_v54 = vpop.f32.mrf.mxu1  ;;  %v15051_v56 = vpop.f32.mrf.mxu0 }
 0x271   : > { %1702 = vst.msk [vmem:[#allocation3 + $0x100] sm:$0xff] %vm1172_vm2, %v1657_v52  ;;  %v1323_v52 = vld [vmem:[#allocation3 + $0x120] sm:$0xff]  ;;  %v1779_v54 = vpack.c.bf16 %v1754_v6, %v1753_v44  ;;  %v3269_v56 = vpack.c.bf16 %v3243_v35, %v3242_v45 }
 0x272   : > { %v1574_v63 = vpop.f32.mrf.mxu1  ;;  %v17203_v0 = vpop.f32.mrf.mxu0 }
 0x273   : > { %v1658_v4 = vadd.f32 %v1574_v63, %v1320_v57 }
 0x274   : > { %v14868_v11 = vpop.f32.mrf.mxu1  ;;  %v15052_v12 = vpop.f32.mrf.mxu0 }
 0x275   : > { %1703 = vst.msk [vmem:[#allocation3 + $0x108] sm:$0xff] %vm1172_vm2, %v1658_v4  ;;  %v3245_v11 = vld [vmem:[#allocation2 + $0x14d] sm:$0xff] }
 0x276   : > { %v1579_v22 = vpop.f32.mrf.mxu1  ;;  %14968 = vmatmul.mubr.msk.bf16.gmra.mxu1 %vm1121_vm1, %v1778_v16  ;;  %v17207_v23 = vpop.f32.mrf.mxu0  ;;  %15246 = vmatmul.mubr.msk.bf16.gmra.mxu0 %vm1121_vm1, %v3268_v19  ;;  %v1755_v19 = vld [vmem:[#allocation2 + $0x141] sm:$0xff] }
 0x277   : > { %v1659_v25 = vadd.f32 %v1579_v22, %v1321_v13  ;;  %14971 = vmatprep.mubr.msk.bf16.mxu1 %vm16401_vm0, %v20308_v40  ;;  %15249 = vmatprep.mubr.msk.bf16.mxu0 %vm16401_vm0, %v20308_v40  ;;  %v3244_v22 = vld [vmem:[#allocation2 + $0x145] sm:$0xff] }
 0x278   : > { %v14871_v26 = vpop.f32.mrf.mxu1  ;;  %v15055_v28 = vpop.f32.mrf.mxu0  ;;  %v3270_v6 = vpack.c.bf16 %v3245_v11, %v3244_v22 }
 0x279   : > { %1704 = vst.msk [vmem:[#allocation3 + $0x110] sm:$0xff] %vm1172_vm2, %v1659_v25  ;;  %v1325_v28 = vld [vmem:[#allocation3 + $0x130] sm:$0xff] }
 0x27a   : > { %v1582_v36 = vpop.f32.mrf.mxu1  ;;  %v17215_v38 = vpop.f32.mrf.mxu0 }
 0x27b   : > { %v1660_v41 = vadd.f32 %v1582_v36, %v1322_v31  ;;  %v1780_v31 = vpack.c.bf16 %v1756_v10, %v1755_v19  ;;  %v1327_v10 = vld [vmem:[#allocation3 + $0x140] sm:$0xff] }
 0x27c   : > { %v14872_v46 = vpop.f32.mrf.mxu1  ;;  %v15056_v48 = vpop.f32.mrf.mxu0 }
 0x27d   : > { %1705 = vst.msk [vmem:[#allocation3 + $0x118] sm:$0xff] %vm1172_vm2, %v1660_v41  ;;  %v1326_v46 = vld [vmem:[#allocation3 + $0x138] sm:$0xff]  ;;  %v1758_v48 = vld [vmem:[#allocation2 + $0x159] sm:$0xff] }
 0x27e   : > { %v1587_v57 = vpop.f32.mrf.mxu1  ;;  %14972 = vmatmul.mubr.msk.bf16.gmra.mxu1 %vm1121_vm1, %v1779_v54  ;;  %v17219_v58 = vpop.f32.mrf.mxu0  ;;  %15250 = vmatmul.mubr.msk.bf16.gmra.mxu0 %vm1121_vm1, %v3269_v56 }
 0x27f   : > { %v1661_v61 = vadd.f32 %v1587_v57, %v1323_v52  ;;  %14975 = vmatprep.mubr.msk.bf16.mxu1 %vm16401_vm0, %v20308_v40  ;;  %15253 = vmatprep.mubr.msk.bf16.mxu0 %vm16401_vm0, %v20308_v40  ;;  %v3247_v52 = vld [vmem:[#allocation2 + $0x15d] sm:$0xff] }
 0x280   : > { %v14875_v63 = vpop.f32.mrf.mxu1  ;;  %v15059_v4 = vpop.f32.mrf.mxu0 }
 0x281   : > { %1706 = vst.msk [vmem:[#allocation3 + $0x120] sm:$0xff] %vm1172_vm2, %v1661_v61  ;;  %v1757_v61 = vld [vmem:[#allocation2 + $0x151] sm:$0xff] }
 0x282   : > { %v1590_v12 = vpop.f32.mrf.mxu1  ;;  %v17227_v13 = vpop.f32.mrf.mxu0  ;;  %v3246_v63 = vld [vmem:[#allocation2 + $0x155] sm:$0xff]  ;;  %v1781_v11 = vpack.c.bf16 %v1758_v48, %v1757_v61 }
 0x283   : > { %v1662_v16 = vadd.f32 %v1590_v12, %v1324_v9  ;;  %v3271_v12 = vpack.c.bf16 %v3247_v52, %v3246_v63  ;;  %v1329_v52 = vld [vmem:[#allocation3 + $0x150] sm:$0xff] }
 0x284   : > { %v14876_v25 = vpop.f32.mrf.mxu1  ;;  %v15060_v26 = vpop.f32.mrf.mxu0 }
 0x285   : > { %1707 = vst.msk [vmem:[#allocation3 + $0x128] sm:$0xff] %vm1172_vm2, %v1662_v16 }
 0x286   : > { %v1595_v35 = vpop.f32.mrf.mxu1  ;;  %14976 = vmatmul.mubr.msk.bf16.gmra.mxu1 %vm1121_vm1, %v1780_v31  ;;  %v17231_v36 = vpop.f32.mrf.mxu0  ;;  %15254 = vmatmul.mubr.msk.bf16.gmra.mxu0 %vm1121_vm1, %v3270_v6  ;;  %v1759_v31 = vld [vmem:[#allocation2 + $0x161] sm:$0x3f]  ;;  %v3249_v6 = vld [vmem:[#allocation2 + $0x16d] sm:$0xff] }
 0x287   : > { %v1663_v41 = vadd.f32 %v1595_v35, %v1325_v28  ;;  %14979 = vmatprep.mubr.msk.bf16.mxu1 %vm16401_vm0, %v20308_v40  ;;  %15257 = vmatprep.mubr.msk.bf16.mxu0 %vm16401_vm0, %v20308_v40  ;;  %v1328_v28 = vld [vmem:[#allocation3 + $0x148] sm:$0xff] }
 0x288   : > { %v14879_v44 = vpop.f32.mrf.mxu1  ;;  %v15063_v45 = vpop.f32.mrf.mxu0 }
 0x289   : > { %1708 = vst.msk [vmem:[#allocation3 + $0x130] sm:$0xff] %vm1172_vm2, %v1663_v41  ;;  %v3248_v45 = vld [vmem:[#allocation2 + $0x165] sm:$0xff] }
 0x28a   : > { %v1598_v54 = vpop.f32.mrf.mxu1  ;;  %v17239_v56 = vpop.f32.mrf.mxu0 }
 0x28b   : > { %v1664_v57 = vadd.f32 %v1598_v54, %v1326_v46  ;;  %v1782_v54 = vpack.c.bf16 %v1759_v31, %v1759_v31  ;;  %v2709_v31 = vld [vmem:[#allocation2 + $0x14] sm:$0xff] }
 0x28c   : > { %v14880_v4 = vpop.f32.mrf.mxu1  ;;  %v15064_v9 = vpop.f32.mrf.mxu0 }
 0x28d   : > { %1709 = vst.msk [vmem:[#allocation3 + $0x138] sm:$0xff] %vm1172_vm2, %v1664_v57  ;;  %v3272_v57 = vpack.c.bf16 %v3249_v6, %v3248_v45  ;;  %v3250_v9 = vld [vmem:[#allocation2 + $0x175] sm:$0x3f]  ;;  %v15793_v6 = vld [vmem:[%s20319_s3 + $0x28] sm:$0xff]  }
 0x28e   : > { %v1603_v16 = vpop.f32.mrf.mxu1  ;;  %14980 = vmatmul.mubr.msk.bf16.gmra.mxu1 %vm1121_vm1, %v1781_v11  ;;  %v17243_v19 = vpop.f32.mrf.mxu0  ;;  %15258 = vmatmul.mubr.msk.bf16.gmra.mxu0 %vm1121_vm1, %v3271_v12  ;;  %v1330_v12 = vld [vmem:[#allocation3 + $0x158] sm:$0xff]  ;;  %v1331_v45 = vld [vmem:[#allocation3 + $0x160] sm:$0x3f] }
 0x28f   : > { %v1665_v22 = vadd.f32 %v1603_v16, %v1327_v10  ;;  %14983 = vmatprep.mubr.msk.bf16.mxu1 %vm16401_vm0, %v20308_v40  ;;  %15261 = vmatprep.mubr.msk.bf16.mxu0 %vm16401_vm0, %v20308_v40  ;;  %v2710_v16 = vld [vmem:[#allocation2 + $0x1c] sm:$0xff] }
 0x290   : > { %v14883_v25 = vpop.f32.mrf.mxu1  ;;  %v15067_v26 = vpop.f32.mrf.mxu0 }
 0x291   : > { %1710 = vst.msk [vmem:[#allocation3 + $0x140] sm:$0xff] %vm1172_vm2, %v1665_v22  ;;  %v3273_v26 = vpack.c.bf16 %v3250_v9, %v3250_v9  ;;  %v4201_v9 = vld [vmem:[#allocation2 + $0x30] sm:$0xff] }
 0x292   : > { %v1606_v35 = vpop.f32.mrf.mxu1  ;;  %v17251_v41 = vpop.f32.mrf.mxu0 }
 0x293   : > { %v1666_v44 = vadd.f32 %v1606_v35, %v1328_v28 }
 0x294   : > { %v14884_v46 = vpop.f32.mrf.mxu1  ;;  %v15068_v48 = vpop.f32.mrf.mxu0 }
 0x295   : > { %1711 = vst.msk [vmem:[#allocation3 + $0x148] sm:$0xff] %vm1172_vm2, %v1666_v44  ;;  %v2754_v46 = vpack.c.bf16 %v2710_v16, %v2709_v31  ;;  %v4200_v16 = vld [vmem:[#allocation2 + $0x28] sm:$0xff] }
 0x296   : > { %v1611_v61 = vpop.f32.mrf.mxu1  ;;  %14984 = vmatmul.mubr.msk.bf16.gmra.mxu1 %vm1121_vm1, %v1782_v54  ;;  %v17255_v63 = vpop.f32.mrf.mxu0  ;;  %15262 = vmatmul.mubr.msk.bf16.gmra.mxu0 %vm1121_vm1, %v3272_v57  ;;  %v4245_v31 = vpack.c.bf16 %v4201_v9, %v4200_v16  ;;  %v4202_v16 = vld [vmem:[#allocation2 + $0x38] sm:$0xff] }
 0x297   : > { %v1667_v4 = vadd.f32 %v1611_v61, %v1329_v52  ;;  %15083 = vmatprep.mubr.msk.bf16.mxu1 %vm16401_vm0, %v20308_v40  ;;  %15265 = vmatprep.mubr.msk.bf16.mxu0 %vm16401_vm0, %v20308_v40 }
 0x298   : > { %v14887_v10 = vpop.f32.mrf.mxu1  ;;  %v15071_v11 = vpop.f32.mrf.mxu0 }
 0x299   : > { %1712 = vst.msk [vmem:[#allocation3 + $0x150] sm:$0xff] %vm1172_vm2, %v1667_v4  ;;  %v2712_v4 = vld [vmem:[#allocation2 + $0x2c] sm:$0xff] }
 0x29a   : > { %v1614_v22 = vpop.f32.mrf.mxu1  ;;  %v17263_v25 = vpop.f32.mrf.mxu0 }
 0x29b   : > { %v1668_v28 = vadd.f32 %v1614_v22, %v1330_v12  ;;  %v2711_v12 = vld [vmem:[#allocation2 + $0x24] sm:$0xff] }
 0x29c   : > { %v14888_v35 = vpop.f32.mrf.mxu1  ;;  %v15072_v44 = vpop.f32.mrf.mxu0 }
 0x29d   : > { %1713 = vst.msk [vmem:[#allocation3 + $0x158] sm:$0xff] %vm1172_vm2, %v1668_v28  ;;  %v2755_v28 = vpack.c.bf16 %v2712_v4, %v2711_v12  ;;  %v2713_v12 = vld [vmem:[#allocation2 + $0x34] sm:$0xff] }
 0x29e   : > { %v1619_v48 = vpop.f32.mrf.mxu1  ;;  %v17269_v52 = vpop.f32.mrf.mxu0  ;;  %15084 = vmatmul.mubr.msk.bf16.vlgmr.msra.gmra.mxu1 %vm1121_vm1, %v2754_v46  ;;  %15266 = vmatmul.mubr.msk.bf16.gmra.mxu0 %vm1121_vm1, %v3273_v26 }
 0x29f   : > { %v1669_v54 = vadd.f32 %v1619_v48, %v1331_v45  ;;  %15270 = vmatpush3.bf16.msra.mxu1 %v15793_v6  ;;  %15087 = vmatprep.mubr.msk.bf16.mxu1 %vm16401_vm0, %v20308_v40  ;;  %v1783_v6 = vld [vmem:[#allocation3] sm:$0xff] }
 0x2a0   : > { %v14891_v57 = vpop.f32.mrf.mxu1  ;;  %v15075_v61 = vpop.f32.mrf.mxu0  ;;  %15365 = vmatprep.mubr.msk.bf16.mxu0 %vm16401_vm0, %v20308_v40  ;;  %15457 = vmatprep.subr.bf16.mxu1 %v20308_v40 }
 0x2a1   : > { %1714 = vst.msk [vmem:[#allocation3 + $0x160] sm:$0x3f] %vm1217_vm3, %v1669_v54  ;;  %v2714_v54 = vld [vmem:[#allocation2 + $0x3c] sm:$0xff] }
 0x2a2   : > { %v1622_v10 = vpop.f32.mrf.mxu1  ;;  %v17279_v11 = vpop.f32.mrf.mxu0  ;;  %v4203_v57 = vld [vmem:[#allocation2 + $0x40] sm:$0xff]  ;;  %v1784_v61 = vld [vmem:[#allocation3 + $0x8] sm:$0xff] }
 0x2a4   : > { %v14892_v22 = vpop.f32.mrf.mxu1  ;;  %v15076_v26 = vpop.f32.mrf.mxu0 }
 0x2a6   : > { %v1940_v35 = vpop.f32.mrf.mxu1  ;;  %v17281_v44 = vpop.f32.mrf.mxu0  ;;  %15088 = vmatmul.mubr.msk.bf16.gmra.mxu1 %vm1121_vm1, %v2755_v28  ;;  %15366 = vmatmul.mubr.msk.bf16.vlgmr.msra.gmra.mxu0 %vm1121_vm1, %v4245_v31  ;;  %v2756_v28 = vpack.c.bf16 %v2714_v54, %v2713_v12  ;;  %v4246_v31 = vpack.c.bf16 %v4203_v57, %v4202_v16 }
 0x2a7   : > { %v2122_v45 = vadd.f32 %v1940_v35, %v1783_v6  ;;  %15091 = vmatprep.mubr.msk.bf16.mxu1 %vm16401_vm0, %v20308_v40  ;;  %15369 = vmatprep.mubr.msk.bf16.mxu0 %vm16401_vm0, %v20308_v40  ;;  %v1785_v6 = vld [vmem:[#allocation3 + $0x10] sm:$0xff] }
 0x2a8   : > { %v14897_v46 = vpop.f32.mrf.mxu1  ;;  %v15079_v48 = vpop.f32.mrf.mxu0 }
 0x2a9   : > { %2167 = vst.msk [vmem:[#allocation3] sm:$0xff] %vm1172_vm2, %v2122_v45 }
 0x2aa   : > { %v1943_v4 = vpop.f32.mrf.mxu1  ;;  %v2616_v9 = vpop.f32.mrf.mxu0 }
 0x2ab   : > { %v2123_v10 = vadd.f32 %v1943_v4, %v1784_v61  ;;  %v2716_v61 = vld [vmem:[#allocation2 + $0x4c] sm:$0xff] }
 0x2ac   : > { %v14898_v22 = vpop.f32.mrf.mxu1  ;;  %v15080_v26 = vpop.f32.mrf.mxu0  ;;  %v4205_v4 = vld [vmem:[#allocation2 + $0x50] sm:$0xff] }
 0x2ad   : > { %2168 = vst.msk [vmem:[#allocation3 + $0x8] sm:$0xff] %vm1172_vm2, %v2123_v10  ;;  %v1786_v10 = vld [vmem:[#allocation3 + $0x18] sm:$0xff] }
 0x2ae   : > { %v1948_v35 = vpop.f32.mrf.mxu1  ;;  %15092 = vmatmul.mubr.msk.bf16.gmra.mxu1 %vm1121_vm1, %v2756_v28  ;;  %v17292_v46 = vpop.f32.mrf.mxu0  ;;  %15370 = vmatmul.mubr.msk.bf16.gmra.mxu0 %vm1121_vm1, %v4246_v31  ;;  %v2715_v26 = vld [vmem:[#allocation2 + $0x44] sm:$0xff] }
 0x2af   : > { %v2124_v45 = vadd.f32 %v1948_v35, %v1785_v6  ;;  %15095 = vmatprep.mubr.msk.bf16.mxu1 %vm16401_vm0, %v20308_v40  ;;  %15373 = vmatprep.mubr.msk.bf16.mxu0 %vm16401_vm0, %v20308_v40  ;;  %v4204_v28 = vld [vmem:[#allocation2 + $0x48] sm:$0xff]  ;;  %v2757_v35 = vpack.c.bf16 %v2716_v61, %v2715_v26  ;;  %v1788_v26 = vld [vmem:[#allocation3 + $0x28] sm:$0xff] }
 0x2b0   : > { %v14901_v48 = vpop.f32.mrf.mxu1  ;;  %v15179_v54 = vpop.f32.mrf.mxu0  ;;  %v2280_v57 = vld [vmem:[#allocation3] sm:$0xff] }
 0x2b1   : > { %2169 = vst.msk [vmem:[#allocation3 + $0x10] sm:$0xff] %vm1172_vm2, %v2124_v45  ;;  %v2619_v9 = vadd.f32 %v17009_v5, %v2280_v57  ;;  %v4247_v48 = vpack.c.bf16 %v4205_v4, %v4204_v28 }
 0x2b2   : > { %v1951_v12 = vpop.f32.mrf.mxu1  ;;  %v17301_v16 = vpop.f32.mrf.mxu0 }
 0x2b3   : > { %v2125_v22 = vadd.f32 %v1951_v12, %v1786_v10  ;;  %2664 = vst.msk [vmem:[#allocation3] sm:$0xff] %vm1172_vm2, %v2619_v9  ;;  %v2718_v9 = vld [vmem:[#allocation2 + $0x5c] sm:$0xff] }
 0x2b4   : > { %v14902_v31 = vpop.f32.mrf.mxu1  ;;  %v15180_v6 = vpop.f32.mrf.mxu0  ;;  %v2281_v54 = vld [vmem:[#allocation3 + $0x8] sm:$0xff]  ;;  %v4207_v12 = vld [vmem:[#allocation2 + $0x60] sm:$0xff] }
 0x2b5   : > { %2170 = vst.msk [vmem:[#allocation3 + $0x18] sm:$0xff] %vm1172_vm2, %v2125_v22  ;;  %v2620_v45 = vadd.f32 %v17017_v14, %v2281_v54  ;;  %v2717_v6 = vld [vmem:[#allocation2 + $0x54] sm:$0xff] }
 0x2b6   : > { %v1956_v5 = vpop.f32.mrf.mxu1  ;;  %15096 = vmatmul.mubr.msk.bf16.gmra.mxu1 %vm1121_vm1, %v2757_v35  ;;  %v17307_v57 = vpop.f32.mrf.mxu0  ;;  %15374 = vmatmul.mubr.msk.bf16.gmra.mxu0 %vm1121_vm1, %v4247_v48  ;;  %v4206_v35 = vld [vmem:[#allocation2 + $0x58] sm:$0xff] }
 0x2b7   : > { %v2126_v10 = vadd.f32 %v1956_v5, %v1787_v1  ;;  %15099 = vmatprep.mubr.msk.bf16.mxu1 %vm16401_vm0, %v20308_v40  ;;  %15377 = vmatprep.mubr.msk.bf16.mxu0 %vm16401_vm0, %v20308_v40  ;;  %2665 = vst.msk [vmem:[#allocation3 + $0x8] sm:$0xff] %vm1172_vm2, %v2620_v45  ;;  %v2758_v45 = vpack.c.bf16 %v2718_v9, %v2717_v6  ;;  %v1790_v6 = vld [vmem:[#allocation3 + $0x38] sm:$0xff] }
 0x2b8   : > { %v14905_v61 = vpop.f32.mrf.mxu1  ;;  %v15183_v4 = vpop.f32.mrf.mxu0  ;;  %v2282_v14 = vld [vmem:[#allocation3 + $0x10] sm:$0xff]  ;;  %v4248_v5 = vpack.c.bf16 %v4207_v12, %v4206_v35 }
 0x2b9   : > { %2171 = vst.msk [vmem:[#allocation3 + $0x20] sm:$0xff] %vm1172_vm2, %v2126_v10  ;;  %v2621_v22 = vadd.f32 %v17021_v24, %v2282_v14  ;;  %v1789_v4 = vld [vmem:[#allocation3 + $0x30] sm:$0xff] }
 0x2ba   : > { %v1959_v28 = vpop.f32.mrf.mxu1  ;;  %v17317_v1 = vpop.f32.mrf.mxu0 }
 0x2bb   : > { %v2127_v31 = vadd.f32 %v1959_v28, %v1788_v26  ;;  %2666 = vst.msk [vmem:[#allocation3 + $0x10] sm:$0xff] %vm1172_vm2, %v2621_v22  ;;  %v2720_v22 = vld [vmem:[#allocation2 + $0x6c] sm:$0xff] }
 0x2bc   : > { %v14906_v48 = vpop.f32.mrf.mxu1  ;;  %v15184_v54 = vpop.f32.mrf.mxu0  ;;  %v2283_v61 = vld [vmem:[#allocation3 + $0x18] sm:$0xff]  ;;  %v4209_v28 = vld [vmem:[#allocation2 + $0x70] sm:$0xff] }
 0x2bd   : > { %2172 = vst.msk [vmem:[#allocation3 + $0x28] sm:$0xff] %vm1172_vm2, %v2127_v31  ;;  %v2622_v10 = vadd.f32 %v17029_v32, %v2283_v61 }
 0x2be   : > { %v1964_v24 = vpop.f32.mrf.mxu1  ;;  %15100 = vmatmul.mubr.msk.bf16.gmra.mxu1 %vm1121_vm1, %v2758_v45  ;;  %v17323_v14 = vpop.f32.mrf.mxu0  ;;  %15378 = vmatmul.mubr.msk.bf16.gmra.mxu0 %vm1121_vm1, %v4248_v5  ;;  %v2719_v45 = vld [vmem:[#allocation2 + $0x64] sm:$0xff] }
 0x2bf   : > { %v2128_v26 = vadd.f32 %v1964_v24, %v1789_v4  ;;  %15103 = vmatprep.mubr.msk.bf16.mxu1 %vm16401_vm0, %v20308_v40  ;;  %15381 = vmatprep.mubr.msk.bf16.mxu0 %vm16401_vm0, %v20308_v40  ;;  %2667 = vst.msk [vmem:[#allocation3 + $0x18] sm:$0xff] %vm1172_vm2, %v2622_v10  ;;  %v4208_v5 = vld [vmem:[#allocation2 + $0x68] sm:$0xff]  ;;  %v2759_v4 = vpack.c.bf16 %v2720_v22, %v2719_v45  ;;  %v1792_v45 = vld [vmem:[#allocation3 + $0x48] sm:$0xff] }
 0x2c0   : > { %v14909_v9 = vpop.f32.mrf.mxu1  ;;  %v15187_v12 = vpop.f32.mrf.mxu0  ;;  %v2284_v32 = vld [vmem:[#allocation3 + $0x20] sm:$0xff]  ;;  %v4249_v24 = vpack.c.bf16 %v4209_v28, %v4208_v5 }
 0x2c1   : > { %2173 = vst.msk [vmem:[#allocation3 + $0x30] sm:$0xff] %vm1172_vm2, %v2128_v26  ;;  %v2623_v31 = vadd.f32 %v17033_v42, %v2284_v32  ;;  %v1791_v12 = vld [vmem:[#allocation3 + $0x40] sm:$0xff] }
 0x2c2   : > { %v1967_v35 = vpop.f32.mrf.mxu1  ;;  %v17333_v48 = vpop.f32.mrf.mxu0 }
 0x2c3   : > { %v2129_v54 = vadd.f32 %v1967_v35, %v1790_v6  ;;  %2668 = vst.msk [vmem:[#allocation3 + $0x20] sm:$0xff] %vm1172_vm2, %v2623_v31  ;;  %v2722_v31 = vld [vmem:[#allocation2 + $0x7c] sm:$0xff] }
 0x2c4   : > { %v14910_v61 = vpop.f32.mrf.mxu1  ;;  %v15188_v10 = vpop.f32.mrf.mxu0  ;;  %v2285_v9 = vld [vmem:[#allocation3 + $0x28] sm:$0xff]  ;;  %v4211_v35 = vld [vmem:[#allocation2 + $0x80] sm:$0xff] }
 0x2c5   : > { %2174 = vst.msk [vmem:[#allocation3 + $0x38] sm:$0xff] %vm1172_vm2, %v2129_v54  ;;  %v2624_v26 = vadd.f32 %v17041_v50, %v2285_v9 }
 0x2c6   : > { %v1972_v42 = vpop.f32.mrf.mxu1  ;;  %15104 = vmatmul.mubr.msk.bf16.gmra.mxu1 %vm1121_vm1, %v2759_v4  ;;  %v17339_v32 = vpop.f32.mrf.mxu0  ;;  %15382 = vmatmul.mubr.msk.bf16.gmra.mxu0 %vm1121_vm1, %v4249_v24  ;;  %v2721_v4 = vld [vmem:[#allocation2 + $0x74] sm:$0xff] }
 0x2c7   : > { %v2130_v6 = vadd.f32 %v1972_v42, %v1791_v12  ;;  %15107 = vmatprep.mubr.msk.bf16.mxu1 %vm16401_vm0, %v20308_v40  ;;  %15385 = vmatprep.mubr.msk.bf16.mxu0 %vm16401_vm0, %v20308_v40  ;;  %2669 = vst.msk [vmem:[#allocation3 + $0x28] sm:$0xff] %vm1172_vm2, %v2624_v26  ;;  %v4210_v24 = vld [vmem:[#allocation2 + $0x78] sm:$0xff]  ;;  %v2760_v12 = vpack.c.bf16 %v2722_v31, %v2721_v4  ;;  %v1794_v4 = vld [vmem:[#allocation3 + $0x58] sm:$0xff] }
 0x2c8   : > { %v14913_v22 = vpop.f32.mrf.mxu1  ;;  %v15191_v28 = vpop.f32.mrf.mxu0  ;;  %v2286_v50 = vld [vmem:[#allocation3 + $0x30] sm:$0xff]  ;;  %v4250_v42 = vpack.c.bf16 %v4211_v35, %v4210_v24 }
 0x2c9   : > { %2175 = vst.msk [vmem:[#allocation3 + $0x40] sm:$0xff] %vm1172_vm2, %v2130_v6  ;;  %v2625_v54 = vadd.f32 %v17045_v60, %v2286_v50  ;;  %v1793_v28 = vld [vmem:[#allocation3 + $0x50] sm:$0xff] }
 0x2ca   : > { %v1975_v5 = vpop.f32.mrf.mxu1  ;;  %v17349_v61 = vpop.f32.mrf.mxu0 }
 0x2cb   : > { %v2131_v10 = vadd.f32 %v1975_v5, %v1792_v45  ;;  %2670 = vst.msk [vmem:[#allocation3 + $0x30] sm:$0xff] %vm1172_vm2, %v2625_v54  ;;  %v2724_v54 = vld [vmem:[#allocation2 + $0x8c] sm:$0xff] }
 0x2cc   : > { %v14914_v9 = vpop.f32.mrf.mxu1  ;;  %v15192_v26 = vpop.f32.mrf.mxu0  ;;  %v2287_v22 = vld [vmem:[#allocation3 + $0x38] sm:$0xff]  ;;  %v4213_v5 = vld [vmem:[#allocation2 + $0x90] sm:$0xff] }
 0x2cd   : > { %2176 = vst.msk [vmem:[#allocation3 + $0x48] sm:$0xff] %vm1172_vm2, %v2131_v10  ;;  %v2626_v6 = vadd.f32 %v17053_v7, %v2287_v22 }
 0x2ce   : > { %v1980_v60 = vpop.f32.mrf.mxu1  ;;  %15108 = vmatmul.mubr.msk.bf16.gmra.mxu1 %vm1121_vm1, %v2760_v12  ;;  %v17355_v50 = vpop.f32.mrf.mxu0  ;;  %15386 = vmatmul.mubr.msk.bf16.gmra.mxu0 %vm1121_vm1, %v4250_v42  ;;  %v2723_v12 = vld [vmem:[#allocation2 + $0x84] sm:$0xff] }
 0x2cf   : > { %v2132_v45 = vadd.f32 %v1980_v60, %v1793_v28  ;;  %15111 = vmatprep.mubr.msk.bf16.mxu1 %vm16401_vm0, %v20308_v40  ;;  %15389 = vmatprep.mubr.msk.bf16.mxu0 %vm16401_vm0, %v20308_v40  ;;  %2671 = vst.msk [vmem:[#allocation3 + $0x38] sm:$0xff] %vm1172_vm2, %v2626_v6  ;;  %v4212_v42 = vld [vmem:[#allocation2 + $0x88] sm:$0xff]  ;;  %v2761_v28 = vpack.c.bf16 %v2724_v54, %v2723_v12  ;;  %v1796_v12 = vld [vmem:[#allocation3 + $0x68] sm:$0xff] }
 0x2d0   : > { %v14917_v31 = vpop.f32.mrf.mxu1  ;;  %v15195_v35 = vpop.f32.mrf.mxu0  ;;  %v2288_v7 = vld [vmem:[#allocation3 + $0x40] sm:$0xff]  ;;  %v4251_v60 = vpack.c.bf16 %v4213_v5, %v4212_v42 }
 0x2d1   : > { %2177 = vst.msk [vmem:[#allocation3 + $0x50] sm:$0xff] %vm1172_vm2, %v2132_v45  ;;  %v2627_v10 = vadd.f32 %v17057_v18, %v2288_v7  ;;  %v1795_v35 = vld [vmem:[#allocation3 + $0x60] sm:$0xff] }
 0x2d2   : > { %v1983_v24 = vpop.f32.mrf.mxu1  ;;  %v17365_v9 = vpop.f32.mrf.mxu0 }
 0x2d3   : > { %v2133_v26 = vadd.f32 %v1983_v24, %v1794_v4  ;;  %2672 = vst.msk [vmem:[#allocation3 + $0x40] sm:$0xff] %vm1172_vm2, %v2627_v10  ;;  %v2726_v10 = vld [vmem:[#allocation2 + $0x9c] sm:$0xff] }
 0x2d4   : > { %v14918_v22 = vpop.f32.mrf.mxu1  ;;  %v15196_v6 = vpop.f32.mrf.mxu0  ;;  %v2289_v31 = vld [vmem:[#allocation3 + $0x48] sm:$0xff]  ;;  %v4215_v24 = vld [vmem:[#allocation2 + $0xa0] sm:$0xff] }
 0x2d5   : > { %2178 = vst.msk [vmem:[#allocation3 + $0x58] sm:$0xff] %vm1172_vm2, %v2133_v26  ;;  %v2628_v45 = vadd.f32 %v17067_v27, %v2289_v31  ;;  %v15796_v31 = vld [vmem:[%s20319_s3 + $0x40] sm:$0xff]  }
 0x2d6   : > { %v1988_v18 = vpop.f32.mrf.mxu1  ;;  %15112 = vmatmul.mubr.msk.bf16.gmra.mxu1 %vm1121_vm1, %v2761_v28  ;;  %v17371_v7 = vpop.f32.mrf.mxu0  ;;  %15390 = vmatmul.mubr.msk.bf16.gmra.mxu0 %vm1121_vm1, %v4251_v60  ;;  %v2725_v28 = vld [vmem:[#allocation2 + $0x94] sm:$0xff] }
 0x2d7   : > { %v2134_v4 = vadd.f32 %v1988_v18, %v1795_v35  ;;  %15115 = vmatprep.mubr.msk.bf16.mxu1 %vm16401_vm0, %v20308_v40  ;;  %15393 = vmatprep.mubr.msk.bf16.mxu0 %vm16401_vm0, %v20308_v40  ;;  %2673 = vst.msk [vmem:[#allocation3 + $0x48] sm:$0xff] %vm1172_vm2, %v2628_v45  ;;  %v4214_v60 = vld [vmem:[#allocation2 + $0x98] sm:$0xff]  ;;  %v2762_v18 = vpack.c.bf16 %v2726_v10, %v2725_v28 }
 0x2d8   : > { %v14921_v54 = vpop.f32.mrf.mxu1  ;;  %v15199_v5 = vpop.f32.mrf.mxu0  ;;  %v2290_v27 = vld [vmem:[#allocation3 + $0x50] sm:$0xff]  ;;  %15552 = vmatpush3.bf16.msra.mxu0 %v15796_v31 }
 0x2d9   : > { %2179 = vst.msk [vmem:[#allocation3 + $0x60] sm:$0xff] %vm1172_vm2, %v2134_v4  ;;  %v2629_v26 = vadd.f32 %v17071_v37, %v2290_v27  ;;  %v4252_v4 = vpack.c.bf16 %v4215_v24, %v4214_v60  ;;  %v1797_v5 = vld [vmem:[#allocation3 + $0x70] sm:$0xff]  ;;  %v1798_v60 = vld [vmem:[#allocation3 + $0x78] sm:$0xff] }
 0x2da   : > { %v1991_v42 = vpop.f32.mrf.mxu1  ;;  %v17381_v22 = vpop.f32.mrf.mxu0 }
 0x2db   : > { %v2135_v6 = vadd.f32 %v1991_v42, %v1796_v12  ;;  %2674 = vst.msk [vmem:[#allocation3 + $0x50] sm:$0xff] %vm1172_vm2, %v2629_v26  ;;  %v2728_v26 = vld [vmem:[#allocation2 + $0xac] sm:$0xff] }
 0x2dc   : > { %v14922_v45 = vpop.f32.mrf.mxu1  ;;  %v15200_v35 = vpop.f32.mrf.mxu0  ;;  %v2291_v54 = vld [vmem:[#allocation3 + $0x58] sm:$0xff] }
 0x2dd   : > { %2180 = vst.msk [vmem:[#allocation3 + $0x68] sm:$0xff] %vm1172_vm2, %v2135_v6  ;;  %v2630_v37 = vadd.f32 %v17079_v47, %v2291_v54  ;;  %v4217_v6 = vld [vmem:[#allocation2 + $0xb0] sm:$0xff] }
 0x2de   : > { %v1996_v27 = vpop.f32.mrf.mxu1  ;;  %15116 = vmatmul.mubr.msk.bf16.gmra.mxu1 %vm1121_vm1, %v2762_v18  ;;  %v17390_v12 = vpop.f32.mrf.mxu0  ;;  %15394 = vmatmul.mubr.msk.bf16.gmra.mxu0 %vm1121_vm1, %v4252_v4  ;;  %v2727_v18 = vld [vmem:[#allocation2 + $0xa4] sm:$0xff] }
 0x2df   : > { %v2136_v42 = vadd.f32 %v1996_v27, %v1797_v5  ;;  %15119 = vmatprep.mubr.msk.bf16.mxu1 %vm16401_vm0, %v20308_v40  ;;  %15397 = vmatprep.mubr.msk.bf16.mxu0 %vm16401_vm0, %v20308_v40  ;;  %2675 = vst.msk [vmem:[#allocation3 + $0x58] sm:$0xff] %vm1172_vm2, %v2630_v37  ;;  %v4216_v4 = vld [vmem:[#allocation2 + $0xa8] sm:$0xff]  ;;  %v2763_v5 = vpack.c.bf16 %v2728_v26, %v2727_v18  ;;  %v1800_v18 = vld [vmem:[#allocation3 + $0x88] sm:$0xff] }
 0x2e0   : > { %v14925_v10 = vpop.f32.mrf.mxu1  ;;  %v15203_v24 = vpop.f32.mrf.mxu0  ;;  %v2292_v47 = vld [vmem:[#allocation3 + $0x60] sm:$0xff]  ;;  %v4253_v27 = vpack.c.bf16 %v4217_v6, %v4216_v4 }
 0x2e1   : > { %2181 = vst.msk [vmem:[#allocation3 + $0x70] sm:$0xff] %vm1172_vm2, %v2136_v42  ;;  %v2631_v28 = vadd.f32 %v17087_v59, %v2292_v47  ;;  %v1799_v24 = vld [vmem:[#allocation3 + $0x80] sm:$0xff] }
 0x2e2   : > { %v1999_v31 = vpop.f32.mrf.mxu1  ;;  %v17400_v45 = vpop.f32.mrf.mxu0 }
 0x2e3   : > { %v2137_v35 = vadd.f32 %v1999_v31, %v1798_v60  ;;  %2676 = vst.msk [vmem:[#allocation3 + $0x60] sm:$0xff] %vm1172_vm2, %v2631_v28  ;;  %v2730_v28 = vld [vmem:[#allocation2 + $0xbc] sm:$0xff] }
 0x2e4   : > { %v14926_v54 = vpop.f32.mrf.mxu1  ;;  %v15204_v37 = vpop.f32.mrf.mxu0  ;;  %v2293_v10 = vld [vmem:[#allocation3 + $0x68] sm:$0xff]  ;;  %v4219_v31 = vld [vmem:[#allocation2 + $0xc0] sm:$0xff] }
 0x2e5   : > { %2182 = vst.msk [vmem:[#allocation3 + $0x78] sm:$0xff] %vm1172_vm2, %v2137_v35  ;;  %v2632_v42 = vadd.f32 %v17095_v8, %v2293_v10 }
 0x2e6   : > { %v2004_v59 = vpop.f32.mrf.mxu1  ;;  %15120 = vmatmul.mubr.msk.bf16.gmra.mxu1 %vm1121_vm1, %v2763_v5  ;;  %v17406_v47 = vpop.f32.mrf.mxu0  ;;  %15398 = vmatmul.mubr.msk.bf16.gmra.mxu0 %vm1121_vm1, %v4253_v27  ;;  %v2729_v5 = vld [vmem:[#allocation2 + $0xb4] sm:$0xff] }
 0x2e7   : > { %v2138_v60 = vadd.f32 %v2004_v59, %v1799_v24  ;;  %15123 = vmatprep.mubr.msk.bf16.mxu1 %vm16401_vm0, %v20308_v40  ;;  %15401 = vmatprep.mubr.msk.bf16.mxu0 %vm16401_vm0, %v20308_v40  ;;  %2677 = vst.msk [vmem:[#allocation3 + $0x68] sm:$0xff] %vm1172_vm2, %v2632_v42  ;;  %v4218_v27 = vld [vmem:[#allocation2 + $0xb8] sm:$0xff]  ;;  %v2764_v24 = vpack.c.bf16 %v2730_v28, %v2729_v5  ;;  %v1802_v5 = vld [vmem:[#allocation3 + $0x98] sm:$0xff] }
 0x2e8   : > { %v14929_v26 = vpop.f32.mrf.mxu1  ;;  %v15207_v6 = vpop.f32.mrf.mxu0  ;;  %v2294_v8 = vld [vmem:[#allocation3 + $0x70] sm:$0xff]  ;;  %v4254_v59 = vpack.c.bf16 %v4219_v31, %v4218_v27 }
 0x2e9   : > { %2183 = vst.msk [vmem:[#allocation3 + $0x80] sm:$0xff] %vm1172_vm2, %v2138_v60  ;;  %v2633_v35 = vadd.f32 %v17099_v20, %v2294_v8  ;;  %v1801_v6 = vld [vmem:[#allocation3 + $0x90] sm:$0xff] }
 0x2ea   : > { %v2007_v4 = vpop.f32.mrf.mxu1  ;;  %v17416_v54 = vpop.f32.mrf.mxu0 }
 0x2eb   : > { %v2139_v37 = vadd.f32 %v2007_v4, %v1800_v18  ;;  %2678 = vst.msk [vmem:[#allocation3 + $0x70] sm:$0xff] %vm1172_vm2, %v2633_v35  ;;  %v2732_v35 = vld [vmem:[#allocation2 + $0xcc] sm:$0xff] }
 0x2ec   : > { %v14930_v10 = vpop.f32.mrf.mxu1  ;;  %v15208_v42 = vpop.f32.mrf.mxu0  ;;  %v2295_v26 = vld [vmem:[#allocation3 + $0x78] sm:$0xff]  ;;  %v4221_v4 = vld [vmem:[#allocation2 + $0xd0] sm:$0xff] }
 0x2ed   : > { %2184 = vst.msk [vmem:[#allocation3 + $0x88] sm:$0xff] %vm1172_vm2, %v2139_v37  ;;  %v2634_v60 = vadd.f32 %v17107_v30, %v2295_v26 }
 0x2ee   : > { %v2012_v20 = vpop.f32.mrf.mxu1  ;;  %15124 = vmatmul.mubr.msk.bf16.gmra.mxu1 %vm1121_vm1, %v2764_v24  ;;  %v17422_v8 = vpop.f32.mrf.mxu0  ;;  %15402 = vmatmul.mubr.msk.bf16.gmra.mxu0 %vm1121_vm1, %v4254_v59  ;;  %v2731_v24 = vld [vmem:[#allocation2 + $0xc4] sm:$0xff] }
 0x2ef   : > { %v2140_v18 = vadd.f32 %v2012_v20, %v1801_v6  ;;  %15127 = vmatprep.mubr.msk.bf16.mxu1 %vm16401_vm0, %v20308_v40  ;;  %15405 = vmatprep.mubr.msk.bf16.mxu0 %vm16401_vm0, %v20308_v40  ;;  %2679 = vst.msk [vmem:[#allocation3 + $0x78] sm:$0xff] %vm1172_vm2, %v2634_v60  ;;  %v4220_v59 = vld [vmem:[#allocation2 + $0xc8] sm:$0xff]  ;;  %v2765_v6 = vpack.c.bf16 %v2732_v35, %v2731_v24  ;;  %v1804_v24 = vld [vmem:[#allocation3 + $0xa8] sm:$0xff] }
 0x2f0   : > { %v14933_v28 = vpop.f32.mrf.mxu1  ;;  %v15211_v31 = vpop.f32.mrf.mxu0  ;;  %v2296_v30 = vld [vmem:[#allocation3 + $0x80] sm:$0xff]  ;;  %v4255_v20 = vpack.c.bf16 %v4221_v4, %v4220_v59 }
 0x2f1   : > { %2185 = vst.msk [vmem:[#allocation3 + $0x90] sm:$0xff] %vm1172_vm2, %v2140_v18  ;;  %v2635_v37 = vadd.f32 %v17111_v43, %v2296_v30  ;;  %v1803_v31 = vld [vmem:[#allocation3 + $0xa0] sm:$0xff] }
 0x2f2   : > { %v2015_v27 = vpop.f32.mrf.mxu1  ;;  %v17432_v10 = vpop.f32.mrf.mxu0 }
 0x2f3   : > { %v2141_v42 = vadd.f32 %v2015_v27, %v1802_v5  ;;  %2680 = vst.msk [vmem:[#allocation3 + $0x80] sm:$0xff] %vm1172_vm2, %v2635_v37  ;;  %v2734_v37 = vld [vmem:[#allocation2 + $0xdc] sm:$0xff] }
 0x2f4   : > { %v14934_v26 = vpop.f32.mrf.mxu1  ;;  %v15212_v60 = vpop.f32.mrf.mxu0  ;;  %v2297_v28 = vld [vmem:[#allocation3 + $0x88] sm:$0xff]  ;;  %v4223_v27 = vld [vmem:[#allocation2 + $0xe0] sm:$0xff] }
 0x2f5   : > { %2186 = vst.msk [vmem:[#allocation3 + $0x98] sm:$0xff] %vm1172_vm2, %v2141_v42  ;;  %v2636_v18 = vadd.f32 %v17119_v53, %v2297_v28 }
 0x2f6   : > { %v2020_v43 = vpop.f32.mrf.mxu1  ;;  %15128 = vmatmul.mubr.msk.bf16.gmra.mxu1 %vm1121_vm1, %v2765_v6  ;;  %v17438_v30 = vpop.f32.mrf.mxu0  ;;  %15406 = vmatmul.mubr.msk.bf16.gmra.mxu0 %vm1121_vm1, %v4255_v20  ;;  %v2733_v6 = vld [vmem:[#allocation2 + $0xd4] sm:$0xff] }
 0x2f7   : > { %v2142_v5 = vadd.f32 %v2020_v43, %v1803_v31  ;;  %15131 = vmatprep.mubr.msk.bf16.mxu1 %vm16401_vm0, %v20308_v40  ;;  %15409 = vmatprep.mubr.msk.bf16.mxu0 %vm16401_vm0, %v20308_v40  ;;  %2681 = vst.msk [vmem:[#allocation3 + $0x88] sm:$0xff] %vm1172_vm2, %v2636_v18  ;;  %v4222_v20 = vld [vmem:[#allocation2 + $0xd8] sm:$0xff]  ;;  %v2766_v31 = vpack.c.bf16 %v2734_v37, %v2733_v6  ;;  %v1806_v6 = vld [vmem:[#allocation3 + $0xb8] sm:$0xff] }
 0x2f8   : > { %v14937_v35 = vpop.f32.mrf.mxu1  ;;  %v15215_v4 = vpop.f32.mrf.mxu0  ;;  %v2298_v53 = vld [vmem:[#allocation3 + $0x90] sm:$0xff]  ;;  %v4256_v43 = vpack.c.bf16 %v4223_v27, %v4222_v20 }
 0x2f9   : > { %2187 = vst.msk [vmem:[#allocation3 + $0xa0] sm:$0xff] %vm1172_vm2, %v2142_v5  ;;  %v2637_v42 = vadd.f32 %v17123_v2, %v2298_v53  ;;  %v1805_v4 = vld [vmem:[#allocation3 + $0xb0] sm:$0xff] }
 0x2fa   : > { %v2023_v59 = vpop.f32.mrf.mxu1  ;;  %v17448_v26 = vpop.f32.mrf.mxu0 }
 0x2fb   : > { %v2143_v60 = vadd.f32 %v2023_v59, %v1804_v24  ;;  %2682 = vst.msk [vmem:[#allocation3 + $0x90] sm:$0xff] %vm1172_vm2, %v2637_v42  ;;  %v2736_v42 = vld [vmem:[#allocation2 + $0xec] sm:$0xff] }
 0x2fc   : > { %v14938_v28 = vpop.f32.mrf.mxu1  ;;  %v15216_v18 = vpop.f32.mrf.mxu0  ;;  %v2299_v35 = vld [vmem:[#allocation3 + $0x98] sm:$0xff]  ;;  %v4225_v59 = vld [vmem:[#allocation2 + $0xf0] sm:$0xff] }
 0x2fd   : > { %2188 = vst.msk [vmem:[#allocation3 + $0xa8] sm:$0xff] %vm1172_vm2, %v2143_v60  ;;  %v2638_v5 = vadd.f32 %v17131_v15, %v2299_v35 }
 0x2fe   : > { %v2028_v2 = vpop.f32.mrf.mxu1  ;;  %15132 = vmatmul.mubr.msk.bf16.gmra.mxu1 %vm1121_vm1, %v2766_v31  ;;  %v17454_v53 = vpop.f32.mrf.mxu0  ;;  %15410 = vmatmul.mubr.msk.bf16.gmra.mxu0 %vm1121_vm1, %v4256_v43  ;;  %v2735_v31 = vld [vmem:[#allocation2 + $0xe4] sm:$0xff] }
 0x2ff   : > { %v2144_v24 = vadd.f32 %v2028_v2, %v1805_v4  ;;  %15135 = vmatprep.mubr.msk.bf16.mxu1 %vm16401_vm0, %v20308_v40  ;;  %15413 = vmatprep.mubr.msk.bf16.mxu0 %vm16401_vm0, %v20308_v40  ;;  %2683 = vst.msk [vmem:[#allocation3 + $0x98] sm:$0xff] %vm1172_vm2, %v2638_v5  ;;  %v4224_v43 = vld [vmem:[#allocation2 + $0xe8] sm:$0xff]  ;;  %v2767_v4 = vpack.c.bf16 %v2736_v42, %v2735_v31  ;;  %v1808_v31 = vld [vmem:[#allocation3 + $0xc8] sm:$0xff] }
 0x300   : > { %v14941_v37 = vpop.f32.mrf.mxu1  ;;  %v15219_v27 = vpop.f32.mrf.mxu0  ;;  %v2300_v15 = vld [vmem:[#allocation3 + $0xa0] sm:$0xff]  ;;  %v4257_v2 = vpack.c.bf16 %v4225_v59, %v4224_v43 }
 0x301   : > { %2189 = vst.msk [vmem:[#allocation3 + $0xb0] sm:$0xff] %vm1172_vm2, %v2144_v24  ;;  %v2639_v60 = vadd.f32 %v17135_v29, %v2300_v15  ;;  %v1807_v27 = vld [vmem:[#allocation3 + $0xc0] sm:$0xff] }
 0x302   : > { %v2031_v20 = vpop.f32.mrf.mxu1  ;;  %v17464_v28 = vpop.f32.mrf.mxu0 }
 0x303   : > { %v2145_v18 = vadd.f32 %v2031_v20, %v1806_v6  ;;  %2684 = vst.msk [vmem:[#allocation3 + $0xa0] sm:$0xff] %vm1172_vm2, %v2639_v60  ;;  %v2738_v60 = vld [vmem:[#allocation2 + $0xfc] sm:$0xff] }
 0x304   : > { %v14942_v35 = vpop.f32.mrf.mxu1  ;;  %v15220_v5 = vpop.f32.mrf.mxu0  ;;  %v2301_v37 = vld [vmem:[#allocation3 + $0xa8] sm:$0xff]  ;;  %v4227_v20 = vld [vmem:[#allocation2 + $0x100] sm:$0xff] }
 0x305   : > { %2190 = vst.msk [vmem:[#allocation3 + $0xb8] sm:$0xff] %vm1172_vm2, %v2145_v18  ;;  %v2640_v24 = vadd.f32 %v17143_v39, %v2301_v37 }
 0x306   : > { %v2036_v29 = vpop.f32.mrf.mxu1  ;;  %15136 = vmatmul.mubr.msk.bf16.gmra.mxu1 %vm1121_vm1, %v2767_v4  ;;  %v17470_v15 = vpop.f32.mrf.mxu0  ;;  %15414 = vmatmul.mubr.msk.bf16.gmra.mxu0 %vm1121_vm1, %v4257_v2  ;;  %v2737_v4 = vld [vmem:[#allocation2 + $0xf4] sm:$0xff] }
 0x307   : > { %v2146_v6 = vadd.f32 %v2036_v29, %v1807_v27  ;;  %15139 = vmatprep.mubr.msk.bf16.mxu1 %vm16401_vm0, %v20308_v40  ;;  %15417 = vmatprep.mubr.msk.bf16.mxu0 %vm16401_vm0, %v20308_v40  ;;  %2685 = vst.msk [vmem:[#allocation3 + $0xa8] sm:$0xff] %vm1172_vm2, %v2640_v24  ;;  %v4226_v2 = vld [vmem:[#allocation2 + $0xf8] sm:$0xff]  ;;  %v2768_v27 = vpack.c.bf16 %v2738_v60, %v2737_v4  ;;  %v1810_v4 = vld [vmem:[#allocation3 + $0xd8] sm:$0xff] }
 0x308   : > { %v14945_v42 = vpop.f32.mrf.mxu1  ;;  %v15223_v59 = vpop.f32.mrf.mxu0  ;;  %v2302_v39 = vld [vmem:[#allocation3 + $0xb0] sm:$0xff]  ;;  %v4258_v29 = vpack.c.bf16 %v4227_v20, %v4226_v2 }
 0x309   : > { %2191 = vst.msk [vmem:[#allocation3 + $0xc0] sm:$0xff] %vm1172_vm2, %v2146_v6  ;;  %v2641_v18 = vadd.f32 %v17147_v55, %v2302_v39  ;;  %v1809_v59 = vld [vmem:[#allocation3 + $0xd0] sm:$0xff] }
 0x30a   : > { %v2039_v43 = vpop.f32.mrf.mxu1  ;;  %v17480_v35 = vpop.f32.mrf.mxu0 }
 0x30b   : > { %v2147_v5 = vadd.f32 %v2039_v43, %v1808_v31  ;;  %2686 = vst.msk [vmem:[#allocation3 + $0xb0] sm:$0xff] %vm1172_vm2, %v2641_v18  ;;  %v2740_v18 = vld [vmem:[#allocation2 + $0x10c] sm:$0xff] }
 0x30c   : > { %v14946_v37 = vpop.f32.mrf.mxu1  ;;  %v15224_v24 = vpop.f32.mrf.mxu0  ;;  %v2303_v42 = vld [vmem:[#allocation3 + $0xb8] sm:$0xff]  ;;  %v4229_v43 = vld [vmem:[#allocation2 + $0x110] sm:$0xff] }
 0x30d   : > { %2192 = vst.msk [vmem:[#allocation3 + $0xc8] sm:$0xff] %vm1172_vm2, %v2147_v5  ;;  %v2642_v6 = vadd.f32 %v17155_v3, %v2303_v42 }
 0x30e   : > { %v2044_v55 = vpop.f32.mrf.mxu1  ;;  %15140 = vmatmul.mubr.msk.bf16.gmra.mxu1 %vm1121_vm1, %v2768_v27  ;;  %v17486_v39 = vpop.f32.mrf.mxu0  ;;  %15418 = vmatmul.mubr.msk.bf16.gmra.mxu0 %vm1121_vm1, %v4258_v29  ;;  %v2739_v27 = vld [vmem:[#allocation2 + $0x104] sm:$0xff] }
 0x30f   : > { %v2148_v31 = vadd.f32 %v2044_v55, %v1809_v59  ;;  %15143 = vmatprep.mubr.msk.bf16.mxu1 %vm16401_vm0, %v20308_v40  ;;  %15421 = vmatprep.mubr.msk.bf16.mxu0 %vm16401_vm0, %v20308_v40  ;;  %2687 = vst.msk [vmem:[#allocation3 + $0xb8] sm:$0xff] %vm1172_vm2, %v2642_v6  ;;  %v4228_v29 = vld [vmem:[#allocation2 + $0x108] sm:$0xff]  ;;  %v2769_v59 = vpack.c.bf16 %v2740_v18, %v2739_v27  ;;  %v1812_v27 = vld [vmem:[#allocation3 + $0xe8] sm:$0xff] }
 0x310   : > { %v14949_v60 = vpop.f32.mrf.mxu1  ;;  %v15227_v20 = vpop.f32.mrf.mxu0  ;;  %v2304_v3 = vld [vmem:[#allocation3 + $0xc0] sm:$0xff]  ;;  %v4259_v55 = vpack.c.bf16 %v4229_v43, %v4228_v29 }
 0x311   : > { %2193 = vst.msk [vmem:[#allocation3 + $0xd0] sm:$0xff] %vm1172_vm2, %v2148_v31  ;;  %v2643_v5 = vadd.f32 %v17159_v21, %v2304_v3  ;;  %v1811_v20 = vld [vmem:[#allocation3 + $0xe0] sm:$0xff] }
 0x312   : > { %v2047_v2 = vpop.f32.mrf.mxu1  ;;  %v17496_v37 = vpop.f32.mrf.mxu0 }
 0x313   : > { %v2149_v24 = vadd.f32 %v2047_v2, %v1810_v4  ;;  %2688 = vst.msk [vmem:[#allocation3 + $0xc0] sm:$0xff] %vm1172_vm2, %v2643_v5  ;;  %v2742_v5 = vld [vmem:[#allocation2 + $0x11c] sm:$0xff] }
 0x314   : > { %v14950_v42 = vpop.f32.mrf.mxu1  ;;  %v15228_v6 = vpop.f32.mrf.mxu0  ;;  %v2305_v60 = vld [vmem:[#allocation3 + $0xc8] sm:$0xff]  ;;  %v4231_v2 = vld [vmem:[#allocation2 + $0x120] sm:$0xff] }
 0x315   : > { %2194 = vst.msk [vmem:[#allocation3 + $0xd8] sm:$0xff] %vm1172_vm2, %v2149_v24  ;;  %v2644_v31 = vadd.f32 %v17167_v34, %v2305_v60 }
 0x316   : > { %v2052_v21 = vpop.f32.mrf.mxu1  ;;  %15144 = vmatmul.mubr.msk.bf16.gmra.mxu1 %vm1121_vm1, %v2769_v59  ;;  %v17502_v3 = vpop.f32.mrf.mxu0  ;;  %15422 = vmatmul.mubr.msk.bf16.gmra.mxu0 %vm1121_vm1, %v4259_v55  ;;  %v2741_v59 = vld [vmem:[#allocation2 + $0x114] sm:$0xff] }
 0x317   : > { %v2150_v4 = vadd.f32 %v2052_v21, %v1811_v20  ;;  %15147 = vmatprep.mubr.msk.bf16.mxu1 %vm16401_vm0, %v20308_v40  ;;  %15425 = vmatprep.mubr.msk.bf16.mxu0 %vm16401_vm0, %v20308_v40  ;;  %2689 = vst.msk [vmem:[#allocation3 + $0xc8] sm:$0xff] %vm1172_vm2, %v2644_v31  ;;  %v4230_v55 = vld [vmem:[#allocation2 + $0x118] sm:$0xff]  ;;  %v2770_v20 = vpack.c.bf16 %v2742_v5, %v2741_v59  ;;  %v1814_v59 = vld [vmem:[#allocation3 + $0xf8] sm:$0xff] }
 0x318   : > { %v14953_v18 = vpop.f32.mrf.mxu1  ;;  %v15231_v43 = vpop.f32.mrf.mxu0  ;;  %v2306_v34 = vld [vmem:[#allocation3 + $0xd0] sm:$0xff]  ;;  %v4260_v21 = vpack.c.bf16 %v4231_v2, %v4230_v55 }
 0x319   : > { %2195 = vst.msk [vmem:[#allocation3 + $0xe0] sm:$0xff] %vm1172_vm2, %v2150_v4  ;;  %v2645_v24 = vadd.f32 %v17171_v49, %v2306_v34  ;;  %v1813_v43 = vld [vmem:[#allocation3 + $0xf0] sm:$0xff] }
 0x31a   : > { %v2055_v29 = vpop.f32.mrf.mxu1  ;;  %v17512_v42 = vpop.f32.mrf.mxu0 }
 0x31b   : > { %v2151_v6 = vadd.f32 %v2055_v29, %v1812_v27  ;;  %2690 = vst.msk [vmem:[#allocation3 + $0xd0] sm:$0xff] %vm1172_vm2, %v2645_v24  ;;  %v2744_v24 = vld [vmem:[#allocation2 + $0x12c] sm:$0xff] }
 0x31c   : > { %v14954_v60 = vpop.f32.mrf.mxu1  ;;  %v15232_v31 = vpop.f32.mrf.mxu0  ;;  %v2307_v18 = vld [vmem:[#allocation3 + $0xd8] sm:$0xff]  ;;  %v4233_v29 = vld [vmem:[#allocation2 + $0x130] sm:$0xff] }
 0x31d   : > { %2196 = vst.msk [vmem:[#allocation3 + $0xe8] sm:$0xff] %vm1172_vm2, %v2151_v6  ;;  %v2646_v4 = vadd.f32 %v17179_v62, %v2307_v18 }
 0x31e   : > { %v2060_v49 = vpop.f32.mrf.mxu1  ;;  %15148 = vmatmul.mubr.msk.bf16.gmra.mxu1 %vm1121_vm1, %v2770_v20  ;;  %v17518_v34 = vpop.f32.mrf.mxu0  ;;  %15426 = vmatmul.mubr.msk.bf16.gmra.mxu0 %vm1121_vm1, %v4260_v21  ;;  %v2743_v20 = vld [vmem:[#allocation2 + $0x124] sm:$0xff] }
 0x31f   : > { %v2152_v27 = vadd.f32 %v2060_v49, %v1813_v43  ;;  %15151 = vmatprep.mubr.msk.bf16.mxu1 %vm16401_vm0, %v20308_v40  ;;  %15429 = vmatprep.mubr.msk.bf16.mxu0 %vm16401_vm0, %v20308_v40  ;;  %2691 = vst.msk [vmem:[#allocation3 + $0xd8] sm:$0xff] %vm1172_vm2, %v2646_v4  ;;  %v4232_v21 = vld [vmem:[#allocation2 + $0x128] sm:$0xff]  ;;  %v2771_v43 = vpack.c.bf16 %v2744_v24, %v2743_v20  ;;  %v1816_v20 = vld [vmem:[#allocation3 + $0x108] sm:$0xff] }
 0x320   : > { %v14957_v5 = vpop.f32.mrf.mxu1  ;;  %v15235_v2 = vpop.f32.mrf.mxu0  ;;  %v2308_v62 = vld [vmem:[#allocation3 + $0xe0] sm:$0xff]  ;;  %v4261_v49 = vpack.c.bf16 %v4233_v29, %v4232_v21 }
 0x321   : > { %2197 = vst.msk [vmem:[#allocation3 + $0xf0] sm:$0xff] %vm1172_vm2, %v2152_v27  ;;  %v2647_v6 = vadd.f32 %v17183_v17, %v2308_v62  ;;  %v1815_v2 = vld [vmem:[#allocation3 + $0x100] sm:$0xff] }
 0x322   : > { %v2063_v55 = vpop.f32.mrf.mxu1  ;;  %v17528_v60 = vpop.f32.mrf.mxu0 }
 0x323   : > { %v2153_v31 = vadd.f32 %v2063_v55, %v1814_v59  ;;  %2692 = vst.msk [vmem:[#allocation3 + $0xe0] sm:$0xff] %vm1172_vm2, %v2647_v6  ;;  %v2746_v6 = vld [vmem:[#allocation2 + $0x13c] sm:$0xff] }
 0x324   : > { %v14958_v18 = vpop.f32.mrf.mxu1  ;;  %v15236_v4 = vpop.f32.mrf.mxu0  ;;  %v2309_v5 = vld [vmem:[#allocation3 + $0xe8] sm:$0xff]  ;;  %v4235_v55 = vld [vmem:[#allocation2 + $0x140] sm:$0xff] }
 0x325   : > { %2198 = vst.msk [vmem:[#allocation3 + $0xf8] sm:$0xff] %vm1172_vm2, %v2153_v31  ;;  %v2648_v27 = vadd.f32 %v17191_v33, %v2309_v5 }
 0x326   : > { %v2068_v17 = vpop.f32.mrf.mxu1  ;;  %15152 = vmatmul.mubr.msk.bf16.gmra.mxu1 %vm1121_vm1, %v2771_v43  ;;  %v17534_v62 = vpop.f32.mrf.mxu0  ;;  %15430 = vmatmul.mubr.msk.bf16.gmra.mxu0 %vm1121_vm1, %v4261_v49  ;;  %v2745_v43 = vld [vmem:[#allocation2 + $0x134] sm:$0xff] }
 0x327   : > { %v2154_v59 = vadd.f32 %v2068_v17, %v1815_v2  ;;  %15155 = vmatprep.mubr.msk.bf16.mxu1 %vm16401_vm0, %v20308_v40  ;;  %15433 = vmatprep.mubr.msk.bf16.mxu0 %vm16401_vm0, %v20308_v40  ;;  %2693 = vst.msk [vmem:[#allocation3 + $0xe8] sm:$0xff] %vm1172_vm2, %v2648_v27  ;;  %v4234_v49 = vld [vmem:[#allocation2 + $0x138] sm:$0xff]  ;;  %v2772_v2 = vpack.c.bf16 %v2746_v6, %v2745_v43  ;;  %v1818_v43 = vld [vmem:[#allocation3 + $0x118] sm:$0xff] }
 0x328   : > { %v14961_v24 = vpop.f32.mrf.mxu1  ;;  %v15239_v29 = vpop.f32.mrf.mxu0  ;;  %v2310_v33 = vld [vmem:[#allocation3 + $0xf0] sm:$0xff]  ;;  %v4262_v17 = vpack.c.bf16 %v4235_v55, %v4234_v49 }
 0x329   : > { %2199 = vst.msk [vmem:[#allocation3 + $0x100] sm:$0xff] %vm1172_vm2, %v2154_v59  ;;  %v2649_v31 = vadd.f32 %v17195_v51, %v2310_v33  ;;  %v1817_v29 = vld [vmem:[#allocation3 + $0x110] sm:$0xff] }
 0x32a   : > { %v2071_v21 = vpop.f32.mrf.mxu1  ;;  %v17544_v18 = vpop.f32.mrf.mxu0 }
 0x32b   : > { %v2155_v4 = vadd.f32 %v2071_v21, %v1816_v20  ;;  %2694 = vst.msk [vmem:[#allocation3 + $0xf0] sm:$0xff] %vm1172_vm2, %v2649_v31  ;;  %v2748_v31 = vld [vmem:[#allocation2 + $0x14c] sm:$0xff] }
 0x32c   : > { %v14962_v5 = vpop.f32.mrf.mxu1  ;;  %v15240_v27 = vpop.f32.mrf.mxu0  ;;  %v2311_v24 = vld [vmem:[#allocation3 + $0xf8] sm:$0xff]  ;;  %v4237_v21 = vld [vmem:[#allocation2 + $0x150] sm:$0xff] }
 0x32d   : > { %2200 = vst.msk [vmem:[#allocation3 + $0x108] sm:$0xff] %vm1172_vm2, %v2155_v4  ;;  %v2650_v59 = vadd.f32 %v17203_v0, %v2311_v24 }
 0x32e   : > { %v2076_v51 = vpop.f32.mrf.mxu1  ;;  %15156 = vmatmul.mubr.msk.bf16.gmra.mxu1 %vm1121_vm1, %v2772_v2  ;;  %v17550_v33 = vpop.f32.mrf.mxu0  ;;  %15434 = vmatmul.mubr.msk.bf16.gmra.mxu0 %vm1121_vm1, %v4262_v17  ;;  %v2747_v2 = vld [vmem:[#allocation2 + $0x144] sm:$0xff] }
 0x32f   : > { %v2156_v20 = vadd.f32 %v2076_v51, %v1817_v29  ;;  %15159 = vmatprep.mubr.msk.bf16.mxu1 %vm16401_vm0, %v20308_v40  ;;  %15437 = vmatprep.mubr.msk.bf16.mxu0 %vm16401_vm0, %v20308_v40  ;;  %2695 = vst.msk [vmem:[#allocation3 + $0xf8] sm:$0xff] %vm1172_vm2, %v2650_v59  ;;  %v4236_v17 = vld [vmem:[#allocation2 + $0x148] sm:$0xff]  ;;  %v2773_v29 = vpack.c.bf16 %v2748_v31, %v2747_v2  ;;  %v1820_v2 = vld [vmem:[#allocation3 + $0x128] sm:$0xff] }
 0x330   : > { %v14965_v6 = vpop.f32.mrf.mxu1  ;;  %v15243_v55 = vpop.f32.mrf.mxu0  ;;  %v2312_v0 = vld [vmem:[#allocation3 + $0x100] sm:$0xff]  ;;  %v4263_v51 = vpack.c.bf16 %v4237_v21, %v4236_v17 }
 0x331   : > { %2201 = vst.msk [vmem:[#allocation3 + $0x110] sm:$0xff] %vm1172_vm2, %v2156_v20  ;;  %v2651_v4 = vadd.f32 %v17207_v23, %v2312_v0  ;;  %v1819_v55 = vld [vmem:[#allocation3 + $0x120] sm:$0xff] }
 0x332   : > { %v2079_v49 = vpop.f32.mrf.mxu1  ;;  %v17560_v5 = vpop.f32.mrf.mxu0 }
 0x333   : > { %v2157_v27 = vadd.f32 %v2079_v49, %v1818_v43  ;;  %2696 = vst.msk [vmem:[#allocation3 + $0x100] sm:$0xff] %vm1172_vm2, %v2651_v4  ;;  %v2750_v4 = vld [vmem:[#allocation2 + $0x15c] sm:$0xff] }
 0x334   : > { %v14966_v24 = vpop.f32.mrf.mxu1  ;;  %v15244_v59 = vpop.f32.mrf.mxu0  ;;  %v2313_v6 = vld [vmem:[#allocation3 + $0x108] sm:$0xff]  ;;  %v4239_v49 = vld [vmem:[#allocation2 + $0x160] sm:$0xff] }
 0x335   : > { %2202 = vst.msk [vmem:[#allocation3 + $0x118] sm:$0xff] %vm1172_vm2, %v2157_v27  ;;  %v2652_v20 = vadd.f32 %v17215_v38, %v2313_v6 }
 0x336   : > { %v2084_v23 = vpop.f32.mrf.mxu1  ;;  %15160 = vmatmul.mubr.msk.bf16.gmra.mxu1 %vm1121_vm1, %v2773_v29  ;;  %v17566_v0 = vpop.f32.mrf.mxu0  ;;  %15438 = vmatmul.mubr.msk.bf16.gmra.mxu0 %vm1121_vm1, %v4263_v51  ;;  %v2749_v29 = vld [vmem:[#allocation2 + $0x154] sm:$0xff] }
 0x337   : > { %v2158_v43 = vadd.f32 %v2084_v23, %v1819_v55  ;;  %15163 = vmatprep.mubr.msk.bf16.mxu1 %vm16401_vm0, %v20308_v40  ;;  %15441 = vmatprep.mubr.msk.bf16.mxu0 %vm16401_vm0, %v20308_v40  ;;  %2697 = vst.msk [vmem:[#allocation3 + $0x108] sm:$0xff] %vm1172_vm2, %v2652_v20  ;;  %v4238_v51 = vld [vmem:[#allocation2 + $0x158] sm:$0xff]  ;;  %v2774_v55 = vpack.c.bf16 %v2750_v4, %v2749_v29  ;;  %v1822_v29 = vld [vmem:[#allocation3 + $0x138] sm:$0xff] }
 0x338   : > { %v14969_v31 = vpop.f32.mrf.mxu1  ;;  %v15247_v21 = vpop.f32.mrf.mxu0  ;;  %v2314_v38 = vld [vmem:[#allocation3 + $0x110] sm:$0xff]  ;;  %v4264_v23 = vpack.c.bf16 %v4239_v49, %v4238_v51 }
 0x339   : > { %2203 = vst.msk [vmem:[#allocation3 + $0x120] sm:$0xff] %vm1172_vm2, %v2158_v43  ;;  %v2653_v27 = vadd.f32 %v17219_v58, %v2314_v38  ;;  %v1821_v21 = vld [vmem:[#allocation3 + $0x130] sm:$0xff] }
 0x33a   : > { %v2087_v17 = vpop.f32.mrf.mxu1  ;;  %v17576_v24 = vpop.f32.mrf.mxu0 }
 0x33b   : > { %v2159_v59 = vadd.f32 %v2087_v17, %v1820_v2  ;;  %2698 = vst.msk [vmem:[#allocation3 + $0x110] sm:$0xff] %vm1172_vm2, %v2653_v27  ;;  %v2752_v27 = vld [vmem:[#allocation2 + $0x16c] sm:$0xff] }
 0x33c   : > { %v14970_v6 = vpop.f32.mrf.mxu1  ;;  %v15248_v20 = vpop.f32.mrf.mxu0  ;;  %v2315_v31 = vld [vmem:[#allocation3 + $0x118] sm:$0xff]  ;;  %v4241_v17 = vld [vmem:[#allocation2 + $0x170] sm:$0xff] }
 0x33d   : > { %2204 = vst.msk [vmem:[#allocation3 + $0x128] sm:$0xff] %vm1172_vm2, %v2159_v59  ;;  %v2654_v43 = vadd.f32 %v17227_v13, %v2315_v31 }
 0x33e   : > { %v2092_v58 = vpop.f32.mrf.mxu1  ;;  %15164 = vmatmul.mubr.msk.bf16.gmra.mxu1 %vm1121_vm1, %v2774_v55  ;;  %v17582_v38 = vpop.f32.mrf.mxu0  ;;  %15442 = vmatmul.mubr.msk.bf16.gmra.mxu0 %vm1121_vm1, %v4264_v23  ;;  %v2751_v55 = vld [vmem:[#allocation2 + $0x164] sm:$0xff] }
 0x33f   : > { %v2160_v2 = vadd.f32 %v2092_v58, %v1821_v21  ;;  %15167 = vmatprep.mubr.msk.bf16.mxu1 %vm16401_vm0, %v20308_v40  ;;  %15445 = vmatprep.mubr.msk.bf16.mxu0 %vm16401_vm0, %v20308_v40  ;;  %2699 = vst.msk [vmem:[#allocation3 + $0x118] sm:$0xff] %vm1172_vm2, %v2654_v43  ;;  %v4240_v23 = vld [vmem:[#allocation2 + $0x168] sm:$0xff]  ;;  %v2775_v21 = vpack.c.bf16 %v2752_v27, %v2751_v55 }
 0x340   : > { %v14973_v4 = vpop.f32.mrf.mxu1  ;;  %v15251_v49 = vpop.f32.mrf.mxu0  ;;  %v2316_v13 = vld [vmem:[#allocation3 + $0x120] sm:$0xff]  ;;  %v4265_v58 = vpack.c.bf16 %v4241_v17, %v4240_v23  ;;  %v1824_v23 = vld [vmem:[#allocation3 + $0x148] sm:$0xff] }
 0x341   : > { %2205 = vst.msk [vmem:[#allocation3 + $0x130] sm:$0xff] %vm1172_vm2, %v2160_v2  ;;  %v2655_v59 = vadd.f32 %v17231_v36, %v2316_v13  ;;  %v1823_v49 = vld [vmem:[#allocation3 + $0x140] sm:$0xff] }
 0x342   : > { %v2095_v51 = vpop.f32.mrf.mxu1  ;;  %v17592_v6 = vpop.f32.mrf.mxu0 }
 0x343   : > { %v2161_v20 = vadd.f32 %v2095_v51, %v1822_v29  ;;  %2700 = vst.msk [vmem:[#allocation3 + $0x120] sm:$0xff] %vm1172_vm2, %v2655_v59  ;;  %v2753_v59 = vld [vmem:[#allocation2 + $0x174] sm:$0x3f] }
 0x344   : > { %v14974_v31 = vpop.f32.mrf.mxu1  ;;  %v15252_v43 = vpop.f32.mrf.mxu0  ;;  %v2317_v4 = vld [vmem:[#allocation3 + $0x128] sm:$0xff] }
 0x345   : > { %2206 = vst.msk [vmem:[#allocation3 + $0x138] sm:$0xff] %vm1172_vm2, %v2161_v20  ;;  %v2656_v2 = vadd.f32 %v17239_v56, %v2317_v4  ;;  %v4242_v51 = vld [vmem:[#allocation2 + $0x178] sm:$0xff]  ;;  %v4243_v20 = vld [vmem:[#allocation2 + $0x180] sm:$0xff] }
 0x346   : > { %v2100_v36 = vpop.f32.mrf.mxu1  ;;  %15168 = vmatmul.mubr.msk.bf16.gmra.mxu1 %vm1121_vm1, %v2775_v21  ;;  %v17598_v13 = vpop.f32.mrf.mxu0  ;;  %15446 = vmatmul.mubr.msk.bf16.gmra.mxu0 %vm1121_vm1, %v4265_v58 }
 0x347   : > { %v2162_v29 = vadd.f32 %v2100_v36, %v1823_v49  ;;  %15171 = vmatprep.mubr.msk.bf16.mxu1 %vm16401_vm0, %v20308_v40  ;;  %15449 = vmatprep.mubr.msk.bf16.mxu0 %vm16401_vm0, %v20308_v40  ;;  %2701 = vst.msk [vmem:[#allocation3 + $0x128] sm:$0xff] %vm1172_vm2, %v2656_v2  ;;  %v2776_v2 = vpack.c.bf16 %v2753_v59, %v2753_v59 }
 0x348   : > { %v14977_v27 = vpop.f32.mrf.mxu1  ;;  %v15255_v17 = vpop.f32.mrf.mxu0  ;;  %v2318_v56 = vld [vmem:[#allocation3 + $0x130] sm:$0xff]  ;;  %v4266_v49 = vpack.c.bf16 %v4243_v20, %v4242_v51 }
 0x349   : > { %2207 = vst.msk [vmem:[#allocation3 + $0x140] sm:$0xff] %vm1172_vm2, %v2162_v29  ;;  %v2657_v55 = vadd.f32 %v17243_v19, %v2318_v56  ;;  %v1825_v27 = vld [vmem:[#allocation3 + $0x150] sm:$0xff] }
 0x34a   : > { %v2103_v31 = vpop.f32.mrf.mxu1  ;;  %v17608_v43 = vpop.f32.mrf.mxu0  ;;  %v3704_v20 = vld [vmem:[#allocation2 + $0x1e] sm:$0xff] }
 0x34b   : > { %v2163_v21 = vadd.f32 %v2103_v31, %v1824_v23  ;;  %2702 = vst.msk [vmem:[#allocation3 + $0x130] sm:$0xff] %vm1172_vm2, %v2657_v55  ;;  %v4244_v55 = vld [vmem:[#allocation2 + $0x188] sm:$0x3f] }
 0x34c   : > { %v14978_v58 = vpop.f32.mrf.mxu1  ;;  %v15256_v4 = vpop.f32.mrf.mxu0  ;;  %v2319_v36 = vld [vmem:[#allocation3 + $0x138] sm:$0xff] }
 0x34d   : > { %2208 = vst.msk [vmem:[#allocation3 + $0x148] sm:$0xff] %vm1172_vm2, %v2163_v21  ;;  %v2658_v29 = vadd.f32 %v17251_v41, %v2319_v36  ;;  %v1826_v31 = vld [vmem:[#allocation3 + $0x158] sm:$0xff] }
 0x34e   : > { %v2108_v17 = vpop.f32.mrf.mxu1  ;;  %15172 = vmatmul.mubr.msk.bf16.gmra.mxu1 %vm1121_vm1, %v2776_v2  ;;  %v17614_v19 = vpop.f32.mrf.mxu0  ;;  %15450 = vmatmul.mubr.msk.bf16.gmra.mxu0 %vm1121_vm1, %v4266_v49  ;;  %v3703_v2 = vld [vmem:[#allocation2 + $0x16] sm:$0xff] }
 0x34f   : > { %v2164_v56 = vadd.f32 %v2108_v17, %v1825_v27  ;;  %15271 = vmatprep.mubr.msk.bf16.mxu1 %vm16401_vm0, %v20308_v40  ;;  %15453 = vmatprep.mubr.msk.bf16.mxu0 %vm16401_vm0, %v20308_v40  ;;  %2703 = vst.msk [vmem:[#allocation3 + $0x138] sm:$0xff] %vm1172_vm2, %v2658_v29  ;;  %v15795_v49 = vld [vmem:[%s20319_s3 + $0x38] sm:$0xff]   ;;  %v3748_v27 = vpack.c.bf16 %v3704_v20, %v3703_v2 }
 0x350   : > { %v14981_v59 = vpop.f32.mrf.mxu1  ;;  %v15259_v51 = vpop.f32.mrf.mxu0  ;;  %v2320_v41 = vld [vmem:[#allocation3 + $0x140] sm:$0xff]  ;;  %v4267_v17 = vpack.c.bf16 %v4244_v55, %v4244_v55 }
 0x351   : > { %2209 = vst.msk [vmem:[#allocation3 + $0x150] sm:$0xff] %vm1172_vm2, %v2164_v56  ;;  %v2659_v23 = vadd.f32 %v17255_v63, %v2320_v41  ;;  %v1827_v59 = vld [vmem:[#allocation3 + $0x160] sm:$0x3f] }
 0x352   : > { %v2111_v21 = vpop.f32.mrf.mxu1  ;;  %v17624_v58 = vpop.f32.mrf.mxu0 }
 0x353   : > { %v2165_v4 = vadd.f32 %v2111_v21, %v1826_v31  ;;  %2704 = vst.msk [vmem:[#allocation3 + $0x140] sm:$0xff] %vm1172_vm2, %v2659_v23  ;;  %v3706_v23 = vld [vmem:[#allocation2 + $0x2e] sm:$0xff] }
 0x354   : > { %v14982_v36 = vpop.f32.mrf.mxu1  ;;  %v15260_v29 = vpop.f32.mrf.mxu0  ;;  %v2321_v56 = vld [vmem:[#allocation3 + $0x148] sm:$0xff] }
 0x355   : > { %2210 = vst.msk [vmem:[#allocation3 + $0x158] sm:$0xff] %vm1172_vm2, %v2165_v4  ;;  %v2660_v63 = vadd.f32 %v17263_v25, %v2321_v56  ;;  %v5195_v21 = vld [vmem:[#allocation2 + $0x32] sm:$0xff]  ;;  %v5194_v29 = vld [vmem:[#allocation2 + $0x2a] sm:$0xff] }
 0x356   : > { %v2116_v51 = vpop.f32.mrf.mxu1  ;;  %v17632_v41 = vpop.f32.mrf.mxu0  ;;  %15272 = vmatmul.mubr.msk.bf16.vlgmr.msra.gmra.mxu1 %vm1121_vm1, %v3748_v27  ;;  %15454 = vmatmul.mubr.msk.bf16.gmra.mxu0 %vm1121_vm1, %v4267_v17 }
 0x357   : > { %v2166_v31 = vadd.f32 %v2116_v51, %v1827_v59  ;;  %15458 = vmatpush3.bf16.msra.mxu1 %v15795_v49  ;;  %15275 = vmatprep.mubr.msk.bf16.mxu1 %vm16401_vm0, %v20308_v40  ;;  %2705 = vst.msk [vmem:[#allocation3 + $0x148] sm:$0xff] %vm1172_vm2, %v2660_v63  ;;  %v3705_v49 = vld [vmem:[#allocation2 + $0x26] sm:$0xff]  ;;  %v5239_v63 = vpack.c.bf16 %v5195_v21, %v5194_v29 }
 0x358   : > { %v14985_v20 = vpop.f32.mrf.mxu1  ;;  %v15263_v55 = vpop.f32.mrf.mxu0  ;;  %15553 = vmatprep.mubr.msk.bf16.mxu0 %vm16401_vm0, %v20308_v40  ;;  %v2322_v25 = vld [vmem:[#allocation3 + $0x150] sm:$0xff]  ;;  %v3749_v56 = vpack.c.bf16 %v3706_v23, %v3705_v49  ;;  %v2778_v49 = vld [vmem:[#allocation3 + $0x8] sm:$0xff] }
 0x359   : > { %2211 = vst.msk [vmem:[#allocation3 + $0x160] sm:$0x3f] %vm1217_vm3, %v2166_v31  ;;  %v2661_v4 = vadd.f32 %v17269_v52, %v2322_v25  ;;  %v2777_v20 = vld [vmem:[#allocation3] sm:$0xff] }
 0x35a   : > { %v2119_v2 = vpop.f32.mrf.mxu1  ;;  %v17643_v36 = vpop.f32.mrf.mxu0 }
 0x35b   : > { %2706 = vst.msk [vmem:[#allocation3 + $0x150] sm:$0xff] %vm1172_vm2, %v2661_v4  ;;  %v3708_v4 = vld [vmem:[#allocation2 + $0x3e] sm:$0xff] }
 0x35c   : > { %v14986_v27 = vpop.f32.mrf.mxu1  ;;  %v15264_v17 = vpop.f32.mrf.mxu0  ;;  %v2323_v59 = vld [vmem:[#allocation3 + $0x158] sm:$0xff] }
 0x35d   : > { %v2662_v51 = vadd.f32 %v17279_v11, %v2323_v59  ;;  %v5197_v2 = vld [vmem:[#allocation2 + $0x42] sm:$0xff] }
 0x35e   : > { %v2934_v31 = vpop.f32.mrf.mxu1  ;;  %v17647_v55 = vpop.f32.mrf.mxu0  ;;  %15276 = vmatmul.mubr.msk.bf16.gmra.mxu1 %vm1121_vm1, %v3749_v56  ;;  %15554 = vmatmul.mubr.msk.bf16.vlgmr.msra.gmra.mxu0 %vm1121_vm1, %v5239_v63  ;;  %v3707_v56 = vld [vmem:[#allocation2 + $0x36] sm:$0xff] }
 0x35f   : > { %v3116_v52 = vadd.f32 %v2934_v31, %v2777_v20  ;;  %15279 = vmatprep.mubr.msk.bf16.mxu1 %vm16401_vm0, %v20308_v40  ;;  %15557 = vmatprep.mubr.msk.bf16.mxu0 %vm16401_vm0, %v20308_v40  ;;  %2707 = vst.msk [vmem:[#allocation3 + $0x158] sm:$0xff] %vm1172_vm2, %v2662_v51  ;;  %v5196_v63 = vld [vmem:[#allocation2 + $0x3a] sm:$0xff]  ;;  %v3750_v51 = vpack.c.bf16 %v3708_v4, %v3707_v56 }
 0x360   : > { %v2324_v25 = vld [vmem:[#allocation3 + $0x160] sm:$0x3f]  ;;  %v15085_v23 = vpop.f32.mrf.mxu1  ;;  %v15267_v11 = vpop.f32.mrf.mxu0  ;;  %v5240_v31 = vpack.c.bf16 %v5197_v2, %v5196_v63 }
 0x361   : > { %v2663_v21 = vadd.f32 %v17281_v44, %v2324_v25  ;;  %3161 = vst.msk [vmem:[#allocation3] sm:$0xff] %vm1172_vm2, %v3116_v52  ;;  %v2779_v23 = vld [vmem:[#allocation3 + $0x10] sm:$0xff]  ;;  %v3710_v2 = vld [vmem:[#allocation2 + $0x4e] sm:$0xff] }
 0x362   : > { %v2937_v29 = vpop.f32.mrf.mxu1  ;;  %v3610_v27 = vpop.f32.mrf.mxu0 }
 0x363   : > { %2708 = vst.msk [vmem:[#allocation3 + $0x160] sm:$0x3f] %vm1217_vm3, %v2663_v21  ;;  %v3117_v17 = vadd.f32 %v2937_v29, %v2778_v49  ;;  %v5199_v49 = vld [vmem:[#allocation2 + $0x52] sm:$0xff]  ;;  %v2780_v27 = vld [vmem:[#allocation3 + $0x18] sm:$0xff] }
 0x364   : > { %v15086_v59 = vpop.f32.mrf.mxu1  ;;  %v15268_v20 = vpop.f32.mrf.mxu0 }
 0x365   : > { %3162 = vst.msk [vmem:[#allocation3 + $0x8] sm:$0xff] %vm1172_vm2, %v3117_v17  ;;  %v3709_v59 = vld [vmem:[#allocation2 + $0x46] sm:$0xff] }
 0x366   : > { %v2942_v44 = vpop.f32.mrf.mxu1  ;;  %15280 = vmatmul.mubr.msk.bf16.gmra.mxu1 %vm1121_vm1, %v3750_v51  ;;  %v17661_v52 = vpop.f32.mrf.mxu0  ;;  %15558 = vmatmul.mubr.msk.bf16.gmra.mxu0 %vm1121_vm1, %v5240_v31  ;;  %v5198_v20 = vld [vmem:[#allocation2 + $0x4a] sm:$0xff] }
 0x367   : > { %v3118_v25 = vadd.f32 %v2942_v44, %v2779_v23  ;;  %15283 = vmatprep.mubr.msk.bf16.mxu1 %vm16401_vm0, %v20308_v40  ;;  %15561 = vmatprep.mubr.msk.bf16.mxu0 %vm16401_vm0, %v20308_v40  ;;  %v3751_v23 = vpack.c.bf16 %v3710_v2, %v3709_v59  ;;  %v5241_v44 = vpack.c.bf16 %v5199_v49, %v5198_v20  ;;  %v2782_v59 = vld [vmem:[#allocation3 + $0x28] sm:$0xff] }
 0x368   : > { %v15089_v11 = vpop.f32.mrf.mxu1  ;;  %v15367_v21 = vpop.f32.mrf.mxu0  ;;  %v3274_v4 = vld [vmem:[#allocation3] sm:$0xff] }
 0x369   : > { %3163 = vst.msk [vmem:[#allocation3 + $0x10] sm:$0xff] %vm1172_vm2, %v3118_v25  ;;  %v3613_v29 = vadd.f32 %v17292_v46, %v3274_v4  ;;  %v2781_v21 = vld [vmem:[#allocation3 + $0x20] sm:$0xff] }
 0x36a   : > { %v2945_v17 = vpop.f32.mrf.mxu1  ;;  %v17670_v56 = vpop.f32.mrf.mxu0 }
 0x36b   : > { %v3119_v63 = vadd.f32 %v2945_v17, %v2780_v27  ;;  %3658 = vst.msk [vmem:[#allocation3] sm:$0xff] %vm1172_vm2, %v3613_v29  ;;  %v3712_v29 = vld [vmem:[#allocation2 + $0x5e] sm:$0xff] }
 0x36c   : > { %v15090_v51 = vpop.f32.mrf.mxu1  ;;  %v15368_v31 = vpop.f32.mrf.mxu0  ;;  %v3275_v11 = vld [vmem:[#allocation3 + $0x8] sm:$0xff]  ;;  %v5201_v17 = vld [vmem:[#allocation2 + $0x62] sm:$0xff] }
 0x36d   : > { %3164 = vst.msk [vmem:[#allocation3 + $0x18] sm:$0xff] %vm1172_vm2, %v3119_v63  ;;  %v3614_v25 = vadd.f32 %v17301_v16, %v3275_v11 }
 0x36e   : > { %v2950_v46 = vpop.f32.mrf.mxu1  ;;  %15284 = vmatmul.mubr.msk.bf16.gmra.mxu1 %vm1121_vm1, %v3751_v23  ;;  %v17676_v4 = vpop.f32.mrf.mxu0  ;;  %15562 = vmatmul.mubr.msk.bf16.gmra.mxu0 %vm1121_vm1, %v5241_v44  ;;  %v3711_v23 = vld [vmem:[#allocation2 + $0x56] sm:$0xff] }
 0x36f   : > { %v3120_v27 = vadd.f32 %v2950_v46, %v2781_v21  ;;  %15287 = vmatprep.mubr.msk.bf16.mxu1 %vm16401_vm0, %v20308_v40  ;;  %15565 = vmatprep.mubr.msk.bf16.mxu0 %vm16401_vm0, %v20308_v40  ;;  %3659 = vst.msk [vmem:[#allocation3 + $0x8] sm:$0xff] %vm1172_vm2, %v3614_v25  ;;  %v5200_v44 = vld [vmem:[#allocation2 + $0x5a] sm:$0xff]  ;;  %v3752_v21 = vpack.c.bf16 %v3712_v29, %v3711_v23  ;;  %v2784_v23 = vld [vmem:[#allocation3 + $0x38] sm:$0xff] }
 0x370   : > { %v15093_v2 = vpop.f32.mrf.mxu1  ;;  %v15371_v49 = vpop.f32.mrf.mxu0  ;;  %v3276_v16 = vld [vmem:[#allocation3 + $0x10] sm:$0xff]  ;;  %v5242_v46 = vpack.c.bf16 %v5201_v17, %v5200_v44 }
 0x371   : > { %3165 = vst.msk [vmem:[#allocation3 + $0x20] sm:$0xff] %vm1172_vm2, %v3120_v27  ;;  %v3615_v63 = vadd.f32 %v17307_v57, %v3276_v16  ;;  %v2783_v49 = vld [vmem:[#allocation3 + $0x30] sm:$0xff] }
 0x372   : > { %v2953_v20 = vpop.f32.mrf.mxu1  ;;  %v17686_v51 = vpop.f32.mrf.mxu0 }
 0x373   : > { %v3121_v31 = vadd.f32 %v2953_v20, %v2782_v59  ;;  %3660 = vst.msk [vmem:[#allocation3 + $0x10] sm:$0xff] %vm1172_vm2, %v3615_v63  ;;  %v3714_v63 = vld [vmem:[#allocation2 + $0x6e] sm:$0xff] }
 0x374   : > { %v15094_v11 = vpop.f32.mrf.mxu1  ;;  %v15372_v25 = vpop.f32.mrf.mxu0  ;;  %v3277_v2 = vld [vmem:[#allocation3 + $0x18] sm:$0xff]  ;;  %v5203_v20 = vld [vmem:[#allocation2 + $0x72] sm:$0xff] }
 0x375   : > { %3166 = vst.msk [vmem:[#allocation3 + $0x28] sm:$0xff] %vm1172_vm2, %v3121_v31  ;;  %v3616_v27 = vadd.f32 %v17317_v1, %v3277_v2 }
 0x376   : > { %v2958_v57 = vpop.f32.mrf.mxu1  ;;  %15288 = vmatmul.mubr.msk.bf16.gmra.mxu1 %vm1121_vm1, %v3752_v21  ;;  %v17692_v16 = vpop.f32.mrf.mxu0  ;;  %15566 = vmatmul.mubr.msk.bf16.gmra.mxu0 %vm1121_vm1, %v5242_v46  ;;  %v3713_v21 = vld [vmem:[#allocation2 + $0x66] sm:$0xff] }
 0x377   : > { %v3122_v59 = vadd.f32 %v2958_v57, %v2783_v49  ;;  %15291 = vmatprep.mubr.msk.bf16.mxu1 %vm16401_vm0, %v20308_v40  ;;  %15569 = vmatprep.mubr.msk.bf16.mxu0 %vm16401_vm0, %v20308_v40  ;;  %3661 = vst.msk [vmem:[#allocation3 + $0x18] sm:$0xff] %vm1172_vm2, %v3616_v27  ;;  %v5202_v46 = vld [vmem:[#allocation2 + $0x6a] sm:$0xff]  ;;  %v3753_v49 = vpack.c.bf16 %v3714_v63, %v3713_v21  ;;  %v2786_v21 = vld [vmem:[#allocation3 + $0x48] sm:$0xff] }
 0x378   : > { %v15097_v29 = vpop.f32.mrf.mxu1  ;;  %v15375_v17 = vpop.f32.mrf.mxu0  ;;  %v3278_v1 = vld [vmem:[#allocation3 + $0x20] sm:$0xff]  ;;  %v5243_v57 = vpack.c.bf16 %v5203_v20, %v5202_v46 }
 0x379   : > { %3167 = vst.msk [vmem:[#allocation3 + $0x30] sm:$0xff] %vm1172_vm2, %v3122_v59  ;;  %v3617_v31 = vadd.f32 %v17323_v14, %v3278_v1  ;;  %v2785_v17 = vld [vmem:[#allocation3 + $0x40] sm:$0xff] }
 0x37a   : > { %v2961_v44 = vpop.f32.mrf.mxu1  ;;  %v17702_v11 = vpop.f32.mrf.mxu0 }
 0x37b   : > { %v3123_v25 = vadd.f32 %v2961_v44, %v2784_v23  ;;  %3662 = vst.msk [vmem:[#allocation3 + $0x20] sm:$0xff] %vm1172_vm2, %v3617_v31  ;;  %v3716_v31 = vld [vmem:[#allocation2 + $0x7e] sm:$0xff] }
 0x37c   : > { %v15098_v2 = vpop.f32.mrf.mxu1  ;;  %v15376_v27 = vpop.f32.mrf.mxu0  ;;  %v3279_v29 = vld [vmem:[#allocation3 + $0x28] sm:$0xff]  ;;  %v5205_v44 = vld [vmem:[#allocation2 + $0x82] sm:$0xff] }
 0x37d   : > { %3168 = vst.msk [vmem:[#allocation3 + $0x38] sm:$0xff] %vm1172_vm2, %v3123_v25  ;;  %v3618_v59 = vadd.f32 %v17333_v48, %v3279_v29 }
 0x37e   : > { %v2966_v14 = vpop.f32.mrf.mxu1  ;;  %15292 = vmatmul.mubr.msk.bf16.gmra.mxu1 %vm1121_vm1, %v3753_v49  ;;  %v17708_v1 = vpop.f32.mrf.mxu0  ;;  %15570 = vmatmul.mubr.msk.bf16.gmra.mxu0 %vm1121_vm1, %v5243_v57  ;;  %v3715_v49 = vld [vmem:[#allocation2 + $0x76] sm:$0xff] }
 0x37f   : > { %v3124_v23 = vadd.f32 %v2966_v14, %v2785_v17  ;;  %15295 = vmatprep.mubr.msk.bf16.mxu1 %vm16401_vm0, %v20308_v40  ;;  %15573 = vmatprep.mubr.msk.bf16.mxu0 %vm16401_vm0, %v20308_v40  ;;  %3663 = vst.msk [vmem:[#allocation3 + $0x28] sm:$0xff] %vm1172_vm2, %v3618_v59  ;;  %v5204_v57 = vld [vmem:[#allocation2 + $0x7a] sm:$0xff]  ;;  %v3754_v17 = vpack.c.bf16 %v3716_v31, %v3715_v49  ;;  %v2788_v49 = vld [vmem:[#allocation3 + $0x58] sm:$0xff] }
 0x380   : > { %v15101_v63 = vpop.f32.mrf.mxu1  ;;  %v15379_v20 = vpop.f32.mrf.mxu0  ;;  %v3280_v48 = vld [vmem:[#allocation3 + $0x30] sm:$0xff]  ;;  %v5244_v14 = vpack.c.bf16 %v5205_v44, %v5204_v57 }
 0x381   : > { %3169 = vst.msk [vmem:[#allocation3 + $0x40] sm:$0xff] %vm1172_vm2, %v3124_v23  ;;  %v3619_v25 = vadd.f32 %v17339_v32, %v3280_v48  ;;  %v2787_v20 = vld [vmem:[#allocation3 + $0x50] sm:$0xff] }
 0x382   : > { %v2969_v46 = vpop.f32.mrf.mxu1  ;;  %v17718_v2 = vpop.f32.mrf.mxu0 }
 0x383   : > { %v3125_v27 = vadd.f32 %v2969_v46, %v2786_v21  ;;  %3664 = vst.msk [vmem:[#allocation3 + $0x30] sm:$0xff] %vm1172_vm2, %v3619_v25  ;;  %v3718_v25 = vld [vmem:[#allocation2 + $0x8e] sm:$0xff] }
 0x384   : > { %v15102_v29 = vpop.f32.mrf.mxu1  ;;  %v15380_v59 = vpop.f32.mrf.mxu0  ;;  %v3281_v63 = vld [vmem:[#allocation3 + $0x38] sm:$0xff]  ;;  %v5207_v46 = vld [vmem:[#allocation2 + $0x92] sm:$0xff] }
 0x385   : > { %3170 = vst.msk [vmem:[#allocation3 + $0x48] sm:$0xff] %vm1172_vm2, %v3125_v27  ;;  %v3620_v23 = vadd.f32 %v17349_v61, %v3281_v63 }
 0x386   : > { %v2974_v32 = vpop.f32.mrf.mxu1  ;;  %15296 = vmatmul.mubr.msk.bf16.gmra.mxu1 %vm1121_vm1, %v3754_v17  ;;  %v17724_v48 = vpop.f32.mrf.mxu0  ;;  %15574 = vmatmul.mubr.msk.bf16.gmra.mxu0 %vm1121_vm1, %v5244_v14  ;;  %v3717_v17 = vld [vmem:[#allocation2 + $0x86] sm:$0xff] }
 0x387   : > { %v3126_v21 = vadd.f32 %v2974_v32, %v2787_v20  ;;  %15299 = vmatprep.mubr.msk.bf16.mxu1 %vm16401_vm0, %v20308_v40  ;;  %15577 = vmatprep.mubr.msk.bf16.mxu0 %vm16401_vm0, %v20308_v40  ;;  %3665 = vst.msk [vmem:[#allocation3 + $0x38] sm:$0xff] %vm1172_vm2, %v3620_v23  ;;  %v5206_v14 = vld [vmem:[#allocation2 + $0x8a] sm:$0xff]  ;;  %v3755_v20 = vpack.c.bf16 %v3718_v25, %v3717_v17  ;;  %v2790_v17 = vld [vmem:[#allocation3 + $0x68] sm:$0xff] }
 0x388   : > { %v15105_v31 = vpop.f32.mrf.mxu1  ;;  %v15383_v44 = vpop.f32.mrf.mxu0  ;;  %v3282_v61 = vld [vmem:[#allocation3 + $0x40] sm:$0xff]  ;;  %v5245_v32 = vpack.c.bf16 %v5207_v46, %v5206_v14 }
 0x389   : > { %3171 = vst.msk [vmem:[#allocation3 + $0x50] sm:$0xff] %vm1172_vm2, %v3126_v21  ;;  %v3621_v27 = vadd.f32 %v17355_v50, %v3282_v61  ;;  %v2789_v44 = vld [vmem:[#allocation3 + $0x60] sm:$0xff] }
 0x38a   : > { %v2977_v57 = vpop.f32.mrf.mxu1  ;;  %v17734_v29 = vpop.f32.mrf.mxu0 }
 0x38b   : > { %v3127_v59 = vadd.f32 %v2977_v57, %v2788_v49  ;;  %3666 = vst.msk [vmem:[#allocation3 + $0x40] sm:$0xff] %vm1172_vm2, %v3621_v27  ;;  %v3720_v27 = vld [vmem:[#allocation2 + $0x9e] sm:$0xff] }
 0x38c   : > { %v15106_v63 = vpop.f32.mrf.mxu1  ;;  %v15384_v23 = vpop.f32.mrf.mxu0  ;;  %v3283_v31 = vld [vmem:[#allocation3 + $0x48] sm:$0xff]  ;;  %v5209_v57 = vld [vmem:[#allocation2 + $0xa2] sm:$0xff] }
 0x38d   : > { %3172 = vst.msk [vmem:[#allocation3 + $0x58] sm:$0xff] %vm1172_vm2, %v3127_v59  ;;  %v3622_v21 = vadd.f32 %v17365_v9, %v3283_v31 }
 0x38e   : > { %v2982_v50 = vpop.f32.mrf.mxu1  ;;  %15300 = vmatmul.mubr.msk.bf16.gmra.mxu1 %vm1121_vm1, %v3755_v20  ;;  %v17740_v61 = vpop.f32.mrf.mxu0  ;;  %15578 = vmatmul.mubr.msk.bf16.gmra.mxu0 %vm1121_vm1, %v5245_v32  ;;  %v3719_v20 = vld [vmem:[#allocation2 + $0x96] sm:$0xff] }
 0x38f   : > { %v3128_v49 = vadd.f32 %v2982_v50, %v2789_v44  ;;  %15303 = vmatprep.mubr.msk.bf16.mxu1 %vm16401_vm0, %v20308_v40  ;;  %15581 = vmatprep.mubr.msk.bf16.mxu0 %vm16401_vm0, %v20308_v40  ;;  %3667 = vst.msk [vmem:[#allocation3 + $0x48] sm:$0xff] %vm1172_vm2, %v3622_v21  ;;  %v5208_v32 = vld [vmem:[#allocation2 + $0x9a] sm:$0xff]  ;;  %v3756_v44 = vpack.c.bf16 %v3720_v27, %v3719_v20  ;;  %v2792_v20 = vld [vmem:[#allocation3 + $0x78] sm:$0xff] }
 0x390   : > { %v15109_v25 = vpop.f32.mrf.mxu1  ;;  %v15387_v46 = vpop.f32.mrf.mxu0  ;;  %v3284_v9 = vld [vmem:[#allocation3 + $0x50] sm:$0xff]  ;;  %v5246_v50 = vpack.c.bf16 %v5209_v57, %v5208_v32 }
 0x391   : > { %3173 = vst.msk [vmem:[#allocation3 + $0x60] sm:$0xff] %vm1172_vm2, %v3128_v49  ;;  %v3623_v59 = vadd.f32 %v17371_v7, %v3284_v9  ;;  %v2791_v46 = vld [vmem:[#allocation3 + $0x70] sm:$0xff] }
 0x392   : > { %v2985_v14 = vpop.f32.mrf.mxu1  ;;  %v17750_v63 = vpop.f32.mrf.mxu0 }
 0x393   : > { %v3129_v23 = vadd.f32 %v2985_v14, %v2790_v17  ;;  %3668 = vst.msk [vmem:[#allocation3 + $0x50] sm:$0xff] %vm1172_vm2, %v3623_v59  ;;  %v3722_v59 = vld [vmem:[#allocation2 + $0xae] sm:$0xff] }
 0x394   : > { %v15110_v31 = vpop.f32.mrf.mxu1  ;;  %v15388_v21 = vpop.f32.mrf.mxu0  ;;  %v3285_v25 = vld [vmem:[#allocation3 + $0x58] sm:$0xff]  ;;  %v5211_v14 = vld [vmem:[#allocation2 + $0xb2] sm:$0xff] }
 0x395   : > { %3174 = vst.msk [vmem:[#allocation3 + $0x68] sm:$0xff] %vm1172_vm2, %v3129_v23  ;;  %v3624_v49 = vadd.f32 %v17381_v22, %v3285_v25 }
 0x396   : > { %v2990_v7 = vpop.f32.mrf.mxu1  ;;  %15304 = vmatmul.mubr.msk.bf16.gmra.mxu1 %vm1121_vm1, %v3756_v44  ;;  %v17756_v9 = vpop.f32.mrf.mxu0  ;;  %15582 = vmatmul.mubr.msk.bf16.gmra.mxu0 %vm1121_vm1, %v5246_v50  ;;  %v3721_v44 = vld [vmem:[#allocation2 + $0xa6] sm:$0xff] }
 0x397   : > { %v3130_v17 = vadd.f32 %v2990_v7, %v2791_v46  ;;  %15307 = vmatprep.mubr.msk.bf16.mxu1 %vm16401_vm0, %v20308_v40  ;;  %15585 = vmatprep.mubr.msk.bf16.mxu0 %vm16401_vm0, %v20308_v40  ;;  %3669 = vst.msk [vmem:[#allocation3 + $0x58] sm:$0xff] %vm1172_vm2, %v3624_v49  ;;  %v5210_v50 = vld [vmem:[#allocation2 + $0xaa] sm:$0xff]  ;;  %v3757_v46 = vpack.c.bf16 %v3722_v59, %v3721_v44  ;;  %v2794_v44 = vld [vmem:[#allocation3 + $0x88] sm:$0xff] }
 0x398   : > { %v15113_v27 = vpop.f32.mrf.mxu1  ;;  %v15391_v57 = vpop.f32.mrf.mxu0  ;;  %v3286_v22 = vld [vmem:[#allocation3 + $0x60] sm:$0xff]  ;;  %v5247_v7 = vpack.c.bf16 %v5211_v14, %v5210_v50 }
 0x399   : > { %3175 = vst.msk [vmem:[#allocation3 + $0x70] sm:$0xff] %vm1172_vm2, %v3130_v17  ;;  %v3625_v23 = vadd.f32 %v17390_v12, %v3286_v22  ;;  %v2793_v57 = vld [vmem:[#allocation3 + $0x80] sm:$0xff] }
 0x39a   : > { %v2993_v32 = vpop.f32.mrf.mxu1  ;;  %v17766_v31 = vpop.f32.mrf.mxu0 }
 0x39b   : > { %v3131_v21 = vadd.f32 %v2993_v32, %v2792_v20  ;;  %3670 = vst.msk [vmem:[#allocation3 + $0x60] sm:$0xff] %vm1172_vm2, %v3625_v23  ;;  %v3724_v23 = vld [vmem:[#allocation2 + $0xbe] sm:$0xff] }
 0x39c   : > { %v15114_v25 = vpop.f32.mrf.mxu1  ;;  %v15392_v49 = vpop.f32.mrf.mxu0  ;;  %v3287_v27 = vld [vmem:[#allocation3 + $0x68] sm:$0xff]  ;;  %v5213_v32 = vld [vmem:[#allocation2 + $0xc2] sm:$0xff] }
 0x39d   : > { %3176 = vst.msk [vmem:[#allocation3 + $0x78] sm:$0xff] %vm1172_vm2, %v3131_v21  ;;  %v3626_v17 = vadd.f32 %v17400_v45, %v3287_v27 }
 0x39e   : > { %v2998_v12 = vpop.f32.mrf.mxu1  ;;  %15308 = vmatmul.mubr.msk.bf16.gmra.mxu1 %vm1121_vm1, %v3757_v46  ;;  %v17772_v22 = vpop.f32.mrf.mxu0  ;;  %15586 = vmatmul.mubr.msk.bf16.gmra.mxu0 %vm1121_vm1, %v5247_v7  ;;  %v3723_v46 = vld [vmem:[#allocation2 + $0xb6] sm:$0xff] }
 0x39f   : > { %v3132_v20 = vadd.f32 %v2998_v12, %v2793_v57  ;;  %15311 = vmatprep.mubr.msk.bf16.mxu1 %vm16401_vm0, %v20308_v40  ;;  %15589 = vmatprep.mubr.msk.bf16.mxu0 %vm16401_vm0, %v20308_v40  ;;  %3671 = vst.msk [vmem:[#allocation3 + $0x68] sm:$0xff] %vm1172_vm2, %v3626_v17  ;;  %v5212_v7 = vld [vmem:[#allocation2 + $0xba] sm:$0xff]  ;;  %v3758_v57 = vpack.c.bf16 %v3724_v23, %v3723_v46  ;;  %v2796_v46 = vld [vmem:[#allocation3 + $0x98] sm:$0xff] }
 0x3a0   : > { %v15117_v59 = vpop.f32.mrf.mxu1  ;;  %v15395_v14 = vpop.f32.mrf.mxu0  ;;  %v3288_v45 = vld [vmem:[#allocation3 + $0x70] sm:$0xff]  ;;  %v5248_v12 = vpack.c.bf16 %v5213_v32, %v5212_v7 }
 0x3a1   : > { %3177 = vst.msk [vmem:[#allocation3 + $0x80] sm:$0xff] %vm1172_vm2, %v3132_v20  ;;  %v3627_v21 = vadd.f32 %v17406_v47, %v3288_v45  ;;  %v2795_v14 = vld [vmem:[#allocation3 + $0x90] sm:$0xff] }
 0x3a2   : > { %v3001_v50 = vpop.f32.mrf.mxu1  ;;  %v17782_v25 = vpop.f32.mrf.mxu0 }
 0x3a3   : > { %v3133_v49 = vadd.f32 %v3001_v50, %v2794_v44  ;;  %3672 = vst.msk [vmem:[#allocation3 + $0x70] sm:$0xff] %vm1172_vm2, %v3627_v21  ;;  %v3726_v21 = vld [vmem:[#allocation2 + $0xce] sm:$0xff] }
 0x3a4   : > { %v15118_v27 = vpop.f32.mrf.mxu1  ;;  %v15396_v17 = vpop.f32.mrf.mxu0  ;;  %v3289_v59 = vld [vmem:[#allocation3 + $0x78] sm:$0xff]  ;;  %v5215_v50 = vld [vmem:[#allocation2 + $0xd2] sm:$0xff] }
 0x3a5   : > { %3178 = vst.msk [vmem:[#allocation3 + $0x88] sm:$0xff] %vm1172_vm2, %v3133_v49  ;;  %v3628_v20 = vadd.f32 %v17416_v54, %v3289_v59 }
 0x3a6   : > { %v3006_v47 = vpop.f32.mrf.mxu1  ;;  %15312 = vmatmul.mubr.msk.bf16.gmra.mxu1 %vm1121_vm1, %v3758_v57  ;;  %v17788_v45 = vpop.f32.mrf.mxu0  ;;  %15590 = vmatmul.mubr.msk.bf16.gmra.mxu0 %vm1121_vm1, %v5248_v12  ;;  %v3725_v57 = vld [vmem:[#allocation2 + $0xc6] sm:$0xff] }
 0x3a7   : > { %v3134_v44 = vadd.f32 %v3006_v47, %v2795_v14  ;;  %15315 = vmatprep.mubr.msk.bf16.mxu1 %vm16401_vm0, %v20308_v40  ;;  %15593 = vmatprep.mubr.msk.bf16.mxu0 %vm16401_vm0, %v20308_v40  ;;  %3673 = vst.msk [vmem:[#allocation3 + $0x78] sm:$0xff] %vm1172_vm2, %v3628_v20  ;;  %v5214_v12 = vld [vmem:[#allocation2 + $0xca] sm:$0xff]  ;;  %v3759_v14 = vpack.c.bf16 %v3726_v21, %v3725_v57  ;;  %v2798_v57 = vld [vmem:[#allocation3 + $0xa8] sm:$0xff] }
 0x3a8   : > { %v15121_v23 = vpop.f32.mrf.mxu1  ;;  %v15399_v32 = vpop.f32.mrf.mxu0  ;;  %v3290_v54 = vld [vmem:[#allocation3 + $0x80] sm:$0xff]  ;;  %v5249_v47 = vpack.c.bf16 %v5215_v50, %v5214_v12 }
 0x3a9   : > { %3179 = vst.msk [vmem:[#allocation3 + $0x90] sm:$0xff] %vm1172_vm2, %v3134_v44  ;;  %v3629_v49 = vadd.f32 %v17422_v8, %v3290_v54  ;;  %v2797_v32 = vld [vmem:[#allocation3 + $0xa0] sm:$0xff] }
 0x3aa   : > { %v3009_v7 = vpop.f32.mrf.mxu1  ;;  %v17798_v27 = vpop.f32.mrf.mxu0 }
 0x3ab   : > { %v3135_v17 = vadd.f32 %v3009_v7, %v2796_v46  ;;  %3674 = vst.msk [vmem:[#allocation3 + $0x80] sm:$0xff] %vm1172_vm2, %v3629_v49  ;;  %v3728_v49 = vld [vmem:[#allocation2 + $0xde] sm:$0xff] }
 0x3ac   : > { %v15122_v59 = vpop.f32.mrf.mxu1  ;;  %v15400_v20 = vpop.f32.mrf.mxu0  ;;  %v3291_v23 = vld [vmem:[#allocation3 + $0x88] sm:$0xff]  ;;  %v5217_v7 = vld [vmem:[#allocation2 + $0xe2] sm:$0xff] }
 0x3ad   : > { %3180 = vst.msk [vmem:[#allocation3 + $0x98] sm:$0xff] %vm1172_vm2, %v3135_v17  ;;  %v3630_v44 = vadd.f32 %v17432_v10, %v3291_v23 }
 0x3ae   : > { %v3014_v8 = vpop.f32.mrf.mxu1  ;;  %15316 = vmatmul.mubr.msk.bf16.gmra.mxu1 %vm1121_vm1, %v3759_v14  ;;  %v17804_v54 = vpop.f32.mrf.mxu0  ;;  %15594 = vmatmul.mubr.msk.bf16.gmra.mxu0 %vm1121_vm1, %v5249_v47  ;;  %v3727_v14 = vld [vmem:[#allocation2 + $0xd6] sm:$0xff] }
 0x3af   : > { %v3136_v46 = vadd.f32 %v3014_v8, %v2797_v32  ;;  %15319 = vmatprep.mubr.msk.bf16.mxu1 %vm16401_vm0, %v20308_v40  ;;  %15597 = vmatprep.mubr.msk.bf16.mxu0 %vm16401_vm0, %v20308_v40  ;;  %3675 = vst.msk [vmem:[#allocation3 + $0x88] sm:$0xff] %vm1172_vm2, %v3630_v44  ;;  %v5216_v47 = vld [vmem:[#allocation2 + $0xda] sm:$0xff]  ;;  %v3760_v32 = vpack.c.bf16 %v3728_v49, %v3727_v14 }
 0x3b0   : > { %v15125_v21 = vpop.f32.mrf.mxu1  ;;  %v15403_v50 = vpop.f32.mrf.mxu0  ;;  %v3292_v10 = vld [vmem:[#allocation3 + $0x90] sm:$0xff]  ;;  %v5250_v8 = vpack.c.bf16 %v5217_v7, %v5216_v47  ;;  %v2800_v47 = vld [vmem:[#allocation3 + $0xb8] sm:$0xff] }
 0x3b1   : > { %3181 = vst.msk [vmem:[#allocation3 + $0xa0] sm:$0xff] %vm1172_vm2, %v3136_v46  ;;  %v3631_v17 = vadd.f32 %v17438_v30, %v3292_v10  ;;  %v2799_v50 = vld [vmem:[#allocation3 + $0xb0] sm:$0xff] }
 0x3b2   : > { %v3017_v12 = vpop.f32.mrf.mxu1  ;;  %v17814_v59 = vpop.f32.mrf.mxu0 }
 0x3b3   : > { %v3137_v20 = vadd.f32 %v3017_v12, %v2798_v57  ;;  %3676 = vst.msk [vmem:[#allocation3 + $0x90] sm:$0xff] %vm1172_vm2, %v3631_v17  ;;  %v3730_v17 = vld [vmem:[#allocation2 + $0xee] sm:$0xff] }
 0x3b4   : > { %v15126_v23 = vpop.f32.mrf.mxu1  ;;  %v15404_v44 = vpop.f32.mrf.mxu0  ;;  %v3293_v21 = vld [vmem:[#allocation3 + $0x98] sm:$0xff]  ;;  %v5219_v12 = vld [vmem:[#allocation2 + $0xf2] sm:$0xff] }
 0x3b5   : > { %3182 = vst.msk [vmem:[#allocation3 + $0xa8] sm:$0xff] %vm1172_vm2, %v3137_v20  ;;  %v3632_v46 = vadd.f32 %v17448_v26, %v3293_v21  ;;  %v15799_v20 = vld [vmem:[%s20299_s5 + $0x34] ss:$8 sps:$4 sm:$0xff]   ;;  %v5218_v21 = vld [vmem:[#allocation2 + $0xea] sm:$0xff] }
 0x3b6   : > { %v3022_v30 = vpop.f32.mrf.mxu1  ;;  %15320 = vmatmul.mubr.msk.bf16.gmra.mxu1 %vm1121_vm1, %v3760_v32  ;;  %v17820_v10 = vpop.f32.mrf.mxu0  ;;  %15598 = vmatmul.mubr.msk.bf16.gmra.mxu0 %vm1121_vm1, %v5250_v8  ;;  %v3729_v8 = vld [vmem:[#allocation2 + $0xe6] sm:$0xff] }
 0x3b7   : > { %v3138_v57 = vadd.f32 %v3022_v30, %v2799_v50  ;;  %15323 = vmatprep.mubr.msk.bf16.mxu1 %vm16401_vm0, %v20308_v40  ;;  %15601 = vmatprep.mubr.msk.bf16.mxu0 %vm16401_vm0, %v20308_v40  ;;  %3677 = vst.msk [vmem:[#allocation3 + $0x98] sm:$0xff] %vm1172_vm2, %v3632_v46  ;;  %v3761_v30 = vpack.c.bf16 %v3730_v17, %v3729_v8  ;;  %v2802_v8 = vld [vmem:[#allocation3 + $0xc8] sm:$0xff] }
 0x3b8   : > { %v15129_v49 = vpop.f32.mrf.mxu1  ;;  %v15407_v7 = vpop.f32.mrf.mxu0  ;;  %v3294_v26 = vld [vmem:[#allocation3 + $0xa0] sm:$0xff]  ;;  %6010 = vmatprep.subr.bf16.mxu1 %v15799_v20 }
 0x3b9   : > { %3183 = vst.msk [vmem:[#allocation3 + $0xb0] sm:$0xff] %vm1172_vm2, %v3138_v57  ;;  %v3633_v14 = vadd.f32 %v17454_v53, %v3294_v26  ;;  %v5251_v57 = vpack.c.bf16 %v5219_v12, %v5218_v21  ;;  %v2801_v53 = vld [vmem:[#allocation3 + $0xc0] sm:$0xff] }
 0x3ba   : > { %v3025_v23 = vpop.f32.mrf.mxu1  ;;  %v17833_v44 = vpop.f32.mrf.mxu0 }
 0x3bb   : > { %v3139_v32 = vadd.f32 %v3025_v23, %v2800_v47  ;;  %3678 = vst.msk [vmem:[#allocation3 + $0xa0] sm:$0xff] %vm1172_vm2, %v3633_v14  ;;  %v20321_v47 = vmov 0.0   ;;  %v3732_v14 = vld [vmem:[#allocation2 + $0xfe] sm:$0xff] }
 0x3bc   : > { %v15130_v46 = vpop.f32.mrf.mxu1  ;;  %v15408_v50 = vpop.f32.mrf.mxu0  ;;  %v3295_v49 = vld [vmem:[#allocation3 + $0xa8] sm:$0xff]  ;;  %v5221_v23 = vld [vmem:[#allocation2 + $0x102] sm:$0xff] }
 0x3bd   : > { %3184 = vst.msk [vmem:[#allocation3 + $0xb8] sm:$0xff] %vm1172_vm2, %v3139_v32  ;;  %v3634_v7 = vadd.f32 %v17464_v28, %v3295_v49 }
 0x3be   : > { %v3030_v26 = vpop.f32.mrf.mxu1  ;;  %15324 = vmatmul.mubr.msk.bf16.gmra.mxu1 %vm1121_vm1, %v3761_v30  ;;  %v17839_v40 = vpop.f32.mrf.mxu0  ;;  %15602 = vmatmul.mubr.msk.bf16.gmra.mxu0 %vm1121_vm1, %v5251_v57  ;;  %v3731_v30 = vld [vmem:[#allocation2 + $0xf6] sm:$0xff] }
 0x3bf   : > { %v3140_v20 = vadd.f32 %v3030_v26, %v2801_v53  ;;  %15327 = vmatprep.mubr.msk.bf16.mxu1 %vm16401_vm0, %v20321_v47  ;;  %15605 = vmatprep.mubr.msk.bf16.mxu0 %vm16401_vm0, %v20321_v47  ;;  %3679 = vst.msk [vmem:[#allocation3 + $0xa8] sm:$0xff] %vm1172_vm2, %v3634_v7  ;;  %v5220_v57 = vld [vmem:[#allocation2 + $0xfa] sm:$0xff]  ;;  %v3762_v53 = vpack.c.bf16 %v3732_v14, %v3731_v30  ;;  %v2804_v30 = vld [vmem:[#allocation3 + $0xd8] sm:$0xff] }
 0x3c0   : > { %v15133_v17 = vpop.f32.mrf.mxu1  ;;  %v15411_v12 = vpop.f32.mrf.mxu0  ;;  %v3296_v28 = vld [vmem:[#allocation3 + $0xb0] sm:$0xff]  ;;  %v5252_v26 = vpack.c.bf16 %v5221_v23, %v5220_v57 }
 0x3c1   : > { %3185 = vst.msk [vmem:[#allocation3 + $0xc0] sm:$0xff] %vm1172_vm2, %v3140_v20  ;;  %v3635_v32 = vadd.f32 %v17470_v15, %v3296_v28  ;;  %v2803_v12 = vld [vmem:[#allocation3 + $0xd0] sm:$0xff] }
 0x3c2   : > { %v3033_v21 = vpop.f32.mrf.mxu1  ;;  %v17849_v46 = vpop.f32.mrf.mxu0 }
 0x3c3   : > { %v3141_v50 = vadd.f32 %v3033_v21, %v2802_v8  ;;  %3680 = vst.msk [vmem:[#allocation3 + $0xb0] sm:$0xff] %vm1172_vm2, %v3635_v32  ;;  %v3734_v32 = vld [vmem:[#allocation2 + $0x10e] sm:$0xff] }
 0x3c4   : > { %v15134_v49 = vpop.f32.mrf.mxu1  ;;  %v15412_v7 = vpop.f32.mrf.mxu0  ;;  %v3297_v17 = vld [vmem:[#allocation3 + $0xb8] sm:$0xff]  ;;  %v5223_v21 = vld [vmem:[#allocation2 + $0x112] sm:$0xff] }
 0x3c5   : > { %3186 = vst.msk [vmem:[#allocation3 + $0xc8] sm:$0xff] %vm1172_vm2, %v3141_v50  ;;  %v3636_v20 = vadd.f32 %v17480_v35, %v3297_v17 }
 0x3c6   : > { %v3038_v15 = vpop.f32.mrf.mxu1  ;;  %15328 = vmatmul.mubr.msk.bf16.gmra.mxu1 %vm1121_vm1, %v3762_v53  ;;  %v17855_v28 = vpop.f32.mrf.mxu0  ;;  %15606 = vmatmul.mubr.msk.bf16.gmra.mxu0 %vm1121_vm1, %v5252_v26  ;;  %v3733_v53 = vld [vmem:[#allocation2 + $0x106] sm:$0xff] }
 0x3c7   : > { %v3142_v8 = vadd.f32 %v3038_v15, %v2803_v12  ;;  %15331 = vmatprep.mubr.msk.bf16.mxu1 %vm16401_vm0, %v20321_v47  ;;  %15609 = vmatprep.mubr.msk.bf16.mxu0 %vm16401_vm0, %v20321_v47  ;;  %3681 = vst.msk [vmem:[#allocation3 + $0xb8] sm:$0xff] %vm1172_vm2, %v3636_v20  ;;  %v5222_v26 = vld [vmem:[#allocation2 + $0x10a] sm:$0xff]  ;;  %v3763_v12 = vpack.c.bf16 %v3734_v32, %v3733_v53  ;;  %v2806_v53 = vld [vmem:[#allocation3 + $0xe8] sm:$0xff] }
 0x3c8   : > { %v15137_v14 = vpop.f32.mrf.mxu1  ;;  %v15415_v23 = vpop.f32.mrf.mxu0  ;;  %v3298_v35 = vld [vmem:[#allocation3 + $0xc0] sm:$0xff]  ;;  %v5253_v15 = vpack.c.bf16 %v5223_v21, %v5222_v26 }
 0x3c9   : > { %3187 = vst.msk [vmem:[#allocation3 + $0xd0] sm:$0xff] %vm1172_vm2, %v3142_v8  ;;  %v3637_v50 = vadd.f32 %v17486_v39, %v3298_v35  ;;  %v2805_v23 = vld [vmem:[#allocation3 + $0xe0] sm:$0xff] }
 0x3ca   : > { %v3041_v57 = vpop.f32.mrf.mxu1  ;;  %v17865_v49 = vpop.f32.mrf.mxu0 }
 0x3cb   : > { %v3143_v7 = vadd.f32 %v3041_v57, %v2804_v30  ;;  %3682 = vst.msk [vmem:[#allocation3 + $0xc0] sm:$0xff] %vm1172_vm2, %v3637_v50  ;;  %v3736_v50 = vld [vmem:[#allocation2 + $0x11e] sm:$0xff] }
 0x3cc   : > { %v15138_v17 = vpop.f32.mrf.mxu1  ;;  %v15416_v20 = vpop.f32.mrf.mxu0  ;;  %v3299_v14 = vld [vmem:[#allocation3 + $0xc8] sm:$0xff]  ;;  %v5225_v57 = vld [vmem:[#allocation2 + $0x122] sm:$0xff] }
 0x3cd   : > { %3188 = vst.msk [vmem:[#allocation3 + $0xd8] sm:$0xff] %vm1172_vm2, %v3143_v7  ;;  %v3638_v8 = vadd.f32 %v17496_v37, %v3299_v14 }
 0x3ce   : > { %v3046_v39 = vpop.f32.mrf.mxu1  ;;  %15332 = vmatmul.mubr.msk.bf16.gmra.mxu1 %vm1121_vm1, %v3763_v12  ;;  %v17871_v35 = vpop.f32.mrf.mxu0  ;;  %15610 = vmatmul.mubr.msk.bf16.gmra.mxu0 %vm1121_vm1, %v5253_v15  ;;  %v3735_v12 = vld [vmem:[#allocation2 + $0x116] sm:$0xff] }
 0x3cf   : > { %v3144_v30 = vadd.f32 %v3046_v39, %v2805_v23  ;;  %15335 = vmatprep.mubr.msk.bf16.mxu1 %vm16401_vm0, %v20321_v47  ;;  %15613 = vmatprep.mubr.msk.bf16.mxu0 %vm16401_vm0, %v20321_v47  ;;  %3683 = vst.msk [vmem:[#allocation3 + $0xc8] sm:$0xff] %vm1172_vm2, %v3638_v8  ;;  %v5224_v15 = vld [vmem:[#allocation2 + $0x11a] sm:$0xff]  ;;  %v3764_v23 = vpack.c.bf16 %v3736_v50, %v3735_v12  ;;  %v2808_v12 = vld [vmem:[#allocation3 + $0xf8] sm:$0xff] }
 0x3d0   : > { %v15141_v32 = vpop.f32.mrf.mxu1  ;;  %v15419_v21 = vpop.f32.mrf.mxu0  ;;  %v3300_v37 = vld [vmem:[#allocation3 + $0xd0] sm:$0xff]  ;;  %v5254_v39 = vpack.c.bf16 %v5225_v57, %v5224_v15 }
 0x3d1   : > { %3189 = vst.msk [vmem:[#allocation3 + $0xe0] sm:$0xff] %vm1172_vm2, %v3144_v30  ;;  %v3639_v7 = vadd.f32 %v17502_v3, %v3300_v37  ;;  %v2807_v21 = vld [vmem:[#allocation3 + $0xf0] sm:$0xff] }
 0x3d2   : > { %v3049_v26 = vpop.f32.mrf.mxu1  ;;  %v17881_v17 = vpop.f32.mrf.mxu0 }
 0x3d3   : > { %v3145_v20 = vadd.f32 %v3049_v26, %v2806_v53  ;;  %3684 = vst.msk [vmem:[#allocation3 + $0xd0] sm:$0xff] %vm1172_vm2, %v3639_v7  ;;  %v3738_v7 = vld [vmem:[#allocation2 + $0x12e] sm:$0xff] }
 0x3d4   : > { %v15142_v14 = vpop.f32.mrf.mxu1  ;;  %v15420_v8 = vpop.f32.mrf.mxu0  ;;  %v3301_v32 = vld [vmem:[#allocation3 + $0xd8] sm:$0xff]  ;;  %v5227_v26 = vld [vmem:[#allocation2 + $0x132] sm:$0xff] }
 0x3d5   : > { %3190 = vst.msk [vmem:[#allocation3 + $0xe8] sm:$0xff] %vm1172_vm2, %v3145_v20  ;;  %v3640_v30 = vadd.f32 %v17512_v42, %v3301_v32 }
 0x3d6   : > { %v3054_v3 = vpop.f32.mrf.mxu1  ;;  %15336 = vmatmul.mubr.msk.bf16.gmra.mxu1 %vm1121_vm1, %v3764_v23  ;;  %v17887_v37 = vpop.f32.mrf.mxu0  ;;  %15614 = vmatmul.mubr.msk.bf16.gmra.mxu0 %vm1121_vm1, %v5254_v39  ;;  %v3737_v23 = vld [vmem:[#allocation2 + $0x126] sm:$0xff] }
 0x3d7   : > { %v3146_v53 = vadd.f32 %v3054_v3, %v2807_v21  ;;  %15339 = vmatprep.mubr.msk.bf16.mxu1 %vm16401_vm0, %v20321_v47  ;;  %15617 = vmatprep.mubr.msk.bf16.mxu0 %vm16401_vm0, %v20321_v47  ;;  %3685 = vst.msk [vmem:[#allocation3 + $0xd8] sm:$0xff] %vm1172_vm2, %v3640_v30  ;;  %v5226_v39 = vld [vmem:[#allocation2 + $0x12a] sm:$0xff]  ;;  %v3765_v21 = vpack.c.bf16 %v3738_v7, %v3737_v23  ;;  %v2810_v23 = vld [vmem:[#allocation3 + $0x108] sm:$0xff] }
 0x3d8   : > { %v15145_v50 = vpop.f32.mrf.mxu1  ;;  %v15423_v57 = vpop.f32.mrf.mxu0  ;;  %v3302_v42 = vld [vmem:[#allocation3 + $0xe0] sm:$0xff]  ;;  %v5255_v3 = vpack.c.bf16 %v5227_v26, %v5226_v39 }
 0x3d9   : > { %3191 = vst.msk [vmem:[#allocation3 + $0xf0] sm:$0xff] %vm1172_vm2, %v3146_v53  ;;  %v3641_v20 = vadd.f32 %v17518_v34, %v3302_v42  ;;  %v2809_v57 = vld [vmem:[#allocation3 + $0x100] sm:$0xff] }
 0x3da   : > { %v3057_v15 = vpop.f32.mrf.mxu1  ;;  %v17897_v14 = vpop.f32.mrf.mxu0 }
 0x3db   : > { %v3147_v8 = vadd.f32 %v3057_v15, %v2808_v12  ;;  %3686 = vst.msk [vmem:[#allocation3 + $0xe0] sm:$0xff] %vm1172_vm2, %v3641_v20  ;;  %v3740_v20 = vld [vmem:[#allocation2 + $0x13e] sm:$0xff] }
 0x3dc   : > { %v15146_v32 = vpop.f32.mrf.mxu1  ;;  %v15424_v30 = vpop.f32.mrf.mxu0  ;;  %v3303_v50 = vld [vmem:[#allocation3 + $0xe8] sm:$0xff]  ;;  %v5229_v15 = vld [vmem:[#allocation2 + $0x142] sm:$0xff] }
 0x3dd   : > { %3192 = vst.msk [vmem:[#allocation3 + $0xf8] sm:$0xff] %vm1172_vm2, %v3147_v8  ;;  %v3642_v53 = vadd.f32 %v17528_v60, %v3303_v50 }
 0x3de   : > { %v3062_v34 = vpop.f32.mrf.mxu1  ;;  %15340 = vmatmul.mubr.msk.bf16.gmra.mxu1 %vm1121_vm1, %v3765_v21  ;;  %v17903_v42 = vpop.f32.mrf.mxu0  ;;  %15618 = vmatmul.mubr.msk.bf16.gmra.mxu0 %vm1121_vm1, %v5255_v3  ;;  %v3739_v21 = vld [vmem:[#allocation2 + $0x136] sm:$0xff] }
 0x3df   : > { %v3148_v12 = vadd.f32 %v3062_v34, %v2809_v57  ;;  %15343 = vmatprep.mubr.msk.bf16.mxu1 %vm16401_vm0, %v20321_v47  ;;  %15621 = vmatprep.mubr.msk.bf16.mxu0 %vm16401_vm0, %v20321_v47  ;;  %3687 = vst.msk [vmem:[#allocation3 + $0xe8] sm:$0xff] %vm1172_vm2, %v3642_v53  ;;  %v5228_v3 = vld [vmem:[#allocation2 + $0x13a] sm:$0xff]  ;;  %v3766_v57 = vpack.c.bf16 %v3740_v20, %v3739_v21  ;;  %v2812_v21 = vld [vmem:[#allocation3 + $0x118] sm:$0xff] }
 0x3e0   : > { %v15149_v7 = vpop.f32.mrf.mxu1  ;;  %v15427_v26 = vpop.f32.mrf.mxu0  ;;  %v3304_v60 = vld [vmem:[#allocation3 + $0xf0] sm:$0xff]  ;;  %v5256_v34 = vpack.c.bf16 %v5229_v15, %v5228_v3 }
 0x3e1   : > { %3193 = vst.msk [vmem:[#allocation3 + $0x100] sm:$0xff] %vm1172_vm2, %v3148_v12  ;;  %v3643_v8 = vadd.f32 %v17534_v62, %v3304_v60  ;;  %v2811_v26 = vld [vmem:[#allocation3 + $0x110] sm:$0xff] }
 0x3e2   : > { %v3065_v39 = vpop.f32.mrf.mxu1  ;;  %v17913_v32 = vpop.f32.mrf.mxu0 }
 0x3e3   : > { %v3149_v30 = vadd.f32 %v3065_v39, %v2810_v23  ;;  %3688 = vst.msk [vmem:[#allocation3 + $0xf0] sm:$0xff] %vm1172_vm2, %v3643_v8  ;;  %v3742_v8 = vld [vmem:[#allocation2 + $0x14e] sm:$0xff] }
 0x3e4   : > { %v15150_v50 = vpop.f32.mrf.mxu1  ;;  %v15428_v53 = vpop.f32.mrf.mxu0  ;;  %v3305_v7 = vld [vmem:[#allocation3 + $0xf8] sm:$0xff]  ;;  %v5231_v39 = vld [vmem:[#allocation2 + $0x152] sm:$0xff] }
 0x3e5   : > { %3194 = vst.msk [vmem:[#allocation3 + $0x108] sm:$0xff] %vm1172_vm2, %v3149_v30  ;;  %v3644_v12 = vadd.f32 %v17544_v18, %v3305_v7 }
 0x3e6   : > { %v3070_v62 = vpop.f32.mrf.mxu1  ;;  %15344 = vmatmul.mubr.msk.bf16.gmra.mxu1 %vm1121_vm1, %v3766_v57  ;;  %v17919_v60 = vpop.f32.mrf.mxu0  ;;  %15622 = vmatmul.mubr.msk.bf16.gmra.mxu0 %vm1121_vm1, %v5256_v34  ;;  %v3741_v57 = vld [vmem:[#allocation2 + $0x146] sm:$0xff] }
 0x3e7   : > { %v3150_v23 = vadd.f32 %v3070_v62, %v2811_v26  ;;  %15347 = vmatprep.mubr.msk.bf16.mxu1 %vm16401_vm0, %v20321_v47  ;;  %15625 = vmatprep.mubr.msk.bf16.mxu0 %vm16401_vm0, %v20321_v47  ;;  %3689 = vst.msk [vmem:[#allocation3 + $0xf8] sm:$0xff] %vm1172_vm2, %v3644_v12  ;;  %v5230_v34 = vld [vmem:[#allocation2 + $0x14a] sm:$0xff]  ;;  %v3767_v26 = vpack.c.bf16 %v3742_v8, %v3741_v57  ;;  %v2814_v57 = vld [vmem:[#allocation3 + $0x128] sm:$0xff] }
 0x3e8   : > { %v15153_v20 = vpop.f32.mrf.mxu1  ;;  %v15431_v15 = vpop.f32.mrf.mxu0  ;;  %v3306_v18 = vld [vmem:[#allocation3 + $0x100] sm:$0xff]  ;;  %v5257_v62 = vpack.c.bf16 %v5231_v39, %v5230_v34 }
 0x3e9   : > { %3195 = vst.msk [vmem:[#allocation3 + $0x110] sm:$0xff] %vm1172_vm2, %v3150_v23  ;;  %v3645_v30 = vadd.f32 %v17550_v33, %v3306_v18  ;;  %v2813_v15 = vld [vmem:[#allocation3 + $0x120] sm:$0xff] }
 0x3ea   : > { %v3073_v3 = vpop.f32.mrf.mxu1  ;;  %v17929_v50 = vpop.f32.mrf.mxu0 }
 0x3eb   : > { %v3151_v53 = vadd.f32 %v3073_v3, %v2812_v21  ;;  %3690 = vst.msk [vmem:[#allocation3 + $0x100] sm:$0xff] %vm1172_vm2, %v3645_v30  ;;  %v3744_v30 = vld [vmem:[#allocation2 + $0x15e] sm:$0xff] }
 0x3ec   : > { %v15154_v7 = vpop.f32.mrf.mxu1  ;;  %v15432_v12 = vpop.f32.mrf.mxu0  ;;  %v3307_v20 = vld [vmem:[#allocation3 + $0x108] sm:$0xff]  ;;  %v5233_v3 = vld [vmem:[#allocation2 + $0x162] sm:$0xff] }
 0x3ed   : > { %3196 = vst.msk [vmem:[#allocation3 + $0x118] sm:$0xff] %vm1172_vm2, %v3151_v53  ;;  %v3646_v23 = vadd.f32 %v17560_v5, %v3307_v20 }
 0x3ee   : > { %v3078_v33 = vpop.f32.mrf.mxu1  ;;  %15348 = vmatmul.mubr.msk.bf16.gmra.mxu1 %vm1121_vm1, %v3767_v26  ;;  %v17935_v18 = vpop.f32.mrf.mxu0  ;;  %15626 = vmatmul.mubr.msk.bf16.gmra.mxu0 %vm1121_vm1, %v5257_v62  ;;  %v3743_v26 = vld [vmem:[#allocation2 + $0x156] sm:$0xff] }
 0x3ef   : > { %v3152_v21 = vadd.f32 %v3078_v33, %v2813_v15  ;;  %15351 = vmatprep.mubr.msk.bf16.mxu1 %vm16401_vm0, %v20321_v47  ;;  %15629 = vmatprep.mubr.msk.bf16.mxu0 %vm16401_vm0, %v20321_v47  ;;  %3691 = vst.msk [vmem:[#allocation3 + $0x108] sm:$0xff] %vm1172_vm2, %v3646_v23  ;;  %v5232_v62 = vld [vmem:[#allocation2 + $0x15a] sm:$0xff]  ;;  %v3768_v15 = vpack.c.bf16 %v3744_v30, %v3743_v26  ;;  %v5235_v26 = vld [vmem:[#allocation2 + $0x172] sm:$0xff] }
 0x3f0   : > { %v15157_v8 = vpop.f32.mrf.mxu1  ;;  %v15435_v39 = vpop.f32.mrf.mxu0  ;;  %v3308_v5 = vld [vmem:[#allocation3 + $0x110] sm:$0xff]  ;;  %v5258_v33 = vpack.c.bf16 %v5233_v3, %v5232_v62 }
 0x3f1   : > { %3197 = vst.msk [vmem:[#allocation3 + $0x120] sm:$0xff] %vm1172_vm2, %v3152_v21  ;;  %v3647_v53 = vadd.f32 %v17566_v0, %v3308_v5  ;;  %v15800_v0 = vld [vmem:[%s20299_s5 + $0x10] ss:$8 sps:$4 sm:$0xff]   ;;  %v15802_v21 = vld [vmem:[%s20299_s5 + $0x14] ss:$8 sps:$4 sm:$0xff]   ;;  %v2815_v5 = vld [vmem:[#allocation3 + $0x130] sm:$0xff] }
 0x3f2   : > { %v3081_v34 = vpop.f32.mrf.mxu1  ;;  %v17945_v7 = vpop.f32.mrf.mxu0  ;;  %5920 = vmatprep.subr.bf16.mxu0 %v15802_v21 }
 0x3f3   : > { %v3153_v12 = vadd.f32 %v3081_v34, %v2814_v57  ;;  %3692 = vst.msk [vmem:[#allocation3 + $0x110] sm:$0xff] %vm1172_vm2, %v3647_v53  ;;  %5921 = vmatpush1.bf16.msra.mxu0 %v15800_v0 }
 0x3f4   : > { %v15158_v20 = vpop.f32.mrf.mxu1  ;;  %v15436_v23 = vpop.f32.mrf.mxu0  ;;  %v3309_v8 = vld [vmem:[#allocation3 + $0x118] sm:$0xff] }
 0x3f5   : > { %3198 = vst.msk [vmem:[#allocation3 + $0x128] sm:$0xff] %vm1172_vm2, %v3153_v12  ;;  %v3648_v39 = vadd.f32 %v17576_v24, %v3309_v8  ;;  %v3746_v12 = vld [vmem:[#allocation2 + $0x16e] sm:$0xff]  ;;  %v3745_v8 = vld [vmem:[#allocation2 + $0x166] sm:$0xff] }
 0x3f6   : > { %v3086_v57 = vpop.f32.mrf.mxu1  ;;  %15352 = vmatmul.mubr.msk.bf16.gmra.mxu1 %vm1121_vm1, %v3768_v15  ;;  %v17957_v53 = vpop.f32.mrf.mxu0  ;;  %15630 = vmatmul.mubr.msk.bf16.gmra.mxu0 %vm1121_vm1, %v5258_v33  ;;  %v2816_v20 = vld [vmem:[#allocation3 + $0x138] sm:$0xff]  ;;  %v3769_v21 = vpack.c.bf16 %v3746_v12, %v3745_v8 }
 0x3f7   : > { %v3154_v30 = vadd.f32 %v3086_v57, %v2815_v5  ;;  %15355 = vmatprep.mubr.msk.bf16.mxu1 %vm16401_vm0, %v20321_v47  ;;  %15633 = vmatprep.mubr.msk.bf16.mxu0 %vm16401_vm0, %v20321_v47  ;;  %3693 = vst.msk [vmem:[#allocation3 + $0x118] sm:$0xff] %vm1172_vm2, %v3648_v39  ;;  %v5234_v5 = vld [vmem:[#allocation2 + $0x16a] sm:$0xff] }
 0x3f8   : > { %v15161_v3 = vpop.f32.mrf.mxu1  ;;  %v15439_v34 = vpop.f32.mrf.mxu0  ;;  %v3310_v24 = vld [vmem:[#allocation3 + $0x120] sm:$0xff] }
 0x3f9   : > { %3199 = vst.msk [vmem:[#allocation3 + $0x130] sm:$0xff] %vm1172_vm2, %v3154_v30  ;;  %v3649_v62 = vadd.f32 %v17582_v38, %v3310_v24  ;;  %v5259_v3 = vpack.c.bf16 %v5235_v26, %v5234_v5  ;;  %v2817_v30 = vld [vmem:[#allocation3 + $0x140] sm:$0xff]  ;;  %v2818_v5 = vld [vmem:[#allocation3 + $0x148] sm:$0xff] }
 0x3fa   : > { %v3089_v23 = vpop.f32.mrf.mxu1  ;;  %v17967_v15 = vpop.f32.mrf.mxu0 }
 0x3fb   : > { %v3155_v33 = vadd.f32 %v3089_v23, %v2816_v20  ;;  %3694 = vst.msk [vmem:[#allocation3 + $0x120] sm:$0xff] %vm1172_vm2, %v3649_v62  ;;  %v3747_v62 = vld [vmem:[#allocation2 + $0x176] sm:$0x3f] }
 0x3fc   : > { %v15162_v39 = vpop.f32.mrf.mxu1  ;;  %v15440_v57 = vpop.f32.mrf.mxu0  ;;  %v3311_v34 = vld [vmem:[#allocation3 + $0x128] sm:$0xff] }
 0x3fd   : > { %3200 = vst.msk [vmem:[#allocation3 + $0x138] sm:$0xff] %vm1172_vm2, %v3155_v33  ;;  %v3650_v0 = vadd.f32 %v17592_v6, %v3311_v34  ;;  %v5236_v23 = vld [vmem:[#allocation2 + $0x17a] sm:$0xff]  ;;  %v5237_v33 = vld [vmem:[#allocation2 + $0x182] sm:$0xff] }
 0x3fe   : > { %v3094_v38 = vpop.f32.mrf.mxu1  ;;  %15356 = vmatmul.mubr.msk.bf16.gmra.mxu1 %vm1121_vm1, %v3769_v21  ;;  %v17973_v24 = vpop.f32.mrf.mxu0  ;;  %15634 = vmatmul.mubr.msk.bf16.gmra.mxu0 %vm1121_vm1, %v5259_v3 }
 0x3ff   : > { %v3156_v20 = vadd.f32 %v3094_v38, %v2817_v30  ;;  %15359 = vmatprep.mubr.msk.bf16.mxu1 %vm16401_vm0, %v20321_v47  ;;  %15637 = vmatprep.mubr.msk.bf16.mxu0 %vm16401_vm0, %v20321_v47  ;;  %3695 = vst.msk [vmem:[#allocation3 + $0x128] sm:$0xff] %vm1172_vm2, %v3650_v0  ;;  %v3770_v0 = vpack.c.bf16 %v3747_v62, %v3747_v62 }
 0x400   : > { %v15165_v12 = vpop.f32.mrf.mxu1  ;;  %v15443_v26 = vpop.f32.mrf.mxu0  ;;  %v3312_v6 = vld [vmem:[#allocation3 + $0x130] sm:$0xff]  ;;  %v5260_v30 = vpack.c.bf16 %v5237_v33, %v5236_v23  ;;  %v4698_v33 = vld [vmem:[#allocation2 + $0x31] sm:$0xff] }
 0x401   : > { %3201 = vst.msk [vmem:[#allocation3 + $0x140] sm:$0xff] %vm1172_vm2, %v3156_v20  ;;  %v3651_v8 = vadd.f32 %v17598_v13, %v3312_v6  ;;  %v2819_v12 = vld [vmem:[#allocation3 + $0x150] sm:$0xff] }
 0x402   : > { %v3097_v39 = vpop.f32.mrf.mxu1  ;;  %v17983_v57 = vpop.f32.mrf.mxu0 }
 0x403   : > { %v3157_v21 = vadd.f32 %v3097_v39, %v2818_v5  ;;  %3696 = vst.msk [vmem:[#allocation3 + $0x130] sm:$0xff] %vm1172_vm2, %v3651_v8  ;;  %v5238_v8 = vld [vmem:[#allocation2 + $0x18a] sm:$0x3f] }
 0x404   : > { %v15166_v3 = vpop.f32.mrf.mxu1  ;;  %v15444_v34 = vpop.f32.mrf.mxu0  ;;  %v3313_v38 = vld [vmem:[#allocation3 + $0x138] sm:$0xff] }
 0x405   : > { %3202 = vst.msk [vmem:[#allocation3 + $0x148] sm:$0xff] %vm1172_vm2, %v3157_v21  ;;  %v3652_v20 = vadd.f32 %v17608_v43, %v3313_v38  ;;  %v2820_v39 = vld [vmem:[#allocation3 + $0x158] sm:$0xff] }
 0x406   : > { %v3102_v26 = vpop.f32.mrf.mxu1  ;;  %15360 = vmatmul.mubr.msk.bf16.gmra.mxu1 %vm1121_vm1, %v3770_v0  ;;  %v17989_v13 = vpop.f32.mrf.mxu0  ;;  %15638 = vmatmul.mubr.msk.bf16.gmra.mxu0 %vm1121_vm1, %v5260_v30  ;;  %v4697_v0 = vld [vmem:[#allocation2 + $0x29] sm:$0xff] }
 0x407   : > { %v3158_v6 = vadd.f32 %v3102_v26, %v2819_v12  ;;  %15459 = vmatprep.mubr.msk.bf16.mxu1 %vm16401_vm0, %v20321_v47  ;;  %15641 = vmatprep.mubr.msk.bf16.mxu0 %vm16401_vm0, %v20321_v47  ;;  %3697 = vst.msk [vmem:[#allocation3 + $0x138] sm:$0xff] %vm1172_vm2, %v3652_v20  ;;  %v15797_v30 = vld [vmem:[%s20299_s5 + $0x30] ss:$8 sps:$4 sm:$0xff]   ;;  %v4742_v12 = vpack.c.bf16 %v4698_v33, %v4697_v0 }
 0x408   : > { %v15169_v62 = vpop.f32.mrf.mxu1  ;;  %v15447_v23 = vpop.f32.mrf.mxu0  ;;  %v3314_v43 = vld [vmem:[#allocation3 + $0x140] sm:$0xff]  ;;  %v5261_v26 = vpack.c.bf16 %v5238_v8, %v5238_v8 }
 0x409   : > { %3203 = vst.msk [vmem:[#allocation3 + $0x150] sm:$0xff] %vm1172_vm2, %v3158_v6  ;;  %v3653_v5 = vadd.f32 %v17614_v19, %v3314_v43  ;;  %v2821_v62 = vld [vmem:[#allocation3 + $0x160] sm:$0x3f] }
 0x40a   : > { %v3105_v21 = vpop.f32.mrf.mxu1  ;;  %v17999_v3 = vpop.f32.mrf.mxu0 }
 0x40b   : > { %v3159_v34 = vadd.f32 %v3105_v21, %v2820_v39  ;;  %3698 = vst.msk [vmem:[#allocation3 + $0x140] sm:$0xff] %vm1172_vm2, %v3653_v5  ;;  %v20322_v21 = vmov 0  }
 0x40c   : > { %v15170_v38 = vpop.f32.mrf.mxu1  ;;  %v15448_v20 = vpop.f32.mrf.mxu0  ;;  %v3315_v6 = vld [vmem:[#allocation3 + $0x148] sm:$0xff] }
 0x40d   : > { %3204 = vst.msk [vmem:[#allocation3 + $0x158] sm:$0xff] %vm1172_vm2, %v3159_v34  ;;  %v3654_v19 = vadd.f32 %v17624_v58, %v3315_v6  ;;  %v4700_v58 = vld [vmem:[#allocation2 + $0x41] sm:$0xff]  ;;  %v4699_v20 = vld [vmem:[#allocation2 + $0x39] sm:$0xff] }
 0x40e   : > { %v3110_v23 = vpop.f32.mrf.mxu1  ;;  %v18007_v43 = vpop.f32.mrf.mxu0  ;;  %15460 = vmatmul.mubr.msk.bf16.vlgmr.msra.gmra.mxu1 %vm1121_vm1, %v4742_v12  ;;  %15642 = vmatmul.mubr.msk.bf16.gmra.mxu0 %vm1121_vm1, %v5261_v26  ;;  %v4743_v26 = vpack.c.bf16 %v4700_v58, %v4699_v20  ;;  %v3772_v20 = vld [vmem:[#allocation3 + $0x8] sm:$0xff] }
 0x40f   : > { %v3160_v39 = vadd.f32 %v3110_v23, %v2821_v62  ;;  %15463 = vmatprep.mubr.msk.bf16.mxu1 %vm16401_vm0, %v20321_v47  ;;  %6011 = vmatpush1.bf16.msra.mxu1 %v15797_v30  ;;  %3699 = vst.msk [vmem:[#allocation3 + $0x148] sm:$0xff] %vm1172_vm2, %v3654_v19  ;;  %v15803_v19 = vld [vmem:[%s20299_s5 + $0x20] ss:$8 sps:$4 sm:$0xff]   ;;  %v15805_v62 = vld [vmem:[%s20299_s5 + $0x24] ss:$8 sps:$4 sm:$0xff]   ;;  %v3771_v23 = vld [vmem:[#allocation3] sm:$0xff] }
 0x410   : > { %v15173_v33 = vpop.f32.mrf.mxu1  ;;  %v15451_v8 = vpop.f32.mrf.mxu0  ;;  %v3316_v5 = vld [vmem:[#allocation3 + $0x150] sm:$0xff]  ;;  %5940 = vmatprep.mubr.bf16.mxu0 %v20322_v21  ;;  %6012 = vmatprep.subr.bf16.mxu1 %v15805_v62 }
 0x411   : > { %3205 = vst.msk [vmem:[#allocation3 + $0x160] sm:$0x3f] %vm1217_vm3, %v3160_v39  ;;  %v3655_v34 = vadd.f32 %v17632_v41, %v3316_v5 }
 0x412   : > { %v3113_v0 = vpop.f32.mrf.mxu1  ;;  %v18017_v38 = vpop.f32.mrf.mxu0 }
 0x413   : > { %3700 = vst.msk [vmem:[#allocation3 + $0x150] sm:$0xff] %vm1172_vm2, %v3655_v34  ;;  %6013 = vmatpush1.bf16.msra.mxu1 %v15803_v19 }
 0x414   : > { %v15174_v12 = vpop.f32.mrf.mxu1  ;;  %v15452_v30 = vpop.f32.mrf.mxu0  ;;  %v3317_v6 = vld [vmem:[#allocation3 + $0x158] sm:$0xff] }
 0x415   : > { %v3656_v41 = vadd.f32 %v17643_v36, %v3317_v6  ;;  %v4702_v36 = vld [vmem:[#allocation2 + $0x51] sm:$0xff]  ;;  %v4701_v6 = vld [vmem:[#allocation2 + $0x49] sm:$0xff] }
 0x416   : > { %v3928_v39 = vpop.f32.mrf.mxu1  ;;  %v18027_v33 = vpop.f32.mrf.mxu0  ;;  %15464 = vmatmul.mubr.msk.bf16.gmra.mxu1 %vm1121_vm1, %v4743_v26 }
 0x417   : > { %v4110_v8 = vadd.f32 %v3928_v39, %v3771_v23  ;;  %15467 = vmatprep.mubr.msk.bf16.mxu1 %vm16401_vm0, %v20321_v47  ;;  %3701 = vst.msk [vmem:[#allocation3 + $0x158] sm:$0xff] %vm1172_vm2, %v3656_v41  ;;  %v4744_v39 = vpack.c.bf16 %v4702_v36, %v4701_v6  ;;  %v3773_v41 = vld [vmem:[#allocation3 + $0x10] sm:$0xff] }
 0x418   : > { %v3318_v5 = vld [vmem:[#allocation3 + $0x160] sm:$0x3f]  ;;  %v15273_v58 = vpop.f32.mrf.mxu1  ;;  %v15455_v34 = vpop.f32.mrf.mxu0  ;;  %v4703_v6 = vld [vmem:[#allocation2 + $0x59] sm:$0xff] }
 0x419   : > { %v3657_v0 = vadd.f32 %v17647_v55, %v3318_v5  ;;  %4155 = vst.msk [vmem:[#allocation3] sm:$0xff] %vm1172_vm2, %v4110_v8 }
 0x41a   : > { %v3931_v12 = vpop.f32.mrf.mxu1  ;;  %v4604_v30 = vpop.f32.mrf.mxu0 }
 0x41b   : > { %3702 = vst.msk [vmem:[#allocation3 + $0x160] sm:$0x3f] %vm1217_vm3, %v3657_v0  ;;  %v4111_v26 = vadd.f32 %v3931_v12, %v3772_v20  ;;  %v4704_v0 = vld [vmem:[#allocation2 + $0x61] sm:$0xff] }
 0x41c   : > { %v15274_v23 = vpop.f32.mrf.mxu1  ;;  %v15456_v62 = vpop.f32.mrf.mxu0  ;;  %v3774_v20 = vld [vmem:[#allocation3 + $0x18] sm:$0xff] }
 0x41d   : > { %4156 = vst.msk [vmem:[#allocation3 + $0x8] sm:$0xff] %vm1172_vm2, %v4111_v26 }
 0x41e   : > { %v3936_v58 = vpop.f32.mrf.mxu1  ;;  %15468 = vmatmul.mubr.msk.bf16.gmra.mxu1 %vm1121_vm1, %v4744_v39  ;;  %v18038_v55 = vpop.f32.mrf.mxu0  ;;  %v4745_v39 = vpack.c.bf16 %v4704_v0, %v4703_v6 }
 0x41f   : > { %v4112_v19 = vadd.f32 %v3936_v58, %v3773_v41  ;;  %15471 = vmatprep.mubr.msk.bf16.mxu1 %vm16401_vm0, %v20321_v47 }
 0x420   : > { %v15277_v8 = vpop.f32.mrf.mxu1  ;;  %v15555_v5 = vpop.f32.mrf.mxu0  ;;  %v4268_v34 = vld [vmem:[#allocation3] sm:$0xff] }
 0x421   : > { %4157 = vst.msk [vmem:[#allocation3 + $0x10] sm:$0xff] %vm1172_vm2, %v4112_v19  ;;  %v4607_v36 = vadd.f32 %v17661_v52, %v4268_v34  ;;  %v3775_v19 = vld [vmem:[#allocation3 + $0x20] sm:$0xff] }
 0x422   : > { %v3939_v12 = vpop.f32.mrf.mxu1  ;;  %v18044_v30 = vpop.f32.mrf.mxu0 }
 0x423   : > { %v4113_v26 = vadd.f32 %v3939_v12, %v3774_v20  ;;  %4652 = vst.msk [vmem:[#allocation3] sm:$0xff] %vm1172_vm2, %v4607_v36  ;;  %v4706_v20 = vld [vmem:[#allocation2 + $0x71] sm:$0xff] }
 0x424   : > { %v15278_v23 = vpop.f32.mrf.mxu1  ;;  %v15556_v62 = vpop.f32.mrf.mxu0  ;;  %v4269_v41 = vld [vmem:[#allocation3 + $0x8] sm:$0xff] }
 0x425   : > { %4158 = vst.msk [vmem:[#allocation3 + $0x18] sm:$0xff] %vm1172_vm2, %v4113_v26  ;;  %v4608_v58 = vadd.f32 %v17670_v56, %v4269_v41  ;;  %v3776_v12 = vld [vmem:[#allocation3 + $0x28] sm:$0xff]  ;;  %v4705_v62 = vld [vmem:[#allocation2 + $0x69] sm:$0xff] }
 0x426   : > { %v3944_v8 = vpop.f32.mrf.mxu1  ;;  %15472 = vmatmul.mubr.msk.bf16.gmra.mxu1 %vm1121_vm1, %v4745_v39  ;;  %v18050_v52 = vpop.f32.mrf.mxu0 }
 0x427   : > { %v4114_v5 = vadd.f32 %v3944_v8, %v3775_v19  ;;  %15475 = vmatprep.mubr.msk.bf16.mxu1 %vm16401_vm0, %v20321_v47  ;;  %4653 = vst.msk [vmem:[#allocation3 + $0x8] sm:$0xff] %vm1172_vm2, %v4608_v58  ;;  %v4746_v19 = vpack.c.bf16 %v4706_v20, %v4705_v62 }
 0x428   : > { %v15281_v34 = vpop.f32.mrf.mxu1  ;;  %v15559_v36 = vpop.f32.mrf.mxu0  ;;  %v4270_v0 = vld [vmem:[#allocation3 + $0x10] sm:$0xff] }
 0x429   : > { %4159 = vst.msk [vmem:[#allocation3 + $0x20] sm:$0xff] %vm1172_vm2, %v4114_v5  ;;  %v4609_v56 = vadd.f32 %v17676_v4, %v4270_v0  ;;  %v3777_v5 = vld [vmem:[#allocation3 + $0x30] sm:$0xff] }
 0x42a   : > { %v3947_v26 = vpop.f32.mrf.mxu1  ;;  %v18057_v6 = vpop.f32.mrf.mxu0 }
 0x42b   : > { %v4115_v23 = vadd.f32 %v3947_v26, %v3776_v12  ;;  %4654 = vst.msk [vmem:[#allocation3 + $0x10] sm:$0xff] %vm1172_vm2, %v4609_v56  ;;  %v4708_v12 = vld [vmem:[#allocation2 + $0x81] sm:$0xff] }
 0x42c   : > { %v15282_v39 = vpop.f32.mrf.mxu1  ;;  %v15560_v41 = vpop.f32.mrf.mxu0  ;;  %v4271_v58 = vld [vmem:[#allocation3 + $0x18] sm:$0xff] }
 0x42d   : > { %4160 = vst.msk [vmem:[#allocation3 + $0x28] sm:$0xff] %vm1172_vm2, %v4115_v23  ;;  %v4610_v8 = vadd.f32 %v17686_v51, %v4271_v58  ;;  %v3778_v26 = vld [vmem:[#allocation3 + $0x38] sm:$0xff]  ;;  %v4707_v41 = vld [vmem:[#allocation2 + $0x79] sm:$0xff] }
 0x42e   : > { %v3952_v34 = vpop.f32.mrf.mxu1  ;;  %15476 = vmatmul.mubr.msk.bf16.gmra.mxu1 %vm1121_vm1, %v4746_v19  ;;  %v18063_v4 = vpop.f32.mrf.mxu0 }
 0x42f   : > { %v4116_v36 = vadd.f32 %v3952_v34, %v3777_v5  ;;  %15479 = vmatprep.mubr.msk.bf16.mxu1 %vm16401_vm0, %v20321_v47  ;;  %4655 = vst.msk [vmem:[#allocation3 + $0x18] sm:$0xff] %vm1172_vm2, %v4610_v8  ;;  %v4747_v5 = vpack.c.bf16 %v4708_v12, %v4707_v41 }
 0x430   : > { %v15285_v0 = vpop.f32.mrf.mxu1  ;;  %v15563_v56 = vpop.f32.mrf.mxu0  ;;  %v4272_v20 = vld [vmem:[#allocation3 + $0x20] sm:$0xff] }
 0x431   : > { %4161 = vst.msk [vmem:[#allocation3 + $0x30] sm:$0xff] %vm1172_vm2, %v4116_v36  ;;  %v4611_v51 = vadd.f32 %v17692_v16, %v4272_v20  ;;  %v3779_v36 = vld [vmem:[#allocation3 + $0x40] sm:$0xff] }
 0x432   : > { %v3955_v23 = vpop.f32.mrf.mxu1  ;;  %v18070_v62 = vpop.f32.mrf.mxu0 }
 0x433   : > { %v4117_v39 = vadd.f32 %v3955_v23, %v3778_v26  ;;  %4656 = vst.msk [vmem:[#allocation3 + $0x20] sm:$0xff] %vm1172_vm2, %v4611_v51  ;;  %v4710_v26 = vld [vmem:[#allocation2 + $0x91] sm:$0xff] }
 0x434   : > { %v15286_v19 = vpop.f32.mrf.mxu1  ;;  %v15564_v58 = vpop.f32.mrf.mxu0  ;;  %v4273_v8 = vld [vmem:[#allocation3 + $0x28] sm:$0xff] }
 0x435   : > { %4162 = vst.msk [vmem:[#allocation3 + $0x38] sm:$0xff] %vm1172_vm2, %v4117_v39  ;;  %v4612_v34 = vadd.f32 %v17702_v11, %v4273_v8  ;;  %v3780_v23 = vld [vmem:[#allocation3 + $0x48] sm:$0xff]  ;;  %v4709_v58 = vld [vmem:[#allocation2 + $0x89] sm:$0xff] }
 0x436   : > { %v3960_v0 = vpop.f32.mrf.mxu1  ;;  %15480 = vmatmul.mubr.msk.bf16.gmra.mxu1 %vm1121_vm1, %v4747_v5  ;;  %v18076_v16 = vpop.f32.mrf.mxu0 }
 0x437   : > { %v4118_v56 = vadd.f32 %v3960_v0, %v3779_v36  ;;  %15483 = vmatprep.mubr.msk.bf16.mxu1 %vm16401_vm0, %v20321_v47  ;;  %4657 = vst.msk [vmem:[#allocation3 + $0x28] sm:$0xff] %vm1172_vm2, %v4612_v34  ;;  %v4748_v36 = vpack.c.bf16 %v4710_v26, %v4709_v58 }
 0x438   : > { %v15289_v20 = vpop.f32.mrf.mxu1  ;;  %v15567_v51 = vpop.f32.mrf.mxu0  ;;  %v4274_v12 = vld [vmem:[#allocation3 + $0x30] sm:$0xff] }
 0x439   : > { %4163 = vst.msk [vmem:[#allocation3 + $0x40] sm:$0xff] %vm1172_vm2, %v4118_v56  ;;  %v4613_v11 = vadd.f32 %v17708_v1, %v4274_v12  ;;  %v3781_v56 = vld [vmem:[#allocation3 + $0x50] sm:$0xff] }
 0x43a   : > { %v3963_v39 = vpop.f32.mrf.mxu1  ;;  %v18083_v41 = vpop.f32.mrf.mxu0 }
 0x43b   : > { %v4119_v19 = vadd.f32 %v3963_v39, %v3780_v23  ;;  %4658 = vst.msk [vmem:[#allocation3 + $0x30] sm:$0xff] %vm1172_vm2, %v4613_v11  ;;  %v4712_v23 = vld [vmem:[#allocation2 + $0xa1] sm:$0xff] }
 0x43c   : > { %v15290_v5 = vpop.f32.mrf.mxu1  ;;  %v15568_v8 = vpop.f32.mrf.mxu0  ;;  %v4275_v34 = vld [vmem:[#allocation3 + $0x38] sm:$0xff] }
 0x43d   : > { %4164 = vst.msk [vmem:[#allocation3 + $0x48] sm:$0xff] %vm1172_vm2, %v4119_v19  ;;  %v4614_v0 = vadd.f32 %v17718_v2, %v4275_v34  ;;  %v3782_v39 = vld [vmem:[#allocation3 + $0x58] sm:$0xff]  ;;  %v4711_v8 = vld [vmem:[#allocation2 + $0x99] sm:$0xff] }
 0x43e   : > { %v3968_v20 = vpop.f32.mrf.mxu1  ;;  %15484 = vmatmul.mubr.msk.bf16.gmra.mxu1 %vm1121_vm1, %v4748_v36  ;;  %v18089_v1 = vpop.f32.mrf.mxu0 }
 0x43f   : > { %v4120_v51 = vadd.f32 %v3968_v20, %v3781_v56  ;;  %15487 = vmatprep.mubr.msk.bf16.mxu1 %vm16401_vm0, %v20321_v47  ;;  %4659 = vst.msk [vmem:[#allocation3 + $0x38] sm:$0xff] %vm1172_vm2, %v4614_v0  ;;  %v4749_v56 = vpack.c.bf16 %v4712_v23, %v4711_v8 }
 0x440   : > { %v15293_v12 = vpop.f32.mrf.mxu1  ;;  %v15571_v11 = vpop.f32.mrf.mxu0  ;;  %v4276_v26 = vld [vmem:[#allocation3 + $0x40] sm:$0xff] }
 0x441   : > { %4165 = vst.msk [vmem:[#allocation3 + $0x50] sm:$0xff] %vm1172_vm2, %v4120_v51  ;;  %v4615_v2 = vadd.f32 %v17724_v48, %v4276_v26  ;;  %v3783_v51 = vld [vmem:[#allocation3 + $0x60] sm:$0xff] }
 0x442   : > { %v3971_v19 = vpop.f32.mrf.mxu1  ;;  %v18096_v58 = vpop.f32.mrf.mxu0 }
 0x443   : > { %v4121_v5 = vadd.f32 %v3971_v19, %v3782_v39  ;;  %4660 = vst.msk [vmem:[#allocation3 + $0x40] sm:$0xff] %vm1172_vm2, %v4615_v2  ;;  %v4714_v39 = vld [vmem:[#allocation2 + $0xb1] sm:$0xff] }
 0x444   : > { %v15294_v36 = vpop.f32.mrf.mxu1  ;;  %v15572_v34 = vpop.f32.mrf.mxu0  ;;  %v4277_v0 = vld [vmem:[#allocation3 + $0x48] sm:$0xff] }
 0x445   : > { %4166 = vst.msk [vmem:[#allocation3 + $0x58] sm:$0xff] %vm1172_vm2, %v4121_v5  ;;  %v4616_v20 = vadd.f32 %v17734_v29, %v4277_v0  ;;  %v3784_v19 = vld [vmem:[#allocation3 + $0x68] sm:$0xff]  ;;  %v4713_v34 = vld [vmem:[#allocation2 + $0xa9] sm:$0xff] }
 0x446   : > { %v3976_v12 = vpop.f32.mrf.mxu1  ;;  %15488 = vmatmul.mubr.msk.bf16.gmra.mxu1 %vm1121_vm1, %v4749_v56  ;;  %v18102_v48 = vpop.f32.mrf.mxu0 }
 0x447   : > { %v4122_v11 = vadd.f32 %v3976_v12, %v3783_v51  ;;  %15491 = vmatprep.mubr.msk.bf16.mxu1 %vm16401_vm0, %v20321_v47  ;;  %4661 = vst.msk [vmem:[#allocation3 + $0x48] sm:$0xff] %vm1172_vm2, %v4616_v20  ;;  %v4750_v51 = vpack.c.bf16 %v4714_v39, %v4713_v34 }
 0x448   : > { %v15297_v26 = vpop.f32.mrf.mxu1  ;;  %v15575_v2 = vpop.f32.mrf.mxu0  ;;  %v4278_v23 = vld [vmem:[#allocation3 + $0x50] sm:$0xff] }
 0x449   : > { %4167 = vst.msk [vmem:[#allocation3 + $0x60] sm:$0xff] %vm1172_vm2, %v4122_v11  ;;  %v4617_v29 = vadd.f32 %v17740_v61, %v4278_v23  ;;  %v3785_v11 = vld [vmem:[#allocation3 + $0x70] sm:$0xff] }
 0x44a   : > { %v3979_v5 = vpop.f32.mrf.mxu1  ;;  %v18109_v8 = vpop.f32.mrf.mxu0 }
 0x44b   : > { %v4123_v36 = vadd.f32 %v3979_v5, %v3784_v19  ;;  %4662 = vst.msk [vmem:[#allocation3 + $0x50] sm:$0xff] %vm1172_vm2, %v4617_v29  ;;  %v4716_v19 = vld [vmem:[#allocation2 + $0xc1] sm:$0xff] }
 0x44c   : > { %v15298_v56 = vpop.f32.mrf.mxu1  ;;  %v15576_v0 = vpop.f32.mrf.mxu0  ;;  %v4279_v20 = vld [vmem:[#allocation3 + $0x58] sm:$0xff] }
 0x44d   : > { %4168 = vst.msk [vmem:[#allocation3 + $0x68] sm:$0xff] %vm1172_vm2, %v4123_v36  ;;  %v4618_v12 = vadd.f32 %v17750_v63, %v4279_v20  ;;  %v3786_v5 = vld [vmem:[#allocation3 + $0x78] sm:$0xff]  ;;  %v4715_v0 = vld [vmem:[#allocation2 + $0xb9] sm:$0xff] }
 0x44e   : > { %v3984_v26 = vpop.f32.mrf.mxu1  ;;  %15492 = vmatmul.mubr.msk.bf16.gmra.mxu1 %vm1121_vm1, %v4750_v51  ;;  %v18115_v61 = vpop.f32.mrf.mxu0 }
 0x44f   : > { %v4124_v2 = vadd.f32 %v3984_v26, %v3785_v11  ;;  %15495 = vmatprep.mubr.msk.bf16.mxu1 %vm16401_vm0, %v20321_v47  ;;  %4663 = vst.msk [vmem:[#allocation3 + $0x58] sm:$0xff] %vm1172_vm2, %v4618_v12  ;;  %v4751_v11 = vpack.c.bf16 %v4716_v19, %v4715_v0 }
 0x450   : > { %v15301_v23 = vpop.f32.mrf.mxu1  ;;  %v15579_v29 = vpop.f32.mrf.mxu0  ;;  %v4280_v39 = vld [vmem:[#allocation3 + $0x60] sm:$0xff] }
 0x451   : > { %4169 = vst.msk [vmem:[#allocation3 + $0x70] sm:$0xff] %vm1172_vm2, %v4124_v2  ;;  %v4619_v63 = vadd.f32 %v17756_v9, %v4280_v39  ;;  %v3787_v2 = vld [vmem:[#allocation3 + $0x80] sm:$0xff] }
 0x452   : > { %v3987_v36 = vpop.f32.mrf.mxu1  ;;  %v18122_v34 = vpop.f32.mrf.mxu0 }
 0x453   : > { %v4125_v56 = vadd.f32 %v3987_v36, %v3786_v5  ;;  %4664 = vst.msk [vmem:[#allocation3 + $0x60] sm:$0xff] %vm1172_vm2, %v4619_v63  ;;  %v4718_v5 = vld [vmem:[#allocation2 + $0xd1] sm:$0xff] }
 0x454   : > { %v15302_v51 = vpop.f32.mrf.mxu1  ;;  %v15580_v20 = vpop.f32.mrf.mxu0  ;;  %v4281_v12 = vld [vmem:[#allocation3 + $0x68] sm:$0xff] }
 0x455   : > { %4170 = vst.msk [vmem:[#allocation3 + $0x78] sm:$0xff] %vm1172_vm2, %v4125_v56  ;;  %v4620_v26 = vadd.f32 %v17766_v31, %v4281_v12  ;;  %v3788_v36 = vld [vmem:[#allocation3 + $0x88] sm:$0xff]  ;;  %v4717_v20 = vld [vmem:[#allocation2 + $0xc9] sm:$0xff] }
 0x456   : > { %v3992_v23 = vpop.f32.mrf.mxu1  ;;  %15496 = vmatmul.mubr.msk.bf16.gmra.mxu1 %vm1121_vm1, %v4751_v11  ;;  %v18128_v9 = vpop.f32.mrf.mxu0 }
 0x457   : > { %v4126_v29 = vadd.f32 %v3992_v23, %v3787_v2  ;;  %15499 = vmatprep.mubr.msk.bf16.mxu1 %vm16401_vm0, %v20321_v47  ;;  %4665 = vst.msk [vmem:[#allocation3 + $0x68] sm:$0xff] %vm1172_vm2, %v4620_v26  ;;  %v4752_v2 = vpack.c.bf16 %v4718_v5, %v4717_v20 }
 0x458   : > { %v15305_v39 = vpop.f32.mrf.mxu1  ;;  %v15583_v63 = vpop.f32.mrf.mxu0  ;;  %v4282_v19 = vld [vmem:[#allocation3 + $0x70] sm:$0xff] }
 0x459   : > { %4171 = vst.msk [vmem:[#allocation3 + $0x80] sm:$0xff] %vm1172_vm2, %v4126_v29  ;;  %v4621_v31 = vadd.f32 %v17772_v22, %v4282_v19  ;;  %v3789_v29 = vld [vmem:[#allocation3 + $0x90] sm:$0xff] }
 0x45a   : > { %v3995_v56 = vpop.f32.mrf.mxu1  ;;  %v18135_v0 = vpop.f32.mrf.mxu0 }
 0x45b   : > { %v4127_v51 = vadd.f32 %v3995_v56, %v3788_v36  ;;  %4666 = vst.msk [vmem:[#allocation3 + $0x70] sm:$0xff] %vm1172_vm2, %v4621_v31  ;;  %v4720_v36 = vld [vmem:[#allocation2 + $0xe1] sm:$0xff] }
 0x45c   : > { %v15306_v11 = vpop.f32.mrf.mxu1  ;;  %v15584_v12 = vpop.f32.mrf.mxu0  ;;  %v4283_v26 = vld [vmem:[#allocation3 + $0x78] sm:$0xff] }
 0x45d   : > { %4172 = vst.msk [vmem:[#allocation3 + $0x88] sm:$0xff] %vm1172_vm2, %v4127_v51  ;;  %v4622_v23 = vadd.f32 %v17782_v25, %v4283_v26  ;;  %v3790_v56 = vld [vmem:[#allocation3 + $0x98] sm:$0xff]  ;;  %v4719_v12 = vld [vmem:[#allocation2 + $0xd9] sm:$0xff] }
 0x45e   : > { %v4000_v39 = vpop.f32.mrf.mxu1  ;;  %15500 = vmatmul.mubr.msk.bf16.gmra.mxu1 %vm1121_vm1, %v4752_v2  ;;  %v18141_v22 = vpop.f32.mrf.mxu0 }
 0x45f   : > { %v4128_v63 = vadd.f32 %v4000_v39, %v3789_v29  ;;  %15503 = vmatprep.mubr.msk.bf16.mxu1 %vm16401_vm0, %v20321_v47  ;;  %4667 = vst.msk [vmem:[#allocation3 + $0x78] sm:$0xff] %vm1172_vm2, %v4622_v23  ;;  %v4753_v29 = vpack.c.bf16 %v4720_v36, %v4719_v12  ;;  %v15808_v36 = vld [vmem:[%s20299_s5 + $0x4] ss:$8 sps:$4 sm:$0xff]   ;;  %v3792_v12 = vld [vmem:[#allocation3 + $0xa8] sm:$0xff] }
 0x460   : > { %v15309_v19 = vpop.f32.mrf.mxu1  ;;  %v15587_v31 = vpop.f32.mrf.mxu0  ;;  %v4284_v5 = vld [vmem:[#allocation3 + $0x80] sm:$0xff]  ;;  %5922 = vmatprep.subr.bf16.mxu0 %v15808_v36  ;;  %v3793_v36 = vld [vmem:[#allocation3 + $0xb0] sm:$0xff] }
 0x461   : > { %4173 = vst.msk [vmem:[#allocation3 + $0x90] sm:$0xff] %vm1172_vm2, %v4128_v63  ;;  %v4623_v25 = vadd.f32 %v17788_v45, %v4284_v5  ;;  %v3791_v63 = vld [vmem:[#allocation3 + $0xa0] sm:$0xff]  ;;  %v15806_v5 = vld [vmem:[%s20299_s5] ss:$8 sps:$4 sm:$0xff]  }
 0x462   : > { %v4003_v51 = vpop.f32.mrf.mxu1  ;;  %v18148_v20 = vpop.f32.mrf.mxu0  ;;  %5923 = vmatpush1.bf16.msra.mxu0 %v15806_v5 }
 0x463   : > { %v4129_v11 = vadd.f32 %v4003_v51, %v3790_v56  ;;  %4668 = vst.msk [vmem:[#allocation3 + $0x80] sm:$0xff] %vm1172_vm2, %v4623_v25  ;;  %v4722_v51 = vld [vmem:[#allocation2 + $0xf1] sm:$0xff] }
 0x464   : > { %v15310_v2 = vpop.f32.mrf.mxu1  ;;  %v15588_v26 = vpop.f32.mrf.mxu0  ;;  %v4285_v23 = vld [vmem:[#allocation3 + $0x88] sm:$0xff] }
 0x465   : > { %4174 = vst.msk [vmem:[#allocation3 + $0x98] sm:$0xff] %vm1172_vm2, %v4129_v11  ;;  %v4624_v39 = vadd.f32 %v17798_v27, %v4285_v23  ;;  %v4721_v23 = vld [vmem:[#allocation2 + $0xe9] sm:$0xff] }
 0x466   : > { %v4008_v19 = vpop.f32.mrf.mxu1  ;;  %15504 = vmatmul.mubr.msk.bf16.gmra.mxu1 %vm1121_vm1, %v4753_v29  ;;  %v18154_v45 = vpop.f32.mrf.mxu0 }
 0x467   : > { %v4130_v31 = vadd.f32 %v4008_v19, %v3791_v63  ;;  %15507 = vmatprep.mubr.msk.bf16.mxu1 %vm16401_vm0, %v20321_v47  ;;  %4669 = vst.msk [vmem:[#allocation3 + $0x88] sm:$0xff] %vm1172_vm2, %v4624_v39  ;;  %v4754_v19 = vpack.c.bf16 %v4722_v51, %v4721_v23 }
 0x468   : > { %v15313_v27 = vpop.f32.mrf.mxu1  ;;  %v15591_v25 = vpop.f32.mrf.mxu0  ;;  %v4286_v56 = vld [vmem:[#allocation3 + $0x90] sm:$0xff] }
 0x469   : > { %4175 = vst.msk [vmem:[#allocation3 + $0xa0] sm:$0xff] %vm1172_vm2, %v4130_v31  ;;  %v4625_v11 = vadd.f32 %v17804_v54, %v4286_v56 }
 0x46a   : > { %v4011_v2 = vpop.f32.mrf.mxu1  ;;  %v18167_v26 = vpop.f32.mrf.mxu0 }
 0x46b   : > { %v4131_v29 = vadd.f32 %v4011_v2, %v3792_v12  ;;  %4670 = vst.msk [vmem:[#allocation3 + $0x90] sm:$0xff] %vm1172_vm2, %v4625_v11  ;;  %v4724_v12 = vld [vmem:[#allocation2 + $0x101] sm:$0xff] }
 0x46c   : > { %v15314_v63 = vpop.f32.mrf.mxu1  ;;  %v15592_v39 = vpop.f32.mrf.mxu0  ;;  %v4287_v27 = vld [vmem:[#allocation3 + $0x98] sm:$0xff] }
 0x46d   : > { %4176 = vst.msk [vmem:[#allocation3 + $0xa8] sm:$0xff] %vm1172_vm2, %v4131_v29  ;;  %v4626_v31 = vadd.f32 %v17814_v59, %v4287_v27  ;;  %v3794_v2 = vld [vmem:[#allocation3 + $0xb8] sm:$0xff]  ;;  %v15811_v63 = vld [vmem:[%s20299_s5 + $0x54] ss:$8 sps:$4 sm:$0xff]  }
 0x46e   : > { %v4016_v25 = vpop.f32.mrf.mxu1  ;;  %15508 = vmatmul.mubr.msk.bf16.gmra.mxu1 %vm1121_vm1, %v4754_v19  ;;  %v18173_v54 = vpop.f32.mrf.mxu0  ;;  %v4723_v19 = vld [vmem:[#allocation2 + $0xf9] sm:$0xff]  ;;  %6100 = vmatprep.subr.bf16.mxu1 %v15811_v63 }
 0x46f   : > { %v4132_v56 = vadd.f32 %v4016_v25, %v3793_v36  ;;  %15511 = vmatprep.mubr.msk.bf16.mxu1 %vm16401_vm0, %v20321_v47  ;;  %4671 = vst.msk [vmem:[#allocation3 + $0x98] sm:$0xff] %vm1172_vm2, %v4626_v31  ;;  %v4755_v36 = vpack.c.bf16 %v4724_v12, %v4723_v19  ;;  %v3796_v63 = vld [vmem:[#allocation3 + $0xc8] sm:$0xff] }
 0x470   : > { %v15317_v5 = vpop.f32.mrf.mxu1  ;;  %v15595_v11 = vpop.f32.mrf.mxu0  ;;  %v4288_v51 = vld [vmem:[#allocation3 + $0xa0] sm:$0xff] }
 0x471   : > { %4177 = vst.msk [vmem:[#allocation3 + $0xb0] sm:$0xff] %vm1172_vm2, %v4132_v56  ;;  %v4627_v59 = vadd.f32 %v17820_v10, %v4288_v51  ;;  %v3795_v56 = vld [vmem:[#allocation3 + $0xc0] sm:$0xff] }
 0x472   : > { %v4019_v29 = vpop.f32.mrf.mxu1  ;;  %v18180_v23 = vpop.f32.mrf.mxu0 }
 0x473   : > { %v4133_v39 = vadd.f32 %v4019_v29, %v3794_v2  ;;  %4672 = vst.msk [vmem:[#allocation3 + $0xa0] sm:$0xff] %vm1172_vm2, %v4627_v59  ;;  %v4726_v29 = vld [vmem:[#allocation2 + $0x111] sm:$0xff] }
 0x474   : > { %v15318_v27 = vpop.f32.mrf.mxu1  ;;  %v15596_v31 = vpop.f32.mrf.mxu0  ;;  %v4289_v25 = vld [vmem:[#allocation3 + $0xa8] sm:$0xff] }
 0x475   : > { %4178 = vst.msk [vmem:[#allocation3 + $0xb8] sm:$0xff] %vm1172_vm2, %v4133_v39  ;;  %v4628_v10 = vadd.f32 %v17833_v44, %v4289_v25  ;;  %v4725_v31 = vld [vmem:[#allocation2 + $0x109] sm:$0xff] }
 0x476   : > { %v4024_v5 = vpop.f32.mrf.mxu1  ;;  %15512 = vmatmul.mubr.msk.bf16.gmra.mxu1 %vm1121_vm1, %v4755_v36  ;;  %v18189_v11 = vpop.f32.mrf.mxu0 }
 0x477   : > { %v4134_v51 = vadd.f32 %v4024_v5, %v3795_v56  ;;  %15515 = vmatprep.mubr.msk.bf16.mxu1 %vm16401_vm0, %v20321_v47  ;;  %4673 = vst.msk [vmem:[#allocation3 + $0xa8] sm:$0xff] %vm1172_vm2, %v4628_v10  ;;  %v4756_v56 = vpack.c.bf16 %v4726_v29, %v4725_v31 }
 0x478   : > { %v15321_v59 = vpop.f32.mrf.mxu1  ;;  %v15599_v12 = vpop.f32.mrf.mxu0  ;;  %v4290_v2 = vld [vmem:[#allocation3 + $0xb0] sm:$0xff] }
 0x479   : > { %4179 = vst.msk [vmem:[#allocation3 + $0xc0] sm:$0xff] %vm1172_vm2, %v4134_v51  ;;  %v4629_v44 = vadd.f32 %v17839_v40, %v4290_v2  ;;  %v3797_v51 = vld [vmem:[#allocation3 + $0xd0] sm:$0xff]  ;;  %v15823_v12 = vld [vmem:[%s20299_s5 + $0x154] ss:$8 sps:$4 sm:$0xff]  }
 0x47a   : > { %v4027_v39 = vpop.f32.mrf.mxu1  ;;  %v18196_v19 = vpop.f32.mrf.mxu0  ;;  %6820 = vmatprep.subr.bf16.mxu0 %v15823_v12 }
 0x47b   : > { %v4135_v27 = vadd.f32 %v4027_v39, %v3796_v63  ;;  %4674 = vst.msk [vmem:[#allocation3 + $0xb0] sm:$0xff] %vm1172_vm2, %v4629_v44  ;;  %v4728_v63 = vld [vmem:[#allocation2 + $0x121] sm:$0xff] }
 0x47c   : > { %v15322_v36 = vpop.f32.mrf.mxu1  ;;  %v15600_v25 = vpop.f32.mrf.mxu0  ;;  %v4291_v10 = vld [vmem:[#allocation3 + $0xb8] sm:$0xff] }
 0x47d   : > { %4180 = vst.msk [vmem:[#allocation3 + $0xc8] sm:$0xff] %vm1172_vm2, %v4135_v27  ;;  %v4630_v5 = vadd.f32 %v17849_v46, %v4291_v10  ;;  %v3798_v27 = vld [vmem:[#allocation3 + $0xd8] sm:$0xff] }
 0x47e   : > { %v4032_v59 = vpop.f32.mrf.mxu1  ;;  %15516 = vmatmul.mubr.msk.bf16.gmra.mxu1 %vm1121_vm1, %v4756_v56  ;;  %v18202_v40 = vpop.f32.mrf.mxu0  ;;  %v4727_v56 = vld [vmem:[#allocation2 + $0x119] sm:$0xff] }
 0x47f   : > { %v4136_v2 = vadd.f32 %v4032_v59, %v3797_v51  ;;  %15519 = vmatprep.mubr.msk.bf16.mxu1 %vm16401_vm0, %v20321_v47  ;;  %4675 = vst.msk [vmem:[#allocation3 + $0xb8] sm:$0xff] %vm1172_vm2, %v4630_v5  ;;  %v4757_v5 = vpack.c.bf16 %v4728_v63, %v4727_v56 }
 0x480   : > { %v15325_v29 = vpop.f32.mrf.mxu1  ;;  %v15603_v44 = vpop.f32.mrf.mxu0  ;;  %v4292_v46 = vld [vmem:[#allocation3 + $0xc0] sm:$0xff] }
 0x481   : > { %4181 = vst.msk [vmem:[#allocation3 + $0xd0] sm:$0xff] %vm1172_vm2, %v4136_v2  ;;  %v4631_v39 = vadd.f32 %v17855_v28, %v4292_v46  ;;  %v3799_v2 = vld [vmem:[#allocation3 + $0xe0] sm:$0xff] }
 0x482   : > { %v4035_v31 = vpop.f32.mrf.mxu1  ;;  %v18212_v36 = vpop.f32.mrf.mxu0 }
 0x483   : > { %v4137_v25 = vadd.f32 %v4035_v31, %v3798_v27  ;;  %4676 = vst.msk [vmem:[#allocation3 + $0xc0] sm:$0xff] %vm1172_vm2, %v4631_v39  ;;  %v4730_v27 = vld [vmem:[#allocation2 + $0x131] sm:$0xff] }
 0x484   : > { %v15326_v10 = vpop.f32.mrf.mxu1  ;;  %v15604_v51 = vpop.f32.mrf.mxu0  ;;  %v4293_v59 = vld [vmem:[#allocation3 + $0xc8] sm:$0xff] }
 0x485   : > { %4182 = vst.msk [vmem:[#allocation3 + $0xd8] sm:$0xff] %vm1172_vm2, %v4137_v25  ;;  %v4632_v12 = vadd.f32 %v17865_v49, %v4293_v59  ;;  %v3800_v31 = vld [vmem:[#allocation3 + $0xe8] sm:$0xff]  ;;  %v4729_v51 = vld [vmem:[#allocation2 + $0x129] sm:$0xff] }
 0x486   : > { %v4040_v29 = vpop.f32.mrf.mxu1  ;;  %15520 = vmatmul.mubr.msk.bf16.gmra.mxu1 %vm1121_vm1, %v4757_v5  ;;  %v18218_v28 = vpop.f32.mrf.mxu0 }
 0x487   : > { %v4138_v44 = vadd.f32 %v4040_v29, %v3799_v2  ;;  %15523 = vmatprep.mubr.msk.bf16.mxu1 %vm16401_vm0, %v20321_v47  ;;  %4677 = vst.msk [vmem:[#allocation3 + $0xc8] sm:$0xff] %vm1172_vm2, %v4632_v12  ;;  %v4758_v2 = vpack.c.bf16 %v4730_v27, %v4729_v51 }
 0x488   : > { %v15329_v46 = vpop.f32.mrf.mxu1  ;;  %v15607_v39 = vpop.f32.mrf.mxu0  ;;  %v4294_v63 = vld [vmem:[#allocation3 + $0xd0] sm:$0xff] }
 0x489   : > { %4183 = vst.msk [vmem:[#allocation3 + $0xe0] sm:$0xff] %vm1172_vm2, %v4138_v44  ;;  %v4633_v49 = vadd.f32 %v17871_v35, %v4294_v63  ;;  %v3801_v44 = vld [vmem:[#allocation3 + $0xf0] sm:$0xff] }
 0x48a   : > { %v4043_v25 = vpop.f32.mrf.mxu1  ;;  %v18225_v56 = vpop.f32.mrf.mxu0 }
 0x48b   : > { %v4139_v10 = vadd.f32 %v4043_v25, %v3800_v31  ;;  %4678 = vst.msk [vmem:[#allocation3 + $0xd0] sm:$0xff] %vm1172_vm2, %v4633_v49  ;;  %v4732_v31 = vld [vmem:[#allocation2 + $0x141] sm:$0xff] }
 0x48c   : > { %v15330_v5 = vpop.f32.mrf.mxu1  ;;  %v15608_v59 = vpop.f32.mrf.mxu0  ;;  %v4295_v12 = vld [vmem:[#allocation3 + $0xd8] sm:$0xff] }
 0x48d   : > { %4184 = vst.msk [vmem:[#allocation3 + $0xe8] sm:$0xff] %vm1172_vm2, %v4139_v10  ;;  %v4634_v29 = vadd.f32 %v17881_v17, %v4295_v12  ;;  %v3802_v25 = vld [vmem:[#allocation3 + $0xf8] sm:$0xff]  ;;  %v4731_v59 = vld [vmem:[#allocation2 + $0x139] sm:$0xff] }
 0x48e   : > { %v4048_v46 = vpop.f32.mrf.mxu1  ;;  %15524 = vmatmul.mubr.msk.bf16.gmra.mxu1 %vm1121_vm1, %v4758_v2  ;;  %v18231_v35 = vpop.f32.mrf.mxu0 }
 0x48f   : > { %v4140_v39 = vadd.f32 %v4048_v46, %v3801_v44  ;;  %15527 = vmatprep.mubr.msk.bf16.mxu1 %vm16401_vm0, %v20321_v47  ;;  %4679 = vst.msk [vmem:[#allocation3 + $0xd8] sm:$0xff] %vm1172_vm2, %v4634_v29  ;;  %v4759_v44 = vpack.c.bf16 %v4732_v31, %v4731_v59 }
 0x490   : > { %v15333_v63 = vpop.f32.mrf.mxu1  ;;  %v15611_v49 = vpop.f32.mrf.mxu0  ;;  %v4296_v27 = vld [vmem:[#allocation3 + $0xe0] sm:$0xff] }
 0x491   : > { %4185 = vst.msk [vmem:[#allocation3 + $0xf0] sm:$0xff] %vm1172_vm2, %v4140_v39  ;;  %v4635_v17 = vadd.f32 %v17887_v37, %v4296_v27  ;;  %v3803_v39 = vld [vmem:[#allocation3 + $0x100] sm:$0xff] }
 0x492   : > { %v4051_v10 = vpop.f32.mrf.mxu1  ;;  %v18238_v51 = vpop.f32.mrf.mxu0 }
 0x493   : > { %v4141_v5 = vadd.f32 %v4051_v10, %v3802_v25  ;;  %4680 = vst.msk [vmem:[#allocation3 + $0xe0] sm:$0xff] %vm1172_vm2, %v4635_v17  ;;  %v4734_v25 = vld [vmem:[#allocation2 + $0x151] sm:$0xff] }
 0x494   : > { %v15334_v2 = vpop.f32.mrf.mxu1  ;;  %v15612_v12 = vpop.f32.mrf.mxu0  ;;  %v4297_v29 = vld [vmem:[#allocation3 + $0xe8] sm:$0xff] }
 0x495   : > { %4186 = vst.msk [vmem:[#allocation3 + $0xf8] sm:$0xff] %vm1172_vm2, %v4141_v5  ;;  %v4636_v46 = vadd.f32 %v17897_v14, %v4297_v29  ;;  %v3804_v10 = vld [vmem:[#allocation3 + $0x108] sm:$0xff]  ;;  %v4733_v12 = vld [vmem:[#allocation2 + $0x149] sm:$0xff] }
 0x496   : > { %v4056_v63 = vpop.f32.mrf.mxu1  ;;  %15528 = vmatmul.mubr.msk.bf16.gmra.mxu1 %vm1121_vm1, %v4759_v44  ;;  %v18244_v37 = vpop.f32.mrf.mxu0 }
 0x497   : > { %v4142_v49 = vadd.f32 %v4056_v63, %v3803_v39  ;;  %15531 = vmatprep.mubr.msk.bf16.mxu1 %vm16401_vm0, %v20321_v47  ;;  %4681 = vst.msk [vmem:[#allocation3 + $0xe8] sm:$0xff] %vm1172_vm2, %v4636_v46  ;;  %v4760_v39 = vpack.c.bf16 %v4734_v25, %v4733_v12 }
 0x498   : > { %v15337_v27 = vpop.f32.mrf.mxu1  ;;  %v15615_v17 = vpop.f32.mrf.mxu0  ;;  %v4298_v31 = vld [vmem:[#allocation3 + $0xf0] sm:$0xff] }
 0x499   : > { %4187 = vst.msk [vmem:[#allocation3 + $0x100] sm:$0xff] %vm1172_vm2, %v4142_v49  ;;  %v4637_v14 = vadd.f32 %v17903_v42, %v4298_v31  ;;  %v3805_v49 = vld [vmem:[#allocation3 + $0x110] sm:$0xff] }
 0x49a   : > { %v4059_v5 = vpop.f32.mrf.mxu1  ;;  %v18251_v59 = vpop.f32.mrf.mxu0 }
 0x49b   : > { %v4143_v2 = vadd.f32 %v4059_v5, %v3804_v10  ;;  %4682 = vst.msk [vmem:[#allocation3 + $0xf0] sm:$0xff] %vm1172_vm2, %v4637_v14  ;;  %v4736_v10 = vld [vmem:[#allocation2 + $0x161] sm:$0xff] }
 0x49c   : > { %v15338_v44 = vpop.f32.mrf.mxu1  ;;  %v15616_v29 = vpop.f32.mrf.mxu0  ;;  %v4299_v46 = vld [vmem:[#allocation3 + $0xf8] sm:$0xff] }
 0x49d   : > { %4188 = vst.msk [vmem:[#allocation3 + $0x108] sm:$0xff] %vm1172_vm2, %v4143_v2  ;;  %v4638_v63 = vadd.f32 %v17913_v32, %v4299_v46  ;;  %v3806_v5 = vld [vmem:[#allocation3 + $0x118] sm:$0xff]  ;;  %v4735_v29 = vld [vmem:[#allocation2 + $0x159] sm:$0xff] }
 0x49e   : > { %v4064_v27 = vpop.f32.mrf.mxu1  ;;  %15532 = vmatmul.mubr.msk.bf16.gmra.mxu1 %vm1121_vm1, %v4760_v39  ;;  %v18257_v42 = vpop.f32.mrf.mxu0 }
 0x49f   : > { %v4144_v17 = vadd.f32 %v4064_v27, %v3805_v49  ;;  %15535 = vmatprep.mubr.msk.bf16.mxu1 %vm16401_vm0, %v20321_v47  ;;  %4683 = vst.msk [vmem:[#allocation3 + $0xf8] sm:$0xff] %vm1172_vm2, %v4638_v63  ;;  %v4761_v49 = vpack.c.bf16 %v4736_v10, %v4735_v29 }
 0x4a0   : > { %v15341_v31 = vpop.f32.mrf.mxu1  ;;  %v15619_v14 = vpop.f32.mrf.mxu0  ;;  %v4300_v25 = vld [vmem:[#allocation3 + $0x100] sm:$0xff] }
 0x4a1   : > { %4189 = vst.msk [vmem:[#allocation3 + $0x110] sm:$0xff] %vm1172_vm2, %v4144_v17  ;;  %v4639_v32 = vadd.f32 %v17919_v60, %v4300_v25  ;;  %v3807_v17 = vld [vmem:[#allocation3 + $0x120] sm:$0xff] }
 0x4a2   : > { %v4067_v2 = vpop.f32.mrf.mxu1  ;;  %v18264_v12 = vpop.f32.mrf.mxu0 }
 0x4a3   : > { %v4145_v44 = vadd.f32 %v4067_v2, %v3806_v5  ;;  %4684 = vst.msk [vmem:[#allocation3 + $0x100] sm:$0xff] %vm1172_vm2, %v4639_v32  ;;  %v4738_v5 = vld [vmem:[#allocation2 + $0x171] sm:$0xff] }
 0x4a4   : > { %v15342_v39 = vpop.f32.mrf.mxu1  ;;  %v15620_v46 = vpop.f32.mrf.mxu0  ;;  %v4301_v63 = vld [vmem:[#allocation3 + $0x108] sm:$0xff] }
 0x4a5   : > { %4190 = vst.msk [vmem:[#allocation3 + $0x118] sm:$0xff] %vm1172_vm2, %v4145_v44  ;;  %v4640_v27 = vadd.f32 %v17929_v50, %v4301_v63  ;;  %v3808_v2 = vld [vmem:[#allocation3 + $0x128] sm:$0xff]  ;;  %v4737_v46 = vld [vmem:[#allocation2 + $0x169] sm:$0xff] }
 0x4a6   : > { %v4072_v31 = vpop.f32.mrf.mxu1  ;;  %15536 = vmatmul.mubr.msk.bf16.gmra.mxu1 %vm1121_vm1, %v4761_v49  ;;  %v18270_v60 = vpop.f32.mrf.mxu0 }
 0x4a7   : > { %v4146_v14 = vadd.f32 %v4072_v31, %v3807_v17  ;;  %15539 = vmatprep.mubr.msk.bf16.mxu1 %vm16401_vm0, %v20321_v47  ;;  %4685 = vst.msk [vmem:[#allocation3 + $0x108] sm:$0xff] %vm1172_vm2, %v4640_v27  ;;  %v4762_v17 = vpack.c.bf16 %v4738_v5, %v4737_v46 }
 0x4a8   : > { %v15345_v25 = vpop.f32.mrf.mxu1  ;;  %v15623_v32 = vpop.f32.mrf.mxu0  ;;  %v4302_v10 = vld [vmem:[#allocation3 + $0x110] sm:$0xff] }
 0x4a9   : > { %4191 = vst.msk [vmem:[#allocation3 + $0x120] sm:$0xff] %vm1172_vm2, %v4146_v14  ;;  %v4641_v50 = vadd.f32 %v17935_v18, %v4302_v10  ;;  %v3809_v14 = vld [vmem:[#allocation3 + $0x130] sm:$0xff] }
 0x4aa   : > { %v4075_v44 = vpop.f32.mrf.mxu1  ;;  %v18277_v29 = vpop.f32.mrf.mxu0 }
 0x4ab   : > { %v4147_v39 = vadd.f32 %v4075_v44, %v3808_v2  ;;  %4686 = vst.msk [vmem:[#allocation3 + $0x110] sm:$0xff] %vm1172_vm2, %v4641_v50  ;;  %v4739_v2 = vld [vmem:[#allocation2 + $0x179] sm:$0xff]  ;;  %v4740_v44 = vld [vmem:[#allocation2 + $0x181] sm:$0xff] }
 0x4ac   : > { %v15346_v49 = vpop.f32.mrf.mxu1  ;;  %v15624_v63 = vpop.f32.mrf.mxu0  ;;  %v4303_v27 = vld [vmem:[#allocation3 + $0x118] sm:$0xff] }
 0x4ad   : > { %4192 = vst.msk [vmem:[#allocation3 + $0x128] sm:$0xff] %vm1172_vm2, %v4147_v39  ;;  %v4642_v31 = vadd.f32 %v17945_v7, %v4303_v27  ;;  %v3810_v39 = vld [vmem:[#allocation3 + $0x138] sm:$0xff] }
 0x4ae   : > { %v4080_v25 = vpop.f32.mrf.mxu1  ;;  %15540 = vmatmul.mubr.msk.bf16.gmra.mxu1 %vm1121_vm1, %v4762_v17  ;;  %v18283_v18 = vpop.f32.mrf.mxu0 }
 0x4af   : > { %v4148_v32 = vadd.f32 %v4080_v25, %v3809_v14  ;;  %15543 = vmatprep.mubr.msk.bf16.mxu1 %vm16401_vm0, %v20321_v47  ;;  %4687 = vst.msk [vmem:[#allocation3 + $0x118] sm:$0xff] %vm1172_vm2, %v4642_v31  ;;  %v4763_v14 = vpack.c.bf16 %v4740_v44, %v4739_v2  ;;  %v4741_v44 = vld [vmem:[#allocation2 + $0x189] sm:$0x3f] }
 0x4b0   : > { %v15349_v10 = vpop.f32.mrf.mxu1  ;;  %v15627_v50 = vpop.f32.mrf.mxu0  ;;  %v4304_v5 = vld [vmem:[#allocation3 + $0x120] sm:$0xff] }
 0x4b1   : > { %4193 = vst.msk [vmem:[#allocation3 + $0x130] sm:$0xff] %vm1172_vm2, %v4148_v32  ;;  %v4643_v7 = vadd.f32 %v17957_v53, %v4304_v5  ;;  %v3811_v32 = vld [vmem:[#allocation3 + $0x140] sm:$0xff] }
 0x4b2   : > { %v4083_v46 = vpop.f32.mrf.mxu1  ;;  %v18290_v49 = vpop.f32.mrf.mxu0 }
 0x4b3   : > { %v4149_v63 = vadd.f32 %v4083_v46, %v3810_v39  ;;  %4688 = vst.msk [vmem:[#allocation3 + $0x120] sm:$0xff] %vm1172_vm2, %v4643_v7  ;;  %v3812_v39 = vld [vmem:[#allocation3 + $0x148] sm:$0xff] }
 0x4b4   : > { %v15350_v17 = vpop.f32.mrf.mxu1  ;;  %v15628_v27 = vpop.f32.mrf.mxu0  ;;  %v4305_v31 = vld [vmem:[#allocation3 + $0x128] sm:$0xff] }
 0x4b5   : > { %4194 = vst.msk [vmem:[#allocation3 + $0x138] sm:$0xff] %vm1172_vm2, %v4149_v63  ;;  %v4644_v25 = vadd.f32 %v17967_v15, %v4305_v31 }
 0x4b6   : > { %v4088_v10 = vpop.f32.mrf.mxu1  ;;  %15544 = vmatmul.mubr.msk.bf16.gmra.mxu1 %vm1121_vm1, %v4763_v14  ;;  %v18296_v53 = vpop.f32.mrf.mxu0 }
 0x4b7   : > { %v4150_v50 = vadd.f32 %v4088_v10, %v3811_v32  ;;  %15547 = vmatprep.mubr.msk.bf16.mxu1 %vm16401_vm0, %v20321_v47  ;;  %4689 = vst.msk [vmem:[#allocation3 + $0x128] sm:$0xff] %vm1172_vm2, %v4644_v25  ;;  %v4764_v47 = vpack.c.bf16 %v4741_v44, %v4741_v44  ;;  %v3813_v32 = vld [vmem:[#allocation3 + $0x150] sm:$0xff] }
 0x4b8   : > { %v15353_v5 = vpop.f32.mrf.mxu1  ;;  %v15631_v7 = vpop.f32.mrf.mxu0  ;;  %v4306_v2 = vld [vmem:[#allocation3 + $0x130] sm:$0xff] }
 0x4b9   : > { %4195 = vst.msk [vmem:[#allocation3 + $0x140] sm:$0xff] %vm1172_vm2, %v4150_v50  ;;  %v4645_v15 = vadd.f32 %v17973_v24, %v4306_v2 }
 0x4ba   : > { %v4091_v46 = vpop.f32.mrf.mxu1  ;;  %v18303_v63 = vpop.f32.mrf.mxu0 }
 0x4bb   : > { %v4151_v17 = vadd.f32 %v4091_v46, %v3812_v39  ;;  %4690 = vst.msk [vmem:[#allocation3 + $0x130] sm:$0xff] %vm1172_vm2, %v4645_v15  ;;  %v3814_v15 = vld [vmem:[#allocation3 + $0x158] sm:$0xff] }
 0x4bc   : > { %v15354_v27 = vpop.f32.mrf.mxu1  ;;  %v15632_v14 = vpop.f32.mrf.mxu0  ;;  %v4307_v31 = vld [vmem:[#allocation3 + $0x138] sm:$0xff] }
 0x4bd   : > { %4196 = vst.msk [vmem:[#allocation3 + $0x148] sm:$0xff] %vm1172_vm2, %v4151_v17  ;;  %v4646_v25 = vadd.f32 %v17983_v57, %v4307_v31  ;;  %v3815_v31 = vld [vmem:[#allocation3 + $0x160] sm:$0x3f] }
 0x4be   : > { %v4096_v10 = vpop.f32.mrf.mxu1  ;;  %15548 = vmatmul.mubr.msk.bf16.gmra.mxu1 %vm1121_vm1, %v4764_v47  ;;  %v18309_v24 = vpop.f32.mrf.mxu0 }
 0x4bf   : > { %v4152_v50 = vadd.f32 %v4096_v10, %v3813_v32  ;;  %6030 = vmatprep.mubr.bf16.mxu1 %v20322_v21  ;;  %4691 = vst.msk [vmem:[#allocation3 + $0x138] sm:$0xff] %vm1172_vm2, %v4646_v25 }
 0x4c0   : > { %v15357_v5 = vpop.f32.mrf.mxu1  ;;  %v15635_v7 = vpop.f32.mrf.mxu0  ;;  %v4308_v2 = vld [vmem:[#allocation3 + $0x140] sm:$0xff] }
 0x4c1   : > { %4197 = vst.msk [vmem:[#allocation3 + $0x150] sm:$0xff] %vm1172_vm2, %v4152_v50  ;;  %v4647_v44 = vadd.f32 %v17989_v13, %v4308_v2 }
 0x4c2   : > { %v4099_v57 = vpop.f32.mrf.mxu1  ;;  %v18315_v39 = vpop.f32.mrf.mxu0 }
 0x4c3   : > { %v4153_v46 = vadd.f32 %v4099_v57, %v3814_v15  ;;  %4692 = vst.msk [vmem:[#allocation3 + $0x140] sm:$0xff] %vm1172_vm2, %v4647_v44 }
 0x4c4   : > { %v15358_v17 = vpop.f32.mrf.mxu1  ;;  %v15636_v27 = vpop.f32.mrf.mxu0  ;;  %v4309_v14 = vld [vmem:[#allocation3 + $0x148] sm:$0xff] }
 0x4c5   : > { %4198 = vst.msk [vmem:[#allocation3 + $0x158] sm:$0xff] %vm1172_vm2, %v4153_v46  ;;  %v4648_v47 = vadd.f32 %v17999_v3, %v4309_v14  ;;  %v4765_v17 = vld [vmem:[#allocation3] sm:$0xff] }
 0x4c6   : > { %v4104_v25 = vpop.f32.mrf.mxu1  ;;  %v18320_v32 = vpop.f32.mrf.mxu0 }
 0x4c7   : > { %v4154_v10 = vadd.f32 %v4104_v25, %v3815_v31  ;;  %4693 = vst.msk [vmem:[#allocation3 + $0x148] sm:$0xff] %vm1172_vm2, %v4648_v47 }
 0x4c8   : > { %v15361_v13 = vpop.f32.mrf.mxu1  ;;  %v15639_v50 = vpop.f32.mrf.mxu0  ;;  %v4310_v5 = vld [vmem:[#allocation3 + $0x150] sm:$0xff] }
 0x4c9   : > { %4199 = vst.msk [vmem:[#allocation3 + $0x160] sm:$0x3f] %vm1217_vm3, %v4154_v10  ;;  %v4649_v7 = vadd.f32 %v18007_v43, %v4310_v5  ;;  %v4766_v13 = vld [vmem:[#allocation3 + $0x8] sm:$0xff] }
 0x4ca   : > { %v4107_v2 = vpop.f32.mrf.mxu1  ;;  %v18325_v44 = vpop.f32.mrf.mxu0 }
 0x4cb   : > { %4694 = vst.msk [vmem:[#allocation3 + $0x150] sm:$0xff] %vm1172_vm2, %v4649_v7 }
 0x4cc   : > { %v15362_v3 = vpop.f32.mrf.mxu1  ;;  %v15640_v15 = vpop.f32.mrf.mxu0  ;;  %v4311_v57 = vld [vmem:[#allocation3 + $0x158] sm:$0xff] }
 0x4cd   : > { %v4650_v46 = vadd.f32 %v18017_v38, %v4311_v57  ;;  %v4767_v3 = vld [vmem:[#allocation3 + $0x10] sm:$0xff] }
 0x4ce   : > { %v4922_v27 = vpop.f32.mrf.mxu1  ;;  %v18329_v14 = vpop.f32.mrf.mxu0 }
 0x4cf   : > { %v5104_v47 = vadd.f32 %v4922_v27, %v4765_v17  ;;  %4695 = vst.msk [vmem:[#allocation3 + $0x158] sm:$0xff] %vm1172_vm2, %v4650_v46 }
 0x4d0   : > { %v4312_v31 = vld [vmem:[#allocation3 + $0x160] sm:$0x3f]  ;;  %v15461_v25 = vpop.f32.mrf.mxu1  ;;  %v15643_v43 = vpop.f32.mrf.mxu0 }
 0x4d1   : > { %v4651_v10 = vadd.f32 %v18027_v33, %v4312_v31  ;;  %5149 = vst.msk [vmem:[#allocation3] sm:$0xff] %vm1172_vm2, %v5104_v47  ;;  %v4768_v33 = vld [vmem:[#allocation3 + $0x18] sm:$0xff] }
 0x4d2   : > { %v4925_v50 = vpop.f32.mrf.mxu1  ;;  %v5598_v5 = vpop.f32.mrf.mxu0 }
 0x4d3   : > { %4696 = vst.msk [vmem:[#allocation3 + $0x160] sm:$0x3f] %vm1217_vm3, %v4651_v10  ;;  %v5105_v38 = vadd.f32 %v4925_v50, %v4766_v13  ;;  %v4769_v13 = vld [vmem:[#allocation3 + $0x20] sm:$0xff] }
 0x4d4   : > { %v15462_v7 = vpop.f32.mrf.mxu1  ;;  %v15644_v2 = vpop.f32.mrf.mxu0 }
 0x4d5   : > { %5150 = vst.msk [vmem:[#allocation3 + $0x8] sm:$0xff] %vm1172_vm2, %v5105_v38 }
 0x4d6   : > { %v4930_v15 = vpop.f32.mrf.mxu1 }
 0x4d7   : > { %v5106_v57 = vadd.f32 %v4930_v15, %v4767_v3 }
 0x4d8   : > { %v5262_v46 = vld [vmem:[#allocation3] sm:$0xff]  ;;  %v15465_v17 = vpop.f32.mrf.mxu1 }
 0x4d9   : > { %v5601_v27 = vadd.f32 %v18038_v55, %v5262_v46  ;;  %5151 = vst.msk [vmem:[#allocation3 + $0x10] sm:$0xff] %vm1172_vm2, %v5106_v57  ;;  %v18345_v55 = vld [vmem:[%s20298_s4] ss:$0 sm:$0xff] }
 0x4da   : > { %v4933_v47 = vpop.f32.mrf.mxu1 }
 0x4db   : > { %5646 = vst.msk [vmem:[#allocation3] sm:$0xff] %vm1172_vm2, %v5601_v27  ;;  %v5107_v31 = vadd.f32 %v4933_v47, %v4768_v33 }
 0x4dc   : > { %v5263_v25 = vld [vmem:[#allocation3 + $0x8] sm:$0xff]  ;;  %v15466_v43 = vpop.f32.mrf.mxu1 }
 0x4dd   : > { %v5602_v10 = vadd.f32 %v18044_v30, %v5263_v25  ;;  %5152 = vst.msk [vmem:[#allocation3 + $0x18] sm:$0xff] %vm1172_vm2, %v5107_v31  ;;  %v4770_v30 = vld [vmem:[#allocation3 + $0x28] sm:$0xff]  ;;  %v4771_v25 = vld [vmem:[#allocation3 + $0x30] sm:$0xff] }
 0x4de   : > { %v4938_v50 = vpop.f32.mrf.mxu1 }
 0x4df   : > { %5647 = vst.msk [vmem:[#allocation3 + $0x8] sm:$0xff] %vm1172_vm2, %v5602_v10  ;;  %v5108_v5 = vadd.f32 %v4938_v50, %v4769_v13 }
 0x4e0   : > { %v5264_v38 = vld [vmem:[#allocation3 + $0x10] sm:$0xff]  ;;  %v15469_v7 = vpop.f32.mrf.mxu1 }
 0x4e1   : > { %v5603_v2 = vadd.f32 %v18050_v52, %v5264_v38  ;;  %5153 = vst.msk [vmem:[#allocation3 + $0x20] sm:$0xff] %vm1172_vm2, %v5108_v5  ;;  %v4772_v7 = vld [vmem:[#allocation3 + $0x38] sm:$0xff] }
 0x4e2   : > { %v5691_v3 = vld [vmem:[#allocation3] sm:$0xff]  ;;  %v4941_v15 = vpop.f32.mrf.mxu1 }
 0x4e3   : > { %v5743_v57 = vadd.f32 %v18345_v55, %v5691_v3  ;;  %5648 = vst.msk [vmem:[#allocation3 + $0x10] sm:$0xff] %vm1172_vm2, %v5603_v2  ;;  %v5109_v46 = vadd.f32 %v4941_v15, %v4770_v30 }
 0x4e4   : > { %v5265_v17 = vld [vmem:[#allocation3 + $0x18] sm:$0xff]  ;;  %v15470_v27 = vpop.f32.mrf.mxu1 }
 0x4e5   : > { %v5788_v33 = vmax.f32 %v5743_v57, 0.0  ;;  %v5604_v47 = vadd.f32 %v18057_v6, %v5265_v17  ;;  %5154 = vst.msk [vmem:[#allocation3 + $0x28] sm:$0xff] %vm1172_vm2, %v5109_v46  ;;  %v15809_v27 = vld [vmem:[%s20299_s5 + $0x50] ss:$8 sps:$4 sm:$0xff]  }
 0x4e6   : > { %v5692_v31 = vld [vmem:[#allocation3 + $0x8] sm:$0xff]  ;;  %v4946_v52 = vpop.f32.mrf.mxu1 }
 0x4e7   : > { %5833 = vst.msk [vmem:[#allocation3] sm:$0xff] %vm1172_vm2, %v5788_v33  ;;  %v5744_v43 = vadd.f32 %v18345_v55, %v5692_v31  ;;  %5649 = vst.msk [vmem:[#allocation3 + $0x18] sm:$0xff] %vm1172_vm2, %v5604_v47  ;;  %v5110_v10 = vadd.f32 %v4946_v52, %v4771_v25 }
 0x4e8   : > { %v5266_v13 = vld [vmem:[#allocation3 + $0x20] sm:$0xff]  ;;  %v15473_v50 = vpop.f32.mrf.mxu1 }
 0x4e9   : > { %v5789_v5 = vmax.f32 %v5744_v43, 0.0  ;;  %v5605_v38 = vadd.f32 %v18063_v4, %v5266_v13  ;;  %5155 = vst.msk [vmem:[#allocation3 + $0x30] sm:$0xff] %vm1172_vm2, %v5110_v10  ;;  %v4773_v4 = vld [vmem:[#allocation3 + $0x40] sm:$0xff]  ;;  %v15814_v13 = vld [vmem:[%s20299_s5 + $0x44] ss:$8 sps:$4 sm:$0xff]  }
 0x4ea   : > { %v5693_v6 = vld [vmem:[#allocation3 + $0x10] sm:$0xff]  ;;  %v4949_v2 = vpop.f32.mrf.mxu1  ;;  %v15821_v50 = vld [vmem:[%s20299_s5 + $0x150] ss:$8 sps:$4 sm:$0xff]  }
 0x4eb   : > { %5834 = vst.msk [vmem:[#allocation3 + $0x8] sm:$0xff] %vm1172_vm2, %v5789_v5  ;;  %v5745_v3 = vadd.f32 %v18345_v55, %v5693_v6  ;;  %5650 = vst.msk [vmem:[#allocation3 + $0x20] sm:$0xff] %vm1172_vm2, %v5605_v38  ;;  %v5111_v30 = vadd.f32 %v4949_v2, %v4772_v7  ;;  %v15829_v6 = vld [vmem:[%s20299_s5 + $0x144] ss:$8 sps:$4 sm:$0xff]  }
 0x4ec   : > { %v5267_v15 = vld [vmem:[#allocation3 + $0x28] sm:$0xff]  ;;  %v15474_v57 = vpop.f32.mrf.mxu1 }
 0x4ed   : > { %v5790_v46 = vmax.f32 %v5745_v3, 0.0  ;;  %v5606_v17 = vadd.f32 %v18070_v62, %v5267_v15  ;;  %5156 = vst.msk [vmem:[#allocation3 + $0x38] sm:$0xff] %vm1172_vm2, %v5111_v30  ;;  %v4774_v30 = vld [vmem:[#allocation3 + $0x48] sm:$0xff]  ;;  %v15812_v57 = vld [vmem:[%s20299_s5 + $0x40] ss:$8 sps:$4 sm:$0xff]  }
 0x4ee   : > { %v5694_v33 = vld [vmem:[#allocation3 + $0x18] sm:$0xff]  ;;  %v4954_v47 = vpop.f32.mrf.mxu1  ;;  %v5879_v31 = vld [vmem:[#allocation3] sm:$0x1]  ;;  %v5968_v25 = vld [vmem:[#allocation3 + $0x2] sm:$0x1] }
 0x4ef   : > { %5835 = vst.msk [vmem:[#allocation3 + $0x10] sm:$0xff] %vm1172_vm2, %v5790_v46  ;;  %v5746_v52 = vadd.f32 %v18345_v55, %v5694_v33  ;;  %5651 = vst.msk [vmem:[#allocation3 + $0x28] sm:$0xff] %vm1172_vm2, %v5606_v17  ;;  %v5112_v43 = vadd.f32 %v4954_v47, %v4773_v4  ;;  %v5880_v10 = vpack.c.bf16 %v5879_v31, %v5879_v31  ;;  %v15817_v17 = vld [vmem:[%s20299_s5 + $0x74] ss:$8 sps:$4 sm:$0xff]   ;;  %v15827_v4 = vld [vmem:[%s20299_s5 + $0x140] ss:$8 sps:$4 sm:$0xff]  }
 0x4f0   : > { %v5969_v62 = vpack.c.bf16 %v5968_v25, %v5968_v25  ;;  %v5268_v5 = vld [vmem:[#allocation3 + $0x30] sm:$0xff]  ;;  %v15477_v38 = vpop.f32.mrf.mxu1  ;;  %v6058_v47 = vld [vmem:[#allocation3 + $0x4] sm:$0x1] }
 0x4f1   : > { %v5791_v7 = vmax.f32 %v5746_v52, 0.0  ;;  %v5607_v2 = vadd.f32 %v18076_v16, %v5268_v5  ;;  %5157 = vst.msk [vmem:[#allocation3 + $0x40] sm:$0xff] %vm1172_vm2, %v5112_v43  ;;  %13820 = vmatmul.mubr.msk.bf16.vlgmr.msra.gmra.mxu0 %vm1172_vm2, %v5880_v10  ;;  %v15835_v31 = vld [vmem:[%s20299_s5 + $0x194] ss:$8 sps:$4 sm:$0xff]   ;;  %v4775_v10 = vld [vmem:[#allocation3 + $0x50] sm:$0xff]  ;;  %v6059_v38 = vpack.c.bf16 %v6058_v47, %v6058_v47 }
 0x4f2   : > { %13829 = vmatmul.mubr.msk.bf16.vlgmr.msra.gmra.mxu1 %vm1172_vm2, %v5969_v62  ;;  %v5695_v3 = vld [vmem:[#allocation3 + $0x20] sm:$0xff]  ;;  %v4957_v15 = vpop.f32.mrf.mxu1  ;;  %6821 = vmatpush1.bf16.msra.mxu0 %v15821_v50 }
 0x4f3   : > { %6101 = vmatpush1.bf16.msra.mxu1 %v15809_v27  ;;  %6120 = vmatprep.mubr.bf16.mxu1 %v20322_v21  ;;  %5836 = vst.msk [vmem:[#allocation3 + $0x18] sm:$0xff] %vm1172_vm2, %v5791_v7  ;;  %v5747_v16 = vadd.f32 %v18345_v55, %v5695_v3  ;;  %5652 = vst.msk [vmem:[#allocation3 + $0x30] sm:$0xff] %vm1172_vm2, %v5607_v2  ;;  %v5113_v46 = vadd.f32 %v4957_v15, %v4774_v30  ;;  %v4776_v15 = vld [vmem:[#allocation3 + $0x58] sm:$0xff] }
 0x4f4   : > { %6102 = vmatprep.subr.bf16.mxu1 %v15814_v13  ;;  %v5269_v27 = vld [vmem:[#allocation3 + $0x38] sm:$0xff]  ;;  %v15478_v33 = vpop.f32.mrf.mxu1  ;;  %6822 = vmatprep.subr.bf16.mxu0 %v15829_v6  ;;  %v15815_v13 = vld [vmem:[%s20299_s5 + $0x70] ss:$8 sps:$4 sm:$0xff]  }
 0x4f5   : > { %6840 = vmatprep.mubr.bf16.mxu0 %v20322_v21  ;;  %v5792_v25 = vmax.f32 %v5747_v16, 0.0  ;;  %v5608_v52 = vadd.f32 %v18083_v41, %v5269_v27  ;;  %5158 = vst.msk [vmem:[#allocation3 + $0x48] sm:$0xff] %vm1172_vm2, %v5113_v46  ;;  %v15820_v41 = vld [vmem:[%s20299_s5 + $0x64] ss:$8 sps:$4 sm:$0xff]   ;;  %v15818_v16 = vld [vmem:[%s20299_s5 + $0x60] ss:$8 sps:$4 sm:$0xff]  }
 0x4f6   : > { %v5696_v43 = vld [vmem:[#allocation3 + $0x28] sm:$0xff]  ;;  %v4962_v62 = vpop.f32.mrf.mxu1  ;;  %6823 = vmatpush1.bf16.msra.mxu0 %v15827_v4  ;;  %v6148_v33 = vld [vmem:[#allocation3 + $0x6] sm:$0x1] }
 0x4f7   : > { %6103 = vmatpush1.bf16.msra.mxu1 %v15812_v57  ;;  %5837 = vst.msk [vmem:[#allocation3 + $0x20] sm:$0xff] %vm1172_vm2, %v5792_v25  ;;  %v5748_v50 = vadd.f32 %v18345_v55, %v5696_v43  ;;  %5653 = vst.msk [vmem:[#allocation3 + $0x38] sm:$0xff] %vm1172_vm2, %v5608_v52  ;;  %v5114_v5 = vadd.f32 %v4962_v62, %v4775_v10  ;;  %7000 = vmatprep.subr.bf16.mxu0 %v15835_v31  ;;  %v4777_v52 = vld [vmem:[#allocation3 + $0x60] sm:$0xff] }
 0x4f8   : > { %6190 = vmatprep.subr.bf16.mxu1 %v15817_v17  ;;  %v5270_v6 = vld [vmem:[#allocation3 + $0x40] sm:$0xff]  ;;  %v15481_v7 = vpop.f32.mrf.mxu1 }
 0x4f9   : > { %v5793_v2 = vmax.f32 %v5748_v50, 0.0  ;;  %v5609_v3 = vadd.f32 %v18089_v1, %v5270_v6  ;;  %5159 = vst.msk [vmem:[#allocation3 + $0x50] sm:$0xff] %vm1172_vm2, %v5114_v5  ;;  %v15826_v17 = vld [vmem:[%s20299_s5 + $0x94] ss:$8 sps:$4 sm:$0xff]   ;;  %v15824_v10 = vld [vmem:[%s20299_s5 + $0x90] ss:$8 sps:$4 sm:$0xff]   ;;  %v6149_v50 = vpack.c.bf16 %v6148_v33, %v6148_v33 }
 0x4fa   : > { %13838 = vmatmul.mubr.msk.bf16.vlgmr.msra.gmra.mxu1 %vm1172_vm2, %v6059_v38  ;;  %v5697_v30 = vld [vmem:[#allocation3 + $0x30] sm:$0xff]  ;;  %v4965_v57 = vpop.f32.mrf.mxu1  ;;  %v4778_v7 = vld [vmem:[#allocation3 + $0x68] sm:$0xff] }
 0x4fb   : > { %6191 = vmatpush1.bf16.msra.mxu1 %v15815_v13  ;;  %6210 = vmatprep.mubr.bf16.mxu1 %v20322_v21  ;;  %5838 = vst.msk [vmem:[#allocation3 + $0x28] sm:$0xff] %vm1172_vm2, %v5793_v2  ;;  %v5749_v46 = vadd.f32 %v18345_v55, %v5697_v30  ;;  %5654 = vst.msk [vmem:[#allocation3 + $0x40] sm:$0xff] %vm1172_vm2, %v5609_v3  ;;  %v5115_v1 = vadd.f32 %v4965_v57, %v4776_v15  ;;  %v15830_v2 = vld [vmem:[%s20299_s5 + $0x80] ss:$8 sps:$4 sm:$0xff]   ;;  %v15833_v57 = vld [vmem:[%s20299_s5 + $0x190] ss:$8 sps:$4 sm:$0xff]  }
 0x4fc   : > { %6192 = vmatprep.subr.bf16.mxu1 %v15820_v41  ;;  %v5271_v4 = vld [vmem:[#allocation3 + $0x48] sm:$0xff]  ;;  %v15482_v27 = vpop.f32.mrf.mxu1 }
 0x4fd   : > { %v5794_v47 = vmax.f32 %v5749_v46, 0.0  ;;  %v5610_v31 = vadd.f32 %v18096_v58, %v5271_v4  ;;  %5160 = vst.msk [vmem:[#allocation3 + $0x58] sm:$0xff] %vm1172_vm2, %v5115_v1  ;;  %v15832_v58 = vld [vmem:[%s20299_s5 + $0x84] ss:$8 sps:$4 sm:$0xff]   ;;  %v15838_v1 = vld [vmem:[%s20299_s5 + $0xb4] ss:$8 sps:$4 sm:$0xff]  }
 0x4fe   : > { %v5698_v25 = vld [vmem:[#allocation3 + $0x38] sm:$0xff]  ;;  %v4970_v43 = vpop.f32.mrf.mxu1  ;;  %v6238_v33 = vld [vmem:[#allocation3 + $0x8] sm:$0x1] }
 0x4ff   : > { %6193 = vmatpush1.bf16.msra.mxu1 %v15818_v16  ;;  %5839 = vst.msk [vmem:[#allocation3 + $0x30] sm:$0xff] %vm1172_vm2, %v5794_v47  ;;  %v5750_v62 = vadd.f32 %v18345_v55, %v5698_v25  ;;  %5655 = vst.msk [vmem:[#allocation3 + $0x48] sm:$0xff] %vm1172_vm2, %v5610_v31  ;;  %v5116_v13 = vadd.f32 %v4970_v43, %v4777_v52  ;;  %v4779_v25 = vld [vmem:[#allocation3 + $0x70] sm:$0xff] }
 0x500   : > { %6280 = vmatprep.subr.bf16.mxu1 %v15826_v17  ;;  %v5272_v5 = vld [vmem:[#allocation3 + $0x50] sm:$0xff]  ;;  %v15485_v38 = vpop.f32.mrf.mxu1 }
 0x501   : > { %v5795_v41 = vmax.f32 %v5750_v62, 0.0  ;;  %v5611_v6 = vadd.f32 %v18102_v48, %v5272_v5  ;;  %5161 = vst.msk [vmem:[#allocation3 + $0x60] sm:$0xff] %vm1172_vm2, %v5116_v13  ;;  %v15841_v17 = vld [vmem:[%s20299_s5 + $0x184] ss:$8 sps:$4 sm:$0xff]   ;;  %v15839_v62 = vld [vmem:[%s20299_s5 + $0x180] ss:$8 sps:$4 sm:$0xff]  }
 0x502   : > { %13847 = vmatmul.mubr.msk.bf16.vlgmr.msra.gmra.mxu1 %vm1172_vm2, %v6149_v50  ;;  %v5699_v3 = vld [vmem:[#allocation3 + $0x40] sm:$0xff]  ;;  %v4973_v30 = vpop.f32.mrf.mxu1  ;;  %v6778_v15 = vld [vmem:[#allocation3 + $0x2a] sm:$0x1]  ;;  %v6239_v50 = vpack.c.bf16 %v6238_v33, %v6238_v33 }
 0x503   : > { %6281 = vmatpush1.bf16.msra.mxu1 %v15824_v10  ;;  %6300 = vmatprep.mubr.bf16.mxu1 %v20322_v21  ;;  %5840 = vst.msk [vmem:[#allocation3 + $0x38] sm:$0xff] %vm1172_vm2, %v5795_v41  ;;  %v5751_v48 = vadd.f32 %v18345_v55, %v5699_v3  ;;  %5656 = vst.msk [vmem:[#allocation3 + $0x50] sm:$0xff] %vm1172_vm2, %v5611_v6  ;;  %v5117_v16 = vadd.f32 %v4973_v30, %v4778_v7  ;;  %v15836_v10 = vld [vmem:[%s20299_s5 + $0xb0] ss:$8 sps:$4 sm:$0xff]   ;;  %v15847_v5 = vld [vmem:[%s20299_s5 + $0x1d4] ss:$8 sps:$4 sm:$0xff]  }
 0x504   : > { %6282 = vmatprep.subr.bf16.mxu1 %v15832_v58  ;;  %v6779_v46 = vpack.c.bf16 %v6778_v15, %v6778_v15  ;;  %v5273_v4 = vld [vmem:[#allocation3 + $0x58] sm:$0xff]  ;;  %v15486_v27 = vpop.f32.mrf.mxu1  ;;  %v6958_v6 = vld [vmem:[#allocation3 + $0x2e] sm:$0x1]  ;;  %v6328_v33 = vld [vmem:[#allocation3 + $0xa] sm:$0x1] }
 0x505   : > { %v5796_v47 = vmax.f32 %v5751_v48, 0.0  ;;  %v5612_v31 = vadd.f32 %v18109_v8, %v5273_v4  ;;  %5162 = vst.msk [vmem:[#allocation3 + $0x68] sm:$0xff] %vm1172_vm2, %v5117_v16  ;;  %v15844_v58 = vld [vmem:[%s20299_s5 + $0xa4] ss:$8 sps:$4 sm:$0xff]   ;;  %v15845_v48 = vld [vmem:[%s20299_s5 + $0x1d0] ss:$8 sps:$4 sm:$0xff]  }
 0x506   : > { %13910 = vmatmul.mubr.msk.bf16.vlgmr.msra.gmra.mxu0 %vm1172_vm2, %v6779_v46  ;;  %v5700_v52 = vld [vmem:[#allocation3 + $0x48] sm:$0xff]  ;;  %v4978_v43 = vpop.f32.mrf.mxu1  ;;  %v4780_v3 = vld [vmem:[#allocation3 + $0x78] sm:$0xff]  ;;  %v6959_v46 = vpack.c.bf16 %v6958_v6, %v6958_v6 }
 0x507   : > { %6283 = vmatpush1.bf16.msra.mxu1 %v15830_v2  ;;  %7001 = vmatpush1.bf16.msra.mxu0 %v15833_v57  ;;  %5841 = vst.msk [vmem:[#allocation3 + $0x40] sm:$0xff] %vm1172_vm2, %v5796_v47  ;;  %v5752_v8 = vadd.f32 %v18345_v55, %v5700_v52  ;;  %5657 = vst.msk [vmem:[#allocation3 + $0x58] sm:$0xff] %vm1172_vm2, %v5612_v31  ;;  %v5118_v13 = vadd.f32 %v4978_v43, %v4779_v25  ;;  %v15842_v57 = vld [vmem:[%s20299_s5 + $0xa0] ss:$8 sps:$4 sm:$0xff]   ;;  %v4781_v25 = vld [vmem:[#allocation3 + $0x80] sm:$0xff] }
 0x508   : > { %6370 = vmatprep.subr.bf16.mxu1 %v15838_v1  ;;  %7002 = vmatprep.subr.bf16.mxu0 %v15841_v17  ;;  %v5274_v38 = vld [vmem:[#allocation3 + $0x60] sm:$0xff]  ;;  %v15489_v41 = vpop.f32.mrf.mxu1  ;;  %v15853_v17 = vld [vmem:[%s20299_s5 + $0x1c4] ss:$8 sps:$4 sm:$0xff]  }
 0x509   : > { %7020 = vmatprep.mubr.bf16.mxu0 %v20322_v21  ;;  %v5797_v7 = vmax.f32 %v5752_v8, 0.0  ;;  %v5613_v2 = vadd.f32 %v18115_v61, %v5274_v38  ;;  %5163 = vst.msk [vmem:[#allocation3 + $0x70] sm:$0xff] %vm1172_vm2, %v5118_v13  ;;  %v15850_v1 = vld [vmem:[%s20299_s5 + $0xd4] ss:$8 sps:$4 sm:$0xff]   ;;  %v6329_v13 = vpack.c.bf16 %v6328_v33, %v6328_v33  ;;  %v7138_v41 = vld [vmem:[#allocation3 + $0x32] sm:$0x1] }
 0x50a   : > { %13856 = vmatmul.mubr.msk.bf16.vlgmr.msra.gmra.mxu1 %vm1172_vm2, %v6239_v50  ;;  %v5701_v30 = vld [vmem:[#allocation3 + $0x50] sm:$0xff]  ;;  %v4981_v15 = vpop.f32.mrf.mxu1 }
 0x50b   : > { %6371 = vmatpush1.bf16.msra.mxu1 %v15836_v10  ;;  %7003 = vmatpush1.bf16.msra.mxu0 %v15839_v62  ;;  %5842 = vst.msk [vmem:[#allocation3 + $0x48] sm:$0xff] %vm1172_vm2, %v5797_v7  ;;  %v5753_v61 = vadd.f32 %v18345_v55, %v5701_v30  ;;  %5658 = vst.msk [vmem:[#allocation3 + $0x60] sm:$0xff] %vm1172_vm2, %v5613_v2  ;;  %v5119_v16 = vadd.f32 %v4981_v15, %v4780_v3  ;;  %v15848_v10 = vld [vmem:[%s20299_s5 + $0xd0] ss:$8 sps:$4 sm:$0xff]   ;;  %v15851_v62 = vld [vmem:[%s20299_s5 + $0x1c0] ss:$8 sps:$4 sm:$0xff]  }
 0x50c   : > { %6372 = vmatprep.subr.bf16.mxu1 %v15844_v58  ;;  %7180 = vmatprep.subr.bf16.mxu0 %v15847_v5  ;;  %v5275_v4 = vld [vmem:[#allocation3 + $0x68] sm:$0xff]  ;;  %v15490_v27 = vpop.f32.mrf.mxu1  ;;  %v15856_v50 = vld [vmem:[%s20299_s5 + $0xc4] ss:$8 sps:$4 sm:$0xff]   ;;  %v15854_v15 = vld [vmem:[%s20299_s5 + $0xc0] ss:$8 sps:$4 sm:$0xff]  }
 0x50d   : > { %6390 = vmatprep.mubr.bf16.mxu1 %v20322_v21  ;;  %v5798_v47 = vmax.f32 %v5753_v61, 0.0  ;;  %v5614_v31 = vadd.f32 %v18122_v34, %v5275_v4  ;;  %5164 = vst.msk [vmem:[#allocation3 + $0x78] sm:$0xff] %vm1172_vm2, %v5119_v16  ;;  %v15859_v58 = vld [vmem:[%s20299_s5 + $0x214] ss:$8 sps:$4 sm:$0xff]   ;;  %v7139_v61 = vpack.c.bf16 %v7138_v41, %v7138_v41  ;;  %v4784_v41 = vld [vmem:[#allocation3 + $0x98] sm:$0xff] }
 0x50e   : > { %13928 = vmatmul.mubr.msk.bf16.vlgmr.msra.gmra.mxu0 %vm1172_vm2, %v6959_v46  ;;  %v5702_v52 = vld [vmem:[#allocation3 + $0x58] sm:$0xff]  ;;  %v4986_v43 = vpop.f32.mrf.mxu1  ;;  %v4782_v2 = vld [vmem:[#allocation3 + $0x88] sm:$0xff] }
 0x50f   : > { %6373 = vmatpush1.bf16.msra.mxu1 %v15842_v57  ;;  %7181 = vmatpush1.bf16.msra.mxu0 %v15845_v48  ;;  %5843 = vst.msk [vmem:[#allocation3 + $0x50] sm:$0xff] %vm1172_vm2, %v5798_v47  ;;  %v5754_v34 = vadd.f32 %v18345_v55, %v5702_v52  ;;  %5659 = vst.msk [vmem:[#allocation3 + $0x68] sm:$0xff] %vm1172_vm2, %v5614_v31  ;;  %v5120_v8 = vadd.f32 %v4986_v43, %v4781_v25  ;;  %v15857_v57 = vld [vmem:[%s20299_s5 + $0x210] ss:$8 sps:$4 sm:$0xff]   ;;  %v15862_v16 = vld [vmem:[%s20299_s5 + $0xf4] ss:$8 sps:$4 sm:$0xff]  }
 0x510   : > { %6460 = vmatprep.subr.bf16.mxu1 %v15850_v1  ;;  %7182 = vmatprep.subr.bf16.mxu0 %v15853_v17  ;;  %v5276_v5 = vld [vmem:[#allocation3 + $0x70] sm:$0xff]  ;;  %v15493_v38 = vpop.f32.mrf.mxu1  ;;  %v6418_v4 = vld [vmem:[#allocation3 + $0xc] sm:$0x1]  ;;  %v15860_v52 = vld [vmem:[%s20299_s5 + $0xf0] ss:$8 sps:$4 sm:$0xff]  }
 0x511   : > { %7200 = vmatprep.mubr.bf16.mxu0 %v20322_v21  ;;  %v5799_v6 = vmax.f32 %v5754_v34, 0.0  ;;  %v5615_v7 = vadd.f32 %v18128_v9, %v5276_v5  ;;  %5165 = vst.msk [vmem:[#allocation3 + $0x80] sm:$0xff] %vm1172_vm2, %v5120_v8  ;;  %v15865_v46 = vld [vmem:[%s20299_s5 + $0x204] ss:$8 sps:$4 sm:$0xff]   ;;  %v15863_v43 = vld [vmem:[%s20299_s5 + $0x200] ss:$8 sps:$4 sm:$0xff]  }
 0x512   : > { %13865 = vmatmul.mubr.msk.bf16.vlgmr.msra.gmra.mxu1 %vm1172_vm2, %v6329_v13  ;;  %v5703_v3 = vld [vmem:[#allocation3 + $0x60] sm:$0xff]  ;;  %v4989_v30 = vpop.f32.mrf.mxu1  ;;  %v4783_v47 = vld [vmem:[#allocation3 + $0x90] sm:$0xff] }
 0x513   : > { %6461 = vmatpush1.bf16.msra.mxu1 %v15848_v10  ;;  %7183 = vmatpush1.bf16.msra.mxu0 %v15851_v62  ;;  %5844 = vst.msk [vmem:[#allocation3 + $0x58] sm:$0xff] %vm1172_vm2, %v5799_v6  ;;  %v5755_v9 = vadd.f32 %v18345_v55, %v5703_v3  ;;  %5660 = vst.msk [vmem:[#allocation3 + $0x70] sm:$0xff] %vm1172_vm2, %v5615_v7  ;;  %v5121_v48 = vadd.f32 %v4989_v30, %v4782_v2  ;;  %v15868_v34 = vld [vmem:[%s20299_s5 + $0xe4] ss:$8 sps:$4 sm:$0xff]   ;;  %v15871_v8 = vld [vmem:[%s20299_s5 + $0x254] ss:$8 sps:$4 sm:$0xff]  }
 0x514   : > { %6462 = vmatprep.subr.bf16.mxu1 %v15856_v50  ;;  %7360 = vmatprep.subr.bf16.mxu0 %v15859_v58  ;;  %v5277_v1 = vld [vmem:[#allocation3 + $0x78] sm:$0xff]  ;;  %v15494_v17 = vpop.f32.mrf.mxu1  ;;  %v6419_v62 = vpack.c.bf16 %v6418_v4, %v6418_v4  ;;  %v7318_v58 = vld [vmem:[#allocation3 + $0x36] sm:$0x1]  ;;  %v15869_v3 = vld [vmem:[%s20299_s5 + $0x250] ss:$8 sps:$4 sm:$0xff]  }
 0x515   : > { %6480 = vmatprep.mubr.bf16.mxu1 %v20322_v21  ;;  %v5800_v27 = vmax.f32 %v5755_v9, 0.0  ;;  %v5616_v33 = vadd.f32 %v18135_v0, %v5277_v1  ;;  %5166 = vst.msk [vmem:[#allocation3 + $0x88] sm:$0xff] %vm1172_vm2, %v5121_v48  ;;  %v15866_v2 = vld [vmem:[%s20299_s5 + $0xe0] ss:$8 sps:$4 sm:$0xff]   ;;  %v15877_v9 = vld [vmem:[%s20299_s5 + $0x244] ss:$8 sps:$4 sm:$0xff]  }
 0x516   : > { %13946 = vmatmul.mubr.msk.bf16.vlgmr.msra.gmra.mxu0 %vm1172_vm2, %v7139_v61  ;;  %v5704_v31 = vld [vmem:[#allocation3 + $0x68] sm:$0xff]  ;;  %v4994_v25 = vpop.f32.mrf.mxu1  ;;  %v4785_v17 = vld [vmem:[#allocation3 + $0xa0] sm:$0xff] }
 0x517   : > { %6463 = vmatpush1.bf16.msra.mxu1 %v15854_v15  ;;  %7361 = vmatpush1.bf16.msra.mxu0 %v15857_v57  ;;  %5845 = vst.msk [vmem:[#allocation3 + $0x60] sm:$0xff] %vm1172_vm2, %v5800_v27  ;;  %v5756_v0 = vadd.f32 %v18345_v55, %v5704_v31  ;;  %5661 = vst.msk [vmem:[#allocation3 + $0x78] sm:$0xff] %vm1172_vm2, %v5616_v33  ;;  %v5122_v10 = vadd.f32 %v4994_v25, %v4783_v47  ;;  %v15874_v57 = vld [vmem:[%s20299_s5 + $0x114] ss:$8 sps:$4 sm:$0xff]   ;;  %v15872_v33 = vld [vmem:[%s20299_s5 + $0x110] ss:$8 sps:$4 sm:$0xff]  }
 0x518   : > { %6550 = vmatprep.subr.bf16.mxu1 %v15862_v16  ;;  %7362 = vmatprep.subr.bf16.mxu0 %v15865_v46  ;;  %v5278_v13 = vld [vmem:[#allocation3 + $0x80] sm:$0xff]  ;;  %v15497_v50 = vpop.f32.mrf.mxu1  ;;  %v7319_v15 = vpack.c.bf16 %v7318_v58, %v7318_v58  ;;  %v6508_v16 = vld [vmem:[#allocation3 + $0xe] sm:$0x1]  ;;  %v15875_v47 = vld [vmem:[%s20299_s5 + $0x240] ss:$8 sps:$4 sm:$0xff]  }
 0x519   : > { %7380 = vmatprep.mubr.bf16.mxu0 %v20322_v21  ;;  %v5801_v5 = vmax.f32 %v5756_v0, 0.0  ;;  %v5617_v38 = vadd.f32 %v18141_v22, %v5278_v13  ;;  %5167 = vst.msk [vmem:[#allocation3 + $0x90] sm:$0xff] %vm1172_vm2, %v5122_v10  ;;  %v6509_v25 = vpack.c.bf16 %v6508_v16, %v6508_v16  ;;  %v4786_v13 = vld [vmem:[#allocation3 + $0xa8] sm:$0xff] }
 0x51a   : > { %13874 = vmatmul.mubr.msk.bf16.vlgmr.msra.gmra.mxu1 %vm1172_vm2, %v6419_v62  ;;  %v5705_v6 = vld [vmem:[#allocation3 + $0x70] sm:$0xff]  ;;  %v4997_v7 = vpop.f32.mrf.mxu1  ;;  %v15884_v16 = vld [vmem:[%s20299_s5 + $0x130] ss:$8 sps:$4 sm:$0xff]  }
 0x51b   : > { %6551 = vmatpush1.bf16.msra.mxu1 %v15860_v52  ;;  %7363 = vmatpush1.bf16.msra.mxu0 %v15863_v43  ;;  %5846 = vst.msk [vmem:[#allocation3 + $0x68] sm:$0xff] %vm1172_vm2, %v5801_v5  ;;  %v5757_v22 = vadd.f32 %v18345_v55, %v5705_v6  ;;  %5662 = vst.msk [vmem:[#allocation3 + $0x80] sm:$0xff] %vm1172_vm2, %v5617_v38  ;;  %v5123_v30 = vadd.f32 %v4997_v7, %v4784_v41  ;;  %v15880_v52 = vld [vmem:[%s20299_s5 + $0x104] ss:$8 sps:$4 sm:$0xff]   ;;  %v15883_v43 = vld [vmem:[%s20299_s5 + $0x294] ss:$8 sps:$4 sm:$0xff]  }
 0x51c   : > { %6552 = vmatprep.subr.bf16.mxu1 %v15868_v34  ;;  %7540 = vmatprep.subr.bf16.mxu0 %v15871_v8  ;;  %v5279_v48 = vld [vmem:[#allocation3 + $0x88] sm:$0xff]  ;;  %v15498_v61 = vpop.f32.mrf.mxu1  ;;  %v7498_v62 = vld [vmem:[#allocation3 + $0x50] sm:$0x1] }
 0x51d   : > { %6570 = vmatprep.mubr.bf16.mxu1 %v20322_v21  ;;  %v5802_v46 = vmax.f32 %v5757_v22, 0.0  ;;  %v5618_v1 = vadd.f32 %v18148_v20, %v5279_v48  ;;  %5168 = vst.msk [vmem:[#allocation3 + $0x98] sm:$0xff] %vm1172_vm2, %v5123_v30  ;;  %v15878_v5 = vld [vmem:[%s20299_s5 + $0x100] ss:$8 sps:$4 sm:$0xff]   ;;  %v15881_v38 = vld [vmem:[%s20299_s5 + $0x290] ss:$8 sps:$4 sm:$0xff]   ;;  %v7499_v6 = vpack.c.bf16 %v7498_v62, %v7498_v62 }
 0x51e   : > { %13964 = vmatmul.mubr.msk.bf16.vlgmr.msra.gmra.mxu0 %vm1172_vm2, %v7319_v15  ;;  %v5706_v4 = vld [vmem:[#allocation3 + $0x78] sm:$0xff]  ;;  %v5002_v27 = vpop.f32.mrf.mxu1  ;;  %v15886_v7 = vld [vmem:[%s20299_s5 + $0x134] ss:$8 sps:$4 sm:$0xff]   ;;  %v6598_v30 = vld [vmem:[#allocation3 + $0x10] sm:$0x1] }
 0x51f   : > { %6553 = vmatpush1.bf16.msra.mxu1 %v15866_v2  ;;  %7541 = vmatpush1.bf16.msra.mxu0 %v15869_v3  ;;  %5847 = vst.msk [vmem:[#allocation3 + $0x70] sm:$0xff] %vm1172_vm2, %v5802_v46  ;;  %v5758_v20 = vadd.f32 %v18345_v55, %v5706_v4  ;;  %5663 = vst.msk [vmem:[#allocation3 + $0x88] sm:$0xff] %vm1172_vm2, %v5618_v1  ;;  %v5124_v31 = vadd.f32 %v5002_v27, %v4785_v17  ;;  %v15889_v2 = vld [vmem:[%s20299_s5 + $0x284] ss:$8 sps:$4 sm:$0xff]   ;;  %v15887_v46 = vld [vmem:[%s20299_s5 + $0x280] ss:$8 sps:$4 sm:$0xff]  }
 0x520   : > { %6640 = vmatprep.subr.bf16.mxu1 %v15874_v57  ;;  %7542 = vmatprep.subr.bf16.mxu0 %v15877_v9  ;;  %v5280_v0 = vld [vmem:[#allocation3 + $0x90] sm:$0xff]  ;;  %v15501_v10 = vpop.f32.mrf.mxu1  ;;  %v6599_v17 = vpack.c.bf16 %v6598_v30, %v6598_v30  ;;  %v15895_v27 = vld [vmem:[%s20299_s5 + $0x2d4] ss:$8 sps:$4 sm:$0xff]   ;;  %v15893_v62 = vld [vmem:[%s20299_s5 + $0x2d0] ss:$8 sps:$4 sm:$0xff]  }
 0x521   : > { %7560 = vmatprep.mubr.bf16.mxu0 %v20322_v21  ;;  %v5803_v34 = vmax.f32 %v5758_v20, 0.0  ;;  %v5619_v8 = vadd.f32 %v18154_v45, %v5280_v0  ;;  %5169 = vst.msk [vmem:[#allocation3 + $0xa0] sm:$0xff] %vm1172_vm2, %v5124_v31  ;;  %v4787_v9 = vld [vmem:[#allocation3 + $0xb0] sm:$0xff] }
 0x522   : > { %13883 = vmatmul.mubr.msk.bf16.vlgmr.msra.gmra.mxu1 %vm1172_vm2, %v6509_v25  ;;  %v5707_v50 = vld [vmem:[#allocation3 + $0x80] sm:$0xff]  ;;  %v5005_v58 = vpop.f32.mrf.mxu1  ;;  %v15892_v4 = vld [vmem:[%s20299_s5 + $0x124] ss:$8 sps:$4 sm:$0xff]   ;;  %v15890_v10 = vld [vmem:[%s20299_s5 + $0x120] ss:$8 sps:$4 sm:$0xff]  }
 0x523   : > { %6641 = vmatpush1.bf16.msra.mxu1 %v15872_v33  ;;  %7543 = vmatpush1.bf16.msra.mxu0 %v15875_v47  ;;  %5848 = vst.msk [vmem:[#allocation3 + $0x78] sm:$0xff] %vm1172_vm2, %v5803_v34  ;;  %v5759_v45 = vadd.f32 %v18345_v55, %v5707_v50  ;;  %5664 = vst.msk [vmem:[#allocation3 + $0x90] sm:$0xff] %vm1172_vm2, %v5619_v8  ;;  %v5125_v41 = vadd.f32 %v5005_v58, %v4786_v13  ;;  %v7678_v20 = vld [vmem:[#allocation3 + $0x54] sm:$0x1]  ;;  %v15898_v13 = vld [vmem:[%s20299_s5 + $0x174] ss:$8 sps:$4 sm:$0xff]  }
 0x524   : > { %6642 = vmatprep.subr.bf16.mxu1 %v15880_v52  ;;  %7720 = vmatprep.subr.bf16.mxu0 %v15883_v43  ;;  %v5281_v3 = vld [vmem:[#allocation3 + $0x98] sm:$0xff]  ;;  %v15502_v22 = vpop.f32.mrf.mxu1  ;;  %v7679_v8 = vpack.c.bf16 %v7678_v20, %v7678_v20 }
 0x525   : > { %6660 = vmatprep.mubr.bf16.mxu1 %v20322_v21  ;;  %v5804_v15 = vmax.f32 %v5759_v45, 0.0  ;;  %v5620_v57 = vadd.f32 %v18167_v26, %v5281_v3  ;;  %5170 = vst.msk [vmem:[#allocation3 + $0xa8] sm:$0xff] %vm1172_vm2, %v5125_v41  ;;  %v4788_v52 = vld [vmem:[#allocation3 + $0xb8] sm:$0xff]  ;;  %v15896_v3 = vld [vmem:[%s20299_s5 + $0x170] ss:$8 sps:$4 sm:$0xff]  }
 0x526   : > { %13982 = vmatmul.mubr.msk.bf16.vlgmr.msra.gmra.mxu0 %vm1172_vm2, %v7499_v6  ;;  %v5708_v48 = vld [vmem:[#allocation3 + $0x88] sm:$0xff]  ;;  %v5010_v61 = vpop.f32.mrf.mxu1  ;;  %v15901_v50 = vld [vmem:[%s20299_s5 + $0x2c4] ss:$8 sps:$4 sm:$0xff]   ;;  %v4789_v6 = vld [vmem:[#allocation3 + $0xc0] sm:$0xff] }
 0x527   : > { %6643 = vmatpush1.bf16.msra.mxu1 %v15878_v5  ;;  %7721 = vmatpush1.bf16.msra.mxu0 %v15881_v38  ;;  %5849 = vst.msk [vmem:[#allocation3 + $0x80] sm:$0xff] %vm1172_vm2, %v5804_v15  ;;  %v5760_v26 = vadd.f32 %v18345_v55, %v5708_v48  ;;  %5665 = vst.msk [vmem:[#allocation3 + $0x98] sm:$0xff] %vm1172_vm2, %v5620_v57  ;;  %v5126_v1 = vadd.f32 %v5010_v61, %v4787_v9  ;;  %v6688_v38 = vld [vmem:[#allocation3 + $0x28] sm:$0x1]  ;;  %v15899_v22 = vld [vmem:[%s20299_s5 + $0x2c0] ss:$8 sps:$4 sm:$0xff]  }
 0x528   : > { %6730 = vmatprep.subr.bf16.mxu1 %v15886_v7  ;;  %7722 = vmatprep.subr.bf16.mxu0 %v15889_v2  ;;  %v5282_v33 = vld [vmem:[#allocation3 + $0xa0] sm:$0xff]  ;;  %v15505_v47 = vpop.f32.mrf.mxu1  ;;  %v6689_v15 = vpack.c.bf16 %v6688_v38, %v6688_v38  ;;  %v15904_v57 = vld [vmem:[%s20299_s5 + $0x164] ss:$8 sps:$4 sm:$0xff]  }
 0x529   : > { %7740 = vmatprep.mubr.bf16.mxu0 %v20322_v21  ;;  %v5805_v31 = vmax.f32 %v5760_v26, 0.0  ;;  %v5621_v25 = vadd.f32 %v18173_v54, %v5282_v33  ;;  %5171 = vst.msk [vmem:[#allocation3 + $0xb0] sm:$0xff] %vm1172_vm2, %v5126_v1  ;;  %v15907_v9 = vld [vmem:[%s20299_s5 + $0x314] ss:$8 sps:$4 sm:$0xff]   ;;  %v15905_v33 = vld [vmem:[%s20299_s5 + $0x310] ss:$8 sps:$4 sm:$0xff]  }
 0x52a   : > { %13892 = vmatmul.mubr.msk.bf16.vlgmr.msra.gmra.mxu1 %vm1172_vm2, %v6599_v17  ;;  %v5709_v43 = vld [vmem:[#allocation3 + $0x90] sm:$0xff]  ;;  %v5013_v0 = vpop.f32.mrf.mxu1  ;;  %v4790_v1 = vld [vmem:[#allocation3 + $0xc8] sm:$0xff] }
 0x52b   : > { %6731 = vmatpush1.bf16.msra.mxu1 %v15884_v16  ;;  %7723 = vmatpush1.bf16.msra.mxu0 %v15887_v46  ;;  %5850 = vst.msk [vmem:[#allocation3 + $0x88] sm:$0xff] %vm1172_vm2, %v5805_v31  ;;  %v5761_v54 = vadd.f32 %v18345_v55, %v5709_v43  ;;  %5666 = vst.msk [vmem:[#allocation3 + $0xa0] sm:$0xff] %vm1172_vm2, %v5621_v25  ;;  %v5127_v34 = vadd.f32 %v5013_v0, %v4788_v52  ;;  %v7858_v16 = vld [vmem:[#allocation3 + $0x58] sm:$0x1]  ;;  %v15910_v31 = vld [vmem:[%s20299_s5 + $0x1b4] ss:$8 sps:$4 sm:$0xff]  }
 0x52c   : > { %6732 = vmatprep.subr.bf16.mxu1 %v15892_v4  ;;  %7900 = vmatprep.subr.bf16.mxu0 %v15895_v27  ;;  %v5283_v58 = vld [vmem:[#allocation3 + $0xa8] sm:$0xff]  ;;  %v15506_v5 = vpop.f32.mrf.mxu1  ;;  %v15902_v27 = vld [vmem:[%s20299_s5 + $0x160] ss:$8 sps:$4 sm:$0xff]   ;;  %v7859_v20 = vpack.c.bf16 %v7858_v16, %v7858_v16  ;;  %v15913_v25 = vld [vmem:[%s20299_s5 + $0x304] ss:$8 sps:$4 sm:$0xff]  }
 0x52d   : > { %6750 = vmatprep.mubr.bf16.mxu1 %v20322_v21  ;;  %v5806_v45 = vmax.f32 %v5761_v54, 0.0  ;;  %v5622_v41 = vadd.f32 %v18180_v23, %v5283_v58  ;;  %5172 = vst.msk [vmem:[#allocation3 + $0xb8] sm:$0xff] %vm1172_vm2, %v5127_v34  ;;  %v6868_v0 = vld [vmem:[#allocation3 + $0x2c] sm:$0x1]  ;;  %v4791_v54 = vld [vmem:[#allocation3 + $0xd0] sm:$0xff] }
 0x52e   : > { %14000 = vmatmul.mubr.msk.bf16.vlgmr.msra.gmra.mxu0 %vm1172_vm2, %v7679_v8  ;;  %v5710_v7 = vld [vmem:[#allocation3 + $0x98] sm:$0xff]  ;;  %v5018_v2 = vpop.f32.mrf.mxu1  ;;  %v6869_v5 = vpack.c.bf16 %v6868_v0, %v6868_v0 }
 0x52f   : > { %6733 = vmatpush1.bf16.msra.mxu1 %v15890_v10  ;;  %7901 = vmatpush1.bf16.msra.mxu0 %v15893_v62  ;;  %5851 = vst.msk [vmem:[#allocation3 + $0x90] sm:$0xff] %vm1172_vm2, %v5806_v45  ;;  %v5762_v23 = vadd.f32 %v18345_v55, %v5710_v7  ;;  %5667 = vst.msk [vmem:[#allocation3 + $0xa8] sm:$0xff] %vm1172_vm2, %v5622_v41  ;;  %v5128_v30 = vadd.f32 %v5018_v2, %v4789_v6  ;;  %v15916_v38 = vld [vmem:[%s20299_s5 + $0x1a4] ss:$8 sps:$4 sm:$0xff]   ;;  %v15919_v45 = vld [vmem:[%s20299_s5 + $0x354] ss:$8 sps:$4 sm:$0xff]  }
 0x530   : > { %6910 = vmatprep.subr.bf16.mxu1 %v15898_v13  ;;  %7902 = vmatprep.subr.bf16.mxu0 %v15901_v50  ;;  %v5284_v48 = vld [vmem:[#allocation3 + $0xb0] sm:$0xff]  ;;  %v15509_v61 = vpop.f32.mrf.mxu1  ;;  %v15908_v13 = vld [vmem:[%s20299_s5 + $0x1b0] ss:$8 sps:$4 sm:$0xff]   ;;  %v8038_v7 = vld [vmem:[#allocation3 + $0x5c] sm:$0x1] }
 0x531   : > { %7920 = vmatprep.mubr.bf16.mxu0 %v20322_v21  ;;  %v5807_v46 = vmax.f32 %v5762_v23, 0.0  ;;  %v5623_v26 = vadd.f32 %v18189_v11, %v5284_v48  ;;  %5173 = vst.msk [vmem:[#allocation3 + $0xc0] sm:$0xff] %vm1172_vm2, %v5128_v30  ;;  %v15911_v50 = vld [vmem:[%s20299_s5 + $0x300] ss:$8 sps:$4 sm:$0xff]   ;;  %v8039_v48 = vpack.c.bf16 %v8038_v7, %v8038_v7  ;;  %v15922_v61 = vld [vmem:[%s20299_s5 + $0x1f4] ss:$8 sps:$4 sm:$0xff]  }
 0x532   : > { %13901 = vmatmul.mubr.msk.bf16.vlgmr.msra.gmra.mxu1 %vm1172_vm2, %v6689_v15  ;;  %v5711_v17 = vld [vmem:[#allocation3 + $0xa0] sm:$0xff]  ;;  %v5021_v4 = vpop.f32.mrf.mxu1  ;;  %v15914_v15 = vld [vmem:[%s20299_s5 + $0x1a0] ss:$8 sps:$4 sm:$0xff]   ;;  %v15925_v16 = vld [vmem:[%s20299_s5 + $0x344] ss:$8 sps:$4 sm:$0xff]  }
 0x533   : > { %6911 = vmatpush1.bf16.msra.mxu1 %v15896_v3  ;;  %7903 = vmatpush1.bf16.msra.mxu0 %v15899_v22  ;;  %5852 = vst.msk [vmem:[#allocation3 + $0x98] sm:$0xff] %vm1172_vm2, %v5807_v46  ;;  %v5763_v11 = vadd.f32 %v18345_v55, %v5711_v17  ;;  %5668 = vst.msk [vmem:[#allocation3 + $0xb0] sm:$0xff] %vm1172_vm2, %v5623_v26  ;;  %v5129_v47 = vadd.f32 %v5021_v4, %v4790_v1  ;;  %v4792_v22 = vld [vmem:[#allocation3 + $0xd8] sm:$0xff]  ;;  %v7048_v1 = vld [vmem:[#allocation3 + $0x30] sm:$0x1] }
 0x534   : > { %6912 = vmatprep.subr.bf16.mxu1 %v15904_v57  ;;  %8080 = vmatprep.subr.bf16.mxu0 %v15907_v9  ;;  %v5285_v52 = vld [vmem:[#allocation3 + $0xb8] sm:$0xff]  ;;  %v15510_v43 = vpop.f32.mrf.mxu1  ;;  %v15917_v57 = vld [vmem:[%s20299_s5 + $0x350] ss:$8 sps:$4 sm:$0xff]  }
 0x535   : > { %6930 = vmatprep.mubr.bf16.mxu1 %v20322_v21  ;;  %v5808_v10 = vmax.f32 %v5763_v11, 0.0  ;;  %v5624_v62 = vadd.f32 %v18196_v19, %v5285_v52  ;;  %5174 = vst.msk [vmem:[#allocation3 + $0xc8] sm:$0xff] %vm1172_vm2, %v5129_v47  ;;  %v15920_v47 = vld [vmem:[%s20299_s5 + $0x1f0] ss:$8 sps:$4 sm:$0xff]   ;;  %v15928_v52 = vld [vmem:[%s20299_s5 + $0x1e4] ss:$8 sps:$4 sm:$0xff]  }
 0x536   : > { %14018 = vmatmul.mubr.msk.bf16.vlgmr.msra.gmra.mxu0 %vm1172_vm2, %v7859_v20  ;;  %v5712_v34 = vld [vmem:[#allocation3 + $0xa8] sm:$0xff]  ;;  %v5026_v8 = vpop.f32.mrf.mxu1  ;;  %v15923_v20 = vld [vmem:[%s20299_s5 + $0x340] ss:$8 sps:$4 sm:$0xff]  }
 0x537   : > { %6913 = vmatpush1.bf16.msra.mxu1 %v15902_v27  ;;  %8081 = vmatpush1.bf16.msra.mxu0 %v15905_v33  ;;  %5853 = vst.msk [vmem:[#allocation3 + $0xa0] sm:$0xff] %vm1172_vm2, %v5808_v10  ;;  %v5764_v19 = vadd.f32 %v18345_v55, %v5712_v34  ;;  %5669 = vst.msk [vmem:[#allocation3 + $0xb8] sm:$0xff] %vm1172_vm2, %v5624_v62  ;;  %v5130_v58 = vadd.f32 %v5026_v8, %v4791_v54  ;;  %v4793_v27 = vld [vmem:[#allocation3 + $0xe0] sm:$0xff]  ;;  %v4794_v34 = vld [vmem:[#allocation3 + $0xe8] sm:$0xff] }
 0x538   : > { %7090 = vmatprep.subr.bf16.mxu1 %v15910_v31  ;;  %8082 = vmatprep.subr.bf16.mxu0 %v15913_v25  ;;  %v5286_v41 = vld [vmem:[#allocation3 + $0xc0] sm:$0xff]  ;;  %v15513_v6 = vpop.f32.mrf.mxu1  ;;  %v7049_v25 = vpack.c.bf16 %v7048_v1, %v7048_v1  ;;  %v8398_v1 = vld [vmem:[#allocation3 + $0x7a] sm:$0x1] }
 0x539   : > { %8100 = vmatprep.mubr.bf16.mxu0 %v20322_v21  ;;  %v5809_v2 = vmax.f32 %v5764_v19, 0.0  ;;  %v5625_v3 = vadd.f32 %v18202_v40, %v5286_v41  ;;  %5175 = vst.msk [vmem:[#allocation3 + $0xd0] sm:$0xff] %vm1172_vm2, %v5130_v58  ;;  %v15931_v43 = vld [vmem:[%s20299_s5 + $0x394] ss:$8 sps:$4 sm:$0xff]   ;;  %v8218_v62 = vld [vmem:[#allocation3 + $0x60] sm:$0x1] }
 0x53a   : > { %13919 = vmatmul.mubr.msk.bf16.vlgmr.msra.gmra.mxu1 %vm1172_vm2, %v6869_v5  ;;  %v5713_v23 = vld [vmem:[#allocation3 + $0xb0] sm:$0xff]  ;;  %v5029_v30 = vpop.f32.mrf.mxu1  ;;  %v15929_v19 = vld [vmem:[%s20299_s5 + $0x390] ss:$8 sps:$4 sm:$0xff]  }
 0x53b   : > { %7091 = vmatpush1.bf16.msra.mxu1 %v15908_v13  ;;  %8083 = vmatpush1.bf16.msra.mxu0 %v15911_v50  ;;  %5854 = vst.msk [vmem:[#allocation3 + $0xa8] sm:$0xff] %vm1172_vm2, %v5809_v2  ;;  %v5765_v40 = vadd.f32 %v18345_v55, %v5713_v23  ;;  %5670 = vst.msk [vmem:[#allocation3 + $0xc0] sm:$0xff] %vm1172_vm2, %v5625_v3  ;;  %v5131_v9 = vadd.f32 %v5029_v30, %v4792_v22  ;;  %v15926_v50 = vld [vmem:[%s20299_s5 + $0x1e0] ss:$8 sps:$4 sm:$0xff]   ;;  %v15937_v41 = vld [vmem:[%s20299_s5 + $0x384] ss:$8 sps:$4 sm:$0xff]  }
 0x53c   : > { %7092 = vmatprep.subr.bf16.mxu1 %v15916_v38  ;;  %8260 = vmatprep.subr.bf16.mxu0 %v15919_v45  ;;  %v5287_v46 = vld [vmem:[#allocation3 + $0xc8] sm:$0xff]  ;;  %v15514_v26 = vpop.f32.mrf.mxu1  ;;  %v8219_v38 = vpack.c.bf16 %v8218_v62, %v8218_v62  ;;  %v7228_v2 = vld [vmem:[#allocation3 + $0x34] sm:$0x1] }
 0x53d   : > { %7110 = vmatprep.mubr.bf16.mxu1 %v20322_v21  ;;  %v5810_v17 = vmax.f32 %v5765_v40, 0.0  ;;  %v5626_v4 = vadd.f32 %v18212_v36, %v5287_v46  ;;  %5176 = vst.msk [vmem:[#allocation3 + $0xd8] sm:$0xff] %vm1172_vm2, %v5131_v9  ;;  %v15934_v45 = vld [vmem:[%s20299_s5 + $0x234] ss:$8 sps:$4 sm:$0xff]   ;;  %v4795_v23 = vld [vmem:[#allocation3 + $0xf0] sm:$0xff] }
 0x53e   : > { %14036 = vmatmul.mubr.msk.bf16.vlgmr.msra.gmra.mxu0 %vm1172_vm2, %v8039_v48  ;;  %v5714_v33 = vld [vmem:[#allocation3 + $0xb8] sm:$0xff]  ;;  %v5034_v11 = vpop.f32.mrf.mxu1  ;;  %v7229_v48 = vpack.c.bf16 %v7228_v2, %v7228_v2 }
 0x53f   : > { %7093 = vmatpush1.bf16.msra.mxu1 %v15914_v15  ;;  %8261 = vmatpush1.bf16.msra.mxu0 %v15917_v57  ;;  %5855 = vst.msk [vmem:[#allocation3 + $0xb0] sm:$0xff] %vm1172_vm2, %v5810_v17  ;;  %v5766_v36 = vadd.f32 %v18345_v55, %v5714_v33  ;;  %5671 = vst.msk [vmem:[#allocation3 + $0xc8] sm:$0xff] %vm1172_vm2, %v5626_v4  ;;  %v5132_v31 = vadd.f32 %v5034_v11, %v4793_v27  ;;  %v15932_v57 = vld [vmem:[%s20299_s5 + $0x230] ss:$8 sps:$4 sm:$0xff]   ;;  %v15935_v40 = vld [vmem:[%s20299_s5 + $0x380] ss:$8 sps:$4 sm:$0xff]  }
 0x540   : > { %7270 = vmatprep.subr.bf16.mxu1 %v15922_v61  ;;  %8262 = vmatprep.subr.bf16.mxu0 %v15925_v16  ;;  %v5288_v0 = vld [vmem:[#allocation3 + $0xd0] sm:$0xff]  ;;  %v15517_v10 = vpop.f32.mrf.mxu1  ;;  %v15943_v16 = vld [vmem:[%s20299_s5 + $0x3d4] ss:$8 sps:$4 sm:$0xff]   ;;  %v4796_v27 = vld [vmem:[#allocation3 + $0xf8] sm:$0xff] }
 0x541   : > { %8280 = vmatprep.mubr.bf16.mxu0 %v20322_v21  ;;  %v5811_v55 = vmax.f32 %v5766_v36, 0.0  ;;  %v5627_v54 = vadd.f32 %v18218_v28, %v5288_v0  ;;  %5177 = vst.msk [vmem:[#allocation3 + $0xe0] sm:$0xff] %vm1172_vm2, %v5132_v31  ;;  %v18751_v28 = vld [vmem:[%s20298_s4] ss:$0 sm:$0xff]  ;;  %v15940_v61 = vld [vmem:[%s20299_s5 + $0x224] ss:$8 sps:$4 sm:$0xff]   ;;  %v8399_v31 = vpack.c.bf16 %v8398_v1, %v8398_v1 }
 0x542   : > { %13937 = vmatmul.mubr.msk.bf16.vlgmr.msra.gmra.mxu1 %vm1172_vm2, %v7049_v25  ;;  %v5715_v8 = vld [vmem:[#allocation3 + $0xc0] sm:$0xff]  ;;  %v5037_v13 = vpop.f32.mrf.mxu1  ;;  %v7408_v10 = vld [vmem:[#allocation3 + $0x38] sm:$0x1]  ;;  %v4799_v1 = vld [vmem:[#allocation3 + $0x110] sm:$0xff] }
 0x543   : > { %7271 = vmatpush1.bf16.msra.mxu1 %v15920_v47  ;;  %8263 = vmatpush1.bf16.msra.mxu0 %v15923_v20  ;;  %5856 = vst.msk [vmem:[#allocation3 + $0xb8] sm:$0xff] %vm1172_vm2, %v5811_v55  ;;  %v5767_v58 = vadd.f32 %v18751_v28, %v5715_v8  ;;  %5672 = vst.msk [vmem:[#allocation3 + $0xd0] sm:$0xff] %vm1172_vm2, %v5627_v54  ;;  %v5133_v5 = vadd.f32 %v5037_v13, %v4794_v34  ;;  %v15938_v47 = vld [vmem:[%s20299_s5 + $0x220] ss:$8 sps:$4 sm:$0xff]   ;;  %v15941_v20 = vld [vmem:[%s20299_s5 + $0x3d0] ss:$8 sps:$4 sm:$0xff]  }
 0x544   : > { %7272 = vmatprep.subr.bf16.mxu1 %v15928_v52  ;;  %8440 = vmatprep.subr.bf16.mxu0 %v15931_v43  ;;  %v5289_v6 = vld [vmem:[#allocation3 + $0xd8] sm:$0xff]  ;;  %v15518_v7 = vpop.f32.mrf.mxu1  ;;  %v15946_v25 = vld [vmem:[%s20299_s5 + $0x274] ss:$8 sps:$4 sm:$0xff]   ;;  %v15944_v13 = vld [vmem:[%s20299_s5 + $0x270] ss:$8 sps:$4 sm:$0xff]  }
 0x545   : > { %7290 = vmatprep.mubr.bf16.mxu1 %v20322_v21  ;;  %v5812_v3 = vmax.f32 %v5767_v58, 0.0  ;;  %v5628_v22 = vadd.f32 %v18225_v56, %v5289_v6  ;;  %5178 = vst.msk [vmem:[#allocation3 + $0xe8] sm:$0xff] %vm1172_vm2, %v5133_v5  ;;  %v15949_v52 = vld [vmem:[%s20299_s5 + $0x3c4] ss:$8 sps:$4 sm:$0xff]   ;;  %v4797_v54 = vld [vmem:[#allocation3 + $0x100] sm:$0xff]  ;;  %v7409_v58 = vpack.c.bf16 %v7408_v10, %v7408_v10 }
 0x546   : > { %14054 = vmatmul.mubr.msk.bf16.vlgmr.msra.gmra.mxu0 %vm1172_vm2, %v8219_v38  ;;  %v5716_v30 = vld [vmem:[#allocation3 + $0xc8] sm:$0xff]  ;;  %v5042_v15 = vpop.f32.mrf.mxu1  ;;  %v15952_v5 = vld [vmem:[%s20299_s5 + $0x264] ss:$8 sps:$4 sm:$0xff]  }
 0x547   : > { %7273 = vmatpush1.bf16.msra.mxu1 %v15926_v50  ;;  %8441 = vmatpush1.bf16.msra.mxu0 %v15929_v19  ;;  %5857 = vst.msk [vmem:[#allocation3 + $0xc0] sm:$0xff] %vm1172_vm2, %v5812_v3  ;;  %v5768_v56 = vadd.f32 %v18751_v28, %v5716_v30  ;;  %5673 = vst.msk [vmem:[#allocation3 + $0xd8] sm:$0xff] %vm1172_vm2, %v5628_v22  ;;  %v5134_v9 = vadd.f32 %v5042_v15, %v4795_v23  ;;  %v15947_v50 = vld [vmem:[%s20299_s5 + $0x3c0] ss:$8 sps:$4 sm:$0xff]   ;;  %v15955_v38 = vld [vmem:[%s20299_s5 + $0x414] ss:$8 sps:$4 sm:$0xff]  }
 0x548   : > { %7450 = vmatprep.subr.bf16.mxu1 %v15934_v45  ;;  %8442 = vmatprep.subr.bf16.mxu0 %v15937_v41  ;;  %v5290_v46 = vld [vmem:[#allocation3 + $0xe0] sm:$0xff]  ;;  %v15521_v26 = vpop.f32.mrf.mxu1  ;;  %v8578_v6 = vld [vmem:[#allocation3 + $0x7e] sm:$0x1]  ;;  %v4798_v3 = vld [vmem:[#allocation3 + $0x108] sm:$0xff] }
 0x549   : > { %8460 = vmatprep.mubr.bf16.mxu0 %v20322_v21  ;;  %v5813_v17 = vmax.f32 %v5768_v56, 0.0  ;;  %v5629_v4 = vadd.f32 %v18231_v35, %v5290_v46  ;;  %5179 = vst.msk [vmem:[#allocation3 + $0xf0] sm:$0xff] %vm1172_vm2, %v5134_v9  ;;  %v15950_v30 = vld [vmem:[%s20299_s5 + $0x260] ss:$8 sps:$4 sm:$0xff]   ;;  %v15953_v15 = vld [vmem:[%s20299_s5 + $0x410] ss:$8 sps:$4 sm:$0xff]  }
 0x54a   : > { %13955 = vmatmul.mubr.msk.bf16.vlgmr.msra.gmra.mxu1 %vm1172_vm2, %v7229_v48  ;;  %v5717_v33 = vld [vmem:[#allocation3 + $0xd0] sm:$0xff]  ;;  %v5045_v11 = vpop.f32.mrf.mxu1  ;;  %v15958_v56 = vld [vmem:[%s20299_s5 + $0x2b4] ss:$8 sps:$4 sm:$0xff]  }
 0x54b   : > { %7451 = vmatpush1.bf16.msra.mxu1 %v15932_v57  ;;  %8443 = vmatpush1.bf16.msra.mxu0 %v15935_v40  ;;  %5858 = vst.msk [vmem:[#allocation3 + $0xc8] sm:$0xff] %vm1172_vm2, %v5813_v17  ;;  %v5769_v35 = vadd.f32 %v18751_v28, %v5717_v33  ;;  %5674 = vst.msk [vmem:[#allocation3 + $0xe0] sm:$0xff] %vm1172_vm2, %v5629_v4  ;;  %v5135_v36 = vadd.f32 %v5045_v11, %v4796_v27  ;;  %v15961_v9 = vld [vmem:[%s20299_s5 + $0x404] ss:$8 sps:$4 sm:$0xff]   ;;  %v15956_v27 = vld [vmem:[%s20299_s5 + $0x2b0] ss:$8 sps:$4 sm:$0xff]  }
 0x54c   : > { %7452 = vmatprep.subr.bf16.mxu1 %v15940_v61  ;;  %8620 = vmatprep.subr.bf16.mxu0 %v15943_v16  ;;  %v5291_v43 = vld [vmem:[#allocation3 + $0xe8] sm:$0xff]  ;;  %v15522_v0 = vpop.f32.mrf.mxu1  ;;  %v8579_v40 = vpack.c.bf16 %v8578_v6, %v8578_v6  ;;  %v7588_v16 = vld [vmem:[#allocation3 + $0x52] sm:$0x1] }
 0x54d   : > { %7470 = vmatprep.mubr.bf16.mxu1 %v20322_v21  ;;  %v5814_v62 = vmax.f32 %v5769_v35, 0.0  ;;  %v5630_v55 = vadd.f32 %v18238_v51, %v5291_v43  ;;  %5180 = vst.msk [vmem:[#allocation3 + $0xf8] sm:$0xff] %vm1172_vm2, %v5135_v36  ;;  %v15959_v33 = vld [vmem:[%s20299_s5 + $0x400] ss:$8 sps:$4 sm:$0xff]   ;;  %v15967_v35 = vld [vmem:[%s20299_s5 + $0x454] ss:$8 sps:$4 sm:$0xff]  }
 0x54e   : > { %14072 = vmatmul.mubr.msk.bf16.vlgmr.msra.gmra.mxu0 %vm1172_vm2, %v8399_v31  ;;  %v5718_v34 = vld [vmem:[#allocation3 + $0xd8] sm:$0xff]  ;;  %v5050_v8 = vpop.f32.mrf.mxu1 }
 0x54f   : > { %7453 = vmatpush1.bf16.msra.mxu1 %v15938_v47  ;;  %8621 = vmatpush1.bf16.msra.mxu0 %v15941_v20  ;;  %5859 = vst.msk [vmem:[#allocation3 + $0xd0] sm:$0xff] %vm1172_vm2, %v5814_v62  ;;  %v5770_v51 = vadd.f32 %v18751_v28, %v5718_v34  ;;  %5675 = vst.msk [vmem:[#allocation3 + $0xe8] sm:$0xff] %vm1172_vm2, %v5630_v55  ;;  %v5136_v19 = vadd.f32 %v5050_v8, %v4797_v54  ;;  %v15964_v20 = vld [vmem:[%s20299_s5 + $0x2a4] ss:$8 sps:$4 sm:$0xff]   ;;  %v15962_v55 = vld [vmem:[%s20299_s5 + $0x2a0] ss:$8 sps:$4 sm:$0xff]  }
 0x550   : > { %7630 = vmatprep.subr.bf16.mxu1 %v15946_v25  ;;  %8622 = vmatprep.subr.bf16.mxu0 %v15949_v52  ;;  %v5292_v45 = vld [vmem:[#allocation3 + $0xf0] sm:$0xff]  ;;  %v15525_v41 = vpop.f32.mrf.mxu1  ;;  %v7589_v47 = vpack.c.bf16 %v7588_v16, %v7588_v16  ;;  %v8758_v25 = vld [vmem:[#allocation3 + $0x82] sm:$0x1]  ;;  %v4800_v0 = vld [vmem:[#allocation3 + $0x118] sm:$0xff] }
 0x551   : > { %8640 = vmatprep.mubr.bf16.mxu0 %v20322_v21  ;;  %v5815_v7 = vmax.f32 %v5770_v51, 0.0  ;;  %v5631_v2 = vadd.f32 %v18244_v37, %v5292_v45  ;;  %5181 = vst.msk [vmem:[#allocation3 + $0x100] sm:$0xff] %vm1172_vm2, %v5136_v19  ;;  %v15965_v54 = vld [vmem:[%s20299_s5 + $0x450] ss:$8 sps:$4 sm:$0xff]   ;;  %v8759_v8 = vpack.c.bf16 %v8758_v25, %v8758_v25  ;;  %v15974_v16 = vld [vmem:[%s20299_s5 + $0x2e0] ss:$8 sps:$4 sm:$0xff]  }
 0x552   : > { %13973 = vmatmul.mubr.msk.bf16.vlgmr.msra.gmra.mxu1 %vm1172_vm2, %v7409_v58  ;;  %v5719_v22 = vld [vmem:[#allocation3 + $0xe0] sm:$0xff]  ;;  %v5053_v23 = vpop.f32.mrf.mxu1  ;;  %v7768_v58 = vld [vmem:[#allocation3 + $0x56] sm:$0x1]  ;;  %v15983_v25 = vld [vmem:[%s20299_s5 + $0x480] ss:$8 sps:$4 sm:$0xff]  }
 0x553   : > { %7631 = vmatpush1.bf16.msra.mxu1 %v15944_v13  ;;  %8623 = vmatpush1.bf16.msra.mxu0 %v15947_v50  ;;  %5860 = vst.msk [vmem:[#allocation3 + $0xd8] sm:$0xff] %vm1172_vm2, %v5815_v7  ;;  %v5771_v37 = vadd.f32 %v18751_v28, %v5719_v22  ;;  %5676 = vst.msk [vmem:[#allocation3 + $0xf0] sm:$0xff] %vm1172_vm2, %v5631_v2  ;;  %v5137_v57 = vadd.f32 %v5053_v23, %v4798_v3  ;;  %v15970_v13 = vld [vmem:[%s20299_s5 + $0x2f4] ss:$8 sps:$4 sm:$0xff]   ;;  %v15973_v50 = vld [vmem:[%s20299_s5 + $0x444] ss:$8 sps:$4 sm:$0xff]  }
 0x554   : > { %7632 = vmatprep.subr.bf16.mxu1 %v15952_v5  ;;  %8800 = vmatprep.subr.bf16.mxu0 %v15955_v38  ;;  %v5293_v48 = vld [vmem:[#allocation3 + $0xf8] sm:$0xff]  ;;  %v15526_v61 = vpop.f32.mrf.mxu1  ;;  %v4801_v45 = vld [vmem:[#allocation3 + $0x120] sm:$0xff]  ;;  %v7769_v22 = vpack.c.bf16 %v7768_v58, %v7768_v58 }
 0x555   : > { %7650 = vmatprep.mubr.bf16.mxu1 %v20322_v21  ;;  %v5816_v46 = vmax.f32 %v5771_v37, 0.0  ;;  %v5632_v26 = vadd.f32 %v18251_v59, %v5293_v48  ;;  %5182 = vst.msk [vmem:[#allocation3 + $0x108] sm:$0xff] %vm1172_vm2, %v5137_v57  ;;  %v15968_v7 = vld [vmem:[%s20299_s5 + $0x2f0] ss:$8 sps:$4 sm:$0xff]   ;;  %v15971_v2 = vld [vmem:[%s20299_s5 + $0x440] ss:$8 sps:$4 sm:$0xff]  }
 0x556   : > { %14090 = vmatmul.mubr.msk.bf16.vlgmr.msra.gmra.mxu0 %vm1172_vm2, %v8579_v40  ;;  %v5720_v17 = vld [vmem:[#allocation3 + $0xe8] sm:$0xff]  ;;  %v5058_v4 = vpop.f32.mrf.mxu1  ;;  %v15976_v23 = vld [vmem:[%s20299_s5 + $0x2e4] ss:$8 sps:$4 sm:$0xff]   ;;  %v8938_v57 = vld [vmem:[#allocation3 + $0x86] sm:$0x1] }
 0x557   : > { %7633 = vmatpush1.bf16.msra.mxu1 %v15950_v30  ;;  %8801 = vmatpush1.bf16.msra.mxu0 %v15953_v15  ;;  %5861 = vst.msk [vmem:[#allocation3 + $0xe0] sm:$0xff] %vm1172_vm2, %v5816_v46  ;;  %v5772_v59 = vadd.f32 %v18751_v28, %v5720_v17  ;;  %5677 = vst.msk [vmem:[#allocation3 + $0xf8] sm:$0xff] %vm1172_vm2, %v5632_v26  ;;  %v5138_v11 = vadd.f32 %v5058_v4, %v4799_v1  ;;  %v15979_v30 = vld [vmem:[%s20299_s5 + $0x494] ss:$8 sps:$4 sm:$0xff]   ;;  %v15977_v46 = vld [vmem:[%s20299_s5 + $0x490] ss:$8 sps:$4 sm:$0xff]  }
 0x558   : > { %7810 = vmatprep.subr.bf16.mxu1 %v15958_v56  ;;  %8802 = vmatprep.subr.bf16.mxu0 %v15961_v9  ;;  %v5294_v36 = vld [vmem:[#allocation3 + $0x100] sm:$0xff]  ;;  %v15529_v31 = vpop.f32.mrf.mxu1  ;;  %v4802_v9 = vld [vmem:[#allocation3 + $0x128] sm:$0xff]  ;;  %v8939_v1 = vpack.c.bf16 %v8938_v57, %v8938_v57  ;;  %v15985_v4 = vld [vmem:[%s20299_s5 + $0x484] ss:$8 sps:$4 sm:$0xff]  }
 0x559   : > { %8820 = vmatprep.mubr.bf16.mxu0 %v20322_v21  ;;  %v5817_v52 = vmax.f32 %v5772_v59, 0.0  ;;  %v5633_v43 = vadd.f32 %v18257_v42, %v5294_v36  ;;  %5183 = vst.msk [vmem:[#allocation3 + $0x110] sm:$0xff] %vm1172_vm2, %v5138_v11  ;;  %v15982_v17 = vld [vmem:[%s20299_s5 + $0x334] ss:$8 sps:$4 sm:$0xff]   ;;  %v7948_v59 = vld [vmem:[#allocation3 + $0x5a] sm:$0x1] }
 0x55a   : > { %13991 = vmatmul.mubr.msk.bf16.vlgmr.msra.gmra.mxu1 %vm1172_vm2, %v7589_v47  ;;  %v5721_v10 = vld [vmem:[#allocation3 + $0xf0] sm:$0xff]  ;;  %v5061_v62 = vpop.f32.mrf.mxu1  ;;  %v15980_v31 = vld [vmem:[%s20299_s5 + $0x330] ss:$8 sps:$4 sm:$0xff]  }
 0x55b   : > { %7811 = vmatpush1.bf16.msra.mxu1 %v15956_v27  ;;  %8803 = vmatpush1.bf16.msra.mxu0 %v15959_v33  ;;  %5862 = vst.msk [vmem:[#allocation3 + $0xe8] sm:$0xff] %vm1172_vm2, %v5817_v52  ;;  %v5773_v42 = vadd.f32 %v18751_v28, %v5721_v10  ;;  %5678 = vst.msk [vmem:[#allocation3 + $0x100] sm:$0xff] %vm1172_vm2, %v5633_v43  ;;  %v5139_v34 = vadd.f32 %v5061_v62, %v4800_v0  ;;  %v15988_v0 = vld [vmem:[%s20299_s5 + $0x324] ss:$8 sps:$4 sm:$0xff]   ;;  %v15991_v10 = vld [vmem:[%s20299_s5 + $0x4d4] ss:$8 sps:$4 sm:$0xff]  }
 0x55c   : > { %7812 = vmatprep.subr.bf16.mxu1 %v15964_v20  ;;  %8980 = vmatprep.subr.bf16.mxu0 %v15967_v35  ;;  %v5295_v51 = vld [vmem:[#allocation3 + $0x108] sm:$0xff]  ;;  %v15530_v19 = vpop.f32.mrf.mxu1  ;;  %v4803_v20 = vld [vmem:[#allocation3 + $0x130] sm:$0xff]  ;;  %v7949_v43 = vpack.c.bf16 %v7948_v59, %v7948_v59 }
 0x55d   : > { %7830 = vmatprep.mubr.bf16.mxu1 %v20322_v21  ;;  %v5818_v5 = vmax.f32 %v5773_v42, 0.0  ;;  %v5634_v38 = vadd.f32 %v18264_v12, %v5295_v51  ;;  %5184 = vst.msk [vmem:[#allocation3 + $0x118] sm:$0xff] %vm1172_vm2, %v5139_v34  ;;  %v15986_v51 = vld [vmem:[%s20299_s5 + $0x320] ss:$8 sps:$4 sm:$0xff]   ;;  %v15989_v19 = vld [vmem:[%s20299_s5 + $0x4d0] ss:$8 sps:$4 sm:$0xff]  }
 0x55e   : > { %14108 = vmatmul.mubr.msk.bf16.vlgmr.msra.gmra.mxu0 %vm1172_vm2, %v8759_v8  ;;  %v5722_v41 = vld [vmem:[#allocation3 + $0xf8] sm:$0xff]  ;;  %v5066_v6 = vpop.f32.mrf.mxu1  ;;  %v16006_v59 = vld [vmem:[%s20299_s5 + $0x3b4] ss:$8 sps:$4 sm:$0xff]  }
 0x55f   : > { %7813 = vmatpush1.bf16.msra.mxu1 %v15962_v55  ;;  %8981 = vmatpush1.bf16.msra.mxu0 %v15965_v54  ;;  %5863 = vst.msk [vmem:[#allocation3 + $0xf0] sm:$0xff] %vm1172_vm2, %v5818_v5  ;;  %v5774_v12 = vadd.f32 %v18751_v28, %v5722_v41  ;;  %5679 = vst.msk [vmem:[#allocation3 + $0x108] sm:$0xff] %vm1172_vm2, %v5634_v38  ;;  %v5140_v3 = vadd.f32 %v5066_v6, %v4801_v45  ;;  %v9118_v54 = vld [vmem:[#allocation3 + $0xa0] sm:$0x1]  ;;  %v4804_v8 = vld [vmem:[#allocation3 + $0x138] sm:$0xff] }
 0x560   : > { %7990 = vmatprep.subr.bf16.mxu1 %v15970_v13  ;;  %8982 = vmatprep.subr.bf16.mxu0 %v15973_v50  ;;  %v5296_v15 = vld [vmem:[#allocation3 + $0x110] sm:$0xff]  ;;  %v15533_v37 = vpop.f32.mrf.mxu1  ;;  %v9119_v5 = vpack.c.bf16 %v9118_v54, %v9118_v54  ;;  %v15994_v38 = vld [vmem:[%s20299_s5 + $0x374] ss:$8 sps:$4 sm:$0xff]  }
 0x561   : > { %9000 = vmatprep.mubr.bf16.mxu0 %v20322_v21  ;;  %v5819_v40 = vmax.f32 %v5774_v12, 0.0  ;;  %v5635_v56 = vadd.f32 %v18270_v60, %v5296_v15  ;;  %5185 = vst.msk [vmem:[#allocation3 + $0x120] sm:$0xff] %vm1172_vm2, %v5140_v3  ;;  %v15997_v45 = vld [vmem:[%s20299_s5 + $0x4c4] ss:$8 sps:$4 sm:$0xff]   ;;  %v4805_v3 = vld [vmem:[#allocation3 + $0x140] sm:$0xff] }
 0x562   : > { %14009 = vmatmul.mubr.msk.bf16.vlgmr.msra.gmra.mxu1 %vm1172_vm2, %v7769_v22  ;;  %v5723_v48 = vld [vmem:[#allocation3 + $0x100] sm:$0xff]  ;;  %v5069_v61 = vpop.f32.mrf.mxu1  ;;  %v15995_v15 = vld [vmem:[%s20299_s5 + $0x4c0] ss:$8 sps:$4 sm:$0xff]  }
 0x563   : > { %7991 = vmatpush1.bf16.msra.mxu1 %v15968_v7  ;;  %8983 = vmatpush1.bf16.msra.mxu0 %v15971_v2  ;;  %5864 = vst.msk [vmem:[#allocation3 + $0xf8] sm:$0xff] %vm1172_vm2, %v5819_v40  ;;  %v5775_v60 = vadd.f32 %v18751_v28, %v5723_v48  ;;  %5680 = vst.msk [vmem:[#allocation3 + $0x110] sm:$0xff] %vm1172_vm2, %v5635_v56  ;;  %v5141_v26 = vadd.f32 %v5069_v61, %v4802_v9  ;;  %v8128_v7 = vld [vmem:[#allocation3 + $0x5e] sm:$0x1]  ;;  %v16003_v56 = vld [vmem:[%s20299_s5 + $0x514] ss:$8 sps:$4 sm:$0xff]  }
 0x564   : > { %7992 = vmatprep.subr.bf16.mxu1 %v15976_v23  ;;  %9160 = vmatprep.subr.bf16.mxu0 %v15979_v30  ;;  %v5297_v27 = vld [vmem:[#allocation3 + $0x118] sm:$0xff]  ;;  %v15534_v33 = vpop.f32.mrf.mxu1  ;;  %v15992_v30 = vld [vmem:[%s20299_s5 + $0x370] ss:$8 sps:$4 sm:$0xff]   ;;  %v8129_v57 = vpack.c.bf16 %v8128_v7, %v8128_v7  ;;  %v9298_v61 = vld [vmem:[#allocation3 + $0xa4] sm:$0x1] }
 0x565   : > { %8010 = vmatprep.mubr.bf16.mxu1 %v20322_v21  ;;  %v5820_v11 = vmax.f32 %v5775_v60, 0.0  ;;  %v5636_v47 = vadd.f32 %v18277_v29, %v5297_v27  ;;  %5186 = vst.msk [vmem:[#allocation3 + $0x128] sm:$0xff] %vm1172_vm2, %v5141_v26  ;;  %v16000_v40 = vld [vmem:[%s20299_s5 + $0x364] ss:$8 sps:$4 sm:$0xff]   ;;  %v4806_v60 = vld [vmem:[#allocation3 + $0x148] sm:$0xff]  ;;  %v9299_v33 = vpack.c.bf16 %v9298_v61, %v9298_v61 }
 0x566   : > { %14126 = vmatmul.mubr.msk.bf16.vlgmr.msra.gmra.mxu0 %vm1172_vm2, %v8939_v1  ;;  %v5724_v35 = vld [vmem:[#allocation3 + $0x108] sm:$0xff]  ;;  %v5074_v36 = vpop.f32.mrf.mxu1 }
 0x567   : > { %7993 = vmatpush1.bf16.msra.mxu1 %v15974_v16  ;;  %9161 = vmatpush1.bf16.msra.mxu0 %v15977_v46  ;;  %5865 = vst.msk [vmem:[#allocation3 + $0x100] sm:$0xff] %vm1172_vm2, %v5820_v11  ;;  %v5776_v29 = vadd.f32 %v18751_v28, %v5724_v35  ;;  %5681 = vst.msk [vmem:[#allocation3 + $0x118] sm:$0xff] %vm1172_vm2, %v5636_v47  ;;  %v5142_v52 = vadd.f32 %v5074_v36, %v4803_v20  ;;  %v16009_v11 = vld [vmem:[%s20299_s5 + $0x504] ss:$8 sps:$4 sm:$0xff]   ;;  %v8308_v35 = vld [vmem:[#allocation3 + $0x78] sm:$0x1] }
 0x568   : > { %8170 = vmatprep.subr.bf16.mxu1 %v15982_v17  ;;  %9162 = vmatprep.subr.bf16.mxu0 %v15985_v4  ;;  %v5298_v62 = vld [vmem:[#allocation3 + $0x120] sm:$0xff]  ;;  %v15537_v55 = vpop.f32.mrf.mxu1  ;;  %v15998_v17 = vld [vmem:[%s20299_s5 + $0x360] ss:$8 sps:$4 sm:$0xff]  }
 0x569   : > { %9180 = vmatprep.mubr.bf16.mxu0 %v20322_v21  ;;  %v5821_v42 = vmax.f32 %v5776_v29, 0.0  ;;  %v5637_v34 = vadd.f32 %v18283_v18, %v5298_v62  ;;  %5187 = vst.msk [vmem:[#allocation3 + $0x130] sm:$0xff] %vm1172_vm2, %v5142_v52  ;;  %v16001_v4 = vld [vmem:[%s20299_s5 + $0x510] ss:$8 sps:$4 sm:$0xff]   ;;  %v8309_v62 = vpack.c.bf16 %v8308_v35, %v8308_v35  ;;  %v16012_v55 = vld [vmem:[%s20299_s5 + $0x3a4] ss:$8 sps:$4 sm:$0xff]  }
 0x56a   : > { %14027 = vmatmul.mubr.msk.bf16.vlgmr.msra.gmra.mxu1 %vm1172_vm2, %v7949_v43  ;;  %v5725_v13 = vld [vmem:[#allocation3 + $0x110] sm:$0xff]  ;;  %v5077_v50 = vpop.f32.mrf.mxu1  ;;  %v16004_v43 = vld [vmem:[%s20299_s5 + $0x3b0] ss:$8 sps:$4 sm:$0xff]   ;;  %v16015_v54 = vld [vmem:[%s20299_s5 + $0x554] ss:$8 sps:$4 sm:$0xff]  }
 0x56b   : > { %8171 = vmatpush1.bf16.msra.mxu1 %v15980_v31  ;;  %9163 = vmatpush1.bf16.msra.mxu0 %v15983_v25  ;;  %5866 = vst.msk [vmem:[#allocation3 + $0x108] sm:$0xff] %vm1172_vm2, %v5821_v42  ;;  %v5777_v18 = vadd.f32 %v18751_v28, %v5725_v13  ;;  %5682 = vst.msk [vmem:[#allocation3 + $0x120] sm:$0xff] %vm1172_vm2, %v5637_v34  ;;  %v5143_v58 = vadd.f32 %v5077_v50, %v4804_v8  ;;  %v4807_v25 = vld [vmem:[#allocation3 + $0x150] sm:$0xff]  ;;  %v9478_v8 = vld [vmem:[#allocation3 + $0xa8] sm:$0x1] }
 0x56c   : > { %8172 = vmatprep.subr.bf16.mxu1 %v15988_v0  ;;  %9340 = vmatprep.subr.bf16.mxu0 %v15991_v10  ;;  %v5299_v41 = vld [vmem:[#allocation3 + $0x128] sm:$0xff]  ;;  %v15538_v6 = vpop.f32.mrf.mxu1  ;;  %v16007_v0 = vld [vmem:[%s20299_s5 + $0x500] ss:$8 sps:$4 sm:$0xff]  }
 0x56d   : > { %8190 = vmatprep.mubr.bf16.mxu1 %v20322_v21  ;;  %v5822_v2 = vmax.f32 %v5777_v18, 0.0  ;;  %v5638_v12 = vadd.f32 %v18290_v49, %v5299_v41  ;;  %5188 = vst.msk [vmem:[#allocation3 + $0x138] sm:$0xff] %vm1172_vm2, %v5143_v58  ;;  %v16010_v58 = vld [vmem:[%s20299_s5 + $0x3a0] ss:$8 sps:$4 sm:$0xff]   ;;  %v16018_v41 = vld [vmem:[%s20299_s5 + $0x3f4] ss:$8 sps:$4 sm:$0xff]  }
 0x56e   : > { %14144 = vmatmul.mubr.msk.bf16.vlgmr.msra.gmra.mxu0 %vm1172_vm2, %v9119_v5  ;;  %v5726_v22 = vld [vmem:[#allocation3 + $0x118] sm:$0xff]  ;;  %v5082_v23 = vpop.f32.mrf.mxu1  ;;  %v16013_v5 = vld [vmem:[%s20299_s5 + $0x550] ss:$8 sps:$4 sm:$0xff]  }
 0x56f   : > { %8173 = vmatpush1.bf16.msra.mxu1 %v15986_v51  ;;  %9341 = vmatpush1.bf16.msra.mxu0 %v15989_v19  ;;  %5867 = vst.msk [vmem:[#allocation3 + $0x110] sm:$0xff] %vm1172_vm2, %v5822_v2  ;;  %v5778_v49 = vadd.f32 %v18751_v28, %v5726_v22  ;;  %5683 = vst.msk [vmem:[#allocation3 + $0x128] sm:$0xff] %vm1172_vm2, %v5638_v12  ;;  %v5144_v37 = vadd.f32 %v5082_v23, %v4805_v3  ;;  %v4808_v51 = vld [vmem:[#allocation3 + $0x158] sm:$0xff]  ;;  %v4809_v23 = vld [vmem:[#allocation3 + $0x160] sm:$0x3f] }
 0x570   : > { %8350 = vmatprep.subr.bf16.mxu1 %v15994_v38  ;;  %9342 = vmatprep.subr.bf16.mxu0 %v15997_v45  ;;  %v5300_v9 = vld [vmem:[#allocation3 + $0x130] sm:$0xff]  ;;  %v15541_v48 = vpop.f32.mrf.mxu1  ;;  %v9479_v45 = vpack.c.bf16 %v9478_v8, %v9478_v8  ;;  %v8488_v12 = vld [vmem:[#allocation3 + $0x7c] sm:$0x1]  ;;  %v16042_v8 = vld [vmem:[%s20299_s5 + $0x474] ss:$8 sps:$4 sm:$0xff]  }
 0x571   : > { %9360 = vmatprep.mubr.bf16.mxu0 %v20322_v21  ;;  %v5823_v16 = vmax.f32 %v5778_v49, 0.0  ;;  %v5639_v46 = vadd.f32 %v18296_v53, %v5300_v9  ;;  %5189 = vst.msk [vmem:[#allocation3 + $0x140] sm:$0xff] %vm1172_vm2, %v5144_v37  ;;  %v16021_v6 = vld [vmem:[%s20299_s5 + $0x544] ss:$8 sps:$4 sm:$0xff]   ;;  %v16016_v49 = vld [vmem:[%s20299_s5 + $0x3f0] ss:$8 sps:$4 sm:$0xff]  }
 0x572   : > { %14045 = vmatmul.mubr.msk.bf16.vlgmr.msra.gmra.mxu1 %vm1172_vm2, %v8129_v57  ;;  %v5727_v26 = vld [vmem:[#allocation3 + $0x120] sm:$0xff]  ;;  %v5085_v1 = vpop.f32.mrf.mxu1  ;;  %v16019_v37 = vld [vmem:[%s20299_s5 + $0x540] ss:$8 sps:$4 sm:$0xff]  }
 0x573   : > { %8351 = vmatpush1.bf16.msra.mxu1 %v15992_v30  ;;  %9343 = vmatpush1.bf16.msra.mxu0 %v15995_v15  ;;  %5868 = vst.msk [vmem:[#allocation3 + $0x118] sm:$0xff] %vm1172_vm2, %v5823_v16  ;;  %v5779_v53 = vadd.f32 %v18751_v28, %v5727_v26  ;;  %5684 = vst.msk [vmem:[#allocation3 + $0x130] sm:$0xff] %vm1172_vm2, %v5639_v46  ;;  %v5145_v27 = vadd.f32 %v5085_v1, %v4806_v60  ;;  %v16027_v9 = vld [vmem:[%s20299_s5 + $0x594] ss:$8 sps:$4 sm:$0xff]  }
 0x574   : > { %8352 = vmatprep.subr.bf16.mxu1 %v16000_v40  ;;  %9520 = vmatprep.subr.bf16.mxu0 %v16003_v56  ;;  %v5301_v47 = vld [vmem:[#allocation3 + $0x138] sm:$0xff]  ;;  %v15542_v20 = vpop.f32.mrf.mxu1  ;;  %v8489_v40 = vpack.c.bf16 %v8488_v12, %v8488_v12  ;;  %v9658_v16 = vld [vmem:[#allocation3 + $0xac] sm:$0x1]  ;;  %v16049_v12 = vld [vmem:[%s20299_s5 + $0x610] ss:$8 sps:$4 sm:$0xff]  }
 0x575   : > { %8370 = vmatprep.mubr.bf16.mxu1 %v20322_v21  ;;  %v5824_v36 = vmax.f32 %v5779_v53, 0.0  ;;  %v5640_v31 = vadd.f32 %v18303_v63, %v5301_v47  ;;  %5190 = vst.msk [vmem:[#allocation3 + $0x148] sm:$0xff] %vm1172_vm2, %v5145_v27  ;;  %v16024_v56 = vld [vmem:[%s20299_s5 + $0x3e4] ss:$8 sps:$4 sm:$0xff]   ;;  %v9659_v53 = vpack.c.bf16 %v9658_v16, %v9658_v16  ;;  %v16030_v27 = vld [vmem:[%s20299_s5 + $0x434] ss:$8 sps:$4 sm:$0xff]  }
 0x576   : > { %14162 = vmatmul.mubr.msk.bf16.vlgmr.msra.gmra.mxu0 %vm1172_vm2, %v9299_v33  ;;  %v5728_v29 = vld [vmem:[#allocation3 + $0x128] sm:$0xff]  ;;  %v5090_v52 = vpop.f32.mrf.mxu1  ;;  %v16033_v33 = vld [vmem:[%s20299_s5 + $0x584] ss:$8 sps:$4 sm:$0xff]   ;;  %v8668_v47 = vld [vmem:[#allocation3 + $0x80] sm:$0x1] }
 0x577   : > { %8353 = vmatpush1.bf16.msra.mxu1 %v15998_v17  ;;  %9521 = vmatpush1.bf16.msra.mxu0 %v16001_v4  ;;  %5869 = vst.msk [vmem:[#allocation3 + $0x120] sm:$0xff] %vm1172_vm2, %v5824_v36  ;;  %v5780_v63 = vadd.f32 %v18751_v28, %v5728_v29  ;;  %5685 = vst.msk [vmem:[#allocation3 + $0x138] sm:$0xff] %vm1172_vm2, %v5640_v31  ;;  %v5146_v10 = vadd.f32 %v5090_v52, %v4807_v25  ;;  %v16022_v17 = vld [vmem:[%s20299_s5 + $0x3e0] ss:$8 sps:$4 sm:$0xff]   ;;  %v16025_v4 = vld [vmem:[%s20299_s5 + $0x590] ss:$8 sps:$4 sm:$0xff]  }
 0x578   : > { %8530 = vmatprep.subr.bf16.mxu1 %v16006_v59  ;;  %9522 = vmatprep.subr.bf16.mxu0 %v16009_v11  ;;  %v5302_v42 = vld [vmem:[#allocation3 + $0x140] sm:$0xff]  ;;  %v15545_v34 = vpop.f32.mrf.mxu1  ;;  %v16031_v25 = vld [vmem:[%s20299_s5 + $0x580] ss:$8 sps:$4 sm:$0xff]   ;;  %v16036_v52 = vld [vmem:[%s20299_s5 + $0x424] ss:$8 sps:$4 sm:$0xff]  }
 0x579   : > { %9540 = vmatprep.mubr.bf16.mxu0 %v20322_v21  ;;  %v5825_v13 = vmax.f32 %v5780_v63, 0.0  ;;  %v5641_v50 = vadd.f32 %v18309_v24, %v5302_v42  ;;  %5191 = vst.msk [vmem:[#allocation3 + $0x150] sm:$0xff] %vm1172_vm2, %v5146_v10  ;;  %v16028_v31 = vld [vmem:[%s20299_s5 + $0x430] ss:$8 sps:$4 sm:$0xff]   ;;  %v9838_v63 = vld [vmem:[#allocation3 + $0xb0] sm:$0x1] }
 0x57a   : > { %14063 = vmatmul.mubr.msk.bf16.vlgmr.msra.gmra.mxu1 %vm1172_vm2, %v8309_v62  ;;  %v5729_v19 = vld [vmem:[#allocation3 + $0x130] sm:$0xff]  ;;  %v5093_v18 = vpop.f32.mrf.mxu1  ;;  %v16037_v42 = vld [vmem:[%s20299_s5 + $0x5d0] ss:$8 sps:$4 sm:$0xff]   ;;  %v16066_v16 = vld [vmem:[%s20299_s5 + $0x4f4] ss:$8 sps:$4 sm:$0xff]  }
 0x57b   : > { %8531 = vmatpush1.bf16.msra.mxu1 %v16004_v43  ;;  %9523 = vmatpush1.bf16.msra.mxu0 %v16007_v0  ;;  %5870 = vst.msk [vmem:[#allocation3 + $0x128] sm:$0xff] %vm1172_vm2, %v5825_v13  ;;  %v5781_v24 = vadd.f32 %v18751_v28, %v5729_v19  ;;  %5686 = vst.msk [vmem:[#allocation3 + $0x140] sm:$0xff] %vm1172_vm2, %v5641_v50  ;;  %v5147_v38 = vadd.f32 %v5093_v18, %v4808_v51  ;;  %v16039_v43 = vld [vmem:[%s20299_s5 + $0x5d4] ss:$8 sps:$4 sm:$0xff]   ;;  %v16045_v13 = vld [vmem:[%s20299_s5 + $0x5c4] ss:$8 sps:$4 sm:$0xff]  }
 0x57c   : > { %8532 = vmatprep.subr.bf16.mxu1 %v16012_v55  ;;  %9700 = vmatprep.subr.bf16.mxu0 %v16015_v54  ;;  %v5303_v7 = vld [vmem:[#allocation3 + $0x148] sm:$0xff]  ;;  %v15546_v2 = vpop.f32.mrf.mxu1  ;;  %v16034_v54 = vld [vmem:[%s20299_s5 + $0x420] ss:$8 sps:$4 sm:$0xff]   ;;  %v8848_v50 = vld [vmem:[#allocation3 + $0x84] sm:$0x1] }
 0x57d   : > { %8550 = vmatprep.mubr.bf16.mxu1 %v20322_v21  ;;  %v5826_v3 = vmax.f32 %v5781_v24, 0.0  ;;  %v5642_v22 = vadd.f32 %v18315_v39, %v5303_v7  ;;  %5192 = vst.msk [vmem:[#allocation3 + $0x158] sm:$0xff] %vm1172_vm2, %v5147_v38  ;;  %v16040_v18 = vld [vmem:[%s20299_s5 + $0x470] ss:$8 sps:$4 sm:$0xff]   ;;  %v8849_v24 = vpack.c.bf16 %v8848_v50, %v8848_v50  ;;  %v16048_v38 = vld [vmem:[%s20299_s5 + $0x464] ss:$8 sps:$4 sm:$0xff]  }
 0x57e   : > { %14180 = vmatmul.mubr.msk.bf16.vlgmr.msra.gmra.mxu0 %vm1172_vm2, %v9479_v45  ;;  %v5730_v30 = vld [vmem:[#allocation3 + $0x138] sm:$0xff]  ;;  %v5098_v15 = vpop.f32.mrf.mxu1  ;;  %v16051_v45 = vld [vmem:[%s20299_s5 + $0x614] ss:$8 sps:$4 sm:$0xff]  }
 0x57f   : > { %8533 = vmatpush1.bf16.msra.mxu1 %v16010_v58  ;;  %9701 = vmatpush1.bf16.msra.mxu0 %v16013_v5  ;;  %5871 = vst.msk [vmem:[#allocation3 + $0x130] sm:$0xff] %vm1172_vm2, %v5826_v3  ;;  %v5782_v39 = vadd.f32 %v18751_v28, %v5730_v30  ;;  %5687 = vst.msk [vmem:[#allocation3 + $0x148] sm:$0xff] %vm1172_vm2, %v5642_v22  ;;  %v5148_v57 = vadd.f32 %v5098_v15, %v4809_v23  ;;  %v16043_v58 = vld [vmem:[%s20299_s5 + $0x5c0] ss:$8 sps:$4 sm:$0xff]   ;;  %v16054_v23 = vld [vmem:[%s20299_s5 + $0x4b4] ss:$8 sps:$4 sm:$0xff]  }
 0x580   : > { %8710 = vmatprep.subr.bf16.mxu1 %v16018_v41  ;;  %9702 = vmatprep.subr.bf16.mxu0 %v16021_v6  ;;  %v5304_v48 = vld [vmem:[#allocation3 + $0x150] sm:$0xff]  ;;  %v15549_v61 = vpop.f32.mrf.mxu1  ;;  %v10018_v41 = vld [vmem:[#allocation3 + $0xca] sm:$0x1]  ;;  %v9028_v15 = vld [vmem:[#allocation3 + $0x88] sm:$0x1] }
 0x581   : > { %9720 = vmatprep.mubr.bf16.mxu0 %v20322_v21  ;;  %v5827_v46 = vmax.f32 %v5782_v39, 0.0  ;;  %v5643_v60 = vadd.f32 %v18320_v32, %v5304_v48  ;;  %5193 = vst.msk [vmem:[#allocation3 + $0x160] sm:$0x3f] %vm1217_vm3, %v5148_v57  ;;  %v16046_v2 = vld [vmem:[%s20299_s5 + $0x460] ss:$8 sps:$4 sm:$0xff]   ;;  %v10019_v22 = vpack.c.bf16 %v10018_v41, %v10018_v41  ;;  %v9029_v39 = vpack.c.bf16 %v9028_v15, %v9028_v15 }
 0x582   : > { %14081 = vmatmul.mubr.msk.bf16.vlgmr.msra.gmra.mxu1 %vm1172_vm2, %v8489_v40  ;;  %v5731_v26 = vld [vmem:[#allocation3 + $0x140] sm:$0xff]  ;;  %v5101_v1 = vpop.f32.mrf.mxu1  ;;  %v16057_v30 = vld [vmem:[%s20299_s5 + $0x604] ss:$8 sps:$4 sm:$0xff]  }
 0x583   : > { %8711 = vmatpush1.bf16.msra.mxu1 %v16016_v49  ;;  %9703 = vmatpush1.bf16.msra.mxu0 %v16019_v37  ;;  %5872 = vst.msk [vmem:[#allocation3 + $0x138] sm:$0xff] %vm1172_vm2, %v5827_v46  ;;  %v5783_v32 = vadd.f32 %v18751_v28, %v5731_v26  ;;  %5688 = vst.msk [vmem:[#allocation3 + $0x150] sm:$0xff] %vm1172_vm2, %v5643_v60  ;;  %v16055_v37 = vld [vmem:[%s20299_s5 + $0x600] ss:$8 sps:$4 sm:$0xff]   ;;  %v16060_v57 = vld [vmem:[%s20299_s5 + $0x4a4] ss:$8 sps:$4 sm:$0xff]  }
 0x584   : > { %8712 = vmatprep.subr.bf16.mxu1 %v16024_v56  ;;  %9880 = vmatprep.subr.bf16.mxu0 %v16027_v9  ;;  %v5305_v59 = vld [vmem:[#allocation3 + $0x158] sm:$0xff]  ;;  %v15550_v11 = vpop.f32.mrf.mxu1  ;;  %v16063_v40 = vld [vmem:[%s20299_s5 + $0x654] ss:$8 sps:$4 sm:$0xff]   ;;  %v16061_v48 = vld [vmem:[%s20299_s5 + $0x650] ss:$8 sps:$4 sm:$0xff]  }
 0x585   : > { %8730 = vmatprep.mubr.bf16.mxu1 %v20322_v21  ;;  %v5828_v20 = vmax.f32 %v5783_v32, 0.0  ;;  %v5644_v35 = vadd.f32 %v18325_v44, %v5305_v59  ;;  %v8669_v44 = vpack.c.bf16 %v8668_v47, %v8668_v47  ;;  %v10198_v56 = vld [vmem:[#allocation3 + $0xce] sm:$0x1]  ;;  %v16058_v9 = vld [vmem:[%s20299_s5 + $0x4a0] ss:$8 sps:$4 sm:$0xff]  }
 0x586   : > { %14198 = vmatmul.mubr.msk.bf16.vlgmr.msra.gmra.mxu0 %vm1172_vm2, %v9659_v53  ;;  %v5732_v36 = vld [vmem:[#allocation3 + $0x148] sm:$0xff]  ;;  %v10199_v61 = vpack.c.bf16 %v10198_v56, %v10198_v56  ;;  %v16069_v46 = vld [vmem:[%s20299_s5 + $0x644] ss:$8 sps:$4 sm:$0xff]   ;;  %v9208_v60 = vld [vmem:[#allocation3 + $0xa2] sm:$0x1] }
 0x587   : > { %8713 = vmatpush1.bf16.msra.mxu1 %v16022_v17  ;;  %9881 = vmatpush1.bf16.msra.mxu0 %v16025_v4  ;;  %5873 = vst.msk [vmem:[#allocation3 + $0x140] sm:$0xff] %vm1172_vm2, %v5828_v20  ;;  %v5784_v29 = vadd.f32 %v18751_v28, %v5732_v36  ;;  %5689 = vst.msk [vmem:[#allocation3 + $0x158] sm:$0xff] %vm1172_vm2, %v5644_v35  ;;  %v16064_v26 = vld [vmem:[%s20299_s5 + $0x4f0] ss:$8 sps:$4 sm:$0xff]   ;;  %v16067_v1 = vld [vmem:[%s20299_s5 + $0x640] ss:$8 sps:$4 sm:$0xff]   ;;  %v9209_v17 = vpack.c.bf16 %v9208_v60, %v9208_v60 }
 0x588   : > { %8890 = vmatprep.subr.bf16.mxu1 %v16030_v27  ;;  %9882 = vmatprep.subr.bf16.mxu0 %v16033_v33  ;;  %v5306_v0 = vld [vmem:[#allocation3 + $0x160] sm:$0x3f]  ;;  %v16072_v4 = vld [vmem:[%s20299_s5 + $0x4e4] ss:$8 sps:$4 sm:$0xff]   ;;  %v10378_v53 = vld [vmem:[#allocation3 + $0xd2] sm:$0x1] }
 0x589   : > { %9900 = vmatprep.mubr.bf16.mxu0 %v20322_v21  ;;  %v5829_v10 = vmax.f32 %v5784_v29, 0.0  ;;  %v5645_v62 = vadd.f32 %v18329_v14, %v5306_v0  ;;  %v9839_v14 = vpack.c.bf16 %v9838_v63, %v9838_v63  ;;  %v16075_v32 = vld [vmem:[%s20299_s5 + $0x694] ss:$8 sps:$4 sm:$0xff]   ;;  %v16070_v27 = vld [vmem:[%s20299_s5 + $0x4e0] ss:$8 sps:$4 sm:$0xff]   ;;  %v10379_v59 = vpack.c.bf16 %v10378_v53, %v10378_v53 }
 0x58a   : > { %14099 = vmatmul.mubr.msk.bf16.vlgmr.msra.gmra.mxu1 %vm1172_vm2, %v8669_v44  ;;  %v5733_v55 = vld [vmem:[#allocation3 + $0x150] sm:$0xff]  ;;  %v16073_v33 = vld [vmem:[%s20299_s5 + $0x690] ss:$8 sps:$4 sm:$0xff]   ;;  %v16078_v11 = vld [vmem:[%s20299_s5 + $0x534] ss:$8 sps:$4 sm:$0xff]  }
 0x58b   : > { %8891 = vmatpush1.bf16.msra.mxu1 %v16028_v31  ;;  %9883 = vmatpush1.bf16.msra.mxu0 %v16031_v25  ;;  %5874 = vst.msk [vmem:[#allocation3 + $0x148] sm:$0xff] %vm1172_vm2, %v5829_v10  ;;  %v5785_v34 = vadd.f32 %v18751_v28, %v5733_v55  ;;  %v16081_v47 = vld [vmem:[%s20299_s5 + $0x684] ss:$8 sps:$4 sm:$0xff]   ;;  %v9388_v20 = vld [vmem:[#allocation3 + $0xa6] sm:$0x1]  ;;  %v5955_v10 = vlaneseq }
 0x58c   : > { %5690 = vst.msk [vmem:[#allocation3 + $0x160] sm:$0x3f] %vm1217_vm3, %v5645_v62  ;;  %8892 = vmatprep.subr.bf16.mxu1 %v16036_v52  ;;  %10060 = vmatprep.subr.bf16.mxu0 %v16039_v43  ;;  %v16076_v35 = vld [vmem:[%s20299_s5 + $0x530] ss:$8 sps:$4 sm:$0xff]   ;;  %v16079_v36 = vld [vmem:[%s20299_s5 + $0x680] ss:$8 sps:$4 sm:$0xff]   ;;  %v9389_v31 = vpack.c.bf16 %v9388_v20, %v9388_v20 }
 0x58d   : > { %8910 = vmatprep.mubr.bf16.mxu1 %v20322_v21  ;;  %v5830_v51 = vmax.f32 %v5785_v34, 0.0  ;;  %v16084_v25 = vld [vmem:[%s20299_s5 + $0x524] ss:$8 sps:$4 sm:$0xff]   ;;  %v16087_v29 = vld [vmem:[%s20299_s5 + $0x6d4] ss:$8 sps:$4 sm:$0xff]  }
 0x58e   : > { %14216 = vmatmul.mubr.msk.bf16.vlgmr.msra.gmra.mxu0 %vm1172_vm2, %v9839_v14  ;;  %v5734_v19 = vld [vmem:[#allocation3 + $0x158] sm:$0xff]  ;;  %v10558_v44 = vld [vmem:[#allocation3 + $0xd6] sm:$0x1]  ;;  %v16085_v43 = vld [vmem:[%s20299_s5 + $0x6d0] ss:$8 sps:$4 sm:$0xff]  }
 0x58f   : > { %8893 = vmatpush1.bf16.msra.mxu1 %v16034_v54  ;;  %10061 = vmatpush1.bf16.msra.mxu0 %v16037_v42  ;;  %5875 = vst.msk [vmem:[#allocation3 + $0x150] sm:$0xff] %vm1172_vm2, %v5830_v51  ;;  %v5786_v5 = vadd.f32 %v18751_v28, %v5734_v19  ;;  %v16082_v52 = vld [vmem:[%s20299_s5 + $0x520] ss:$8 sps:$4 sm:$0xff]   ;;  %v16402_v0 = vmov 1966171168   ;;  %v10559_v62 = vpack.c.bf16 %v10558_v44, %v10558_v44 }
 0x590   : > { %9070 = vmatprep.subr.bf16.mxu1 %v16042_v8  ;;  %10062 = vmatprep.subr.bf16.mxu0 %v16045_v13  ;;  %v5953_v63 = vunpack.c.l.s4 %v16402_v0  ;;  %v16090_v55 = vld [vmem:[%s20299_s5 + $0x574] ss:$8 sps:$4 sm:$0xff]   ;;  %v16093_v54 = vld [vmem:[%s20299_s5 + $0x6c4] ss:$8 sps:$4 sm:$0xff]   ;;  %v9568_v42 = vld [vmem:[#allocation3 + $0xaa] sm:$0x1] }
 0x591   : > { %10080 = vmatprep.mubr.bf16.mxu0 %v20322_v21  ;;  %v5831_v6 = vmax.f32 %v5786_v5, 0.0  ;;  %v16088_v34 = vld [vmem:[%s20299_s5 + $0x570] ss:$8 sps:$4 sm:$0xff]   ;;  %v16091_v14 = vld [vmem:[%s20299_s5 + $0x6c0] ss:$8 sps:$4 sm:$0xff]   ;;  %v19226_v13 = vshrl.u32 %v5955_v10, 7  ;;  %v9569_v50 = vpack.c.bf16 %v9568_v42, %v9568_v42 }
 0x592   : > { %14117 = vmatmul.mubr.msk.bf16.vlgmr.msra.gmra.mxu1 %vm1172_vm2, %v8849_v24  ;;  %v5954_v8 = vunpack.c.0.s8 %v5953_v63  ;;  %v16096_v51 = vld [vmem:[%s20299_s5 + $0x564] ss:$8 sps:$4 sm:$0xff]   ;;  %v16099_v19 = vld [vmem:[%s20299_s5 + $0x714] ss:$8 sps:$4 sm:$0xff]   ;;  %v11098_v0 = vld [vmem:[#allocation3 + $0xf8] sm:$0x1] }
 0x593   : > { %v5735_v7 = vld [vmem:[#allocation3 + $0x160] sm:$0x3f]  ;;  %9071 = vmatpush1.bf16.msra.mxu1 %v16040_v18  ;;  %10063 = vmatpush1.bf16.msra.mxu0 %v16043_v58  ;;  %5876 = vst.msk [vmem:[#allocation3 + $0x158] sm:$0xff] %vm1172_vm2, %v5831_v6  ;;  %v10738_v18 = vld [vmem:[#allocation3 + $0xf0] sm:$0x1]  ;;  %v11099_v42 = vpack.c.bf16 %v11098_v0, %v11098_v0 }
 0x594   : > { %v5787_v3 = vadd.f32 %v18751_v28, %v5735_v7  ;;  %9072 = vmatprep.subr.bf16.mxu1 %v16048_v38  ;;  %10240 = vmatprep.subr.bf16.mxu0 %v16051_v45  ;;  %v16052_v28 = vld [vmem:[%s20299_s5 + $0x4b0] ss:$8 sps:$4 sm:$0xff]   ;;  %v19237_v24 = vsub.s32 %v5954_v8, %v19226_v13  ;;  %v16094_v38 = vld [vmem:[%s20299_s5 + $0x560] ss:$8 sps:$4 sm:$0xff]   ;;  %v10739_v7 = vpack.c.bf16 %v10738_v18, %v10738_v18  ;;  %v16120_v44 = vld [vmem:[%s20299_s5 + $0x5e4] ss:$8 sps:$4 sm:$0xff]  }
 0x595   : > { %9090 = vmatprep.mubr.bf16.mxu1 %v20322_v21  ;;  %v16097_v45 = vld [vmem:[%s20299_s5 + $0x710] ss:$8 sps:$4 sm:$0xff]  }
 0x596   : > { %v5832_v49 = vmax.f32 %v5787_v3, 0.0  ;;  %14234 = vmatmul.mubr.msk.bf16.vlgmr.msra.gmra.mxu0 %vm1172_vm2, %v10019_v22 }
 0x597   : > { %9073 = vmatpush1.bf16.msra.mxu1 %v16046_v2  ;;  %10241 = vmatpush1.bf16.msra.mxu0 %v16049_v12  ;;  %v16102_v2 = vld [vmem:[%s20299_s5 + $0x5b4] ss:$8 sps:$4 sm:$0xff]   ;;  %v16105_v12 = vld [vmem:[%s20299_s5 + $0x704] ss:$8 sps:$4 sm:$0xff]  }
 0x598   : > { %5877 = vst.msk [vmem:[#allocation3 + $0x160] sm:$0x3f] %vm1217_vm3, %v5832_v49  ;;  %9250 = vmatprep.subr.bf16.mxu1 %v16054_v23  ;;  %10242 = vmatprep.subr.bf16.mxu0 %v16057_v30  ;;  %v9748_v23 = vld [vmem:[#allocation3 + $0xae] sm:$0x1] }
 0x599   : > { %10260 = vmatprep.mubr.bf16.mxu0 %v20322_v21 }
 0x59a   : > { %14135 = vmatmul.mubr.msk.bf16.vlgmr.msra.gmra.mxu1 %vm1172_vm2, %v9029_v39  ;;  %v16103_v39 = vld [vmem:[%s20299_s5 + $0x700] ss:$8 sps:$4 sm:$0xff]  }
 0x59b   : > { %9251 = vmatpush1.bf16.msra.mxu1 %v16052_v28  ;;  %10243 = vmatpush1.bf16.msra.mxu0 %v16055_v37  ;;  %v16100_v37 = vld [vmem:[%s20299_s5 + $0x5b0] ss:$8 sps:$4 sm:$0xff]  }
 0x59c   : > { %9252 = vmatprep.subr.bf16.mxu1 %v16060_v57  ;;  %10420 = vmatprep.subr.bf16.mxu0 %v16063_v40  ;;  %v5878_v57 = vld [vmem:[%s20300_s6] sm:$0x3] }
 0x59d   : > { %9270 = vmatprep.mubr.bf16.mxu1 %v20322_v21 }
 0x59e   : > { %14252 = vmatmul.mubr.msk.bf16.vlgmr.msra.gmra.mxu0 %vm1172_vm2, %v10199_v61  ;;  %v16111_v61 = vld [vmem:[%s20299_s5 + $0x754] ss:$8 sps:$4 sm:$0xff]  }
 0x59f   : > { %9253 = vmatpush1.bf16.msra.mxu1 %v16058_v9  ;;  %10421 = vmatpush1.bf16.msra.mxu0 %v16061_v48  ;;  %v9749_v9 = vpack.c.bf16 %v9748_v23, %v9748_v23  ;;  %v16108_v48 = vld [vmem:[%s20299_s5 + $0x5a4] ss:$8 sps:$4 sm:$0xff]  }
 0x5a0   : > { %9430 = vmatprep.subr.bf16.mxu1 %v16066_v16  ;;  %10422 = vmatprep.subr.bf16.mxu0 %v16069_v46  ;;  %v10918_v46 = vld [vmem:[#allocation3 + $0xf4] sm:$0x1] }
 0x5a1   : > { %10440 = vmatprep.mubr.bf16.mxu0 %v20322_v21  ;;  %v10919_v53 = vpack.c.bf16 %v10918_v46, %v10918_v46  ;;  %v16136_v46 = vld [vmem:[%s20299_s5 + $0x670] ss:$8 sps:$4 sm:$0xff]  }
 0x5a2   : > { %14153 = vmatmul.mubr.msk.bf16.vlgmr.msra.gmra.mxu1 %vm1172_vm2, %v9209_v17  ;;  %v16106_v17 = vld [vmem:[%s20299_s5 + $0x5a0] ss:$8 sps:$4 sm:$0xff]  }
 0x5a3   : > { %9431 = vmatpush1.bf16.msra.mxu1 %v16064_v26  ;;  %10423 = vmatpush1.bf16.msra.mxu0 %v16067_v1 }
 0x5a4   : > { %9432 = vmatprep.subr.bf16.mxu1 %v16072_v4  ;;  %10600 = vmatprep.subr.bf16.mxu0 %v16075_v32  ;;  %v16109_v4 = vld [vmem:[%s20299_s5 + $0x750] ss:$8 sps:$4 sm:$0xff]  }
 0x5a5   : > { %9450 = vmatprep.mubr.bf16.mxu1 %v20322_v21 }
 0x5a6   : > { %14270 = vmatmul.mubr.msk.bf16.vlgmr.msra.gmra.mxu0 %vm1172_vm2, %v10379_v59 }
 0x5a7   : > { %9433 = vmatpush1.bf16.msra.mxu1 %v16070_v27  ;;  %10601 = vmatpush1.bf16.msra.mxu0 %v16073_v33  ;;  %v16114_v27 = vld [vmem:[%s20299_s5 + $0x5f4] ss:$8 sps:$4 sm:$0xff]   ;;  %v16117_v33 = vld [vmem:[%s20299_s5 + $0x744] ss:$8 sps:$4 sm:$0xff]  }
 0x5a8   : > { %9610 = vmatprep.subr.bf16.mxu1 %v16078_v11  ;;  %10602 = vmatprep.subr.bf16.mxu0 %v16081_v47  ;;  %v9928_v47 = vld [vmem:[#allocation3 + $0xc8] sm:$0x1] }
 0x5a9   : > { %10620 = vmatprep.mubr.bf16.mxu0 %v20322_v21 }
 0x5aa   : > { %14171 = vmatmul.mubr.msk.bf16.vlgmr.msra.gmra.mxu1 %vm1172_vm2, %v9389_v31  ;;  %v16115_v31 = vld [vmem:[%s20299_s5 + $0x740] ss:$8 sps:$4 sm:$0xff]  }
 0x5ab   : > { %9611 = vmatpush1.bf16.msra.mxu1 %v16076_v35  ;;  %10603 = vmatpush1.bf16.msra.mxu0 %v16079_v36  ;;  %v16112_v36 = vld [vmem:[%s20299_s5 + $0x5f0] ss:$8 sps:$4 sm:$0xff]  }
 0x5ac   : > { %9612 = vmatprep.subr.bf16.mxu1 %v16084_v25  ;;  %10780 = vmatprep.subr.bf16.mxu0 %v16087_v29  ;;  %v9929_v29 = vpack.c.bf16 %v9928_v47, %v9928_v47 }
 0x5ad   : > { %9630 = vmatprep.mubr.bf16.mxu1 %v20322_v21 }
 0x5ae   : > { %14288 = vmatmul.mubr.msk.bf16.vlgmr.msra.gmra.mxu0 %vm1172_vm2, %v10559_v62  ;;  %v16118_v62 = vld [vmem:[%s20299_s5 + $0x5e0] ss:$8 sps:$4 sm:$0xff]  }
 0x5af   : > { %9613 = vmatpush1.bf16.msra.mxu1 %v16082_v52  ;;  %10781 = vmatpush1.bf16.msra.mxu0 %v16085_v43  ;;  %v16123_v52 = vld [vmem:[%s20299_s5 + $0x794] ss:$8 sps:$4 sm:$0xff]  }
 0x5b0   : > { %9790 = vmatprep.subr.bf16.mxu1 %v16090_v55  ;;  %10782 = vmatprep.subr.bf16.mxu0 %v16093_v54  ;;  %v16121_v55 = vld [vmem:[%s20299_s5 + $0x790] ss:$8 sps:$4 sm:$0xff]  }
 0x5b1   : > { %10800 = vmatprep.mubr.bf16.mxu0 %v20322_v21  ;;  %v5942_v58 = vpop.f32.mrf.mxu0 }
 0x5b2   : > { %v6032_v5 = vpop.f32.mrf.mxu1  ;;  %14189 = vmatmul.mubr.msk.bf16.vlgmr.msra.gmra.mxu1 %vm1172_vm2, %v9569_v50  ;;  %v10108_v50 = vld [vmem:[#allocation3 + $0xcc] sm:$0x1] }
 0x5b3   : > { %9791 = vmatpush1.bf16.msra.mxu1 %v16088_v34  ;;  %10783 = vmatpush1.bf16.msra.mxu0 %v16091_v14  ;;  %v5944_v41 = vpop.f32.mrf.mxu0  ;;  %v16126_v34 = vld [vmem:[%s20299_s5 + $0x634] ss:$8 sps:$4 sm:$0xff]   ;;  %v16129_v14 = vld [vmem:[%s20299_s5 + $0x784] ss:$8 sps:$4 sm:$0xff]  }
 0x5b4   : > { %v6034_v6 = vpop.f32.mrf.mxu1  ;;  %9792 = vmatprep.subr.bf16.mxu1 %v16096_v51  ;;  %10960 = vmatprep.subr.bf16.mxu0 %v16099_v19  ;;  %v5951_v3 = vcombine.low %v5942_v58, %v5944_v41  ;;  %v16124_v58 = vld [vmem:[%s20299_s5 + $0x630] ss:$8 sps:$4 sm:$0xff]   ;;  %v10109_v41 = vpack.c.bf16 %v10108_v50, %v10108_v50 }
 0x5b5   : > { %v6041_v22 = vcombine.low %v6032_v5, %v6034_v6  ;;  %9810 = vmatprep.mubr.bf16.mxu1 %v20322_v21  ;;  %v5946_v30 = vpop.f32.mrf.mxu0  ;;  %v16127_v5 = vld [vmem:[%s20299_s5 + $0x780] ss:$8 sps:$4 sm:$0xff]   ;;  %v16132_v6 = vld [vmem:[%s20299_s5 + $0x624] ss:$8 sps:$4 sm:$0xff]  }
 0x5b6   : > { %v6036_v15 = vpop.f32.mrf.mxu1  ;;  %14306 = vmatmul.mubr.msk.bf16.vlgmr.msra.gmra.mxu0 %vm1172_vm2, %v10739_v7  ;;  %v5958_v49 = vrot.slane %v5951_v3, %v19237_v24  ;;  %v16135_v7 = vld [vmem:[%s20299_s5 + $0x7d4] ss:$8 sps:$4 sm:$0xff]   ;;  %v11278_v3 = vld [vmem:[#allocation3 + $0xfc] sm:$0x1] }
 0x5b7   : > { %v6048_v28 = vrot.slane %v6041_v22, %v19237_v24  ;;  %9793 = vmatpush1.bf16.msra.mxu1 %v16094_v38  ;;  %10961 = vmatpush1.bf16.msra.mxu0 %v16097_v45  ;;  %v5947_v40 = vpop.f32.mrf.mxu0  ;;  %v16130_v15 = vld [vmem:[%s20299_s5 + $0x620] ss:$8 sps:$4 sm:$0xff]  }
 0x5b8   : > { %v6037_v56 = vpop.f32.mrf.mxu1  ;;  %9970 = vmatprep.subr.bf16.mxu1 %v16102_v2  ;;  %10962 = vmatprep.subr.bf16.mxu0 %v16105_v12  ;;  %v5965_v16 = vrot.slane %v5958_v49, %v19237_v24  ;;  %v16133_v49 = vld [vmem:[%s20299_s5 + $0x7d0] ss:$8 sps:$4 sm:$0xff]   ;;  %v16141_v40 = vld [vmem:[%s20299_s5 + $0x7c4] ss:$8 sps:$4 sm:$0xff]  }
 0x5b9   : > { %10980 = vmatprep.mubr.bf16.mxu0 %v20322_v21  ;;  %v6055_v1 = vrot.slane %v6048_v28, %v19237_v24 }
 0x5ba   : > { %v6122_v60 = vpop.f32.mrf.mxu1  ;;  %14207 = vmatmul.mubr.msk.bf16.vlgmr.msra.gmra.mxu1 %vm1172_vm2, %v9749_v9  ;;  %v5967_v26 = vadd.f32 %v5965_v16, %v5878_v57  ;;  %v16138_v57 = vld [vmem:[%s20299_s5 + $0x674] ss:$8 sps:$4 sm:$0xff]   ;;  %v10288_v9 = vld [vmem:[#allocation3 + $0xd0] sm:$0x1] }
 0x5bb   : > { %9971 = vmatpush1.bf16.msra.mxu1 %v16100_v37  ;;  %10963 = vmatpush1.bf16.msra.mxu0 %v16103_v39  ;;  %v11279_v39 = vpack.c.bf16 %v11278_v3, %v11278_v3 }
 0x5bc   : > { %v6124_v32 = vpop.f32.mrf.mxu1  ;;  %9972 = vmatprep.subr.bf16.mxu1 %v16108_v48  ;;  %11140 = vmatprep.subr.bf16.mxu0 %v16111_v61  ;;  %v6057_v59 = vadd.f32 %v6055_v1, %v5967_v26 }
 0x5bd   : > { %v6131_v11 = vcombine.low %v6122_v60, %v6124_v32  ;;  %9990 = vmatprep.mubr.bf16.mxu1 %v20322_v21  ;;  %v16139_v60 = vld [vmem:[%s20299_s5 + $0x7c0] ss:$8 sps:$4 sm:$0xff]   ;;  %v16147_v32 = vld [vmem:[%s20299_s5 + $0x814] ss:$8 sps:$4 sm:$0xff]  }
 0x5be   : > { %v6126_v20 = vpop.f32.mrf.mxu1  ;;  %14324 = vmatmul.mubr.msk.bf16.vlgmr.msra.gmra.mxu0 %vm1172_vm2, %v10919_v53 }
 0x5bf   : > { %v6138_v35 = vrot.slane %v6131_v11, %v19237_v24  ;;  %9973 = vmatpush1.bf16.msra.mxu1 %v16106_v17  ;;  %11141 = vmatpush1.bf16.msra.mxu0 %v16109_v4  ;;  %v10289_v17 = vpack.c.bf16 %v10288_v9, %v10288_v9  ;;  %v16144_v4 = vld [vmem:[%s20299_s5 + $0x664] ss:$8 sps:$4 sm:$0xff]   ;;  %v16142_v20 = vld [vmem:[%s20299_s5 + $0x660] ss:$8 sps:$4 sm:$0xff]  }
 0x5c0   : > { %v6127_v25 = vpop.f32.mrf.mxu1  ;;  %10150 = vmatprep.subr.bf16.mxu1 %v16114_v27  ;;  %11142 = vmatprep.subr.bf16.mxu0 %v16117_v33  ;;  %v11458_v33 = vld [vmem:[#allocation3 + $0x100] sm:$0x1] }
 0x5c1   : > { %v6145_v43 = vrot.slane %v6138_v35, %v19237_v24  ;;  %11160 = vmatprep.mubr.bf16.mxu0 %v20322_v21  ;;  %v16145_v35 = vld [vmem:[%s20299_s5 + $0x810] ss:$8 sps:$4 sm:$0xff]   ;;  %v11459_v25 = vpack.c.bf16 %v11458_v33, %v11458_v33 }
 0x5c2   : > { %v6212_v63 = vpop.f32.mrf.mxu1  ;;  %14225 = vmatmul.mubr.msk.bf16.vlgmr.msra.gmra.mxu1 %vm1172_vm2, %v9929_v29  ;;  %v16150_v29 = vld [vmem:[%s20299_s5 + $0x6b4] ss:$8 sps:$4 sm:$0xff]   ;;  %v16169_v33 = vld [vmem:[%s20299_s5 + $0x890] ss:$8 sps:$4 sm:$0xff]  }
 0x5c3   : > { %v6147_v10 = vadd.f32 %v6145_v43, %v6057_v59  ;;  %10151 = vmatpush1.bf16.msra.mxu1 %v16112_v36  ;;  %11143 = vmatpush1.bf16.msra.mxu0 %v16115_v31  ;;  %v10468_v43 = vld [vmem:[#allocation3 + $0xd4] sm:$0x1] }
 0x5c4   : > { %v6214_v54 = vpop.f32.mrf.mxu1  ;;  %10152 = vmatprep.subr.bf16.mxu1 %v16120_v44  ;;  %11320 = vmatprep.subr.bf16.mxu0 %v16123_v52  ;;  %v16153_v44 = vld [vmem:[%s20299_s5 + $0x804] ss:$8 sps:$4 sm:$0xff]  }
 0x5c5   : > { %v6221_v8 = vcombine.low %v6212_v63, %v6214_v54  ;;  %10170 = vmatprep.mubr.bf16.mxu1 %v20322_v21 }
 0x5c6   : > { %v6216_v51 = vpop.f32.mrf.mxu1  ;;  %v19317_v19 = vpop.f32.mrf.mxu0  ;;  %14342 = vmatmul.mubr.msk.bf16.vlgmr.msra.gmra.mxu0 %vm1172_vm2, %v11099_v42 }
 0x5c7   : > { %v6228_v18 = vrot.slane %v6221_v8, %v19237_v24  ;;  %10153 = vmatpush1.bf16.msra.mxu1 %v16118_v62  ;;  %11321 = vmatpush1.bf16.msra.mxu0 %v16121_v55  ;;  %v16148_v62 = vld [vmem:[%s20299_s5 + $0x6b0] ss:$8 sps:$4 sm:$0xff]   ;;  %v16151_v55 = vld [vmem:[%s20299_s5 + $0x800] ss:$8 sps:$4 sm:$0xff]   ;;  %v16159_v8 = vld [vmem:[%s20299_s5 + $0x854] ss:$8 sps:$4 sm:$0xff]  }
 0x5c8   : > { %v6217_v38 = vpop.f32.mrf.mxu1  ;;  %v19327_v45 = vpop.f32.mrf.mxu0  ;;  %10330 = vmatprep.subr.bf16.mxu1 %v16126_v34  ;;  %11322 = vmatprep.subr.bf16.mxu0 %v16129_v14  ;;  %v10469_v34 = vpack.c.bf16 %v10468_v43, %v10468_v43  ;;  %v16156_v14 = vld [vmem:[%s20299_s5 + $0x6a4] ss:$8 sps:$4 sm:$0xff]   ;;  %v16175_v43 = vld [vmem:[%s20299_s5 + $0x880] ss:$8 sps:$4 sm:$0xff]  }
 0x5c9   : > { %v6235_v2 = vrot.slane %v6228_v18, %v19237_v24  ;;  %v6851_v12 = vcombine.low %v19317_v19, %v19327_v45  ;;  %11340 = vmatprep.mubr.bf16.mxu0 %v20322_v21  ;;  %v11638_v18 = vld [vmem:[#allocation3 + $0x11a] sm:$0x1]  ;;  %v16204_v19 = vld [vmem:[%s20299_s5 + $0x7a4] ss:$8 sps:$4 sm:$0xff]   ;;  %v16207_v45 = vld [vmem:[%s20299_s5 + $0x954] ss:$8 sps:$4 sm:$0xff]  }
 0x5ca   : > { %v6302_v22 = vpop.f32.mrf.mxu1  ;;  %v6846_v23 = vpop.f32.mrf.mxu0  ;;  %14243 = vmatmul.mubr.msk.bf16.vlgmr.msra.gmra.mxu1 %vm1172_vm2, %v10109_v41  ;;  %v16154_v41 = vld [vmem:[%s20299_s5 + $0x6a0] ss:$8 sps:$4 sm:$0xff]   ;;  %v11639_v3 = vpack.c.bf16 %v11638_v18, %v11638_v18 }
 0x5cb   : > { %v6237_v30 = vadd.f32 %v6235_v2, %v6147_v10  ;;  %10331 = vmatpush1.bf16.msra.mxu1 %v16124_v58  ;;  %11323 = vmatpush1.bf16.msra.mxu0 %v16127_v5  ;;  %v16165_v23 = vld [vmem:[%s20299_s5 + $0x844] ss:$8 sps:$4 sm:$0xff]  }
 0x5cc   : > { %v6304_v28 = vpop.f32.mrf.mxu1  ;;  %v6847_v37 = vpop.f32.mrf.mxu0  ;;  %10332 = vmatprep.subr.bf16.mxu1 %v16132_v6  ;;  %11500 = vmatprep.subr.bf16.mxu0 %v16135_v7  ;;  %v16157_v6 = vld [vmem:[%s20299_s5 + $0x850] ss:$8 sps:$4 sm:$0xff]  }
 0x5cd   : > { %v6311_v56 = vcombine.low %v6302_v22, %v6304_v28  ;;  %10350 = vmatprep.mubr.bf16.mxu1 %v20322_v21  ;;  %v16162_v22 = vld [vmem:[%s20299_s5 + $0x6f4] ss:$8 sps:$4 sm:$0xff]  }
 0x5ce   : > { %v6306_v48 = vpop.f32.mrf.mxu1  ;;  %v19353_v61 = vpop.f32.mrf.mxu0  ;;  %14360 = vmatmul.mubr.msk.bf16.vlgmr.msra.gmra.mxu0 %vm1172_vm2, %v11279_v39  ;;  %v16160_v39 = vld [vmem:[%s20299_s5 + $0x6f0] ss:$8 sps:$4 sm:$0xff]  }
 0x5cf   : > { %v6318_v16 = vrot.slane %v6311_v56, %v19237_v24  ;;  %10333 = vmatpush1.bf16.msra.mxu1 %v16130_v15  ;;  %11501 = vmatpush1.bf16.msra.mxu0 %v16133_v49  ;;  %v10648_v15 = vld [vmem:[#allocation3 + $0xd8] sm:$0x1]  ;;  %v16168_v48 = vld [vmem:[%s20299_s5 + $0x6e4] ss:$8 sps:$4 sm:$0xff]  }
 0x5d0   : > { %v6307_v26 = vpop.f32.mrf.mxu1  ;;  %v19363_v1 = vpop.f32.mrf.mxu0  ;;  %10510 = vmatprep.subr.bf16.mxu1 %v16138_v57  ;;  %11502 = vmatprep.subr.bf16.mxu0 %v16141_v40  ;;  %v16163_v57 = vld [vmem:[%s20299_s5 + $0x840] ss:$8 sps:$4 sm:$0xff]   ;;  %v10649_v9 = vpack.c.bf16 %v10648_v15, %v10648_v15 }
 0x5d1   : > { %v6325_v53 = vrot.slane %v6318_v16, %v19237_v24  ;;  %v7031_v27 = vcombine.low %v19353_v61, %v19363_v1  ;;  %11520 = vmatprep.mubr.bf16.mxu0 %v20322_v21  ;;  %v16171_v16 = vld [vmem:[%s20299_s5 + $0x894] ss:$8 sps:$4 sm:$0xff]   ;;  %v11818_v26 = vld [vmem:[#allocation3 + $0x11e] sm:$0x1] }
 0x5d2   : > { %v6392_v59 = vpop.f32.mrf.mxu1  ;;  %v7026_v11 = vpop.f32.mrf.mxu0  ;;  %14261 = vmatmul.mubr.msk.bf16.vlgmr.msra.gmra.mxu1 %vm1172_vm2, %v10289_v17  ;;  %v16216_v61 = vld [vmem:[%s20299_s5 + $0x7e4] ss:$8 sps:$4 sm:$0xff]   ;;  %v16219_v1 = vld [vmem:[%s20299_s5 + $0x994] ss:$8 sps:$4 sm:$0xff]  }
 0x5d3   : > { %v6327_v47 = vadd.f32 %v6325_v53, %v6237_v30  ;;  %10511 = vmatpush1.bf16.msra.mxu1 %v16136_v46  ;;  %11503 = vmatpush1.bf16.msra.mxu0 %v16139_v60  ;;  %v16166_v53 = vld [vmem:[%s20299_s5 + $0x6e0] ss:$8 sps:$4 sm:$0xff]  }
 0x5d4   : > { %v6394_v36 = vpop.f32.mrf.mxu1  ;;  %v7027_v31 = vpop.f32.mrf.mxu0  ;;  %10512 = vmatprep.subr.bf16.mxu1 %v16144_v4  ;;  %11680 = vmatprep.subr.bf16.mxu0 %v16147_v32 }
 0x5d5   : > { %v6401_v52 = vcombine.low %v6392_v59, %v6394_v36  ;;  %10530 = vmatprep.mubr.bf16.mxu1 %v20322_v21  ;;  %v10828_v31 = vld [vmem:[#allocation3 + $0xf2] sm:$0x1] }
 0x5d6   : > { %v6396_v0 = vpop.f32.mrf.mxu1  ;;  %v19389_v63 = vpop.f32.mrf.mxu0  ;;  %14378 = vmatmul.mubr.msk.bf16.vlgmr.msra.gmra.mxu0 %vm1172_vm2, %v11459_v25 }
 0x5d7   : > { %v6408_v10 = vrot.slane %v6401_v52, %v19237_v24  ;;  %10513 = vmatpush1.bf16.msra.mxu1 %v16142_v20  ;;  %11681 = vmatpush1.bf16.msra.mxu0 %v16145_v35  ;;  %v16174_v20 = vld [vmem:[%s20299_s5 + $0x734] ss:$8 sps:$4 sm:$0xff]   ;;  %v16177_v35 = vld [vmem:[%s20299_s5 + $0x884] ss:$8 sps:$4 sm:$0xff]   ;;  %v16172_v52 = vld [vmem:[%s20299_s5 + $0x730] ss:$8 sps:$4 sm:$0xff]  }
 0x5d8   : > { %v6397_v54 = vpop.f32.mrf.mxu1  ;;  %v19399_v42 = vpop.f32.mrf.mxu0  ;;  %10690 = vmatprep.subr.bf16.mxu1 %v16150_v29  ;;  %11682 = vmatprep.subr.bf16.mxu0 %v16153_v44 }
 0x5d9   : > { %v6415_v50 = vrot.slane %v6408_v10, %v19237_v24  ;;  %v7211_v51 = vcombine.low %v19389_v63, %v19399_v42  ;;  %11700 = vmatprep.mubr.bf16.mxu0 %v20322_v21  ;;  %v16183_v54 = vld [vmem:[%s20299_s5 + $0x8d4] ss:$8 sps:$4 sm:$0xff]   ;;  %v16228_v63 = vld [vmem:[%s20299_s5 + $0x824] ss:$8 sps:$4 sm:$0xff]  }
 0x5da   : > { %v6482_v58 = vpop.f32.mrf.mxu1  ;;  %v7206_v5 = vpop.f32.mrf.mxu0  ;;  %14279 = vmatmul.mubr.msk.bf16.vlgmr.msra.gmra.mxu1 %vm1172_vm2, %v10469_v34  ;;  %v16231_v42 = vld [vmem:[%s20299_s5 + $0x9d4] ss:$8 sps:$4 sm:$0xff]  }
 0x5db   : > { %v6417_v38 = vadd.f32 %v6415_v50, %v6327_v47  ;;  %10691 = vmatpush1.bf16.msra.mxu1 %v16148_v62  ;;  %11683 = vmatpush1.bf16.msra.mxu0 %v16151_v55  ;;  %v11819_v47 = vpack.c.bf16 %v11818_v26, %v11818_v26  ;;  %v10829_v62 = vpack.c.bf16 %v10828_v31, %v10828_v31  ;;  %v16180_v55 = vld [vmem:[%s20299_s5 + $0x724] ss:$8 sps:$4 sm:$0xff]   ;;  %v16178_v5 = vld [vmem:[%s20299_s5 + $0x720] ss:$8 sps:$4 sm:$0xff]  }
 0x5dc   : > { %v6484_v7 = vpop.f32.mrf.mxu1  ;;  %v7207_v2 = vpop.f32.mrf.mxu0  ;;  %10692 = vmatprep.subr.bf16.mxu1 %v16156_v14  ;;  %11860 = vmatprep.subr.bf16.mxu0 %v16159_v8  ;;  %v11998_v8 = vld [vmem:[#allocation3 + $0x122] sm:$0x1] }
 0x5dd   : > { %v6491_v30 = vcombine.low %v6482_v58, %v6484_v7  ;;  %10710 = vmatprep.mubr.bf16.mxu1 %v20322_v21  ;;  %v11999_v7 = vpack.c.bf16 %v11998_v8, %v11998_v8  ;;  %v16186_v2 = vld [vmem:[%s20299_s5 + $0x774] ss:$8 sps:$4 sm:$0xff]  }
 0x5de   : > { %v6486_v49 = vpop.f32.mrf.mxu1  ;;  %v19425_v28 = vpop.f32.mrf.mxu0  ;;  %14396 = vmatmul.mubr.msk.bf16.vlgmr.msra.gmra.mxu0 %vm1172_vm2, %v11639_v3  ;;  %v16189_v3 = vld [vmem:[%s20299_s5 + $0x8c4] ss:$8 sps:$4 sm:$0xff]  }
 0x5df   : > { %v6498_v37 = vrot.slane %v6491_v30, %v19237_v24  ;;  %10693 = vmatpush1.bf16.msra.mxu1 %v16154_v41  ;;  %11861 = vmatpush1.bf16.msra.mxu0 %v16157_v6 }
 0x5e0   : > { %v6487_v40 = vpop.f32.mrf.mxu1  ;;  %v19435_v56 = vpop.f32.mrf.mxu0  ;;  %10870 = vmatprep.subr.bf16.mxu1 %v16162_v22  ;;  %11862 = vmatprep.subr.bf16.mxu0 %v16165_v23  ;;  %v11008_v23 = vld [vmem:[#allocation3 + $0xf6] sm:$0x1] }
 0x5e1   : > { %v6505_v46 = vrot.slane %v6498_v37, %v19237_v24  ;;  %v7391_v60 = vcombine.low %v19425_v28, %v19435_v56  ;;  %11880 = vmatprep.mubr.bf16.mxu0 %v20322_v21  ;;  %v16184_v37 = vld [vmem:[%s20299_s5 + $0x770] ss:$8 sps:$4 sm:$0xff]   ;;  %v16240_v28 = vld [vmem:[%s20299_s5 + $0x864] ss:$8 sps:$4 sm:$0xff]   ;;  %v16243_v56 = vld [vmem:[%s20299_s5 + $0xa14] ss:$8 sps:$4 sm:$0xff]  }
 0x5e2   : > { %v6572_v17 = vpop.f32.mrf.mxu1  ;;  %v7386_v4 = vpop.f32.mrf.mxu0  ;;  %14297 = vmatmul.mubr.msk.bf16.vlgmr.msra.gmra.mxu1 %vm1172_vm2, %v10649_v9  ;;  %v11009_v9 = vpack.c.bf16 %v11008_v23, %v11008_v23  ;;  %v16210_v23 = vld [vmem:[%s20299_s5 + $0x7f4] ss:$8 sps:$4 sm:$0xff]  }
 0x5e3   : > { %v6507_v32 = vadd.f32 %v6505_v46, %v6417_v38  ;;  %10871 = vmatpush1.bf16.msra.mxu1 %v16160_v39  ;;  %11863 = vmatpush1.bf16.msra.mxu0 %v16163_v57  ;;  %v16181_v38 = vld [vmem:[%s20299_s5 + $0x8d0] ss:$8 sps:$4 sm:$0xff]   ;;  %v16187_v39 = vld [vmem:[%s20299_s5 + $0x8c0] ss:$8 sps:$4 sm:$0xff]  }
 0x5e4   : > { %v6574_v59 = vpop.f32.mrf.mxu1  ;;  %v7387_v11 = vpop.f32.mrf.mxu0  ;;  %10872 = vmatprep.subr.bf16.mxu1 %v16168_v48  ;;  %12040 = vmatprep.subr.bf16.mxu0 %v16171_v16  ;;  %v16192_v48 = vld [vmem:[%s20299_s5 + $0x764] ss:$8 sps:$4 sm:$0xff]   ;;  %v16195_v16 = vld [vmem:[%s20299_s5 + $0x914] ss:$8 sps:$4 sm:$0xff]  }
 0x5e5   : > { %v6581_v36 = vcombine.low %v6572_v17, %v6574_v59  ;;  %10890 = vmatprep.mubr.bf16.mxu1 %v20322_v21  ;;  %v12178_v17 = vld [vmem:[#allocation3 + $0x126] sm:$0x1]  ;;  %v16193_v59 = vld [vmem:[%s20299_s5 + $0x910] ss:$8 sps:$4 sm:$0xff]  }
 0x5e6   : > { %v6576_v25 = vpop.f32.mrf.mxu1  ;;  %v19461_v29 = vpop.f32.mrf.mxu0  ;;  %14414 = vmatmul.mubr.msk.bf16.vlgmr.msra.gmra.mxu0 %vm1172_vm2, %v11819_v47 }
 0x5e7   : > { %v6588_v44 = vrot.slane %v6581_v36, %v19237_v24  ;;  %10873 = vmatpush1.bf16.msra.mxu1 %v16166_v53  ;;  %12041 = vmatpush1.bf16.msra.mxu0 %v16169_v33  ;;  %v16190_v33 = vld [vmem:[%s20299_s5 + $0x760] ss:$8 sps:$4 sm:$0xff]   ;;  %v16201_v36 = vld [vmem:[%s20299_s5 + $0x904] ss:$8 sps:$4 sm:$0xff]  }
 0x5e8   : > { %v6577_v0 = vpop.f32.mrf.mxu1  ;;  %v19471_v10 = vpop.f32.mrf.mxu0  ;;  %11050 = vmatprep.subr.bf16.mxu1 %v16174_v20  ;;  %12042 = vmatprep.subr.bf16.mxu0 %v16177_v35  ;;  %v12179_v20 = vpack.c.bf16 %v12178_v17, %v12178_v17  ;;  %v16198_v35 = vld [vmem:[%s20299_s5 + $0x7b4] ss:$8 sps:$4 sm:$0xff]   ;;  %v11188_v25 = vld [vmem:[#allocation3 + $0xfa] sm:$0x1] }
 0x5e9   : > { %v6595_v34 = vrot.slane %v6588_v44, %v19237_v24  ;;  %v7571_v14 = vcombine.low %v19461_v29, %v19471_v10  ;;  %12060 = vmatprep.mubr.bf16.mxu0 %v20322_v21  ;;  %v11189_v8 = vpack.c.bf16 %v11188_v25, %v11188_v25  ;;  %v16211_v17 = vld [vmem:[%s20299_s5 + $0x940] ss:$8 sps:$4 sm:$0xff]   ;;  %v16252_v29 = vld [vmem:[%s20299_s5 + $0x8a4] ss:$8 sps:$4 sm:$0xff]  }
 0x5ea   : > { %v6662_v50 = vpop.f32.mrf.mxu1  ;;  %v7566_v18 = vpop.f32.mrf.mxu0  ;;  %14315 = vmatmul.mubr.msk.bf16.vlgmr.msra.gmra.mxu1 %vm1172_vm2, %v10829_v62  ;;  %v16196_v62 = vld [vmem:[%s20299_s5 + $0x7b0] ss:$8 sps:$4 sm:$0xff]  }
 0x5eb   : > { %v6597_v58 = vadd.f32 %v6595_v34, %v6507_v32  ;;  %11051 = vmatpush1.bf16.msra.mxu1 %v16172_v52  ;;  %12043 = vmatpush1.bf16.msra.mxu0 %v16175_v43  ;;  %v6858_v43 = vrot.slane %v6851_v12, %v19237_v24  ;;  %v12358_v18 = vld [vmem:[#allocation3 + $0x140] sm:$0x1] }
 0x5ec   : > { %v6664_v41 = vpop.f32.mrf.mxu1  ;;  %v7567_v6 = vpop.f32.mrf.mxu0  ;;  %11052 = vmatprep.subr.bf16.mxu1 %v16180_v55  ;;  %12220 = vmatprep.subr.bf16.mxu0 %v16183_v54  ;;  %v16199_v55 = vld [vmem:[%s20299_s5 + $0x900] ss:$8 sps:$4 sm:$0xff]  }
 0x5ed   : > { %v6671_v22 = vcombine.low %v6662_v50, %v6664_v41  ;;  %11070 = vmatprep.mubr.bf16.mxu1 %v20322_v21  ;;  %v16202_v6 = vld [vmem:[%s20299_s5 + $0x7a0] ss:$8 sps:$4 sm:$0xff]  }
 0x5ee   : > { %v6666_v30 = vpop.f32.mrf.mxu1  ;;  %v19497_v15 = vpop.f32.mrf.mxu0  ;;  %14432 = vmatmul.mubr.msk.bf16.vlgmr.msra.gmra.mxu0 %vm1172_vm2, %v11999_v7  ;;  %v16205_v7 = vld [vmem:[%s20299_s5 + $0x950] ss:$8 sps:$4 sm:$0xff]  }
 0x5ef   : > { %v6678_v49 = vrot.slane %v6671_v22, %v19237_v24  ;;  %11053 = vmatpush1.bf16.msra.mxu1 %v16178_v5  ;;  %12221 = vmatpush1.bf16.msra.mxu0 %v16181_v38  ;;  %v6865_v38 = vrot.slane %v6858_v43, %v19237_v24  ;;  %v12359_v22 = vpack.c.bf16 %v12358_v18, %v12358_v18  ;;  %v16213_v30 = vld [vmem:[%s20299_s5 + $0x944] ss:$8 sps:$4 sm:$0xff]  }
 0x5f0   : > { %v6667_v57 = vpop.f32.mrf.mxu1  ;;  %v19507_v40 = vpop.f32.mrf.mxu0  ;;  %11230 = vmatprep.subr.bf16.mxu1 %v16186_v2  ;;  %12222 = vmatprep.subr.bf16.mxu0 %v16189_v3 }
 0x5f1   : > { %v6685_v46 = vrot.slane %v6678_v49, %v19237_v24  ;;  %v7751_v26 = vcombine.low %v19497_v15, %v19507_v40  ;;  %12240 = vmatprep.mubr.bf16.mxu0 %v20322_v21 }
 0x5f2   : > { %v6752_v4 = vpop.f32.mrf.mxu1  ;;  %v7746_v32 = vpop.f32.mrf.mxu0  ;;  %14333 = vmatmul.mubr.msk.bf16.vlgmr.msra.gmra.mxu1 %vm1172_vm2, %v11009_v9 }
 0x5f3   : > { %v6687_v53 = vadd.f32 %v6685_v46, %v6597_v58  ;;  %11231 = vmatpush1.bf16.msra.mxu1 %v16184_v37  ;;  %12223 = vmatpush1.bf16.msra.mxu0 %v16187_v39  ;;  %v11368_v39 = vld [vmem:[#allocation3 + $0xfe] sm:$0x1]  ;;  %v16208_v46 = vld [vmem:[%s20299_s5 + $0x7f0] ss:$8 sps:$4 sm:$0xff]  }
 0x5f4   : > { %v6754_v11 = vpop.f32.mrf.mxu1  ;;  %v7747_v47 = vpop.f32.mrf.mxu0  ;;  %11232 = vmatprep.subr.bf16.mxu1 %v16192_v48  ;;  %12400 = vmatprep.subr.bf16.mxu0 %v16195_v16  ;;  %v7038_v48 = vrot.slane %v7031_v27, %v19237_v24 }
 0x5f5   : > { %v6761_v31 = vcombine.low %v6752_v4, %v6754_v11  ;;  %11250 = vmatprep.mubr.bf16.mxu1 %v20322_v21 }
 0x5f6   : > { %v6756_v44 = vpop.f32.mrf.mxu1  ;;  %v19533_v52 = vpop.f32.mrf.mxu0  ;;  %14450 = vmatmul.mubr.msk.bf16.vlgmr.msra.gmra.mxu0 %vm1172_vm2, %v12179_v20  ;;  %v7045_v20 = vrot.slane %v7038_v48, %v19237_v24 }
 0x5f7   : > { %v6768_v0 = vrot.slane %v6761_v31, %v19237_v24  ;;  %11233 = vmatpush1.bf16.msra.mxu1 %v16190_v33  ;;  %12401 = vmatpush1.bf16.msra.mxu0 %v16193_v59  ;;  %v12538_v59 = vld [vmem:[#allocation3 + $0x144] sm:$0x1]  ;;  %v16217_v31 = vld [vmem:[%s20299_s5 + $0x990] ss:$8 sps:$4 sm:$0xff]  }
 0x5f8   : > { %v6757_v54 = vpop.f32.mrf.mxu1  ;;  %v19547_v34 = vpop.f32.mrf.mxu0  ;;  %11410 = vmatprep.subr.bf16.mxu1 %v16198_v35  ;;  %12402 = vmatprep.subr.bf16.mxu0 %v16201_v36  ;;  %v16214_v36 = vld [vmem:[%s20299_s5 + $0x7e0] ss:$8 sps:$4 sm:$0xff]   ;;  %v12539_v43 = vpack.c.bf16 %v12538_v59, %v12538_v59 }
 0x5f9   : > { %v6775_v12 = vrot.slane %v6768_v0, %v19237_v24  ;;  %v7931_v50 = vcombine.low %v19533_v52, %v19547_v34  ;;  %12420 = vmatprep.mubr.bf16.mxu0 %v20322_v21  ;;  %v16222_v0 = vld [vmem:[%s20299_s5 + $0x834] ss:$8 sps:$4 sm:$0xff]  }
 0x5fa   : > { %v6932_v58 = vpop.f32.mrf.mxu1  ;;  %v7926_v5 = vpop.f32.mrf.mxu0  ;;  %14351 = vmatmul.mubr.msk.bf16.vlgmr.msra.gmra.mxu1 %vm1172_vm2, %v11189_v8  ;;  %v11548_v8 = vld [vmem:[#allocation3 + $0x118] sm:$0x1] }
 0x5fb   : > { %v6777_v41 = vadd.f32 %v6775_v12, %v6687_v53  ;;  %11411 = vmatpush1.bf16.msra.mxu1 %v16196_v62  ;;  %12403 = vmatpush1.bf16.msra.mxu0 %v16199_v55  ;;  %v11369_v53 = vpack.c.bf16 %v11368_v39, %v11368_v39  ;;  %v16225_v62 = vld [vmem:[%s20299_s5 + $0x984] ss:$8 sps:$4 sm:$0xff]   ;;  %v7218_v12 = vrot.slane %v7211_v51, %v19237_v24  ;;  %v16223_v5 = vld [vmem:[%s20299_s5 + $0x980] ss:$8 sps:$4 sm:$0xff]  }
 0x5fc   : > { %v6934_v2 = vpop.f32.mrf.mxu1  ;;  %v7927_v3 = vpop.f32.mrf.mxu0  ;;  %11412 = vmatprep.subr.bf16.mxu1 %v16204_v19  ;;  %12580 = vmatprep.subr.bf16.mxu0 %v16207_v45 }
 0x5fd   : > { %v6867_v49 = vadd.f32 %v6865_v38, %v6777_v41  ;;  %v6941_v37 = vcombine.low %v6932_v58, %v6934_v2  ;;  %11430 = vmatprep.mubr.bf16.mxu1 %v20322_v21  ;;  %v16220_v58 = vld [vmem:[%s20299_s5 + $0x830] ss:$8 sps:$4 sm:$0xff]  }
 0x5fe   : > { %v6936_v57 = vpop.f32.mrf.mxu1  ;;  %v19574_v9 = vpop.f32.mrf.mxu0  ;;  %14468 = vmatmul.mubr.msk.bf16.vlgmr.msra.gmra.mxu0 %vm1172_vm2, %v12359_v22  ;;  %v12718_v2 = vld [vmem:[#allocation3 + $0x148] sm:$0x1] }
 0x5ff   : > { %v6948_v16 = vrot.slane %v6941_v37, %v19237_v24  ;;  %11413 = vmatpush1.bf16.msra.mxu1 %v16202_v6  ;;  %12581 = vmatpush1.bf16.msra.mxu0 %v16205_v7  ;;  %v11549_v6 = vpack.c.bf16 %v11548_v8, %v11548_v8  ;;  %v16229_v37 = vld [vmem:[%s20299_s5 + $0x9d0] ss:$8 sps:$4 sm:$0xff]   ;;  %v12719_v48 = vpack.c.bf16 %v12718_v2, %v12718_v2 }
 0x600   : > { %v6937_v4 = vpop.f32.mrf.mxu1  ;;  %v19588_v32 = vpop.f32.mrf.mxu0  ;;  %11590 = vmatprep.subr.bf16.mxu1 %v16210_v23  ;;  %12582 = vmatprep.subr.bf16.mxu0 %v16213_v30  ;;  %v7225_v23 = vrot.slane %v7218_v12, %v19237_v24 }
 0x601   : > { %v6955_v27 = vrot.slane %v6948_v16, %v19237_v24  ;;  %v8111_v33 = vcombine.low %v19574_v9, %v19588_v32  ;;  %12600 = vmatprep.mubr.bf16.mxu0 %v20322_v21  ;;  %v16234_v16 = vld [vmem:[%s20299_s5 + $0x874] ss:$8 sps:$4 sm:$0xff]  }
 0x602   : > { %v7112_v11 = vpop.f32.mrf.mxu1  ;;  %v8106_v47 = vpop.f32.mrf.mxu0  ;;  %14369 = vmatmul.mubr.msk.bf16.vlgmr.msra.gmra.mxu1 %vm1172_vm2, %v11369_v53  ;;  %v11728_v53 = vld [vmem:[#allocation3 + $0x11c] sm:$0x1] }
 0x603   : > { %v6957_v35 = vadd.f32 %v6955_v27, %v6867_v49  ;;  %11591 = vmatpush1.bf16.msra.mxu1 %v16208_v46  ;;  %12583 = vmatpush1.bf16.msra.mxu0 %v16211_v17  ;;  %v16226_v49 = vld [vmem:[%s20299_s5 + $0x820] ss:$8 sps:$4 sm:$0xff]   ;;  %v16237_v46 = vld [vmem:[%s20299_s5 + $0x9c4] ss:$8 sps:$4 sm:$0xff]   ;;  %v7398_v27 = vrot.slane %v7391_v60, %v19237_v24 }
 0x604   : > { %v7114_v25 = vpop.f32.mrf.mxu1  ;;  %v8107_v44 = vpop.f32.mrf.mxu0  ;;  %11592 = vmatprep.subr.bf16.mxu1 %v16216_v61  ;;  %12760 = vmatprep.subr.bf16.mxu0 %v16219_v1  ;;  %v16235_v47 = vld [vmem:[%s20299_s5 + $0x9c0] ss:$8 sps:$4 sm:$0xff]  }
 0x605   : > { %v7047_v55 = vadd.f32 %v7045_v20, %v6957_v35  ;;  %v7121_v54 = vcombine.low %v7112_v11, %v7114_v25  ;;  %11610 = vmatprep.mubr.bf16.mxu1 %v20322_v21  ;;  %v16232_v11 = vld [vmem:[%s20299_s5 + $0x870] ss:$8 sps:$4 sm:$0xff]   ;;  %v12898_v25 = vld [vmem:[#allocation3 + $0x14c] sm:$0x1] }
 0x606   : > { %v7116_v19 = vpop.f32.mrf.mxu1  ;;  %v19615_v45 = vpop.f32.mrf.mxu0  ;;  %14486 = vmatmul.mubr.msk.bf16.vlgmr.msra.gmra.mxu0 %vm1172_vm2, %v12539_v43  ;;  %v12899_v12 = vpack.c.bf16 %v12898_v25, %v12898_v25 }
 0x607   : > { %v7128_v18 = vrot.slane %v7121_v54, %v19237_v24  ;;  %11593 = vmatpush1.bf16.msra.mxu1 %v16214_v36  ;;  %12761 = vmatpush1.bf16.msra.mxu0 %v16217_v31  ;;  %v11729_v36 = vpack.c.bf16 %v11728_v53, %v11728_v53  ;;  %v16241_v54 = vld [vmem:[%s20299_s5 + $0xa10] ss:$8 sps:$4 sm:$0xff]  }
 0x608   : > { %v7117_v38 = vpop.f32.mrf.mxu1  ;;  %v19629_v41 = vpop.f32.mrf.mxu0  ;;  %11770 = vmatprep.subr.bf16.mxu1 %v16222_v0  ;;  %12762 = vmatprep.subr.bf16.mxu0 %v16225_v62  ;;  %v7405_v0 = vrot.slane %v7398_v27, %v19237_v24 }
 0x609   : > { %v7135_v51 = vrot.slane %v7128_v18, %v19237_v24  ;;  %v8291_v7 = vcombine.low %v19615_v45, %v19629_v41  ;;  %12780 = vmatprep.mubr.bf16.mxu0 %v20322_v21  ;;  %v16246_v18 = vld [vmem:[%s20299_s5 + $0x8b4] ss:$8 sps:$4 sm:$0xff]  }
 0x60a   : > { %v7292_v3 = vpop.f32.mrf.mxu1  ;;  %v8286_v22 = vpop.f32.mrf.mxu0  ;;  %14387 = vmatmul.mubr.msk.bf16.vlgmr.msra.gmra.mxu1 %vm1172_vm2, %v11549_v6  ;;  %v11908_v6 = vld [vmem:[#allocation3 + $0x120] sm:$0x1] }
 0x60b   : > { %v7137_v30 = vadd.f32 %v7135_v51, %v7047_v55  ;;  %11771 = vmatpush1.bf16.msra.mxu1 %v16220_v58  ;;  %12763 = vmatpush1.bf16.msra.mxu0 %v16223_v5  ;;  %v16238_v55 = vld [vmem:[%s20299_s5 + $0x860] ss:$8 sps:$4 sm:$0xff]   ;;  %v16249_v58 = vld [vmem:[%s20299_s5 + $0xa04] ss:$8 sps:$4 sm:$0xff]   ;;  %v7578_v51 = vrot.slane %v7571_v14, %v19237_v24 }
 0x60c   : > { %v7294_v39 = vpop.f32.mrf.mxu1  ;;  %v8287_v57 = vpop.f32.mrf.mxu0  ;;  %11772 = vmatprep.subr.bf16.mxu1 %v16228_v63  ;;  %12940 = vmatprep.subr.bf16.mxu0 %v16231_v42  ;;  %v16247_v22 = vld [vmem:[%s20299_s5 + $0xa00] ss:$8 sps:$4 sm:$0xff]  }
 0x60d   : > { %v7227_v17 = vadd.f32 %v7225_v23, %v7137_v30  ;;  %v7301_v4 = vcombine.low %v7292_v3, %v7294_v39  ;;  %11790 = vmatprep.mubr.bf16.mxu1 %v20322_v21  ;;  %v16244_v3 = vld [vmem:[%s20299_s5 + $0x8b0] ss:$8 sps:$4 sm:$0xff]  }
 0x60e   : > { %v7296_v61 = vpop.f32.mrf.mxu1  ;;  %v19656_v1 = vpop.f32.mrf.mxu0  ;;  %14504 = vmatmul.mubr.msk.bf16.vlgmr.msra.gmra.mxu0 %vm1172_vm2, %v12719_v48  ;;  %v7585_v48 = vrot.slane %v7578_v51, %v19237_v24 }
 0x60f   : > { %v7308_v59 = vrot.slane %v7301_v4, %v19237_v24  ;;  %11773 = vmatpush1.bf16.msra.mxu1 %v16226_v49  ;;  %12941 = vmatpush1.bf16.msra.mxu0 %v16229_v37  ;;  %v11909_v49 = vpack.c.bf16 %v11908_v6, %v11908_v6  ;;  %v13078_v37 = vld [vmem:[#allocation3 + $0x150] sm:$0x1]  ;;  %v16255_v61 = vld [vmem:[%s20299_s5 + $0x8f4] ss:$8 sps:$4 sm:$0xff]  }
 0x610   : > { %v7297_v20 = vpop.f32.mrf.mxu1  ;;  %v19670_v35 = vpop.f32.mrf.mxu0  ;;  %11950 = vmatprep.subr.bf16.mxu1 %v16234_v16  ;;  %12942 = vmatprep.subr.bf16.mxu0 %v16237_v46  ;;  %v16250_v46 = vld [vmem:[%s20299_s5 + $0x8a0] ss:$8 sps:$4 sm:$0xff]   ;;  %v13079_v53 = vpack.c.bf16 %v13078_v37, %v13078_v37 }
 0x611   : > { %v7315_v60 = vrot.slane %v7308_v59, %v19237_v24  ;;  %v8471_v31 = vcombine.low %v19656_v1, %v19670_v35  ;;  %12960 = vmatprep.mubr.bf16.mxu0 %v20322_v21 }
 0x612   : > { %v7472_v44 = vpop.f32.mrf.mxu1  ;;  %v8466_v43 = vpop.f32.mrf.mxu0  ;;  %14405 = vmatmul.mubr.msk.bf16.vlgmr.msra.gmra.mxu1 %vm1172_vm2, %v11729_v36  ;;  %v7758_v36 = vrot.slane %v7751_v26, %v19237_v24 }
 0x613   : > { %v7317_v62 = vadd.f32 %v7315_v60, %v7227_v17  ;;  %11951 = vmatpush1.bf16.msra.mxu1 %v16232_v11  ;;  %12943 = vmatpush1.bf16.msra.mxu0 %v16235_v47  ;;  %v12088_v11 = vld [vmem:[#allocation3 + $0x124] sm:$0x1]  ;;  %v16258_v43 = vld [vmem:[%s20299_s5 + $0x8e4] ss:$8 sps:$4 sm:$0xff]  }
 0x614   : > { %v7474_v8 = vpop.f32.mrf.mxu1  ;;  %v8467_v19 = vpop.f32.mrf.mxu0  ;;  %11952 = vmatprep.subr.bf16.mxu1 %v16240_v28  ;;  %13120 = vmatprep.subr.bf16.mxu0 %v16243_v56  ;;  %v16253_v56 = vld [vmem:[%s20299_s5 + $0x8f0] ss:$8 sps:$4 sm:$0xff]  }
 0x615   : > { %v7407_v5 = vadd.f32 %v7405_v0, %v7317_v62  ;;  %v7481_v38 = vcombine.low %v7472_v44, %v7474_v8  ;;  %11970 = vmatprep.mubr.bf16.mxu1 %v20322_v21  ;;  %v12089_v44 = vpack.c.bf16 %v12088_v11, %v12088_v11  ;;  %v7765_v62 = vrot.slane %v7758_v36, %v19237_v24  ;;  %v16265_v11 = vld [vmem:[%s20299_s5 + $0x970] ss:$8 sps:$4 sm:$0xff]  }
 0x616   : > { %v7476_v63 = vpop.f32.mrf.mxu1  ;;  %v19697_v42 = vpop.f32.mrf.mxu0  ;;  %14522 = vmatmul.mubr.msk.bf16.vlgmr.msra.gmra.mxu0 %vm1172_vm2, %v12899_v12  ;;  %v16261_v12 = vld [vmem:[%s20299_s5 + $0x934] ss:$8 sps:$4 sm:$0xff]  }
 0x617   : > { %v7488_v2 = vrot.slane %v7481_v38, %v19237_v24  ;;  %11953 = vmatpush1.bf16.msra.mxu1 %v16238_v55  ;;  %13121 = vmatpush1.bf16.msra.mxu0 %v16241_v54  ;;  %v16256_v54 = vld [vmem:[%s20299_s5 + $0x8e0] ss:$8 sps:$4 sm:$0xff]   ;;  %v7938_v63 = vrot.slane %v7931_v50, %v19237_v24 }
 0x618   : > { %v7477_v23 = vpop.f32.mrf.mxu1  ;;  %v19711_v30 = vpop.f32.mrf.mxu0  ;;  %12130 = vmatprep.subr.bf16.mxu1 %v16246_v18  ;;  %13122 = vmatprep.subr.bf16.mxu0 %v16249_v58 }
 0x619   : > { %v7495_v10 = vrot.slane %v7488_v2, %v19237_v24  ;;  %v8651_v14 = vcombine.low %v19697_v42, %v19711_v30  ;;  %13140 = vmatprep.mubr.bf16.mxu0 %v20322_v21  ;;  %v16259_v2 = vld [vmem:[%s20299_s5 + $0x930] ss:$8 sps:$4 sm:$0xff]  }
 0x61a   : > { %v7652_v39 = vpop.f32.mrf.mxu1  ;;  %v8646_v57 = vpop.f32.mrf.mxu0  ;;  %14423 = vmatmul.mubr.msk.bf16.vlgmr.msra.gmra.mxu1 %vm1172_vm2, %v11909_v49  ;;  %v16264_v49 = vld [vmem:[%s20299_s5 + $0x924] ss:$8 sps:$4 sm:$0xff]  }
 0x61b   : > { %v7497_v16 = vadd.f32 %v7495_v10, %v7407_v5  ;;  %12131 = vmatpush1.bf16.msra.mxu1 %v16244_v3  ;;  %13123 = vmatpush1.bf16.msra.mxu0 %v16247_v22  ;;  %v12268_v5 = vld [vmem:[#allocation3 + $0x128] sm:$0x1]  ;;  %v7945_v10 = vrot.slane %v7938_v63, %v19237_v24 }
 0x61c   : > { %v7654_v17 = vpop.f32.mrf.mxu1  ;;  %v8647_v4 = vpop.f32.mrf.mxu0  ;;  %12132 = vmatprep.subr.bf16.mxu1 %v16252_v29  ;;  %12150 = vmatprep.mubr.bf16.mxu1 %v20322_v21  ;;  %v12269_v23 = vpack.c.bf16 %v12268_v5, %v12268_v5  ;;  %v16271_v5 = vld [vmem:[%s20299_s5 + $0x9b0] ss:$8 sps:$4 sm:$0xff]  }
 0x61d   : > { %v7587_v27 = vadd.f32 %v7585_v48, %v7497_v16  ;;  %v7661_v59 = vcombine.low %v7652_v39, %v7654_v17  ;;  %v16262_v39 = vld [vmem:[%s20299_s5 + $0x920] ss:$8 sps:$4 sm:$0xff]   ;;  %v16267_v16 = vld [vmem:[%s20299_s5 + $0x974] ss:$8 sps:$4 sm:$0xff]   ;;  %v12448_v4 = vld [vmem:[#allocation3 + $0x142] sm:$0x1] }
 0x61e   : > { %v7656_v47 = vpop.f32.mrf.mxu1  ;;  %v19729_v20 = vpop.f32.mrf.mxu0  ;;  %14540 = vmatmul.mubr.msk.bf16.vlgmr.msra.gmra.mxu0 %vm1172_vm2, %v13079_v53 }
 0x61f   : > { %v7668_v28 = vrot.slane %v7661_v59, %v19237_v24  ;;  %12133 = vmatpush1.bf16.msra.mxu1 %v16250_v46 }
 0x620   : > { %v7657_v60 = vpop.f32.mrf.mxu1  ;;  %v19740_v25 = vpop.f32.mrf.mxu0  ;;  %12310 = vmatprep.subr.bf16.mxu1 %v16255_v61 }
 0x621   : > { %v7675_v0 = vrot.slane %v7668_v28, %v19237_v24  ;;  %v8831_v15 = vcombine.low %v19729_v20, %v19740_v25  ;;  %v12449_v28 = vpack.c.bf16 %v12448_v4, %v12448_v4  ;;  %v16277_v4 = vld [vmem:[%s20299_s5 + $0x9f0] ss:$8 sps:$4 sm:$0xff]  }
 0x622   : > { %v7832_v40 = vpop.f32.mrf.mxu1  ;;  %v8826_v26 = vpop.f32.mrf.mxu0  ;;  %14441 = vmatmul.mubr.msk.bf16.vlgmr.msra.gmra.mxu1 %vm1172_vm2, %v12089_v44 }
 0x623   : > { %v7677_v55 = vadd.f32 %v7675_v0, %v7587_v27  ;;  %12311 = vmatpush1.bf16.msra.mxu1 %v16253_v56  ;;  %12330 = vmatprep.mubr.bf16.mxu1 %v20322_v21  ;;  %v8118_v27 = vrot.slane %v8111_v33, %v19237_v24  ;;  %v16270_v56 = vld [vmem:[%s20299_s5 + $0x964] ss:$8 sps:$4 sm:$0xff]   ;;  %v16268_v0 = vld [vmem:[%s20299_s5 + $0x960] ss:$8 sps:$4 sm:$0xff]  }
 0x624   : > { %v7834_v8 = vpop.f32.mrf.mxu1  ;;  %v8827_v19 = vpop.f32.mrf.mxu0  ;;  %12312 = vmatprep.subr.bf16.mxu1 %v16258_v43 }
 0x625   : > { %v7767_v18 = vadd.f32 %v7765_v62, %v7677_v55  ;;  %v7841_v58 = vcombine.low %v7832_v40, %v7834_v8  ;;  %v8125_v44 = vrot.slane %v8118_v27, %v19237_v24  ;;  %v16273_v62 = vld [vmem:[%s20299_s5 + $0x9b4] ss:$8 sps:$4 sm:$0xff]  }
 0x626   : > { %v7836_v38 = vpop.f32.mrf.mxu1  ;;  %v19757_v6 = vpop.f32.mrf.mxu0  ;;  %v12628_v8 = vld [vmem:[#allocation3 + $0x146] sm:$0x1] }
 0x627   : > { %v7848_v51 = vrot.slane %v7841_v58, %v19237_v24  ;;  %12313 = vmatpush1.bf16.msra.mxu1 %v16256_v54 }
 0x628   : > { %v7837_v3 = vpop.f32.mrf.mxu1  ;;  %v19767_v22 = vpop.f32.mrf.mxu0  ;;  %12490 = vmatprep.subr.bf16.mxu1 %v16261_v12 }
 0x629   : > { %v7855_v29 = vrot.slane %v7848_v51, %v19237_v24  ;;  %v9011_v52 = vcombine.low %v19757_v6, %v19767_v22  ;;  %v12629_v51 = vpack.c.bf16 %v12628_v8, %v12628_v8 }
 0x62a   : > { %v8012_v34 = vpop.f32.mrf.mxu1  ;;  %v9006_v50 = vpop.f32.mrf.mxu0  ;;  %14459 = vmatmul.mubr.msk.bf16.vlgmr.msra.gmra.mxu1 %vm1172_vm2, %v12269_v23 }
 0x62b   : > { %v7857_v37 = vadd.f32 %v7855_v29, %v7767_v18  ;;  %12491 = vmatpush1.bf16.msra.mxu1 %v16259_v2  ;;  %12510 = vmatprep.mubr.bf16.mxu1 %v20322_v21  ;;  %v8298_v18 = vrot.slane %v8291_v7, %v19237_v24  ;;  %v16276_v2 = vld [vmem:[%s20299_s5 + $0x9a4] ss:$8 sps:$4 sm:$0xff]   ;;  %v16274_v29 = vld [vmem:[%s20299_s5 + $0x9a0] ss:$8 sps:$4 sm:$0xff]  }
 0x62c   : > { %v8014_v57 = vpop.f32.mrf.mxu1  ;;  %v9007_v48 = vpop.f32.mrf.mxu0  ;;  %12492 = vmatprep.subr.bf16.mxu1 %v16264_v49 }
 0x62d   : > { %v7947_v46 = vadd.f32 %v7945_v10, %v7857_v37  ;;  %v8021_v17 = vcombine.low %v8012_v34, %v8014_v57  ;;  %v8305_v23 = vrot.slane %v8298_v18, %v19237_v24  ;;  %v16279_v10 = vld [vmem:[%s20299_s5 + $0x9f4] ss:$8 sps:$4 sm:$0xff]   ;;  %v12808_v57 = vld [vmem:[#allocation3 + $0x14a] sm:$0x1] }
 0x62e   : > { %v8016_v53 = vpop.f32.mrf.mxu1  ;;  %v19784_v61 = vpop.f32.mrf.mxu0 }
 0x62f   : > { %v8028_v59 = vrot.slane %v8021_v17, %v19237_v24  ;;  %12493 = vmatpush1.bf16.msra.mxu1 %v16262_v39 }
 0x630   : > { %v8017_v47 = vpop.f32.mrf.mxu1  ;;  %v19794_v36 = vpop.f32.mrf.mxu0  ;;  %12670 = vmatprep.subr.bf16.mxu1 %v16267_v16 }
 0x631   : > { %v8035_v60 = vrot.slane %v8028_v59, %v19237_v24  ;;  %v9191_v9 = vcombine.low %v19784_v61, %v19794_v36  ;;  %v12809_v59 = vpack.c.bf16 %v12808_v57, %v12808_v57 }
 0x632   : > { %v8192_v32 = vpop.f32.mrf.mxu1  ;;  %v9186_v33 = vpop.f32.mrf.mxu0  ;;  %14477 = vmatmul.mubr.msk.bf16.vlgmr.msra.gmra.mxu1 %vm1172_vm2, %v12449_v28 }
 0x633   : > { %v8037_v43 = vadd.f32 %v8035_v60, %v7947_v46  ;;  %12671 = vmatpush1.bf16.msra.mxu1 %v16265_v11  ;;  %12690 = vmatprep.mubr.bf16.mxu1 %v20322_v21  ;;  %v8478_v46 = vrot.slane %v8471_v31, %v19237_v24  ;;  %v16282_v11 = vld [vmem:[%s20299_s5 + $0x9e4] ss:$8 sps:$4 sm:$0xff]   ;;  %v16280_v60 = vld [vmem:[%s20299_s5 + $0x9e0] ss:$8 sps:$4 sm:$0xff]  }
 0x634   : > { %v8194_v40 = vpop.f32.mrf.mxu1  ;;  %v9187_v26 = vpop.f32.mrf.mxu0  ;;  %12672 = vmatprep.subr.bf16.mxu1 %v16270_v56 }
 0x635   : > { %v8127_v55 = vadd.f32 %v8125_v44, %v8037_v43  ;;  %v8201_v54 = vcombine.low %v8192_v32, %v8194_v40  ;;  %v8485_v28 = vrot.slane %v8478_v46, %v19237_v24 }
 0x636   : > { %v8196_v19 = vpop.f32.mrf.mxu1  ;;  %v19811_v12 = vpop.f32.mrf.mxu0 }
 0x637   : > { %v8208_v58 = vrot.slane %v8201_v54, %v19237_v24  ;;  %12673 = vmatpush1.bf16.msra.mxu1 %v16268_v0  ;;  %v12988_v0 = vld [vmem:[#allocation3 + $0x14e] sm:$0x1] }
 0x638   : > { %v8197_v38 = vpop.f32.mrf.mxu1  ;;  %v19821_v63 = vpop.f32.mrf.mxu0  ;;  %12850 = vmatprep.subr.bf16.mxu1 %v16273_v62  ;;  %v8658_v62 = vrot.slane %v8651_v14, %v19237_v24 }
 0x639   : > { %v8215_v3 = vrot.slane %v8208_v58, %v19237_v24  ;;  %v9371_v45 = vcombine.low %v19811_v12, %v19821_v63 }
 0x63a   : > { %v8372_v41 = vpop.f32.mrf.mxu1  ;;  %v9366_v7 = vpop.f32.mrf.mxu0  ;;  %14495 = vmatmul.mubr.msk.bf16.vlgmr.msra.gmra.mxu1 %vm1172_vm2, %v12629_v51  ;;  %v8665_v38 = vrot.slane %v8658_v62, %v19237_v24 }
 0x63b   : > { %v8217_v49 = vadd.f32 %v8215_v3, %v8127_v55  ;;  %12851 = vmatpush1.bf16.msra.mxu1 %v16271_v5  ;;  %12870 = vmatprep.mubr.bf16.mxu1 %v20322_v21  ;;  %v8838_v7 = vrot.slane %v8831_v15, %v19237_v24 }
 0x63c   : > { %v8374_v34 = vpop.f32.mrf.mxu1  ;;  %v9367_v50 = vpop.f32.mrf.mxu0  ;;  %12852 = vmatprep.subr.bf16.mxu1 %v16276_v2 }
 0x63d   : > { %v8307_v37 = vadd.f32 %v8305_v23, %v8217_v49  ;;  %v8381_v39 = vcombine.low %v8372_v41, %v8374_v34 }
 0x63e   : > { %v8376_v48 = vpop.f32.mrf.mxu1  ;;  %v19838_v16 = vpop.f32.mrf.mxu0 }
 0x63f   : > { %v8388_v17 = vrot.slane %v8381_v39, %v19237_v24  ;;  %12853 = vmatpush1.bf16.msra.mxu1 %v16274_v29  ;;  %v8845_v39 = vrot.slane %v8838_v7, %v19237_v24 }
 0x640   : > { %v8377_v53 = vpop.f32.mrf.mxu1  ;;  %v19848_v27 = vpop.f32.mrf.mxu0  ;;  %13030 = vmatprep.subr.bf16.mxu1 %v16279_v10 }
 0x641   : > { %v8395_v47 = vrot.slane %v8388_v17, %v19237_v24  ;;  %v9551_v1 = vcombine.low %v19838_v16, %v19848_v27 }
 0x642   : > { %v8552_v35 = vpop.f32.mrf.mxu1  ;;  %v9546_v31 = vpop.f32.mrf.mxu0  ;;  %14513 = vmatmul.mubr.msk.bf16.vlgmr.msra.gmra.mxu1 %vm1172_vm2, %v12809_v59 }
 0x643   : > { %v8397_v56 = vadd.f32 %v8395_v47, %v8307_v37  ;;  %13031 = vmatpush1.bf16.msra.mxu1 %v16277_v4  ;;  %13050 = vmatprep.mubr.bf16.mxu1 %v20322_v21  ;;  %v12989_v21 = vpack.c.bf16 %v12988_v0, %v12988_v0  ;;  %v9018_v4 = vrot.slane %v9011_v52, %v19237_v24 }
 0x644   : > { %v8554_v32 = vpop.f32.mrf.mxu1  ;;  %v9547_v33 = vpop.f32.mrf.mxu0  ;;  %13032 = vmatprep.subr.bf16.mxu1 %v16282_v11 }
 0x645   : > { %v8487_v44 = vadd.f32 %v8485_v28, %v8397_v56  ;;  %v8561_v43 = vcombine.low %v8552_v35, %v8554_v32  ;;  %v9025_v56 = vrot.slane %v9018_v4, %v19237_v24 }
 0x646   : > { %v8556_v40 = vpop.f32.mrf.mxu1  ;;  %v19862_v26 = vpop.f32.mrf.mxu0 }
 0x647   : > { %v8568_v55 = vrot.slane %v8561_v43, %v19237_v24  ;;  %13033 = vmatpush1.bf16.msra.mxu1 %v16280_v60  ;;  %v9198_v43 = vrot.slane %v9191_v9, %v19237_v24 }
 0x648   : > { %v8557_v54 = vpop.f32.mrf.mxu1  ;;  %v19869_v8 = vpop.f32.mrf.mxu0 }
 0x649   : > { %v8575_v19 = vrot.slane %v8568_v55, %v19237_v24  ;;  %v9731_v18 = vcombine.low %v19862_v26, %v19869_v8  ;;  %v16283_v8 = vld [vmem:[%s20301_s7 + $0x78] sm:$0xff]  }
 0x64a   : > { %v8732_v58 = vpop.f32.mrf.mxu1  ;;  %v9726_v5 = vpop.f32.mrf.mxu0  ;;  %14531 = vmatmul.mubr.msk.bf16.vlgmr.msra.gmra.mxu1 %vm1172_vm2, %v12989_v21  ;;  %14777 = vmatprep.subr.bf16.mxu1 %v16283_v8  ;;  %v16293_v8 = vld [vmem:[%s20301_s7 + $0x50] sm:$0xff]  }
 0x64b   : > { %v8577_v42 = vadd.f32 %v8575_v19, %v8487_v44 }
 0x64c   : > { %v8734_v30 = vpop.f32.mrf.mxu1  ;;  %v9727_v14 = vpop.f32.mrf.mxu0 }
 0x64d   : > { %v8667_v51 = vadd.f32 %v8665_v38, %v8577_v42  ;;  %v8741_v2 = vcombine.low %v8732_v58, %v8734_v30  ;;  %v9205_v58 = vrot.slane %v9198_v43, %v19237_v24  ;;  %v9378_v14 = vrot.slane %v9371_v45, %v19237_v24 }
 0x64e   : > { %v8736_v3 = vpop.f32.mrf.mxu1  ;;  %v19876_v41 = vpop.f32.mrf.mxu0 }
 0x64f   : > { %v8748_v23 = vrot.slane %v8741_v2, %v19237_v24 }
 0x650   : > { %v8737_v49 = vpop.f32.mrf.mxu1  ;;  %v19883_v29 = vpop.f32.mrf.mxu0 }
 0x651   : > { %v8755_v34 = vrot.slane %v8748_v23, %v19237_v24  ;;  %v9911_v50 = vcombine.low %v19876_v41, %v19883_v29  ;;  %v16286_v41 = vld [vmem:[%s20301_s7 + $0x30] sm:$0xff]  }
 0x652   : > { %v8912_v10 = vpop.f32.mrf.mxu1  ;;  %v9906_v37 = vpop.f32.mrf.mxu0 }
 0x653   : > { %v8757_v57 = vadd.f32 %v8755_v34, %v8667_v51 }
 0x654   : > { %v8914_v48 = vpop.f32.mrf.mxu1  ;;  %v9907_v46 = vpop.f32.mrf.mxu0 }
 0x655   : > { %v8847_v17 = vadd.f32 %v8845_v39, %v8757_v57  ;;  %v8921_v20 = vcombine.low %v8912_v10, %v8914_v48  ;;  %v9385_v10 = vrot.slane %v9378_v14, %v19237_v24  ;;  %v9558_v46 = vrot.slane %v9551_v1, %v19237_v24 }
 0x656   : > { %v8916_v25 = vpop.f32.mrf.mxu1  ;;  %v19889_v15 = vpop.f32.mrf.mxu0 }
 0x657   : > { %v8928_v53 = vrot.slane %v8921_v20, %v19237_v24 }
 0x658   : > { %v8917_v59 = vpop.f32.mrf.mxu1  ;;  %v19896_v11 = vpop.f32.mrf.mxu0 }
 0x659   : > { %v8935_v47 = vrot.slane %v8928_v53, %v19237_v24  ;;  %v10091_v35 = vcombine.low %v19889_v15, %v19896_v11  ;;  %v16290_v15 = vld [vmem:[%s20301_s7 + $0x20] sm:$0xff]  }
 0x65a   : > { %v9092_v31 = vpop.f32.mrf.mxu1  ;;  %v10086_v28 = vpop.f32.mrf.mxu0 }
 0x65b   : > { %v8937_v60 = vadd.f32 %v8935_v47, %v8847_v17 }
 0x65c   : > { %v9094_v32 = vpop.f32.mrf.mxu1  ;;  %v10087_v33 = vpop.f32.mrf.mxu0 }
 0x65d   : > { %v9027_v44 = vadd.f32 %v9025_v56, %v8937_v60  ;;  %v9101_v6 = vcombine.low %v9092_v31, %v9094_v32  ;;  %v9565_v31 = vrot.slane %v9558_v46, %v19237_v24  ;;  %v9738_v33 = vrot.slane %v9731_v18, %v19237_v24 }
 0x65e   : > { %v9096_v22 = vpop.f32.mrf.mxu1  ;;  %v19902_v52 = vpop.f32.mrf.mxu0 }
 0x65f   : > { %v9108_v0 = vrot.slane %v9101_v6, %v19237_v24 }
 0x660   : > { %v9097_v40 = vpop.f32.mrf.mxu1  ;;  %v19909_v62 = vpop.f32.mrf.mxu0 }
 0x661   : > { %v9115_v55 = vrot.slane %v9108_v0, %v19237_v24  ;;  %v10271_v54 = vcombine.low %v19902_v52, %v19909_v62  ;;  %v16294_v52 = vld [vmem:[%s20301_s7 + $0x10] sm:$0xff]  }
 0x662   : > { %v9272_v21 = vpop.f32.mrf.mxu1  ;;  %v10266_v19 = vpop.f32.mrf.mxu0 }
 0x663   : > { %v9117_v5 = vadd.f32 %v9115_v55, %v9027_v44 }
 0x664   : > { %v9274_v38 = vpop.f32.mrf.mxu1  ;;  %v10267_v42 = vpop.f32.mrf.mxu0 }
 0x665   : > { %v9207_v30 = vadd.f32 %v9205_v58, %v9117_v5  ;;  %v9281_v61 = vcombine.low %v9272_v21, %v9274_v38  ;;  %v9745_v21 = vrot.slane %v9738_v33, %v19237_v24 }
 0x666   : > { %v9276_v36 = vpop.f32.mrf.mxu1  ;;  %v19915_v9 = vpop.f32.mrf.mxu0 }
 0x667   : > { %v9288_v51 = vrot.slane %v9281_v61, %v19237_v24  ;;  %v9918_v61 = vrot.slane %v9911_v50, %v19237_v24 }
 0x668   : > { %v9277_v2 = vpop.f32.mrf.mxu1  ;;  %v19922_v3 = vpop.f32.mrf.mxu0 }
 0x669   : > { %v9295_v7 = vrot.slane %v9288_v51, %v19237_v24  ;;  %v10451_v23 = vcombine.low %v19915_v9, %v19922_v3  ;;  %v9925_v29 = vrot.slane %v9918_v61, %v19237_v24  ;;  %v16295_v61 = vld [vmem:[%s20301_s7 + $0x48] sm:$0xff]  }
 0x66a   : > { %v9452_v49 = vpop.f32.mrf.mxu1  ;;  %v10446_v34 = vpop.f32.mrf.mxu0 }
 0x66b   : > { %v9297_v37 = vadd.f32 %v9295_v7, %v9207_v30  ;;  %v16284_v30 = vld [vmem:[%s20301_s7 + $0x38] sm:$0xff]  }
 0x66c   : > { %v9454_v39 = vpop.f32.mrf.mxu1  ;;  %v10447_v57 = vpop.f32.mrf.mxu0  ;;  %14778 = vmatpush3.bf16.msra.mxu1 %v16284_v30 }
 0x66d   : > { %v9387_v48 = vadd.f32 %v9385_v10, %v9297_v37  ;;  %v9461_v12 = vcombine.low %v9452_v49, %v9454_v39  ;;  %v16285_v49 = vld [vmem:[%s20301_s7 + $0x70] sm:$0xff]  }
 0x66e   : > { %v9456_v63 = vpop.f32.mrf.mxu1  ;;  %v19928_v45 = vpop.f32.mrf.mxu0  ;;  %14779 = vmatprep.subr.bf16.mxu1 %v16285_v49 }
 0x66f   : > { %v9468_v17 = vrot.slane %v9461_v12, %v19237_v24  ;;  %v16287_v12 = vld [vmem:[%s20301_s7 + $0x68] sm:$0xff]  }
 0x670   : > { %v9457_v20 = vpop.f32.mrf.mxu1  ;;  %v19935_v25 = vpop.f32.mrf.mxu0  ;;  %14780 = vmatpush3.bf16.msra.mxu1 %v16286_v41 }
 0x671   : > { %v9475_v4 = vrot.slane %v9468_v17, %v19237_v24  ;;  %v10631_v53 = vcombine.low %v19928_v45, %v19935_v25  ;;  %v16288_v17 = vld [vmem:[%s20301_s7 + $0x28] sm:$0xff]   ;;  %v10098_v20 = vrot.slane %v10091_v35, %v19237_v24  ;;  %14781 = vmatprep.subr.bf16.mxu1 %v16287_v12 }
 0x672   : > { %v9632_v59 = vpop.f32.mrf.mxu1  ;;  %v10626_v47 = vpop.f32.mrf.mxu0 }
 0x673   : > { %v9477_v28 = vadd.f32 %v9475_v4, %v9387_v48  ;;  %v10105_v11 = vrot.slane %v10098_v20, %v19237_v24 }
 0x674   : > { %v9634_v56 = vpop.f32.mrf.mxu1  ;;  %v10627_v60 = vpop.f32.mrf.mxu0  ;;  %14782 = vmatpush3.bf16.msra.mxu1 %v16288_v17 }
 0x675   : > { %v9567_v32 = vadd.f32 %v9565_v31, %v9477_v28  ;;  %v9641_v16 = vcombine.low %v9632_v59, %v9634_v56  ;;  %v16289_v56 = vld [vmem:[%s20301_s7 + $0x60] sm:$0xff]  }
 0x676   : > { %v9636_v27 = vpop.f32.mrf.mxu1  ;;  %v19941_v1 = vpop.f32.mrf.mxu0  ;;  %14783 = vmatprep.subr.bf16.mxu1 %v16289_v56 }
 0x677   : > { %v9648_v44 = vrot.slane %v9641_v16, %v19237_v24 }
 0x678   : > { %v9637_v6 = vpop.f32.mrf.mxu1  ;;  %v19948_v22 = vpop.f32.mrf.mxu0  ;;  %14784 = vmatpush3.bf16.msra.mxu1 %v16290_v15 }
 0x679   : > { %v9655_v43 = vrot.slane %v9648_v44, %v19237_v24  ;;  %v10811_v0 = vcombine.low %v19941_v1, %v19948_v22  ;;  %v16291_v6 = vld [vmem:[%s20301_s7 + $0x58] sm:$0xff]  }
 0x67a   : > { %v9812_v40 = vpop.f32.mrf.mxu1  ;;  %v10806_v55 = vpop.f32.mrf.mxu0  ;;  %14785 = vmatprep.subr.bf16.mxu1 %v16291_v6 }
 0x67b   : > { %v9657_v19 = vadd.f32 %v9655_v43, %v9567_v32  ;;  %v16292_v55 = vld [vmem:[%s20301_s7 + $0x18] sm:$0xff]  }
 0x67c   : > { %v9814_v58 = vpop.f32.mrf.mxu1  ;;  %v10807_v5 = vpop.f32.mrf.mxu0  ;;  %14786 = vmatpush3.bf16.msra.mxu1 %v16292_v55 }
 0x67d   : > { %v9747_v38 = vadd.f32 %v9745_v21, %v9657_v19  ;;  %v9821_v26 = vcombine.low %v9812_v40, %v9814_v58  ;;  %v10278_v21 = vrot.slane %v10271_v54, %v19237_v24  ;;  %14787 = vmatprep.subr.bf16.mxu1 %v16293_v8 }
 0x67e   : > { %v9816_v18 = vpop.f32.mrf.mxu1  ;;  %v19957_v42 = vpop.f32.mrf.mxu0 }
 0x67f   : > { %v9828_v36 = vrot.slane %v9821_v26, %v19237_v24  ;;  %v10285_v62 = vrot.slane %v10278_v21, %v19237_v24 }
 0x680   : > { %v9817_v14 = vpop.f32.mrf.mxu1  ;;  %v19967_v51 = vpop.f32.mrf.mxu0  ;;  %14788 = vmatpush3.bf16.msra.mxu1 %v16294_v52 }
 0x681   : > { %v9835_v2 = vrot.slane %v9828_v36, %v19237_v24  ;;  %v10991_v7 = vcombine.low %v19957_v42, %v19967_v51  ;;  %14789 = vmatprep.subr.bf16.mxu1 %v16295_v61 }
 0x682   : > { %v9992_v34 = vpop.f32.mrf.mxu1  ;;  %v10986_v10 = vpop.f32.mrf.mxu0 }
 0x683   : > { %v9837_v50 = vadd.f32 %v9835_v2, %v9747_v38  ;;  %v16296_v2 = vld [vmem:[%s20301_s7 + $0x8] sm:$0xff]   ;;  %v16297_v10 = vld [vmem:[%s20301_s7 + $0x40] sm:$0xff]  }
 0x684   : > { %v9994_v37 = vpop.f32.mrf.mxu1  ;;  %v10987_v39 = vpop.f32.mrf.mxu0  ;;  %14790 = vmatpush3.bf16.msra.mxu1 %v16296_v2 }
 0x685   : > { %v9927_v57 = vadd.f32 %v9925_v29, %v9837_v50  ;;  %v10001_v48 = vcombine.low %v9992_v34, %v9994_v37  ;;  %v10458_v50 = vrot.slane %v10451_v23, %v19237_v24  ;;  %14791 = vmatprep.subr.bf16.mxu1 %v16297_v10 }
 0x686   : > { %v9996_v63 = vpop.f32.mrf.mxu1  ;;  %v19982_v46 = vpop.f32.mrf.mxu0 }
 0x687   : > { %v10008_v4 = vrot.slane %v10001_v48, %v19237_v24  ;;  %v16298_v48 = vld [vmem:[%s20301_s7] sm:$0xff]   ;;  %v10465_v9 = vrot.slane %v10458_v50, %v19237_v24 }
 0x688   : > { %v9997_v59 = vpop.f32.mrf.mxu1  ;;  %v19992_v47 = vpop.f32.mrf.mxu0  ;;  %14792 = vmatpush3.bf16.msra.mxu1 %v16298_v48 }
 0x689   : > { %v10015_v31 = vrot.slane %v10008_v4, %v19237_v24  ;;  %v11171_v28 = vcombine.low %v19982_v46, %v19992_v47 }
 0x68a   : > { %v10172_v60 = vpop.f32.mrf.mxu1  ;;  %v11166_v32 = vpop.f32.mrf.mxu0 }
 0x68b   : > { %v10017_v35 = vadd.f32 %v10015_v31, %v9927_v57  ;;  %v10638_v32 = vrot.slane %v10631_v53, %v19237_v24 }
 0x68c   : > { %v10174_v16 = vpop.f32.mrf.mxu1  ;;  %v11167_v27 = vpop.f32.mrf.mxu0 }
 0x68d   : > { %v10107_v33 = vadd.f32 %v10105_v11, %v10017_v35  ;;  %v10181_v44 = vcombine.low %v10172_v60, %v10174_v16  ;;  %v10645_v6 = vrot.slane %v10638_v32, %v19237_v24 }
 0x68e   : > { %v10176_v43 = vpop.f32.mrf.mxu1  ;;  %v20007_v40 = vpop.f32.mrf.mxu0 }
 0x68f   : > { %v10188_v19 = vrot.slane %v10181_v44, %v19237_v24 }
 0x690   : > { %v10177_v58 = vpop.f32.mrf.mxu1  ;;  %v20017_v5 = vpop.f32.mrf.mxu0 }
 0x691   : > { %v10195_v38 = vrot.slane %v10188_v19, %v19237_v24  ;;  %v11351_v26 = vcombine.low %v20007_v40, %v20017_v5  ;;  %v10818_v58 = vrot.slane %v10811_v0, %v19237_v24 }
 0x692   : > { %v10352_v18 = vpop.f32.mrf.mxu1  ;;  %v11346_v30 = vpop.f32.mrf.mxu0 }
 0x693   : > { %v10197_v54 = vadd.f32 %v10195_v38, %v10107_v33  ;;  %v10825_v61 = vrot.slane %v10818_v58, %v19237_v24 }
 0x694   : > { %v10354_v36 = vpop.f32.mrf.mxu1  ;;  %v11347_v14 = vpop.f32.mrf.mxu0 }
 0x695   : > { %v10287_v49 = vadd.f32 %v10285_v62, %v10197_v54  ;;  %v10361_v34 = vcombine.low %v10352_v18, %v10354_v36 }
 0x696   : > { %v10356_v41 = vpop.f32.mrf.mxu1  ;;  %v20038_v29 = vpop.f32.mrf.mxu0 }
 0x697   : > { %v10368_v37 = vrot.slane %v10361_v34, %v19237_v24  ;;  %v10998_v34 = vrot.slane %v10991_v7, %v19237_v24 }
 0x698   : > { %v10357_v39 = vpop.f32.mrf.mxu1  ;;  %v20045_v57 = vpop.f32.mrf.mxu0 }
 0x699   : > { %v10375_v12 = vrot.slane %v10368_v37, %v19237_v24  ;;  %v11531_v63 = vcombine.low %v20038_v29, %v20045_v57 }
 0x69a   : > { %v10532_v17 = vpop.f32.mrf.mxu1  ;;  %v11526_v20 = vpop.f32.mrf.mxu0 }
 0x69b   : > { %v10377_v3 = vadd.f32 %v10375_v12, %v10287_v49  ;;  %v11538_v40 = vrot.slane %v11531_v63, %v19237_v24 }
 0x69c   : > { %v10534_v23 = vpop.f32.mrf.mxu1  ;;  %v11527_v4 = vpop.f32.mrf.mxu0 }
 0x69d   : > { %v10467_v59 = vadd.f32 %v10465_v9, %v10377_v3  ;;  %v10541_v31 = vcombine.low %v10532_v17, %v10534_v23  ;;  %v11005_v17 = vrot.slane %v10998_v34, %v19237_v24  ;;  %v11178_v4 = vrot.slane %v11171_v28, %v19237_v24 }
 0x69e   : > { %v10536_v56 = vpop.f32.mrf.mxu1  ;;  %v20054_v60 = vpop.f32.mrf.mxu0 }
 0x69f   : > { %v10548_v15 = vrot.slane %v10541_v31, %v19237_v24 }
 0x6a0   : > { %v10537_v11 = vpop.f32.mrf.mxu1  ;;  %v20061_v35 = vpop.f32.mrf.mxu0 }
 0x6a1   : > { %v10555_v16 = vrot.slane %v10548_v15, %v19237_v24  ;;  %v11711_v27 = vcombine.low %v20054_v60, %v20061_v35 }
 0x6a2   : > { %v10712_v33 = vpop.f32.mrf.mxu1  ;;  %v11706_v44 = vpop.f32.mrf.mxu0 }
 0x6a3   : > { %v10557_v43 = vadd.f32 %v10555_v16, %v10467_v59  ;;  %v11718_v29 = vrot.slane %v11711_v27, %v19237_v24 }
 0x6a4   : > { %v10714_v55 = vpop.f32.mrf.mxu1  ;;  %v11707_v21 = vpop.f32.mrf.mxu0 }
 0x6a5   : > { %v10647_v19 = vadd.f32 %v10645_v6, %v10557_v43  ;;  %v10721_v45 = vcombine.low %v10712_v33, %v10714_v55  ;;  %v11185_v33 = vrot.slane %v11178_v4, %v19237_v24  ;;  %v11358_v21 = vrot.slane %v11351_v26, %v19237_v24 }
 0x6a6   : > { %v10716_v25 = vpop.f32.mrf.mxu1  ;;  %v20067_v53 = vpop.f32.mrf.mxu0 }
 0x6a7   : > { %v10728_v38 = vrot.slane %v10721_v45, %v19237_v24 }
 0x6a8   : > { %v10717_v8 = vpop.f32.mrf.mxu1  ;;  %v20074_v18 = vpop.f32.mrf.mxu0 }
 0x6a9   : > { %v10735_v30 = vrot.slane %v10728_v38, %v19237_v24  ;;  %v11891_v52 = vcombine.low %v20067_v53, %v20074_v18 }
 0x6aa   : > { %v10892_v62 = vpop.f32.mrf.mxu1  ;;  %v11886_v54 = vpop.f32.mrf.mxu0 }
 0x6ab   : > { %v10737_v36 = vadd.f32 %v10735_v30, %v10647_v19  ;;  %v11365_v30 = vrot.slane %v11358_v21, %v19237_v24  ;;  %v11898_v60 = vrot.slane %v11891_v52, %v19237_v24 }
 0x6ac   : > { %v10894_v14 = vpop.f32.mrf.mxu1  ;;  %v11887_v2 = vpop.f32.mrf.mxu0 }
 0x6ad   : > { %v10827_v49 = vadd.f32 %v10825_v61, %v10737_v36  ;;  %v10901_v1 = vcombine.low %v10892_v62, %v10894_v14  ;;  %v11905_v21 = vrot.slane %v11898_v60, %v19237_v24 }
 0x6ae   : > { %v10896_v22 = vpop.f32.mrf.mxu1  ;;  %v20080_v0 = vpop.f32.mrf.mxu0 }
 0x6af   : > { %v10908_v10 = vrot.slane %v10901_v1, %v19237_v24 }
 0x6b0   : > { %v10897_v41 = vpop.f32.mrf.mxu1  ;;  %v20087_v50 = vpop.f32.mrf.mxu0 }
 0x6b1   : > { %v10915_v37 = vrot.slane %v10908_v10, %v19237_v24  ;;  %v12071_v39 = vcombine.low %v20080_v0, %v20087_v50  ;;  %v11545_v41 = vrot.slane %v11538_v40, %v19237_v24 }
 0x6b2   : > { %v11072_v48 = vpop.f32.mrf.mxu1  ;;  %v12066_v12 = vpop.f32.mrf.mxu0 }
 0x6b3   : > { %v10917_v20 = vadd.f32 %v10915_v37, %v10827_v49  ;;  %v12078_v53 = vrot.slane %v12071_v39, %v19237_v24 }
 0x6b4   : > { %v11074_v9 = vpop.f32.mrf.mxu1  ;;  %v12067_v3 = vpop.f32.mrf.mxu0 }
 0x6b5   : > { %v11007_v23 = vadd.f32 %v11005_v17, %v10917_v20  ;;  %v11081_v42 = vcombine.low %v11072_v48, %v11074_v9 }
 0x6b6   : > { %v11076_v51 = vpop.f32.mrf.mxu1  ;;  %v20093_v7 = vpop.f32.mrf.mxu0 }
 0x6b7   : > { %v11088_v59 = vrot.slane %v11081_v42, %v19237_v24 }
 0x6b8   : > { %v11077_v31 = vpop.f32.mrf.mxu1  ;;  %v20100_v56 = vpop.f32.mrf.mxu0 }
 0x6b9   : > { %v11095_v32 = vrot.slane %v11088_v59, %v19237_v24  ;;  %v12251_v15 = vcombine.low %v20093_v7, %v20100_v56  ;;  %v11725_v59 = vrot.slane %v11718_v29, %v19237_v24 }
 0x6ba   : > { %v11252_v11 = vpop.f32.mrf.mxu1  ;;  %v12246_v16 = vpop.f32.mrf.mxu0 }
 0x6bb   : > { %v11097_v44 = vadd.f32 %v11095_v32, %v11007_v23  ;;  %v12258_v0 = vrot.slane %v12251_v15, %v19237_v24 }
 0x6bc   : > { %v11254_v6 = vpop.f32.mrf.mxu1  ;;  %v12247_v43 = vpop.f32.mrf.mxu0 }
 0x6bd   : > { %v11187_v55 = vadd.f32 %v11185_v33, %v11097_v44  ;;  %v11261_v46 = vcombine.low %v11252_v11, %v11254_v6 }
 0x6be   : > { %v11256_v47 = vpop.f32.mrf.mxu1  ;;  %v20106_v28 = vpop.f32.mrf.mxu0 }
 0x6bf   : > { %v11268_v19 = vrot.slane %v11261_v46, %v19237_v24 }
 0x6c0   : > { %v11257_v45 = vpop.f32.mrf.mxu1  ;;  %v20113_v25 = vpop.f32.mrf.mxu0 }
 0x6c1   : > { %v11275_v58 = vrot.slane %v11268_v19, %v19237_v24 }
 0x6c2   : > { %v11432_v38 = vpop.f32.mrf.mxu1  ;;  %v12426_v8 = vpop.f32.mrf.mxu0 }
 0x6c3   : > { %v11277_v62 = vadd.f32 %v11275_v58, %v11187_v55 }
 0x6c4   : > { %v11434_v54 = vpop.f32.mrf.mxu1  ;;  %v12427_v61 = vpop.f32.mrf.mxu0 }
 0x6c5   : > { %v11367_v36 = vadd.f32 %v11365_v30, %v11277_v62  ;;  %v11441_v14 = vcombine.low %v11432_v38, %v11434_v54 }
 0x6c6   : > { %v11436_v2 = vpop.f32.mrf.mxu1  ;;  %v20117_v49 = vpop.f32.mrf.mxu0 }
 0x6c7   : > { %v11448_v5 = vrot.slane %v11441_v14, %v19237_v24  ;;  %v12085_v2 = vrot.slane %v12078_v53, %v19237_v24 }
 0x6c8   : > { %v11437_v26 = vpop.f32.mrf.mxu1  ;;  %v20124_v1 = vpop.f32.mrf.mxu0 }
 0x6c9   : > { %v11455_v22 = vrot.slane %v11448_v5, %v19237_v24 }
 0x6ca   : > { %v11612_v34 = vpop.f32.mrf.mxu1  ;;  %v12606_v10 = vpop.f32.mrf.mxu0 }
 0x6cb   : > { %v11457_v37 = vadd.f32 %v11455_v22, %v11367_v36 }
 0x6cc   : > { %v11614_v48 = vpop.f32.mrf.mxu1  ;;  %v12607_v12 = vpop.f32.mrf.mxu0 }
 0x6cd   : > { %v11547_v17 = vadd.f32 %v11545_v41, %v11457_v37  ;;  %v11621_v20 = vcombine.low %v11612_v34, %v11614_v48  ;;  %v12265_v48 = vrot.slane %v12258_v0, %v19237_v24  ;;  %v12431_v12 = vcombine.low %v20106_v28, %v20113_v25 }
 0x6ce   : > { %v11616_v9 = vpop.f32.mrf.mxu1  ;;  %v20128_v3 = vpop.f32.mrf.mxu0 }
 0x6cf   : > { %v11628_v57 = vrot.slane %v11621_v20, %v19237_v24 }
 0x6d0   : > { %v11617_v63 = vpop.f32.mrf.mxu1  ;;  %v20135_v23 = vpop.f32.mrf.mxu0 }
 0x6d1   : > { %v11635_v42 = vrot.slane %v11628_v57, %v19237_v24  ;;  %v12438_v63 = vrot.slane %v12431_v12, %v19237_v24 }
 0x6d2   : > { %v11792_v51 = vpop.f32.mrf.mxu1  ;;  %v12786_v4 = vpop.f32.mrf.mxu0 }
 0x6d3   : > { %v11637_v31 = vadd.f32 %v11635_v42, %v11547_v17 }
 0x6d4   : > { %v11794_v32 = vpop.f32.mrf.mxu1  ;;  %v12787_v11 = vpop.f32.mrf.mxu0 }
 0x6d5   : > { %v11727_v16 = vadd.f32 %v11725_v59, %v11637_v31  ;;  %v11801_v33 = vcombine.low %v11792_v51, %v11794_v32  ;;  %v12445_v51 = vrot.slane %v12438_v63, %v19237_v24  ;;  %v13213_v63 = vld [vmem:[%s20302_s8] sm:$0x1] }
 0x6d6   : > { %v11796_v44 = vpop.f32.mrf.mxu1  ;;  %v20139_v6 = vpop.f32.mrf.mxu0 }
 0x6d7   : > { %v11808_v35 = vrot.slane %v11801_v33, %v19237_v24  ;;  %v12611_v33 = vcombine.low %v20117_v49, %v20124_v1 }
 0x6d8   : > { %v11797_v27 = vpop.f32.mrf.mxu1  ;;  %v20146_v43 = vpop.f32.mrf.mxu0 }
 0x6d9   : > { %v11815_v55 = vrot.slane %v11808_v35, %v19237_v24 }
 0x6da   : > { %v11972_v46 = vpop.f32.mrf.mxu1  ;;  %v12966_v47 = vpop.f32.mrf.mxu0 }
 0x6db   : > { %v11817_v19 = vadd.f32 %v11815_v55, %v11727_v16  ;;  %v12618_v55 = vrot.slane %v12611_v33, %v19237_v24 }
 0x6dc   : > { %v11974_v45 = vpop.f32.mrf.mxu1  ;;  %v12967_v58 = vpop.f32.mrf.mxu0 }
 0x6dd   : > { %v11907_v38 = vadd.f32 %v11905_v21, %v11817_v19  ;;  %v11981_v8 = vcombine.low %v11972_v46, %v11974_v45  ;;  %v12791_v21 = vcombine.low %v20128_v3, %v20135_v23  ;;  %v12625_v58 = vrot.slane %v12618_v55, %v19237_v24 }
 0x6de   : > { %v11976_v30 = vpop.f32.mrf.mxu1  ;;  %v20150_v62 = vpop.f32.mrf.mxu0 }
 0x6df   : > { %v11988_v18 = vrot.slane %v11981_v8, %v19237_v24  ;;  %v12798_v1 = vrot.slane %v12791_v21, %v19237_v24 }
 0x6e0   : > { %v11977_v52 = vpop.f32.mrf.mxu1  ;;  %v20157_v54 = vpop.f32.mrf.mxu0 }
 0x6e1   : > { %v11995_v61 = vrot.slane %v11988_v18, %v19237_v24  ;;  %v12971_v18 = vcombine.low %v20139_v6, %v20146_v43  ;;  %v12805_v3 = vrot.slane %v12798_v1, %v19237_v24 }
 0x6e2   : > { %v12152_v36 = vpop.f32.mrf.mxu1  ;;  %v13146_v14 = vpop.f32.mrf.mxu0 }
 0x6e3   : > { %v11997_v40 = vadd.f32 %v11995_v61, %v11907_v38 }
 0x6e4   : > { %v12154_v5 = vpop.f32.mrf.mxu1  ;;  %v13147_v26 = vpop.f32.mrf.mxu0 }
 0x6e5   : > { %v12087_v22 = vadd.f32 %v12085_v2, %v11997_v40  ;;  %v12161_v34 = vcombine.low %v12152_v36, %v12154_v5  ;;  %v12978_v2 = vrot.slane %v12971_v18, %v19237_v24  ;;  %v13151_v40 = vcombine.low %v20150_v62, %v20157_v54 }
 0x6e6   : > { %v12156_v10 = vpop.f32.mrf.mxu1  ;;  %v13171_v62 = vsub.s32 0, %v19226_v13  ;;  %v13175_v54 = vsub.s32 1, %v19226_v13 }
 0x6e7   : > { %v12168_v50 = vrot.slane %v12161_v34, %v19237_v24  ;;  %v12985_v6 = vrot.slane %v12978_v2, %v19237_v24  ;;  %v13158_v43 = vrot.slane %v13151_v40, %v19237_v24 }
 0x6e8   : > { %v12157_v39 = vpop.f32.mrf.mxu1 }
 0x6e9   : > { %v12175_v41 = vrot.slane %v12168_v50, %v19237_v24 }
 0x6ea   : > { %v12332_v37 = vpop.f32.mrf.mxu1 }
 0x6eb   : > { %v12177_v17 = vadd.f32 %v12175_v41, %v12087_v22 }
 0x6ec   : > { %v12334_v20 = vpop.f32.mrf.mxu1 }
 0x6ed   : > { %v12267_v9 = vadd.f32 %v12265_v48, %v12177_v17  ;;  %v12341_v29 = vcombine.low %v12332_v37, %v12334_v20  ;;  %v13165_v37 = vrot.slane %v13158_v43, %v19237_v24 }
 0x6ee   : > { %v12336_v57 = vpop.f32.mrf.mxu1 }
 0x6ef   : > { %v12348_v7 = vrot.slane %v12341_v29, %v19237_v24 }
 0x6f0   : > { %v12337_v56 = vpop.f32.mrf.mxu1 }
 0x6f1   : > { %v12355_v15 = vrot.slane %v12348_v7, %v19237_v24 }
 0x6f2   : > { %v12512_v42 = vpop.f32.mrf.mxu1 }
 0x6f3   : > { %v12357_v4 = vadd.f32 %v12355_v15, %v12267_v9 }
 0x6f4   : > { %v12514_v59 = vpop.f32.mrf.mxu1 }
 0x6f5   : > { %v12447_v31 = vadd.f32 %v12445_v51, %v12357_v4  ;;  %v12521_v32 = vcombine.low %v12512_v42, %v12514_v59 }
 0x6f6   : > { %v12516_v28 = vpop.f32.mrf.mxu1 }
 0x6f7   : > { %v12528_v11 = vrot.slane %v12521_v32, %v19237_v24 }
 0x6f8   : > { %v12517_v25 = vpop.f32.mrf.mxu1 }
 0x6f9   : > { %v12535_v60 = vrot.slane %v12528_v11, %v19237_v24 }
 0x6fa   : > { %v12692_v16 = vpop.f32.mrf.mxu1 }
 0x6fb   : > { %v12537_v19 = vadd.f32 %v12535_v60, %v12447_v31 }
 0x6fc   : > { %v12694_v44 = vpop.f32.mrf.mxu1 }
 0x6fd   : > { %v12701_v35 = vcombine.low %v12692_v16, %v12694_v44  ;;  %v12627_v8 = vadd.f32 %v12625_v58, %v12537_v19 }
 0x6fe   : > { %v12696_v27 = vpop.f32.mrf.mxu1 }
 0x6ff   : > { %v12708_v46 = vrot.slane %v12701_v35, %v19237_v24 }
 0x700   : > { %v12697_v47 = vpop.f32.mrf.mxu1 }
 0x701   : > { %v12715_v38 = vrot.slane %v12708_v46, %v19237_v24 }
 0x702   : > { %v12872_v45 = vpop.f32.mrf.mxu1 }
 0x703   : > { %v12717_v52 = vadd.f32 %v12715_v38, %v12627_v8 }
 0x704   : > { %v12874_v49 = vpop.f32.mrf.mxu1 }
 0x705   : > { %v12881_v30 = vcombine.low %v12872_v45, %v12874_v49  ;;  %v12807_v5 = vadd.f32 %v12805_v3, %v12717_v52 }
 0x706   : > { %v12876_v53 = vpop.f32.mrf.mxu1 }
 0x707   : > { %v12888_v61 = vrot.slane %v12881_v30, %v19237_v24 }
 0x708   : > { %v12877_v36 = vpop.f32.mrf.mxu1 }
 0x709   : > { %v12895_v23 = vrot.slane %v12888_v61, %v19237_v24 }
 0x70a   : > { %v13052_v14 = vpop.f32.mrf.mxu1 }
 0x70b   : > { %v12897_v22 = vadd.f32 %v12895_v23, %v12807_v5 }
 0x70c   : > { %v13054_v26 = vpop.f32.mrf.mxu1 }
 0x70d   : > { %v13061_v34 = vcombine.low %v13052_v14, %v13054_v26  ;;  %v12987_v39 = vadd.f32 %v12985_v6, %v12897_v22 }
 0x70e   : > { %v13056_v10 = vpop.f32.mrf.mxu1 }
 0x70f   : > { %v13068_v0 = vrot.slane %v13061_v34, %v19237_v24 }
 0x710   : > { %v13057_v50 = vpop.f32.mrf.mxu1 }
 0x711   : > { %v13075_v41 = vrot.slane %v13068_v0, %v19237_v24 }
 0x713   : > { %v13077_v48 = vadd.f32 %v13075_v41, %v12987_v39 }
 0x715   : > { %v13167_v12 = vadd.f32 %v13165_v37, %v13077_v48 }
 0x717   : > { %v13172_v17 = vrot.slane %v13167_v12, %v13171_v62  ;;  %v13176_v20 = vrot.slane %v13167_v12, %v13175_v54 }
 0x719   : > { %v13179_v9 = vpack.c.bf16 %v13172_v17, %v13172_v17  ;;  %v13180_v29 = vpack.c.bf16 %v13176_v20, %v13176_v20 }
 0x71b   : > { %13342 = vmatprep.mubr.bf16.mxu1 %v13180_v29 }
 0x71c   : > { %13343 = vmatmul.mubr.bf16.vlgmr.msra.gmra.mxu1 %v13179_v9 }
 0x7dc   : > { %v14793_v57 = vpop.f32.mrf.mxu1 }
 0x7de   : > { %v14794_v7 = vpop.f32.mrf.mxu1 }
 0x7df   : > { %v14795_v24 = vadd.f32 %v14794_v7, %v14793_v57 }
 0x7e0   : > { %v14796_v56 = vpop.f32.mrf.mxu1 }
 0x7e1   : > { %v13345_v15 = vadd.f32 %v14795_v24, %v13213_v63 }
 0x7e2   : > { %v14797_v42 = vpop.f32.mrf.mxu1 }
 0x7e3   : > { %13368 = vrot.lane.b32.xlu1 %v13345_v15, %s16403_s30  ;;  %v13351_v13 = vsel %vm13350_vm4, %v13345_v15, -inf  ;;  %s16307_s30 = scalar_lea.vmem %s20222_s24, 16 }
 0x7e4   : > { %13352 = vmax.xlane.f32.xlu0 %v13351_v13  ;;  %p16308_p11 = scmp.ne.s32.totalorder %s20222_s24, %s16307_s30  ;;  %p16315_p1 = scmp.lt.s32.totalorder %s16313_s2, %s16307_s30 }
 0x7e6   : > { %p16309_p12 = pnand %p16308_p11, %p16504_p5  ;;  %p16316_p2 = por %p16315_p1, %p16314_p0 }
 0x7e8   : > { %p16310_p13 = pneg %p16309_p12 }
 0x7ea   : > { %p16317_p3 = pnand %p16316_p2, %p16310_p13 }
 0x855   : > { %v13369_v51 = vpop.permute.xlu1 %13368 }
 0x856   : > { %13372 = vst.msk [vmem:[%s401_s15] sm:$0x1] %vm13371_vm5, %v13369_v51 }
 0x86d   : > { %v13353_v4 = vpop.xlane.xlu0 %13352 }
 0x86e   : > { %v13354_v59 = vsub.f32 %v13345_v15, %v13353_v4 }
 0x870   : > { %v13355_v31 = vmul.f32 1.442695, %v13354_v59 }
 0x872   : > { %16299 = vpow2.f32 %v13355_v31 }
 0x87f   : > { %v16300_v32 = vpop.eup %16299 }
 0x880   : > { %v13357_v28 = vsel %vm13350_vm4, %v16300_v32, 0.0 }
 0x881   : > { %13358 = vadd.xlane.f32.xlu0 %v13357_v28 }
 0x90a   : > { %v13359_v25 = vpop.xlane.xlu0 %13358 }
 0x90b   : > { %16301 = vrcp.f32 %v13359_v25 }
 0x90c   : > { %16303 = vlog2.f32 %v13359_v25 }
 0x918   : > { %v16302_v11 = vpop.eup %16301 }
 0x919   : > { %v16304_v16 = vpop.eup %16303  ;;  %v13361_v33 = vmul.f32 %v16302_v11, %v16300_v32 }
 0x91a   : > { %v13363_v44 = vmul.f32 0.6931472, %v16304_v16 }
 0x91b   : > { %13365 = vst.msk [vmem:[%s382_s14] sm:$0x1] %vm13350_vm4, %v13361_v33 }
 0x91c   : > { %v13364_v60 = vsub.f32 %v13354_v59, %v13363_v44 }
 0x91d   : > { %16320 = shalt.err (!%p16317_p3)
}
 0x91e   : > { %s16321_s16 = scalar_lea.hbm %s20220_s13, 16  ;;  %s16325_s15 = scalar_lea.hbm %s20303_s9, 32 }
 0x91f   : > { %p16322_p4 = scmp.ne.s32.totalorder %s20220_s13, %s16321_s16  ;;  %p16326_p9 = scmp.lt.s32.totalorder %s20220_s13, %s20303_s9 }
 0x920   : > { %p16327_p10 = scmp.lt.s32.totalorder %s16325_s15, %s16321_s16 }
 0x921   : > { %p16323_p7 = pnand %p16322_p4, %p16504_p5 }
 0x922   : > { %p16328_p11 = por %p16327_p10, %p16326_p9 }
 0x923   : > { %p16324_p8 = pneg %p16323_p7 }
 0x925   : > { %p16329_p12 = pnand %p16328_p11, %p16324_p8 }
 0x927   : > { %16332 = shalt.err (!%p16329_p12)
}
 0x928   : > { %15648 = dma.vmem_to_hbm [thread:$0]  (%p16504_p5), %s20222_s24, 16, %s20220_s13, %s13374_s29  }
 0x929   : > { %s20323_s1 = scalar_lea.vmem [#allocation6], %s20210_s22  ;;  %s13378_s2 = scalar_lea.sflag [#allocation7], %s20210_s22 }
 0x92a   : > { %13366 = vst.msk [vmem:[%s20323_s1] sm:$0x1] %vm13350_vm4, %v13364_v60  ;;  %s16333_s3 = scalar_lea.vmem %s20230_s25, 16  ;;  %s16405_s30 = smov [#allocation6]  }
 0x92b   : > { %p16334_p13 = scmp.ne.s32.totalorder %s20230_s25, %s16333_s3  ;;  %s16337_s16 = sshll.u32 %s16405_s30, 4  ;;  %s16338_s16 = int_to_ptr.vmem [resolvable:$false] %s16337_s16 }
 0x92c   : > { %s16339_s14 = scalar_lea.vmem %s16338_s16, 32  ;;  %p16340_p2 = scmp.lt.s32.totalorder %s20230_s25, %s16338_s16 }
 0x92d   : > { %p16335_p0 = pnand %p16334_p13, %p16504_p5  ;;  %p16341_p3 = scmp.lt.s32.totalorder %s16339_s14, %s16333_s3 }
 0x92f   : > { %p16336_p1 = pneg %p16335_p0  ;;  %p16342_p4 = por %p16341_p3, %p16340_p2 }
 0x931   : > { %p16343_p7 = pnand %p16342_p4, %p16336_p1 }
 0x933   : > { %16346 = shalt.err (!%p16343_p7)
}
 0x934   : > { %s16347_s24 = scalar_lea.hbm %s20228_s0, 16  ;;  %s16351_s13 = scalar_lea.hbm %s20304_s10, 32 }
 0x935   : > { %p16348_p8 = scmp.ne.s32.totalorder %s20228_s0, %s16347_s24  ;;  %p16352_p11 = scmp.lt.s32.totalorder %s20228_s0, %s20304_s10 }
 0x936   : > { %p16353_p12 = scmp.lt.s32.totalorder %s16351_s13, %s16347_s24 }
 0x937   : > { %p16349_p9 = pnand %p16348_p8, %p16504_p5 }
 0x938   : > { %p16354_p13 = por %p16353_p12, %p16352_p11 }
 0x939   : > { %p16350_p10 = pneg %p16349_p9 }
 0x93b   : > { %p16355_p0 = pnand %p16354_p13, %p16350_p10 }
 0x93d   : > { %16358 = shalt.err (!%p16355_p0)
}
 0x93e   : > { %15649 = dma.vmem_to_hbm [thread:$0]  (%p16504_p5), %s20230_s25, 16, %s20228_s0, %s13378_s2  }
 0x93f PF: > { %p15659_p1 = scmp.ge.s32.totalorder %s16397_s20, 2  ;;  %s13421_s12 = sand.u32 1, %s16385_s17  }
 0x940   : > { %s13422_s1 = scalar_lea.sflag [#allocation5], %s13421_s12 }
 0x941   : > { %p15653_p2 = pnand %p15659_p1, %p16508_p6 }
 0x943   : > { %p15654_p3 = pneg %p15653_p2 }
 0x945   : > { %16376 = dma.done.wait (%p15654_p3), %s13422_s1, 16  }
 0x946   : > { %16378 = vsyncadd (%p15654_p3), %s13422_s1, 4294967280  ;;  %s13430_s3 = scalar_lea.sflag [#allocation7], %s13421_s12 }
 0x947   : > { %16380 = dma.done.wait (%p15654_p3), %s13430_s3, 16  }
 0x948   : > { %16382 = vsyncadd (%p15654_p3), %s13430_s3, 4294967280  ;;  %p25_p5 = scmp.ge.s32.totalorder %s16491_s23, 4   ;;  %s20324_s17 = smov %s16389_s18 }
 0x949   : > { %s20325_s18 = smov %s16393_s19  ;;  %s20326_s19 = smov %s16502_s26 }
 0x94a   : > { %s20327_s20 = smov %s16491_s23  ;;  %27 = sbr.rel (!%p25_p5) target bundleno = 10 (0xa), region = 208 }
 0x94f   :  { %13440 = vsyncpa [#allocation5], 1 }
 0x950   :  { %13442 = vsyncpa [#allocation5 + $0x1], 1 }
 0x951   :  { %13443 = vsyncpa [#allocation7], 1 }
 0x952   :  { %13445 = vsyncpa [#allocation7 + $0x1], 1 }

</bundles_post_ra>
